<compile_context>
chip_gen: v5e
topology: v5e:2x2
jax: 0.10.0
libtpu: 0.0.40
codegen_flags: <defaults>
</compile_context>

<pallas_src>
import functools

import numpy as np
import jax
import jax.numpy as jnp
from jax.experimental import pallas as pl
from jax.experimental.pallas import tpu as pltpu

CP = 128   # padded channel width (hidden width 64 zero-padded to a full 128-lane vreg)
KP = 128   # padded class dim (num_classes zero-padded; sliced off in the wrapper)


def _round_up(v, m):
    return (v + m - 1) // m * m


def conv_geometry(H, W):
    """Flat-spatial layout constants.

    Each image occupies `rp` contiguous rows of a (rows, CP) buffer:
        rows [0, lead)        zero  (alignment lead so p0 is a multiple of 8)
        rows [lead, lead+P)   the zero-padded (H+2, W+2) image, row-major, P=(H+2)(W+2)
        rows [lead+P, rp)     zero  (alignment tail)
    A 3x3/pad=1 conv output at padded position p only needs rows p±(W+3), so each tap
    is a contiguous slice of this flat buffer; outputs at non-interior positions are
    garbage and get zeroed by a border mask.
    """
    Wp = W + 2
    P = (H + 2) * Wp
    lead = (-(W + 3)) % 8                 # makes p0 = lead + W + 3 a multiple of 8
    p0 = lead + W + 3                     # first interior output row (image 0)
    m_img = _round_up(H * Wp - 2, 8)      # output rows computed per image
    rp = _round_up(lead + P, 8)           # row stride per image
    rp = max(rp, _round_up(p0 + m_img + (W + 3), 8))   # keep tap reads in-bounds
    return P, Wp, lead, p0, m_img, rp


def _border_mask(H, W, Nb, lead, rp):
    """(M, 1) f32: 1.0 at rows that are interior conv-output positions, else 0.0."""
    Wp = W + 2
    P = (H + 2) * Wp
    p0 = lead + W + 3
    M = (Nb - 1) * rp + _round_up(H * Wp - 2, 8)
    p = p0 + np.arange(M)
    n = p // rp
    r = p - n * rp - lead
    y, x = r // Wp, r % Wp
    interior = (r >= 0) & (r < P) & (y >= 1) & (y <= H) & (x >= 1) & (x <= W)
    return jnp.asarray(interior.reshape(M, 1).astype(np.float32))


# ----------------------------------------------------------------------------
# Fused kernel: [Conv3x3 + ReLU] * L  ->  AvgPool(1)  ->  Flatten  ->  Linear
# ----------------------------------------------------------------------------
def fused_depth_cnn_kernel(x_ref, w_ref, b_ref, mask_ref, fcw_ref, fcb_ref,
                           o_ref, *bufs, num_layers, H, W, Nb, lead, rp):
    """One batch block (Nb images) per grid step; the whole network stays in VMEM.

    x_ref   : (Nb*rp, CP)        bf16  flat padded images (wrapper pre-padded)
    w_ref   : (L*9, CP, CP)      bf16  per-tap conv weights, zero-padded channels
    b_ref   : (L, 1, CP)         f32   conv biases, zero-padded
    mask_ref: (M, 1)             f32   0/1 interior mask for the computed row range
    fcw_ref : (CP, KP)           f32   FC weight, zero-padded
    fcb_ref : (1, KP)            f32   FC bias, zero-padded
    o_ref   : (Nb, 1, KP)        f32   padded logits (sliced in the wrapper)
    bufs    : up to 2 x (Nb*rp, CP) bf16 ping-pong activation scratch buffers
    """
    Wp = W + 2
    p0 = lead + W + 3
    m_img = H * Wp - 2                                # valid output rows per image
    M = (Nb - 1) * rp + _round_up(m_img, 8)           # rows computed per conv layer
    rows = Nb * rp

    mask = mask_ref[...]                              # (M, 1) f32

    # Zero only the tiny fringes of the scratch buffers (rows the conv taps read but
    # that no store ever writes).  ~48 rows of bf16 per buffer per step -- cheap and
    # safe under megacore splitting (scratch is per-core, so a one-time init at
    # program_id==0 would leave the other core's scratch uninitialized).
    for buf in bufs:
        buf[0:p0, :] = jnp.zeros((p0, CP), buf.dtype)
        if rows > p0 + M:
            buf[p0 + M:rows, :] = jnp.zeros((rows - p0 - M, CP), buf.dtype)

    src = x_ref                                       # layer 0 reads the DMA'd input
    feat = None
    for layer in range(num_layers):                   # static unroll (L is compile-time)
        acc = jnp.zeros((M, CP), jnp.float32)
        for t in range(9):                            # 9 per-tap MXU matmuls, K=128 each
            ky, kx = t // 3, t % 3
            d = (ky - 1) * Wp + (kx - 1)
            lhs = src[pl.ds(p0 + d, M), :]            # contiguous (M, CP) bf16 slice
            acc = acc + jnp.dot(lhs, w_ref[layer * 9 + t],
                                preferred_element_type=jnp.float32)
        # bias + ReLU in f32; mask zeroes garbage at non-interior rows (this also keeps
        # the padding border zero for the next layer's taps).
        out = jnp.maximum(acc + b_ref[layer], 0.0) * mask
        if layer + 1 < num_layers:
            dst = bufs[layer % len(bufs)]
            dst[pl.ds(p0, M), :] = out.astype(dst.dtype)   # single aligned bf16 store
            src = dst
        else:
            feat = out                                     # last layer stays in f32

    # AdaptiveAvgPool2d(1) + Flatten + Linear, fused (feature map never hits HBM).
    # Each image's interior rows form a contiguous 286-row window; masked border rows
    # inside the window are zero, so a plain sum / (H*W) is the exact average pool.
    pooled = jnp.concatenate(
        [jnp.sum(feat[n * rp:n * rp + m_img, :], axis=0, keepdims=True)
         for n in range(Nb)], axis=0) * (1.0 / float(H * W))          # (Nb, CP) f32
    logits = jnp.dot(pooled, fcw_ref[...],
                     preferred_element_type=jnp.float32) + fcb_ref[...]
    o_ref[...] = logits.reshape(Nb, 1, KP).astype(o_ref.dtype)


# ----------------------------------------------------------------------------
# Wrappers
# ----------------------------------------------------------------------------
def _choose_batch_block(N):
    """Largest Nb <= 8 dividing N that keeps >= 2 grid steps (v7x has 2 TensorCores)."""
    best = 1
    for nb in range(1, min(N, 8) + 1):
        if N % nb == 0 and (N // nb >= 2 or N == 1):
            best = nb
    return best


def depth_cnn_fused_call(x_flat, packed, mask, *, N, H, W, Nb, lead, rp, num_layers):
    num_steps = N // Nb
    M = mask.shape[0]
    w_all, b_all = packed["conv_w"], packed["conv_b"]
    fc_w, fc_b = packed["fc_w"], packed["fc_b"]
    n_bufs = min(max(num_layers - 1, 0), 2)           # 0 if L==1, 1 if L==2, else 2

    kernel = functools.partial(
        fused_depth_cnn_kernel,
        num_layers=num_layers, H=H, W=W, Nb=Nb, lead=lead, rp=rp)

    flops = num_steps * (num_layers * 9 * 2 * M * CP * CP + 2 * Nb * CP * KP)
    bytes_accessed = (x_flat.size * 2 + w_all.size * 2 + b_all.size * 4
                      + mask.size * 4 + fc_w.size * 4 + fc_b.size * 4 + N * KP * 4)

    out = pl.pallas_call(
        kernel,
        out_shape=jax.ShapeDtypeStruct((N, 1, KP), jnp.float32),
        grid=(num_steps,),
        in_specs=[
            pl.BlockSpec((Nb * rp, CP), lambda n: (n, 0)),              # per-step images
            pl.BlockSpec((num_layers * 9, CP, CP), lambda n: (0, 0, 0)),  # conv W (resident)
            pl.BlockSpec((num_layers, 1, CP), lambda n: (0, 0, 0)),       # conv b
            pl.BlockSpec((M, 1), lambda n: (0, 0)),                       # border mask
            pl.BlockSpec((CP, KP), lambda n: (0, 0)),                     # fc W
            pl.BlockSpec((1, KP), lambda n: (0, 0)),                      # fc b
        ],
        out_specs=pl.BlockSpec((Nb, 1, KP), lambda n: (n, 0, 0)),
        scratch_shapes=[pltpu.VMEM((Nb * rp, CP), jnp.bfloat16)
                        for _ in range(n_bufs)],
        compiler_params=pltpu.CompilerParams(
            dimension_semantics=("parallel",)),
        cost_estimate=pl.CostEstimate(
            flops=flops, transcendentals=0, bytes_accessed=bytes_accessed),
    )(x_flat, w_all, b_all, mask, fc_w, fc_b)
    return out.reshape(N, KP)


@functools.partial(jax.jit, static_argnames=("num_classes",))
def depth_cnn_forward(x_nchw, packed, *, num_classes):
    """Matches DepthCNN.forward: [Conv3x3+ReLU]*L -> AvgPool(1) -> Flatten -> Linear."""
    N, C, H, W = x_nchw.shape
    num_layers = packed["conv_w"].shape[0] // 9
    P, _, lead, _, _, rp = conv_geometry(H, W)
    Nb = _choose_batch_block(N)

    # Pre-pad once (fused by XLA, tiny): NCHW -> NHWC, channels -> 128 lanes, +1 spatial
    # halo, flatten each padded image to `rp` rows, cast bf16 -> lane-dense per-step DMA.
    x = jnp.transpose(x_nchw, (0, 2, 3, 1))
    x = jnp.pad(x, ((0, 0), (1, 1), (1, 1), (0, CP - C)))
    x = x.reshape(N, P, CP)
    x = jnp.pad(x, ((0, 0), (lead, rp - lead - P), (0, 0)))
    x_flat = x.reshape(N * rp, CP).astype(jnp.bfloat16)

    mask = _border_mask(H, W, Nb, lead, rp)
    logits = depth_cnn_fused_call(x_flat, packed, mask, N=N, H=H, W=W,
                                  Nb=Nb, lead=lead, rp=rp, num_layers=num_layers)
    return logits[:, :num_classes]


# ----------------------------------------------------------------------------
# Parameter construction / packing
# ----------------------------------------------------------------------------
def init_depth_cnn_params(key, in_channels, num_classes, num_layers, hidden=64):
    """Deterministic synthetic params (shapes match nn.Conv2d / nn.Linear of the module)."""
    convs = []
    c = in_channels
    for _ in range(num_layers):
        key, kw, kb = jax.random.split(key, 3)
        fan_in = c * 9
        w = jax.random.normal(kw, (3, 3, c, hidden), jnp.float32) / jnp.sqrt(fan_in)
        b = jax.random.normal(kb, (hidden,), jnp.float32) * 0.01
        convs.append((w, b))
        c = hidden
    key, kw, kb = jax.random.split(key, 3)
    fc_w = jax.random.normal(kw, (hidden, num_classes), jnp.float32) / jnp.sqrt(hidden)
    fc_b = jax.random.normal(kb, (num_classes,), jnp.float32) * 0.01
    return convs, fc_w, fc_b


def pack_params_for_kernel(convs, fc_w, fc_b):
    """Zero-pad channels/classes to 128 lanes; conv weights -> (L*9, CP, CP) bf16 per-tap."""
    L = len(convs)
    w_all = np.zeros((L, 3, 3, CP, CP), np.float32)
    b_all = np.zeros((L, 1, CP), np.float32)
    for layer, (w, b) in enumerate(convs):
        cin, cout = w.shape[2], w.shape[3]
        assert cin <= CP and cout <= CP
        w_all[layer, :, :, :cin, :cout] = np.asarray(w)
        b_all[layer, 0, :cout] = np.asarray(b)
    hidden, nc = fc_w.shape
    fcw = np.zeros((CP, KP), np.float32)
    fcw[:hidden, :nc] = np.asarray(fc_w)
    fcb = np.zeros((1, KP), np.float32)
    fcb[0, :nc] = np.asarray(fc_b)
    return {
        "conv_w": jnp.asarray(w_all.reshape(L * 9, CP, CP), dtype=jnp.bfloat16),
        "conv_b": jnp.asarray(b_all),
        "fc_w": jnp.asarray(fcw),
        "fc_b": jnp.asarray(fcb),
    }


# ----------------------------------------------------------------------------
# Pure-JAX reference (same math; bf16 matmul operands so it is precision-matched
# to the kernel's MXU inputs; f32 accumulation, bias/ReLU/pool/FC in f32).
# ----------------------------------------------------------------------------
def ref_forward(x_nchw, convs, fc_w, fc_b):
    xh = jnp.transpose(x_nchw, (0, 2, 3, 1)).astype(jnp.float32)
    for (w, b) in convs:
        N, H, W, _ = xh.shape
        xp = jnp.pad(xh, ((0, 0), (1, 1), (1, 1), (0, 0)))
        acc = jnp.zeros((N, H, W, w.shape[-1]), jnp.float32)
        for ky in range(3):
            for kx in range(3):
                patch = xp[:, ky:ky + H, kx:kx + W, :].astype(jnp.bfloat16)
                acc = acc + jnp.einsum("nhwc,cd->nhwd", patch,
                                       w[ky, kx].astype(jnp.bfloat16),
                                       preferred_element_type=jnp.float32)
        xh = jnp.maximum(acc + b, 0.0)
    pooled = jnp.mean(xh, axis=(1, 2))
    return pooled @ fc_w + fc_b


# ----------------------------------------------------------------------------
# Main
# ----------------------------------------------------------------------------
if __name__ == "__main__":
    N, C_IN, H, W = 2, 4, 16, 16
    NUM_CLASSES = 10
    NUM_LAYERS = 2
    HIDDEN = 64            # fixed by the module: every conv outputs 64 channels

    key = jax.random.PRNGKey(0)
    key, kx = jax.random.split(key)
    x = jax.random.normal(kx, (N, C_IN, H, W), jnp.float32)   # NCHW, like PyTorch

    convs, fc_w, fc_b = init_depth_cnn_params(key, C_IN, NUM_CLASSES, NUM_LAYERS, HIDDEN)
    packed = pack_params_for_kernel(convs, fc_w, fc_b)

    out = depth_cnn_forward(x, packed, num_classes=NUM_CLASSES)
    out = jax.block_until_ready(out)

    ref = jax.block_until_ready(ref_forward(x, convs, fc_w, fc_b))
    assert out.shape == (N, NUM_CLASSES)
    assert jnp.allclose(out, ref, atol=2e-3, rtol=2e-3), "mismatch vs reference"

    print("KERNEL_OK")
</pallas_src>

<mosaic_0001>
module attributes {stable_mosaic.version = 11 : i64} {
  func.func @fused_depth_cnn_kernel(%arg0: i32, %arg1: memref<336x128xbf16, #tpu.memory_space<vmem>>, %arg2: memref<18x128x128xbf16, #tpu.memory_space<vmem>>, %arg3: memref<2x1x128xf32, #tpu.memory_space<vmem>>, %arg4: memref<288x1xf32, #tpu.memory_space<vmem>>, %arg5: memref<128x128xf32, #tpu.memory_space<vmem>>, %arg6: memref<1x128xf32, #tpu.memory_space<vmem>>, %arg7: memref<1x1x128xf32, #tpu.memory_space<vmem>>, %arg8: memref<336x128xbf16, #tpu.memory_space<vmem>>) attributes {dimension_semantics = [#tpu.dimension_semantics<parallel>], iteration_bounds = array<i64: 2>, scalar_prefetch = 0 : i64, scratch_operands = 1 : i64, tpu.core_type = #tpu.core_type<tc>, window_params = [{transform_indices = @transform_0, window_bounds = array<i64: 336, 128>}, {pipeline_mode = #tpu.pipeline_mode<synchronous>, transform_indices = @transform_1, window_bounds = array<i64: 18, 128, 128>}, {pipeline_mode = #tpu.pipeline_mode<synchronous>, transform_indices = @transform_2, window_bounds = array<i64: 2, 1, 128>}, {pipeline_mode = #tpu.pipeline_mode<synchronous>, transform_indices = @transform_3, window_bounds = array<i64: 288, 1>}, {pipeline_mode = #tpu.pipeline_mode<synchronous>, transform_indices = @transform_4, window_bounds = array<i64: 128, 128>}, {pipeline_mode = #tpu.pipeline_mode<synchronous>, transform_indices = @transform_5, window_bounds = array<i64: 1, 128>}, {transform_indices = @transform_6, window_bounds = array<i64: 1, 1, 128>}]} {
    %c0 = arith.constant 0 : index
    %c0_0 = arith.constant 0 : index
    %0 = vector.load %arg4[%c0, %c0_0] : memref<288x1xf32, #tpu.memory_space<vmem>>, vector<288x1xf32>
    %cst = arith.constant 0.000000e+00 : bf16
    %1 = vector.broadcast %cst : bf16 to vector<24x128xbf16>
    %c0_1 = arith.constant 0 : index
    %c0_2 = arith.constant 0 : index
    %2 = vector.load %arg8[%c0_1, %c0_2] : memref<336x128xbf16, #tpu.memory_space<vmem>>, vector<24x128xbf16>
    tpu.vector_store %arg8[%c0_1, %c0_2], %1 {strides = array<i32>} : memref<336x128xbf16, #tpu.memory_space<vmem>>, vector<24x128xbf16>,
    %cst_3 = arith.constant 0.000000e+00 : bf16
    %3 = vector.broadcast %cst_3 : bf16 to vector<24x128xbf16>
    %c312 = arith.constant 312 : index
    %c0_4 = arith.constant 0 : index
    %4 = vector.load %arg8[%c312, %c0_4] : memref<336x128xbf16, #tpu.memory_space<vmem>>, vector<24x128xbf16>
    tpu.vector_store %arg8[%c312, %c0_4], %3 {strides = array<i32>} : memref<336x128xbf16, #tpu.memory_space<vmem>>, vector<24x128xbf16>,
    %cst_5 = arith.constant 0.000000e+00 : f32
    %5 = vector.broadcast %cst_5 : f32 to vector<288x128xf32>
    %c5 = arith.constant 5 : index
    %c0_6 = arith.constant 0 : index
    %6 = vector.load %arg1[%c5, %c0_6] : memref<336x128xbf16, #tpu.memory_space<vmem>>, vector<288x128xbf16>
    %c0_7 = arith.constant 0 : index
    %c0_8 = arith.constant 0 : index
    %c0_9 = arith.constant 0 : index
    %7 = vector.load %arg2[%c0_7, %c0_8, %c0_9] : memref<18x128x128xbf16, #tpu.memory_space<vmem>>, vector<1x128x128xbf16>
    %8 = vector.shape_cast %7 : vector<1x128x128xbf16> to vector<128x128xbf16>
    %cst_10 = arith.constant dense<0.000000e+00> : vector<288x128xf32>
    %9 = tpu.matmul %6, %8, %cst_10 {dimension_numbers = #tpu.dot_dimension_numbers<[1], [0], [0], [1], [0, 0, 1, 1], [], []>} : vector<288x128xbf16>, vector<128x128xbf16>, vector<288x128xf32> -> vector<288x128xf32>
    %10 = arith.addf %5, %9 : vector<288x128xf32>
    %c6 = arith.constant 6 : index
    %c0_11 = arith.constant 0 : index
    %11 = vector.load %arg1[%c6, %c0_11] : memref<336x128xbf16, #tpu.memory_space<vmem>>, vector<288x128xbf16>
    %c1 = arith.constant 1 : index
    %c0_12 = arith.constant 0 : index
    %c0_13 = arith.constant 0 : index
    %12 = vector.load %arg2[%c1, %c0_12, %c0_13] : memref<18x128x128xbf16, #tpu.memory_space<vmem>>, vector<1x128x128xbf16>
    %13 = vector.shape_cast %12 : vector<1x128x128xbf16> to vector<128x128xbf16>
    %cst_14 = arith.constant dense<0.000000e+00> : vector<288x128xf32>
    %14 = tpu.matmul %11, %13, %cst_14 {dimension_numbers = #tpu.dot_dimension_numbers<[1], [0], [0], [1], [0, 0, 1, 1], [], []>} : vector<288x128xbf16>, vector<128x128xbf16>, vector<288x128xf32> -> vector<288x128xf32>
    %15 = arith.addf %10, %14 : vector<288x128xf32>
    %c7 = arith.constant 7 : index
    %c0_15 = arith.constant 0 : index
    %16 = vector.load %arg1[%c7, %c0_15] : memref<336x128xbf16, #tpu.memory_space<vmem>>, vector<288x128xbf16>
    %c2 = arith.constant 2 : index
    %c0_16 = arith.constant 0 : index
    %c0_17 = arith.constant 0 : index
    %17 = vector.load %arg2[%c2, %c0_16, %c0_17] : memref<18x128x128xbf16, #tpu.memory_space<vmem>>, vector<1x128x128xbf16>
    %18 = vector.shape_cast %17 : vector<1x128x128xbf16> to vector<128x128xbf16>
    %cst_18 = arith.constant dense<0.000000e+00> : vector<288x128xf32>
    %19 = tpu.matmul %16, %18, %cst_18 {dimension_numbers = #tpu.dot_dimension_numbers<[1], [0], [0], [1], [0, 0, 1, 1], [], []>} : vector<288x128xbf16>, vector<128x128xbf16>, vector<288x128xf32> -> vector<288x128xf32>
    %20 = arith.addf %15, %19 : vector<288x128xf32>
    %c23 = arith.constant 23 : index
    %c0_19 = arith.constant 0 : index
    %21 = vector.load %arg1[%c23, %c0_19] : memref<336x128xbf16, #tpu.memory_space<vmem>>, vector<288x128xbf16>
    %c3 = arith.constant 3 : index
    %c0_20 = arith.constant 0 : index
    %c0_21 = arith.constant 0 : index
    %22 = vector.load %arg2[%c3, %c0_20, %c0_21] : memref<18x128x128xbf16, #tpu.memory_space<vmem>>, vector<1x128x128xbf16>
    %23 = vector.shape_cast %22 : vector<1x128x128xbf16> to vector<128x128xbf16>
    %cst_22 = arith.constant dense<0.000000e+00> : vector<288x128xf32>
    %24 = tpu.matmul %21, %23, %cst_22 {dimension_numbers = #tpu.dot_dimension_numbers<[1], [0], [0], [1], [0, 0, 1, 1], [], []>} : vector<288x128xbf16>, vector<128x128xbf16>, vector<288x128xf32> -> vector<288x128xf32>
    %25 = arith.addf %20, %24 : vector<288x128xf32>
    %c24 = arith.constant 24 : index
    %c0_23 = arith.constant 0 : index
    %26 = vector.load %arg1[%c24, %c0_23] : memref<336x128xbf16, #tpu.memory_space<vmem>>, vector<288x128xbf16>
    %c4 = arith.constant 4 : index
    %c0_24 = arith.constant 0 : index
    %c0_25 = arith.constant 0 : index
    %27 = vector.load %arg2[%c4, %c0_24, %c0_25] : memref<18x128x128xbf16, #tpu.memory_space<vmem>>, vector<1x128x128xbf16>
    %28 = vector.shape_cast %27 : vector<1x128x128xbf16> to vector<128x128xbf16>
    %cst_26 = arith.constant dense<0.000000e+00> : vector<288x128xf32>
    %29 = tpu.matmul %26, %28, %cst_26 {dimension_numbers = #tpu.dot_dimension_numbers<[1], [0], [0], [1], [0, 0, 1, 1], [], []>} : vector<288x128xbf16>, vector<128x128xbf16>, vector<288x128xf32> -> vector<288x128xf32>
    %30 = arith.addf %25, %29 : vector<288x128xf32>
    %c25 = arith.constant 25 : index
    %c0_27 = arith.constant 0 : index
    %31 = vector.load %arg1[%c25, %c0_27] : memref<336x128xbf16, #tpu.memory_space<vmem>>, vector<288x128xbf16>
    %c5_28 = arith.constant 5 : index
    %c0_29 = arith.constant 0 : index
    %c0_30 = arith.constant 0 : index
    %32 = vector.load %arg2[%c5_28, %c0_29, %c0_30] : memref<18x128x128xbf16, #tpu.memory_space<vmem>>, vector<1x128x128xbf16>
    %33 = vector.shape_cast %32 : vector<1x128x128xbf16> to vector<128x128xbf16>
    %cst_31 = arith.constant dense<0.000000e+00> : vector<288x128xf32>
    %34 = tpu.matmul %31, %33, %cst_31 {dimension_numbers = #tpu.dot_dimension_numbers<[1], [0], [0], [1], [0, 0, 1, 1], [], []>} : vector<288x128xbf16>, vector<128x128xbf16>, vector<288x128xf32> -> vector<288x128xf32>
    %35 = arith.addf %30, %34 : vector<288x128xf32>
    %c41 = arith.constant 41 : index
    %c0_32 = arith.constant 0 : index
    %36 = vector.load %arg1[%c41, %c0_32] : memref<336x128xbf16, #tpu.memory_space<vmem>>, vector<288x128xbf16>
    %c6_33 = arith.constant 6 : index
    %c0_34 = arith.constant 0 : index
    %c0_35 = arith.constant 0 : index
    %37 = vector.load %arg2[%c6_33, %c0_34, %c0_35] : memref<18x128x128xbf16, #tpu.memory_space<vmem>>, vector<1x128x128xbf16>
    %38 = vector.shape_cast %37 : vector<1x128x128xbf16> to vector<128x128xbf16>
    %cst_36 = arith.constant dense<0.000000e+00> : vector<288x128xf32>
    %39 = tpu.matmul %36, %38, %cst_36 {dimension_numbers = #tpu.dot_dimension_numbers<[1], [0], [0], [1], [0, 0, 1, 1], [], []>} : vector<288x128xbf16>, vector<128x128xbf16>, vector<288x128xf32> -> vector<288x128xf32>
    %40 = arith.addf %35, %39 : vector<288x128xf32>
    %c42 = arith.constant 42 : index
    %c0_37 = arith.constant 0 : index
    %41 = vector.load %arg1[%c42, %c0_37] : memref<336x128xbf16, #tpu.memory_space<vmem>>, vector<288x128xbf16>
    %c7_38 = arith.constant 7 : index
    %c0_39 = arith.constant 0 : index
    %c0_40 = arith.constant 0 : index
    %42 = vector.load %arg2[%c7_38, %c0_39, %c0_40] : memref<18x128x128xbf16, #tpu.memory_space<vmem>>, vector<1x128x128xbf16>
    %43 = vector.shape_cast %42 : vector<1x128x128xbf16> to vector<128x128xbf16>
    %cst_41 = arith.constant dense<0.000000e+00> : vector<288x128xf32>
    %44 = tpu.matmul %41, %43, %cst_41 {dimension_numbers = #tpu.dot_dimension_numbers<[1], [0], [0], [1], [0, 0, 1, 1], [], []>} : vector<288x128xbf16>, vector<128x128xbf16>, vector<288x128xf32> -> vector<288x128xf32>
    %45 = arith.addf %40, %44 : vector<288x128xf32>
    %c43 = arith.constant 43 : index
    %c0_42 = arith.constant 0 : index
    %46 = vector.load %arg1[%c43, %c0_42] : memref<336x128xbf16, #tpu.memory_space<vmem>>, vector<288x128xbf16>
    %c8 = arith.constant 8 : index
    %c0_43 = arith.constant 0 : index
    %c0_44 = arith.constant 0 : index
    %47 = vector.load %arg2[%c8, %c0_43, %c0_44] : memref<18x128x128xbf16, #tpu.memory_space<vmem>>, vector<1x128x128xbf16>
    %48 = vector.shape_cast %47 : vector<1x128x128xbf16> to vector<128x128xbf16>
    %cst_45 = arith.constant dense<0.000000e+00> : vector<288x128xf32>
    %49 = tpu.matmul %46, %48, %cst_45 {dimension_numbers = #tpu.dot_dimension_numbers<[1], [0], [0], [1], [0, 0, 1, 1], [], []>} : vector<288x128xbf16>, vector<128x128xbf16>, vector<288x128xf32> -> vector<288x128xf32>
    %50 = arith.addf %45, %49 : vector<288x128xf32>
    %c0_46 = arith.constant 0 : index
    %c0_47 = arith.constant 0 : index
    %c0_48 = arith.constant 0 : index
    %51 = vector.load %arg3[%c0_46, %c0_47, %c0_48] : memref<2x1x128xf32, #tpu.memory_space<vmem>>, vector<1x1x128xf32>
    %52 = vector.shape_cast %51 : vector<1x1x128xf32> to vector<1x128xf32>
    %53 = vector.broadcast %52 : vector<1x128xf32> to vector<288x128xf32>
    %54 = arith.addf %50, %53 : vector<288x128xf32>
    %cst_49 = arith.constant 0.000000e+00 : f32
    %55 = vector.broadcast %cst_49 : f32 to vector<288x128xf32>
    %56 = arith.maximumf %54, %55 : vector<288x128xf32>
    %57 = vector.broadcast %0 : vector<288x1xf32> to vector<288x128xf32>
    %58 = arith.mulf %56, %57 : vector<288x128xf32>
    %59 = arith.truncf %58 : vector<288x128xf32> to vector<288x128xbf16>
    %c24_50 = arith.constant 24 : index
    %c0_51 = arith.constant 0 : index
    %60 = vector.load %arg8[%c24_50, %c0_51] : memref<336x128xbf16, #tpu.memory_space<vmem>>, vector<288x128xbf16>
    tpu.vector_store %arg8[%c24_50, %c0_51], %59 {strides = array<i32>} : memref<336x128xbf16, #tpu.memory_space<vmem>>, vector<288x128xbf16>,
    %cst_52 = arith.constant 0.000000e+00 : f32
    %61 = vector.broadcast %cst_52 : f32 to vector<288x128xf32>
    %c5_53 = arith.constant 5 : index
    %c0_54 = arith.constant 0 : index
    %62 = vector.load %arg8[%c5_53, %c0_54] : memref<336x128xbf16, #tpu.memory_space<vmem>>, vector<288x128xbf16>
    %c9 = arith.constant 9 : index
    %c0_55 = arith.constant 0 : index
    %c0_56 = arith.constant 0 : index
    %63 = vector.load %arg2[%c9, %c0_55, %c0_56] : memref<18x128x128xbf16, #tpu.memory_space<vmem>>, vector<1x128x128xbf16>
    %64 = vector.shape_cast %63 : vector<1x128x128xbf16> to vector<128x128xbf16>
    %cst_57 = arith.constant dense<0.000000e+00> : vector<288x128xf32>
    %65 = tpu.matmul %62, %64, %cst_57 {dimension_numbers = #tpu.dot_dimension_numbers<[1], [0], [0], [1], [0, 0, 1, 1], [], []>} : vector<288x128xbf16>, vector<128x128xbf16>, vector<288x128xf32> -> vector<288x128xf32>
    %66 = arith.addf %61, %65 : vector<288x128xf32>
    %c6_58 = arith.constant 6 : index
    %c0_59 = arith.constant 0 : index
    %67 = vector.load %arg8[%c6_58, %c0_59] : memref<336x128xbf16, #tpu.memory_space<vmem>>, vector<288x128xbf16>
    %c10 = arith.constant 10 : index
    %c0_60 = arith.constant 0 : index
    %c0_61 = arith.constant 0 : index
    %68 = vector.load %arg2[%c10, %c0_60, %c0_61] : memref<18x128x128xbf16, #tpu.memory_space<vmem>>, vector<1x128x128xbf16>
    %69 = vector.shape_cast %68 : vector<1x128x128xbf16> to vector<128x128xbf16>
    %cst_62 = arith.constant dense<0.000000e+00> : vector<288x128xf32>
    %70 = tpu.matmul %67, %69, %cst_62 {dimension_numbers = #tpu.dot_dimension_numbers<[1], [0], [0], [1], [0, 0, 1, 1], [], []>} : vector<288x128xbf16>, vector<128x128xbf16>, vector<288x128xf32> -> vector<288x128xf32>
    %71 = arith.addf %66, %70 : vector<288x128xf32>
    %c7_63 = arith.constant 7 : index
    %c0_64 = arith.constant 0 : index
    %72 = vector.load %arg8[%c7_63, %c0_64] : memref<336x128xbf16, #tpu.memory_space<vmem>>, vector<288x128xbf16>
    %c11 = arith.constant 11 : index
    %c0_65 = arith.constant 0 : index
    %c0_66 = arith.constant 0 : index
    %73 = vector.load %arg2[%c11, %c0_65, %c0_66] : memref<18x128x128xbf16, #tpu.memory_space<vmem>>, vector<1x128x128xbf16>
    %74 = vector.shape_cast %73 : vector<1x128x128xbf16> to vector<128x128xbf16>
    %cst_67 = arith.constant dense<0.000000e+00> : vector<288x128xf32>
    %75 = tpu.matmul %72, %74, %cst_67 {dimension_numbers = #tpu.dot_dimension_numbers<[1], [0], [0], [1], [0, 0, 1, 1], [], []>} : vector<288x128xbf16>, vector<128x128xbf16>, vector<288x128xf32> -> vector<288x128xf32>
    %76 = arith.addf %71, %75 : vector<288x128xf32>
    %c23_68 = arith.constant 23 : index
    %c0_69 = arith.constant 0 : index
    %77 = vector.load %arg8[%c23_68, %c0_69] : memref<336x128xbf16, #tpu.memory_space<vmem>>, vector<288x128xbf16>
    %c12 = arith.constant 12 : index
    %c0_70 = arith.constant 0 : index
    %c0_71 = arith.constant 0 : index
    %78 = vector.load %arg2[%c12, %c0_70, %c0_71] : memref<18x128x128xbf16, #tpu.memory_space<vmem>>, vector<1x128x128xbf16>
    %79 = vector.shape_cast %78 : vector<1x128x128xbf16> to vector<128x128xbf16>
    %cst_72 = arith.constant dense<0.000000e+00> : vector<288x128xf32>
    %80 = tpu.matmul %77, %79, %cst_72 {dimension_numbers = #tpu.dot_dimension_numbers<[1], [0], [0], [1], [0, 0, 1, 1], [], []>} : vector<288x128xbf16>, vector<128x128xbf16>, vector<288x128xf32> -> vector<288x128xf32>
    %81 = arith.addf %76, %80 : vector<288x128xf32>
    %c24_73 = arith.constant 24 : index
    %c0_74 = arith.constant 0 : index
    %82 = vector.load %arg8[%c24_73, %c0_74] : memref<336x128xbf16, #tpu.memory_space<vmem>>, vector<288x128xbf16>
    %c13 = arith.constant 13 : index
    %c0_75 = arith.constant 0 : index
    %c0_76 = arith.constant 0 : index
    %83 = vector.load %arg2[%c13, %c0_75, %c0_76] : memref<18x128x128xbf16, #tpu.memory_space<vmem>>, vector<1x128x128xbf16>
    %84 = vector.shape_cast %83 : vector<1x128x128xbf16> to vector<128x128xbf16>
    %cst_77 = arith.constant dense<0.000000e+00> : vector<288x128xf32>
    %85 = tpu.matmul %82, %84, %cst_77 {dimension_numbers = #tpu.dot_dimension_numbers<[1], [0], [0], [1], [0, 0, 1, 1], [], []>} : vector<288x128xbf16>, vector<128x128xbf16>, vector<288x128xf32> -> vector<288x128xf32>
    %86 = arith.addf %81, %85 : vector<288x128xf32>
    %c25_78 = arith.constant 25 : index
    %c0_79 = arith.constant 0 : index
    %87 = vector.load %arg8[%c25_78, %c0_79] : memref<336x128xbf16, #tpu.memory_space<vmem>>, vector<288x128xbf16>
    %c14 = arith.constant 14 : index
    %c0_80 = arith.constant 0 : index
    %c0_81 = arith.constant 0 : index
    %88 = vector.load %arg2[%c14, %c0_80, %c0_81] : memref<18x128x128xbf16, #tpu.memory_space<vmem>>, vector<1x128x128xbf16>
    %89 = vector.shape_cast %88 : vector<1x128x128xbf16> to vector<128x128xbf16>
    %cst_82 = arith.constant dense<0.000000e+00> : vector<288x128xf32>
    %90 = tpu.matmul %87, %89, %cst_82 {dimension_numbers = #tpu.dot_dimension_numbers<[1], [0], [0], [1], [0, 0, 1, 1], [], []>} : vector<288x128xbf16>, vector<128x128xbf16>, vector<288x128xf32> -> vector<288x128xf32>
    %91 = arith.addf %86, %90 : vector<288x128xf32>
    %c41_83 = arith.constant 41 : index
    %c0_84 = arith.constant 0 : index
    %92 = vector.load %arg8[%c41_83, %c0_84] : memref<336x128xbf16, #tpu.memory_space<vmem>>, vector<288x128xbf16>
    %c15 = arith.constant 15 : index
    %c0_85 = arith.constant 0 : index
    %c0_86 = arith.constant 0 : index
    %93 = vector.load %arg2[%c15, %c0_85, %c0_86] : memref<18x128x128xbf16, #tpu.memory_space<vmem>>, vector<1x128x128xbf16>
    %94 = vector.shape_cast %93 : vector<1x128x128xbf16> to vector<128x128xbf16>
    %cst_87 = arith.constant dense<0.000000e+00> : vector<288x128xf32>
    %95 = tpu.matmul %92, %94, %cst_87 {dimension_numbers = #tpu.dot_dimension_numbers<[1], [0], [0], [1], [0, 0, 1, 1], [], []>} : vector<288x128xbf16>, vector<128x128xbf16>, vector<288x128xf32> -> vector<288x128xf32>
    %96 = arith.addf %91, %95 : vector<288x128xf32>
    %c42_88 = arith.constant 42 : index
    %c0_89 = arith.constant 0 : index
    %97 = vector.load %arg8[%c42_88, %c0_89] : memref<336x128xbf16, #tpu.memory_space<vmem>>, vector<288x128xbf16>
    %c16 = arith.constant 16 : index
    %c0_90 = arith.constant 0 : index
    %c0_91 = arith.constant 0 : index
    %98 = vector.load %arg2[%c16, %c0_90, %c0_91] : memref<18x128x128xbf16, #tpu.memory_space<vmem>>, vector<1x128x128xbf16>
    %99 = vector.shape_cast %98 : vector<1x128x128xbf16> to vector<128x128xbf16>
    %cst_92 = arith.constant dense<0.000000e+00> : vector<288x128xf32>
    %100 = tpu.matmul %97, %99, %cst_92 {dimension_numbers = #tpu.dot_dimension_numbers<[1], [0], [0], [1], [0, 0, 1, 1], [], []>} : vector<288x128xbf16>, vector<128x128xbf16>, vector<288x128xf32> -> vector<288x128xf32>
    %101 = arith.addf %96, %100 : vector<288x128xf32>
    %c43_93 = arith.constant 43 : index
    %c0_94 = arith.constant 0 : index
    %102 = vector.load %arg8[%c43_93, %c0_94] : memref<336x128xbf16, #tpu.memory_space<vmem>>, vector<288x128xbf16>
    %c17 = arith.constant 17 : index
    %c0_95 = arith.constant 0 : index
    %c0_96 = arith.constant 0 : index
    %103 = vector.load %arg2[%c17, %c0_95, %c0_96] : memref<18x128x128xbf16, #tpu.memory_space<vmem>>, vector<1x128x128xbf16>
    %104 = vector.shape_cast %103 : vector<1x128x128xbf16> to vector<128x128xbf16>
    %cst_97 = arith.constant dense<0.000000e+00> : vector<288x128xf32>
    %105 = tpu.matmul %102, %104, %cst_97 {dimension_numbers = #tpu.dot_dimension_numbers<[1], [0], [0], [1], [0, 0, 1, 1], [], []>} : vector<288x128xbf16>, vector<128x128xbf16>, vector<288x128xf32> -> vector<288x128xf32>
    %106 = arith.addf %101, %105 : vector<288x128xf32>
    %c1_98 = arith.constant 1 : index
    %c0_99 = arith.constant 0 : index
    %c0_100 = arith.constant 0 : index
    %107 = vector.load %arg3[%c1_98, %c0_99, %c0_100] : memref<2x1x128xf32, #tpu.memory_space<vmem>>, vector<1x1x128xf32>
    %108 = vector.shape_cast %107 : vector<1x1x128xf32> to vector<1x128xf32>
    %109 = vector.broadcast %108 : vector<1x128xf32> to vector<288x128xf32>
    %110 = arith.addf %106, %109 : vector<288x128xf32>
    %cst_101 = arith.constant 0.000000e+00 : f32
    %111 = vector.broadcast %cst_101 : f32 to vector<288x128xf32>
    %112 = arith.maximumf %110, %111 : vector<288x128xf32>
    %113 = vector.broadcast %0 : vector<288x1xf32> to vector<288x128xf32>
    %114 = arith.mulf %112, %113 : vector<288x128xf32>
    %115 = vector.extract_strided_slice %114 {offsets = [0, 0], sizes = [286, 128], strides = [1, 1]} : vector<288x128xf32> to vector<286x128xf32>
    %cst_102 = arith.constant dense<0.000000e+00> : vector<128xf32>
    %116 = vector.multi_reduction <add>, %115, %cst_102 [0] : vector<286x128xf32> to vector<128xf32>
    %117 = vector.shape_cast %116 : vector<128xf32> to vector<1x128xf32>
    %cst_103 = arith.constant 3.906250e-03 : f32
    %118 = vector.broadcast %cst_103 : f32 to vector<1x128xf32>
    %119 = arith.mulf %117, %118 : vector<1x128xf32>
    %c0_104 = arith.constant 0 : index
    %c0_105 = arith.constant 0 : index
    %120 = vector.load %arg5[%c0_104, %c0_105] : memref<128x128xf32, #tpu.memory_space<vmem>>, vector<128x128xf32>
    %cst_106 = arith.constant dense<0.000000e+00> : vector<1x128xf32>
    %121 = tpu.matmul %119, %120, %cst_106 {dimension_numbers = #tpu.dot_dimension_numbers<[1], [0], [0], [1], [0, 0, 1, 1], [], []>} : vector<1x128xf32>, vector<128x128xf32>, vector<1x128xf32> -> vector<1x128xf32>
    %c0_107 = arith.constant 0 : index
    %c0_108 = arith.constant 0 : index
    %122 = vector.load %arg6[%c0_107, %c0_108] : memref<1x128xf32, #tpu.memory_space<vmem>>, vector<1x128xf32>
    %123 = arith.addf %121, %122 : vector<1x128xf32>
    %124 = vector.shape_cast %123 : vector<1x128xf32> to vector<1x1x128xf32>
    %c0_109 = arith.constant 0 : index
    %c0_110 = arith.constant 0 : index
    %c0_111 = arith.constant 0 : index
    %125 = vector.load %arg7[%c0_109, %c0_110, %c0_111] : memref<1x1x128xf32, #tpu.memory_space<vmem>>, vector<1x1x128xf32>
    tpu.vector_store %arg7[%c0_109, %c0_110, %c0_111], %124 {strides = array<i32>} : memref<1x1x128xf32, #tpu.memory_space<vmem>>, vector<1x1x128xf32>,
    return
  }
  func.func @transform_0(%arg0: i32) -> (i32, i32) {
    %c0_i32 = arith.constant 0 : i32
    %c0_i32_0 = arith.constant 0 : i32
    return %arg0, %c0_i32 : i32, i32
  }
  func.func @transform_1(%arg0: i32) -> (i32, i32, i32) {
    %c0_i32 = arith.constant 0 : i32
    %c0_i32_0 = arith.constant 0 : i32
    %c0_i32_1 = arith.constant 0 : i32
    %c0_i32_2 = arith.constant 0 : i32
    return %c0_i32, %c0_i32_0, %c0_i32_1 : i32, i32, i32
  }
  func.func @transform_2(%arg0: i32) -> (i32, i32, i32) {
    %c0_i32 = arith.constant 0 : i32
    %c0_i32_0 = arith.constant 0 : i32
    %c0_i32_1 = arith.constant 0 : i32
    %c0_i32_2 = arith.constant 0 : i32
    return %c0_i32, %c0_i32_0, %c0_i32_1 : i32, i32, i32
  }
  func.func @transform_3(%arg0: i32) -> (i32, i32) {
    %c0_i32 = arith.constant 0 : i32
    %c0_i32_0 = arith.constant 0 : i32
    %c0_i32_1 = arith.constant 0 : i32
    return %c0_i32, %c0_i32_0 : i32, i32
  }
  func.func @transform_4(%arg0: i32) -> (i32, i32) {
    %c0_i32 = arith.constant 0 : i32
    %c0_i32_0 = arith.constant 0 : i32
    %c0_i32_1 = arith.constant 0 : i32
    return %c0_i32, %c0_i32_0 : i32, i32
  }
  func.func @transform_5(%arg0: i32) -> (i32, i32) {
    %c0_i32 = arith.constant 0 : i32
    %c0_i32_0 = arith.constant 0 : i32
    %c0_i32_1 = arith.constant 0 : i32
    return %c0_i32, %c0_i32_0 : i32, i32
  }
  func.func @transform_6(%arg0: i32) -> (i32, i32, i32) {
    %c0_i32 = arith.constant 0 : i32
    %c0_i32_0 = arith.constant 0 : i32
    %c0_i32_1 = arith.constant 0 : i32
    return %arg0, %c0_i32, %c0_i32_0 : i32, i32, i32
  }
}

</mosaic_0001>

<bundles_post_ra>
// kernel: depth_cnn_forward.1
= control target key start
LH: loop header
LB: loop body
LE: loop exit
PB: predicated region body
PF: predicated region fallthrough
CT: control target
= control target key end

     0   :  { %11 = vsyncpa [#allocation4], 0  ;;  %s13382_s0 = inlined_call_operand.vmem [shape: bf16[672,128], index: 0, kind: input, shape index: {}]   ;;  %s13383_s1 = inlined_call_operand.vmem [shape: bf16[18,128,128], index: 1, kind: input, shape index: {}]   ;;  %s13384_s2 = inlined_call_operand.vmem [shape: f32[2,1,128], index: 2, kind: input, shape index: {}]   ;;  %s13385_s3 = inlined_call_operand.vmem [shape: f32[288,1], index: 3, kind: input, shape index: {}]   ;;  %s13386_s4 = inlined_call_operand.vmem [shape: f32[128,128], index: 4, kind: input, shape index: {}]   ;;  %s13387_s5 = inlined_call_operand.vmem [shape: f32[1,128], index: 5, kind: input, shape index: {}]   ;;  %s13388_s6 = inlined_call_operand.hbm [shape: f32[2,1,128], index: 6, kind: output, shape index: {}]  }
   0x1   :  { %13 = vsyncpa [#allocation4 + $0x1], 0  ;;  %s9774_s21 = smov 0   ;;  %s9776_s22 = smov 0  }
   0x2   :  { %s9778_s23 = smov 0   ;;  %s9780_s24 = smov 0  }
   0x3 LB: > { %s9795_s25 = sadd.s32 4294967295, %s9736_s24   ;;  %s7574_s26 = sadd.s32 4294967294, %s9736_s24   ;;  %s9736_s24 = sphi %s9780_s24, %s13839_s24   ;;  %s9732_s23 = sphi %s9778_s23, %s13838_s23   ;;  %s9728_s22 = sphi %s9776_s22, %s13837_s22   ;;  %s9724_s21 = sphi %s9774_s21, %s13836_s21  }
   0x4   : > { %s9799_s27 = sadd.s32 1, %s9736_s24   ;;  %s157_s28 = sadd.s32 1, %s9732_s23 }
   0x5   : > { %s154_s29 = ssub.s32 %s9736_s24, %s9799_s27  ;;  %p167_p0 = scmp.ne.s32.totalorder %s9732_s23, %s9728_s22 }
   0x6   : > { %p155_p1 = scmp.eq.s32.totalorder %s154_s29, 0  ;;  %p168_p2 = scmp.eq.s32.totalorder %s9795_s25, 1 }
   0x7   : > { %p173_p3 = scmp.ne.s32.totalorder %s9728_s22, %s9724_s21  ;;  %p174_p4 = scmp.eq.s32.totalorder %s7574_s26, 1 }
   0x8   : > { %s9810_s30 = scalar_select %p155_p1, %s9732_s23, %s157_s28  }
   0x9   : > { %p9812_p5 = por %p168_p2, %p167_p0  ;;  %p9816_p6 = por %p174_p4, %p173_p3 }
   0xa   : > { %p7577_p7 = scmp.ge.s32.totalorder %s9736_s24, 1  ;;  %p216_p8 = scmp.lt.s32.totalorder %s9736_s24, 3 }
   0xc   : > { %p217_p9 = pnand %p7577_p7, %p216_p8 }
   0xe   : > { %220 = sbr.rel (%p217_p9) target bundleno = 1794 (0x702), region = 44 }
  0x13   : > { %v8878_v0 = vld [vmem:[%s13383_s1 + $0x78] sm:$0xff]  ;;  %s245_s13 = smul.u32 42, %s9795_s25  ;;  %v8877_v2 = vld [vmem:[%s13383_s1 + $0x70] sm:$0xff]  ;;  %v8876_v4 = vld [vmem:[%s13383_s1 + $0x68] sm:$0xff]  ;;  %vm458_vm0 = vcmask 1044480   ;;  %vm3076_vm4 = vcmask 1046528   ;;  %s7515_s16 = scalar_lea.hbm %s13388_s6, %s9795_s25 }
  0x14   : > { %v8870_v1 = vld [vmem:[%s13383_s1 + $0x38] sm:$0xff]  ;;  %562 = vmatpush.bf16.msra.mxu0 %v8878_v0  ;;  %9590 = vmatpush.bf16.msra.mxu3 %v8878_v0  ;;  %v8869_v3 = vld [vmem:[%s13383_s1 + $0x30] sm:$0xff]  ;;  %v8868_v5 = vld [vmem:[%s13383_s1 + $0x28] sm:$0xff]  ;;  %vm664_vm1 = vsmask.f32 5376  ;;  %vm7458_vm6 = vcmask 1045504  }
  0x15   : > { %p246_p10 = scmp.lt.s32.totalorder %s245_s13, 83  ;;  %901 = vmatpush.bf16.msra.mxu1 %v8870_v1  ;;  %9598 = vmatpush.bf16.msra.mxu2 %v8870_v1  ;;  %v8875_v8 = vld [vmem:[%s13383_s1 + $0x60] sm:$0xff]  ;;  %v8874_v12 = vld [vmem:[%s13383_s1 + $0x58] sm:$0xff]  ;;  %v8873_v20 = vld [vmem:[%s13383_s1 + $0x50] sm:$0xff]  ;;  %vm1021_vm2 = vsmask.f32 4352 }
  0x16   : > { %v8867_v9 = vld [vmem:[%s13383_s1 + $0x20] sm:$0xff]  ;;  %v8866_v16 = vld [vmem:[%s13383_s1 + $0x18] sm:$0xff]  ;;  %v8865_v25 = vld [vmem:[%s13383_s1 + $0x10] sm:$0xff]  ;;  %vm2209_vm3 = vsmask.f32 7424  ;;  %s9694_s11 = scalar_lea.hbm %s13388_s6, 2 }
  0x17   : > { %s13841_s13 = smov (!%p246_p10, %s245_s13), 83  ;;  %v8872_v31 = vld [vmem:[%s13383_s1 + $0x48] sm:$0xff]  ;;  %v8871_v42 = vld [vmem:[%s13383_s1 + $0x40] sm:$0xff]  ;;  %v8902_v51 = vld [vmem:[%s13383_s1 + $0x138] sm:$0xff]  ;;  %vm3336_vm5 = vsmask.f32 6400 }
  0x18   : > { %563 = vmatpush.bf16.msra.mxu0 %v8877_v2  ;;  %9591 = vmatpush.bf16.msra.mxu3 %v8877_v2  ;;  %s7578_s20 = sshll.u32 %s13841_s13, 2  ;;  %v8864_v36 = vld [vmem:[%s13383_s1 + $0x8] sm:$0xff]  ;;  %v8863_v47 = vld [vmem:[%s13383_s1] sm:$0xff]  ;;  %v8886_v52 = vld [vmem:[%s13383_s1 + $0xb8] sm:$0xff]  ;;  %s243_s13 = sand.u32 1, %s9728_s22  }
  0x19   : > { %902 = vmatpush.bf16.msra.mxu1 %v8869_v3  ;;  %9599 = vmatpush.bf16.msra.mxu2 %v8869_v3  ;;  %s9844_s10 = scalar_lea.vmem %s13382_s0, %s7578_s20  ;;  %v8894_v59 = vld [vmem:[%s13383_s1 + $0xf8] sm:$0xff]  ;;  %v8901_v60 = vld [vmem:[%s13383_s1 + $0x130] sm:$0xff]  ;;  %v8900_v3 = vld [vmem:[%s13383_s1 + $0x128] sm:$0xff]  ;;  %s7519_s20 = sshll.u32 %s7515_s16, 4  ;;  %s7520_s20 = int_to_ptr.hbm [resolvable:$true] %s7519_s20 }
  0x1a   : > { %v295_v6 = vld [vmem:[%s9844_s10 + $0x4] sm:$0xf]  ;;  %v294_v7 = vld [vmem:[%s9844_s10] sm:$0xc]  ;;  %v9858_v13 = vld [vmem:[%s9844_s10 + $0x8] sm:$0xff]  ;;  %s7507_s26 = scalar_lea.sflag [#allocation4], %s243_s13 }
  0x1b   : > { %v403_v10 = vunpack.c.l.b16 %v295_v6  ;;  %v662_v11 = vunpack.c.l.b16 %v294_v7  ;;  %v347_v14 = vld [vmem:[%s9844_s10] sm:$0x8]  ;;  %v9862_v15 = vld [vmem:[%s9844_s10 + $0x50] sm:$0xff]  ;;  %v9868_v17 = vld [vmem:[%s9844_s10 + $0x58] sm:$0xff]  ;;  %v674_v21 = vshrl.u32 %v9858_v13, 16  ;;  %v677_v22 = vshll.u32 %v9858_v13, 16 }
  0x1c   : > { %564 = vmatpush.bf16.msra.mxu0 %v8876_v4  ;;  %9592 = vmatpush.bf16.msra.mxu3 %v8876_v4  ;;  %v402_v19 = vunpack.c.l.b16 %v347_v14  ;;  %v13404_v23 = vshrl.u32 %v9862_v15, 16  ;;  %v13403_v24 = vshll.u32 %v9862_v15, 16  ;;  %v13402_v28 = vshrl.u32 %v9868_v17, 16  ;;  %v9928_v57 = vld [vmem:[%s9844_s10 + $0x10] sm:$0xff]  ;;  %v9931_v58 = vld [vmem:[%s9844_s10 + $0x60] sm:$0xff]  ;;  %s9688_s28 = sshra.s32 %s7520_s20, 4  ;;  %s9689_s28 = int_to_ptr.hbm [resolvable:$true] %s9688_s28 }
  0x1d   : > { %903 = vmatpush.bf16.msra.mxu1 %v8868_v5  ;;  %9600 = vmatpush.bf16.msra.mxu2 %v8868_v5  ;;  %v663_v18 = vpack.c.b16 %v403_v10, %v662_v11  ;;  %v13401_v29 = vshll.u32 %v9868_v17, 16  ;;  %v676_v32 = vrot.slane %v674_v21, 2  ;;  %v679_v33 = vrot.slane %v677_v22, 3  ;;  %v8885_v61 = vld [vmem:[%s13383_s1 + $0xb0] sm:$0xff]  ;;  %s9690_s29 = scalar_lea.hbm %s9689_s28, 1  ;;  %p9695_p0 = scmp.lt.s32.totalorder %s9689_s28, %s13388_s6 }
  0x1e   : > { %v9882_v30 = vpack.c.b16 %v403_v10, %v402_v19  ;;  %v757_v34 = vrot.slane %v13404_v23, 2  ;;  %v760_v35 = vrot.slane %v13403_v24, 3  ;;  %v766_v39 = vrot.slane %v13402_v28, 2  ;;  %v8893_v2 = vld [vmem:[%s13383_s1 + $0xf0] sm:$0xff]  ;;  %v9967_v19 = vld [vmem:[%s9844_s10 + $0x18] sm:$0xff]  ;;  %p9691_p11 = scmp.ne.s32.totalorder %s9689_s28, %s9690_s29  ;;  %p9696_p1 = scmp.lt.s32.totalorder %s9694_s11, %s9690_s29 }
  0x1f   : > { %v666_v26 = vshrl.u32 %v663_v18, 16  ;;  %v669_v27 = vshll.u32 %v663_v18, 16  ;;  %v769_v40 = vrot.slane %v13401_v29, 3  ;;  %v460_v41 = vrot.slane %v9858_v13, 3 }
  0x20   : > { %565 = vmatpush.bf16.msra.mxu0 %v8875_v8  ;;  %9593 = vmatpush.bf16.msra.mxu3 %v8875_v8  ;;  %v459_v43 = vrot.slane %v9882_v30, 3  ;;  %v478_v44 = vrot.slane %v9862_v15, 3  ;;  %v480_v45 = vrot.slane %v9868_v17, 3  ;;  %v680_v46 = vor.u32 %v679_v33, %v676_v32  ;;  %p9692_p12 = pnand %p9691_p11, %p9812_p5  ;;  %p9697_p2 = por %p9696_p1, %p9695_p0 }
  0x21   : > { %904 = vmatpush.bf16.msra.mxu1 %v8867_v9  ;;  %9601 = vmatpush.bf16.msra.mxu2 %v8867_v9  ;;  %v668_v37 = vrot.slane %v666_v26, 2  ;;  %v671_v38 = vrot.slane %v669_v27, 3  ;;  %v9912_v49 = vor.u32 %v760_v35, %v757_v34  ;;  %v770_v50 = vor.u32 %v769_v40, %v766_v39  ;;  %v8892_v26 = vld [vmem:[%s13383_s1 + $0xe8] sm:$0xff]  ;;  %v8899_v27 = vld [vmem:[%s13383_s1 + $0x120] sm:$0xff] }
  0x22   : > { %v461_v53 = vsel %vm458_vm0, %v459_v43, %v460_v41  ;;  %v481_v54 = vsel %vm458_vm0, %v478_v44, %v480_v45  ;;  %v683_v62 = vshrl.u32 %v9928_v57, 16  ;;  %v686_v63 = vshll.u32 %v9928_v57, 16  ;;  %p9693_p13 = pneg %p9692_p12 }
  0x23   : > { %v672_v48 = vor.u32 %v671_v38, %v668_v37  ;;  %v771_v56 = vsel %vm664_vm1, %v9912_v49, %v770_v50  ;;  %v13400_v0 = vshrl.u32 %v9931_v58, 16  ;;  %v13399_v1 = vshll.u32 %v9931_v58, 16 }
  0x24   : > { %566 = vmatpush.bf16.msra.mxu0 %v8874_v12  ;;  %9594 = vmatpush.bf16.msra.mxu3 %v8874_v12  ;;  %v685_v4 = vrot.slane %v683_v62, 2  ;;  %v688_v5 = vrot.slane %v686_v63, 3  ;;  %v462_v8 = vrot.slane %v9928_v57, 3  ;;  %v482_v9 = vrot.slane %v9931_v58, 3  ;;  %p9698_p3 = pnand %p9697_p2, %p9693_p13 }
  0x25   : > { %905 = vmatpush.bf16.msra.mxu1 %v8866_v16  ;;  %9602 = vmatpush.bf16.msra.mxu2 %v8866_v16  ;;  %v681_v55 = vsel %vm664_vm1, %v672_v48, %v680_v46  ;;  %v775_v6 = vrot.slane %v13400_v0, 2  ;;  %v778_v7 = vrot.slane %v13399_v1, 3  ;;  %v695_v32 = vshll.u32 %v9967_v19, 16  ;;  %v10000_v48 = vld [vmem:[%s9844_s10 + $0x20] sm:$0xff]  ;;  %v8923_v0 = vld [vmem:[%s13383_s1 + $0x150] sm:$0xff] }
  0x26   : > { %v689_v10 = vor.u32 %v688_v5, %v685_v4  ;;  %v463_v12 = vsel %vm458_vm0, %v460_v41, %v462_v8  ;;  %v483_v14 = vsel %vm458_vm0, %v480_v45, %v482_v9  ;;  %v464_v39 = vrot.slane %v9967_v19, 3 }
  0x27   : > { %v779_v11 = vor.u32 %v778_v7, %v775_v6 }
  0x28   : > { %567 = vmatpush.bf16.msra.mxu0 %v8873_v20  ;;  %9595 = vmatpush.bf16.msra.mxu3 %v8873_v20  ;;  %v690_v16 = vsel %vm664_vm1, %v680_v46, %v689_v10  ;;  %v9970_v20 = vld [vmem:[%s9844_s10 + $0x68] sm:$0xff]  ;;  %v465_v43 = vsel %vm458_vm0, %v462_v8, %v464_v39 }
  0x29   : > { %906 = vmatpush.bf16.msra.mxu1 %v8865_v25  ;;  %9603 = vmatpush.bf16.msra.mxu2 %v8865_v25  ;;  %v780_v18 = vsel %vm664_vm1, %v770_v50, %v779_v11  ;;  %v8884_v25 = vld [vmem:[%s13383_s1 + $0xa8] sm:$0xff]  ;;  %v13398_v33 = vshrl.u32 %v9970_v20, 16  ;;  %v13397_v34 = vshll.u32 %v9970_v20, 16  ;;  %v484_v40 = vrot.slane %v9970_v20, 3  ;;  %v10003_v50 = vld [vmem:[%s9844_s10 + $0x70] sm:$0xff] }
  0x2a   : > { %v486_v4 = vrot.slane %v10003_v50, 3 }
  0x2b   : > { %v784_v37 = vrot.slane %v13398_v33, 2  ;;  %v787_v38 = vrot.slane %v13397_v34, 3  ;;  %v485_v45 = vsel %vm458_vm0, %v482_v9, %v484_v40 }
  0x2c   : > { %568 = vmatpush.bf16.msra.mxu0 %v8872_v31  ;;  %9596 = vmatpush.bf16.msra.mxu3 %v8872_v31  ;;  %v692_v31 = vshrl.u32 %v9967_v19, 16  ;;  %v487_v8 = vsel %vm458_vm0, %v484_v40, %v486_v4 }
  0x2d   : > { %907 = vmatpush.bf16.msra.mxu1 %v8864_v36  ;;  %9604 = vmatpush.bf16.msra.mxu2 %v8864_v36  ;;  %v697_v36 = vrot.slane %v695_v32, 3 }
  0x2e   : > { %v694_v35 = vrot.slane %v692_v31, 2 }
  0x30   : > { %569 = vmatpush.bf16.msra.mxu0 %v8871_v42  ;;  %9597 = vmatpush.bf16.msra.mxu3 %v8871_v42  ;;  %v698_v41 = vor.u32 %v697_v36, %v694_v35  ;;  %v788_v42 = vor.u32 %v787_v38, %v784_v37 }
  0x31   : > { %908 = vmatpush.bf16.msra.mxu1 %v8863_v47  ;;  %9605 = vmatpush.bf16.msra.mxu2 %v8863_v47 }
  0x32   : > { %v699_v46 = vsel %vm664_vm1, %v689_v10, %v698_v41  ;;  %v789_v47 = vsel %vm664_vm1, %v779_v11, %v788_v42  ;;  %v10030_v11 = vld [vmem:[%s9844_s10 + $0x28] sm:$0xff] }
  0x33   : > { %570 = vmatmul.bf16.vlgmr.msra.gmra.mxu0 %v461_v53  ;;  %620 = vmatmul.bf16.vlgmr.msra.gmra.mxu3 %v481_v54  ;;  %v701_v53 = vshrl.u32 %v10000_v48, 16  ;;  %v704_v54 = vshll.u32 %v10000_v48, 16  ;;  %v468_v40 = vrot.slane %v10030_v11, 3 }
  0x34   : > { %1927 = vmatpush.bf16.msrb.mxu0 %v8902_v51  ;;  %909 = vmatmul.bf16.vlgmr.msra.gmra.mxu1 %v681_v55  ;;  %v8883_v51 = vld [vmem:[%s13383_s1 + $0xa0] sm:$0xff]  ;;  %v13396_v55 = vshrl.u32 %v10003_v50, 16 }
  0x35   : > { %1173 = vmatpush.bf16.msrb.mxu2 %v8886_v52  ;;  %1691 = vmatpush.bf16.msrb.mxu3 %v8894_v59  ;;  %v8891_v52 = vld [vmem:[%s13383_s1 + $0xe0] sm:$0xff]  ;;  %v703_v59 = vrot.slane %v701_v53, 2 }
  0x36   : > { %959 = vmatmul.bf16.vlgmr.msra.gmra.mxu2 %v771_v56  ;;  %v13395_v56 = vshll.u32 %v10003_v50, 16 }
  0x38   : > { %1928 = vmatpush.bf16.msrb.mxu0 %v8901_v60  ;;  %v706_v60 = vrot.slane %v704_v54, 3 }
  0x39   : > { %1174 = vmatpush.bf16.msrb.mxu2 %v8885_v61  ;;  %1692 = vmatpush.bf16.msrb.mxu3 %v8893_v2  ;;  %v793_v61 = vrot.slane %v13396_v55, 2  ;;  %v796_v2 = vrot.slane %v13395_v56, 3 }
  0x3a   : > { %v707_v5 = vor.u32 %v706_v60, %v703_v59  ;;  %v10066_v59 = vld [vmem:[%s9844_s10 + $0x80] sm:$0xff]  ;;  %v8897_v60 = vld [vmem:[%s13383_s1 + $0x110] sm:$0xff] }
  0x3b   : > { %v797_v6 = vor.u32 %v796_v2, %v793_v61  ;;  %v8881_v61 = vld [vmem:[%s13383_s1 + $0x90] sm:$0xff] }
  0x3c   : > { %1929 = vmatpush.bf16.msrb.mxu0 %v8900_v3  ;;  %v466_v3 = vrot.slane %v10000_v48, 3  ;;  %v708_v9 = vsel %vm664_vm1, %v698_v41, %v707_v5  ;;  %v8889_v2 = vld [vmem:[%s13383_s1 + $0xd0] sm:$0xff] }
  0x3d   : > { %1175 = vmatpush.bf16.msrb.mxu2 %v8884_v25  ;;  %1693 = vmatpush.bf16.msrb.mxu3 %v8892_v26  ;;  %v798_v10 = vsel %vm664_vm1, %v788_v42, %v797_v6  ;;  %v710_v25 = vshrl.u32 %v10030_v11, 16  ;;  %v713_v26 = vshll.u32 %v10030_v11, 16 }
  0x3e   : > { %v467_v7 = vsel %vm458_vm0, %v464_v39, %v466_v3 }
  0x3f   : > { %v712_v36 = vrot.slane %v710_v25, 2  ;;  %v715_v37 = vrot.slane %v713_v26, 3 }
  0x40   : > { %1930 = vmatpush.bf16.msrb.mxu0 %v8899_v27 }
  0x41   : > { %1176 = vmatpush.bf16.msrb.mxu2 %v8883_v51  ;;  %1694 = vmatpush.bf16.msrb.mxu3 %v8891_v52  ;;  %v716_v42 = vor.u32 %v715_v37, %v712_v36  ;;  %v10063_v52 = vld [vmem:[%s9844_s10 + $0x30] sm:$0xff] }
  0x43   : > { %575 = vmatmul.bf16.gmra.mxu0 %v463_v12  ;;  %625 = vmatmul.bf16.gmra.mxu3 %v483_v14  ;;  %v10033_v12 = vld [vmem:[%s9844_s10 + $0x78] sm:$0xff] }
  0x44   : > { %914 = vmatmul.bf16.gmra.mxu1 %v690_v16  ;;  %v8898_v14 = vld [vmem:[%s13383_s1 + $0x118] sm:$0xff]  ;;  %v13394_v27 = vshrl.u32 %v10033_v12, 16  ;;  %v13393_v35 = vshll.u32 %v10033_v12, 16  ;;  %v488_v41 = vrot.slane %v10033_v12, 3 }
  0x45   : > { %v8882_v16 = vld [vmem:[%s13383_s1 + $0x98] sm:$0xff]  ;;  %1931 = vmatpush.bf16.msrb.mxu0 %v8898_v14  ;;  %v470_v14 = vrot.slane %v10063_v52, 3 }
  0x46   : > { %964 = vmatmul.bf16.gmra.mxu2 %v780_v18  ;;  %v8890_v18 = vld [vmem:[%s13383_s1 + $0xd8] sm:$0xff]  ;;  %v802_v38 = vrot.slane %v13394_v27, 2  ;;  %v805_v39 = vrot.slane %v13393_v35, 3 }
  0x47   : > { %1177 = vmatpush.bf16.msrb.mxu2 %v8882_v16  ;;  %1695 = vmatpush.bf16.msrb.mxu3 %v8890_v18  ;;  %v490_v16 = vrot.slane %v10066_v59, 3  ;;  %v471_v37 = vsel %vm458_vm0, %v468_v40, %v470_v14 }
  0x49   : > { %1932 = vmatpush.bf16.msrb.mxu0 %v8897_v60 }
  0x4b   : > { %1178 = vmatpush.bf16.msrb.mxu2 %v8881_v61  ;;  %1696 = vmatpush.bf16.msrb.mxu3 %v8889_v2 }
  0x53   : > { %580 = vmatmul.bf16.gmra.mxu0 %v465_v43  ;;  %630 = vmatmul.bf16.gmra.mxu3 %v485_v45  ;;  %v806_v43 = vor.u32 %v805_v39, %v802_v38  ;;  %v469_v45 = vsel %vm458_vm0, %v466_v3, %v468_v40  ;;  %v719_v3 = vshrl.u32 %v10063_v52, 16  ;;  %v491_v38 = vsel %vm458_vm0, %v488_v41, %v490_v16  ;;  %v8888_v40 = vld [vmem:[%s13383_s1 + $0xc8] sm:$0xff] }
  0x54   : > { %919 = vmatmul.bf16.gmra.mxu1 %v699_v46  ;;  %v489_v46 = vsel %vm458_vm0, %v486_v4, %v488_v41  ;;  %v722_v4 = vshll.u32 %v10063_v52, 16  ;;  %v8896_v41 = vld [vmem:[%s13383_s1 + $0x108] sm:$0xff]  ;;  %1697 = vmatpush.bf16.msrb.mxu3 %v8888_v40  ;;  %v8879_v40 = vld [vmem:[%s13383_s1 + $0x80] sm:$0xff] }
  0x55   : > { %v807_v51 = vsel %vm664_vm1, %v797_v6, %v806_v43  ;;  %v13391_v6 = vshll.u32 %v10066_v59, 16  ;;  %1933 = vmatpush.bf16.msrb.mxu0 %v8896_v41  ;;  %v8887_v41 = vld [vmem:[%s13383_s1 + $0xc0] sm:$0xff] }
  0x56   : > { %969 = vmatmul.bf16.gmra.mxu2 %v789_v47  ;;  %v717_v47 = vsel %vm664_vm1, %v707_v5, %v716_v42  ;;  %v13392_v5 = vshrl.u32 %v10066_v59, 16 }
  0x58   : > { %1698 = vmatpush.bf16.msrb.mxu3 %v8887_v41 }
  0x63   : > { %585 = vmatmul.bf16.gmra.mxu0 %v467_v7  ;;  %635 = vmatmul.bf16.gmra.mxu3 %v487_v8  ;;  %v721_v7 = vrot.slane %v719_v3, 2  ;;  %v724_v8 = vrot.slane %v722_v4, 3 }
  0x64   : > { %924 = vmatmul.bf16.gmra.mxu1 %v708_v9  ;;  %v811_v9 = vrot.slane %v13392_v5, 2 }
  0x65   : > { %v725_v18 = vor.u32 %v724_v8, %v721_v7 }
  0x66   : > { %974 = vmatmul.bf16.gmra.mxu2 %v798_v10  ;;  %v814_v10 = vrot.slane %v13391_v6, 3  ;;  %v10134_v6 = vld [vmem:[%s9844_s10 + $0x40] sm:$0xff] }
  0x67   : > { %v726_v39 = vsel %vm664_vm1, %v716_v42, %v725_v18 }
  0x68   : > { %v815_v36 = vor.u32 %v814_v10, %v811_v9  ;;  %v330_v10 = vld [vmem:[%s9844_s10 + $0x90] sm:$0x7] }
  0x73   : > { %590 = vmatmul.bf16.gmra.mxu0 %v469_v45  ;;  %640 = vmatmul.bf16.gmra.mxu3 %v489_v46  ;;  %v816_v45 = vsel %vm664_vm1, %v806_v43, %v815_v36  ;;  %v10096_v46 = vld [vmem:[%s9844_s10 + $0x38] sm:$0xff] }
  0x74   : > { %929 = vmatmul.bf16.gmra.mxu1 %v717_v47  ;;  %v10099_v47 = vld [vmem:[%s9844_s10 + $0x88] sm:$0xff]  ;;  %v728_v42 = vshrl.u32 %v10096_v46, 16  ;;  %v731_v43 = vshll.u32 %v10096_v46, 16 }
  0x75   : > { %v13389_v60 = vshrl.u32 %v10099_v47, 16  ;;  %v13390_v61 = vshll.u32 %v10099_v47, 16 }
  0x76   : > { %979 = vmatmul.bf16.gmra.mxu2 %v807_v51  ;;  %v8880_v51 = vld [vmem:[%s13383_s1 + $0x88] sm:$0xff]  ;;  %v730_v2 = vrot.slane %v728_v42, 2  ;;  %v733_v7 = vrot.slane %v731_v43, 3 }
  0x77   : > { %1179 = vmatpush.bf16.msrb.mxu2 %v8880_v51  ;;  %v820_v8 = vrot.slane %v13389_v60, 2  ;;  %v823_v9 = vrot.slane %v13390_v61, 3 }
  0x79   : > { %v824_v51 = vor.u32 %v823_v9, %v820_v8  ;;  %v1308_v9 = vld [vmem:[%s9844_s10 + $0x8] sm:$0x8] }
  0x7b   : > { %1180 = vmatpush.bf16.msrb.mxu2 %v8879_v40  ;;  %v474_v40 = vrot.slane %v10134_v6, 3 }
  0x83   : > { %595 = vmatmul.bf16.gmra.mxu0 %v471_v37  ;;  %645 = vmatmul.bf16.gmra.mxu3 %v491_v38  ;;  %v472_v37 = vrot.slane %v10096_v46, 3  ;;  %v492_v38 = vrot.slane %v10099_v47, 3 }
  0x84   : > { %934 = vmatmul.bf16.gmra.mxu1 %v726_v39  ;;  %v438_v39 = vunpack.c.l.b16 %v330_v10  ;;  %v10149_v10 = vld [vmem:[%s9844_s10 + $0xc] sm:$0xf] }
  0x85   : > { %v473_v60 = vsel %vm458_vm0, %v470_v14, %v472_v37  ;;  %v493_v61 = vsel %vm458_vm0, %v490_v16, %v492_v38  ;;  %v740_v14 = vshll.u32 %v10134_v6, 16  ;;  %v475_v55 = vsel %vm458_vm0, %v472_v37, %v474_v40 }
  0x86   : > { %984 = vmatmul.bf16.gmra.mxu2 %v816_v45  ;;  %v734_v45 = vor.u32 %v733_v7, %v730_v2  ;;  %v457_v5 = vpack.c.b16 %v438_v39, %v438_v39  ;;  %v825_v2 = vsel %vm664_vm1, %v815_v36, %v824_v51  ;;  %v737_v7 = vshrl.u32 %v10134_v6, 16  ;;  %v8927_v39 = vld [vmem:[%s13383_s1 + $0x170] sm:$0xff] }
  0x88   : > { %v735_v35 = vsel %vm664_vm1, %v725_v18, %v734_v45  ;;  %v827_v16 = vshrl.u32 %v457_v5, 16  ;;  %v830_v8 = vshll.u32 %v457_v5, 16  ;;  %v8928_v18 = vld [vmem:[%s13383_s1 + $0x178] sm:$0xff]  ;;  %v739_v36 = vrot.slane %v737_v7, 2 }
  0x89   : > { %2424 = vmatpush.bf16.msrb.mxu1 %v8928_v18  ;;  %v494_v41 = vrot.slane %v457_v5, 3  ;;  %v1400_v18 = vunpack.c.l.b16 %v10149_v10  ;;  %v8895_v5 = vld [vmem:[%s13383_s1 + $0x100] sm:$0xff] }
  0x8a   : > { %1934 = vmatpush.bf16.msrb.mxu0 %v8895_v5 }
  0x8d   : > { %2425 = vmatpush.bf16.msrb.mxu1 %v8927_v39  ;;  %v495_v39 = vsel %vm458_vm0, %v492_v38, %v494_v41 }
  0x93   : > { %600 = vmatmul.bf16.gmra.mxu0 %v473_v60  ;;  %650 = vmatmul.bf16.gmra.mxu3 %v493_v61  ;;  %v742_v60 = vrot.slane %v740_v14, 3  ;;  %v832_v61 = vrot.slane %v830_v8, 3  ;;  %v10160_v8 = vld [vmem:[%s9844_s10 + $0x48] sm:$0xff] }
  0x94   : > { %939 = vmatmul.bf16.gmra.mxu1 %v735_v35  ;;  %v829_v35 = vrot.slane %v827_v16, 2  ;;  %v8926_v16 = vld [vmem:[%s13383_s1 + $0x168] sm:$0xff]  ;;  %v746_v37 = vshrl.u32 %v10160_v8, 16  ;;  %v749_v38 = vshll.u32 %v10160_v8, 16 }
  0x95   : > { %v743_v27 = vor.u32 %v742_v60, %v739_v36  ;;  %2426 = vmatpush.bf16.msrb.mxu1 %v8926_v16 }
  0x96   : > { %989 = vmatmul.bf16.gmra.mxu2 %v825_v2  ;;  %v1399_v2 = vunpack.c.l.b16 %v1308_v9  ;;  %v833_v56 = vor.u32 %v832_v61, %v829_v35  ;;  %v10172_v35 = vld [vmem:[%s9844_s10 + $0x10] sm:$0xff]   ;;  %v8925_v61 = vld [vmem:[%s13383_s1 + $0x160] sm:$0xff]  ;;  %v748_v16 = vrot.slane %v746_v37, 2 }
  0x97   : > { %v744_v36 = vsel %vm664_vm1, %v734_v45, %v743_v27  ;;  %v1464_v45 = vshrl.u32 %v10172_v35, 16 }
  0x98   : > { %v1436_v34 = vpack.c.b16 %v1400_v18, %v1399_v2  ;;  %v834_v60 = vsel %vm664_vm1, %v824_v51, %v833_v56  ;;  %v1467_v56 = vshll.u32 %v10172_v35, 16  ;;  %v1023_v51 = vshrl.u32 %v9882_v30, 16 }
  0x99   : > { %v1026_v2 = vshll.u32 %v9882_v30, 16  ;;  %2427 = vmatpush.bf16.msrb.mxu1 %v8925_v61  ;;  %v1030_v30 = vrot.slane %v674_v21, 3  ;;  %v1031_v61 = vrot.slane %v677_v22, 4 }
  0x9a   : > { %v1456_v9 = vshrl.u32 %v1436_v34, 16  ;;  %v1459_v41 = vshll.u32 %v1436_v34, 16  ;;  %v1025_v33 = vrot.slane %v1023_v51, 3 }
  0x9b   : > { %v1028_v1 = vrot.slane %v1026_v2, 4  ;;  %v1032_v51 = vor.u32 %v1031_v61, %v1030_v30  ;;  %v8922_v2 = vld [vmem:[%s13383_s1 + $0x148] sm:$0xff] }
  0x9c   : > { %v1458_v34 = vrot.slane %v1456_v9, 3  ;;  %v1461_v5 = vrot.slane %v1459_v41, 4  ;;  %v8953_v9 = vld [vmem:[%s13383_s1 + $0x1b8] sm:$0xff] }
  0x9d   : > { %v8961_v41 = vld [vmem:[%s13383_s1 + $0x1f8] sm:$0xff]  ;;  %2920 = vmatpush.bf16.msra.mxu2 %v8953_v9  ;;  %v1029_v22 = vor.u32 %v1028_v1, %v1025_v33  ;;  %v1035_v9 = vrot.slane %v686_v63, 4 }
  0x9e   : > { %3180 = vmatpush.bf16.msra.mxu3 %v8961_v41 }
  0xa3   : > { %605 = vmatmul.bf16.gmra.mxu0 %v475_v55  ;;  %655 = vmatmul.bf16.gmra.mxu3 %v495_v39  ;;  %v8924_v55 = vld [vmem:[%s13383_s1 + $0x158] sm:$0xff]  ;;  %v751_v39 = vrot.slane %v749_v38, 3 }
  0xa4   : > { %944 = vmatmul.bf16.gmra.mxu1 %v744_v36  ;;  %v1466_v36 = vrot.slane %v1464_v45, 3  ;;  %v476_v45 = vrot.slane %v10160_v8, 3 }
  0xa5   : > { %2428 = vmatpush.bf16.msrb.mxu1 %v8924_v55  ;;  %v752_v13 = vor.u32 %v751_v39, %v748_v16 }
  0xa6   : > { %994 = vmatmul.bf16.gmra.mxu2 %v834_v60  ;;  %v1469_v60 = vrot.slane %v1467_v56, 4  ;;  %v1462_v56 = vor.u32 %v1461_v5, %v1458_v34  ;;  %v477_v29 = vsel %vm458_vm0, %v474_v40, %v476_v45  ;;  %v1033_v5 = vsel %vm1021_vm2, %v1029_v22, %v1032_v51 }
  0xa7   : > { %v753_v34 = vsel %vm664_vm1, %v743_v27, %v752_v13  ;;  %v8969_v27 = vld [vmem:[%s13383_s1 + $0x238] sm:$0xff]  ;;  %v762_v57 = vsel %vm664_vm1, %v752_v13, %v9912_v49  ;;  %v1038_v49 = vrot.slane %v692_v31, 3 }
  0xa8   : > { %v1470_v21 = vor.u32 %v1469_v60, %v1466_v36  ;;  %v9316_v36 = vld [vmem:[%s9844_s10 + $0x18] sm:$0xff]   ;;  %3488 = vmatpush.bf16.msra.mxu0 %v8969_v27 }
  0xa9   : > { %2429 = vmatpush.bf16.msrb.mxu1 %v8923_v0  ;;  %v8921_v0 = vld [vmem:[%s13383_s1 + $0x140] sm:$0xff]  ;;  %v1473_v33 = vshrl.u32 %v9316_v36, 16  ;;  %v1476_v40 = vshll.u32 %v9316_v36, 16  ;;  %v479_v36 = vsel %vm458_vm0, %v476_v45, %v478_v44 }
  0xaa   : > { %v1471_v28 = vsel %vm1021_vm2, %v1462_v56, %v1470_v21 }
  0xab   : > { %v1475_v61 = vrot.slane %v1473_v33, 3  ;;  %v9317_v33 = vld [vmem:[%s9844_s10 + $0x20] sm:$0xff]  }
  0xad   : > { %2430 = vmatpush.bf16.msrb.mxu1 %v8922_v2 }
  0xb0   : > { %v571_v55 = vpop.f32.mrf.mxu0 }
  0xb1   : > { %v910_v24 = vpop.f32.mrf.mxu1  ;;  %2431 = vmatpush.bf16.msrb.mxu1 %v8921_v0 }
  0xb2   : > { %v10215_v1 = vadd.f32 %v910_v24, %v571_v55  ;;  %v1478_v24 = vrot.slane %v1476_v40, 4  ;;  %v8903_v40 = vld [vmem:[%s9844_s10 + $0xc] sm:$0xff] }
  0xb3   : > { %610 = vmatmul.bf16.gmra.mxu0 %v477_v29  ;;  %1699 = vmatmul.bf16.vlgmr.msrb.gmra.mxu3 %v1471_v28  ;;  %v1034_v28 = vrot.slane %v683_v62, 3  ;;  %v2213_v44 = vshll.u32 %v8903_v40, 16 }
  0xb4   : > { %949 = vmatmul.bf16.gmra.mxu1 %v753_v34  ;;  %v1479_v56 = vor.u32 %v1478_v24, %v1475_v61 }
  0xb5   : > { %v1036_v22 = vor.u32 %v1035_v9, %v1034_v28  ;;  %v1039_v28 = vrot.slane %v695_v32, 4  ;;  %v2211_v9 = vshrl.u32 %v8903_v40, 16 }
  0xb6   : > { %1181 = vmatmul.bf16.vlgmr.msrb.gmra.mxu2 %v1033_v5  ;;  %v621_v16 = vpop.f32.mrf.mxu3  ;;  %v1480_v0 = vsel %vm1021_vm2, %v1470_v21, %v1479_v56 }
  0xb7   : > { %v1037_v63 = vsel %vm1021_vm2, %v1032_v51, %v1036_v22  ;;  %v1040_v31 = vor.u32 %v1039_v28, %v1038_v49 }
  0xb8   : > { %v573_v30 = vpop.f32.mrf.mxu0 }
  0xb9   : > { %v960_v39 = vpop.f32.mrf.mxu2  ;;  %v912_v29 = vpop.f32.mrf.mxu1 }
  0xba   : > { %v10220_v60 = vadd.f32 %v960_v39, %v621_v16  ;;  %v10226_v41 = vadd.f32 %v912_v29, %v573_v30  ;;  %v1482_v16 = vshrl.u32 %v9317_v33, 16  ;;  %v1485_v39 = vshll.u32 %v9317_v33, 16  ;;  %v8904_v30 = vld [vmem:[%s9844_s10 + $0x14] sm:$0xff] }
  0xbc   : > { %v1484_v13 = vrot.slane %v1482_v16, 3  ;;  %v1487_v51 = vrot.slane %v1485_v39, 4 }
  0xbe   : > { %v623_v2 = vpop.f32.mrf.mxu3 }
  0xc0   : > { %v576_v5 = vpop.f32.mrf.mxu0 }
  0xc1   : > { %v962_v55 = vpop.f32.mrf.mxu2  ;;  %v915_v62 = vpop.f32.mrf.mxu1 }
  0xc2   : > { %v10228_v34 = vadd.f32 %v962_v55, %v623_v2  ;;  %v10239_v27 = vadd.f32 %v915_v62, %v576_v5  ;;  %v2215_v2 = vrot.slane %v2213_v44, 1  ;;  %v2218_v55 = vshll.u32 %v8904_v30, 16 }
  0xc3   : > { %615 = vmatmul.bf16.gmra.mxu0 %v479_v36  ;;  %1704 = vmatmul.bf16.gmra.mxu3 %v1480_v0  ;;  %v8952_v36 = vld [vmem:[%s13383_s1 + $0x1b0] sm:$0xff]  ;;  %v9096_v0 = vunpack.c.l.b16 %v10172_v35  ;;  %v1488_v62 = vor.u32 %v1487_v51, %v1484_v13 }
  0xc4   : > { %954 = vmatmul.bf16.gmra.mxu1 %v762_v57  ;;  %2921 = vmatpush.bf16.msra.mxu2 %v8952_v36  ;;  %v2216_v57 = vor.u32 %v2215_v2, %v2211_v9  ;;  %v8960_v35 = vld [vmem:[%s13383_s1 + $0x1f0] sm:$0xff]  ;;  %v1042_v36 = vrot.slane %v701_v53, 3 }
  0xc5   : > { %v1843_v32 = vpack.c.b16 %v9096_v0, %v1400_v18  ;;  %v1489_v39 = vsel %vm1021_vm2, %v1479_v56, %v1488_v62  ;;  %3181 = vmatpush.bf16.msra.mxu3 %v8960_v35  ;;  %v8905_v56 = vld [vmem:[%s9844_s10 + $0x1c] sm:$0xff]  ;;  %v8968_v2 = vld [vmem:[%s13383_s1 + $0x230] sm:$0xff]  ;;  %v1043_v0 = vrot.slane %v704_v54, 4 }
  0xc6   : > { %1186 = vmatmul.bf16.gmra.mxu2 %v1037_v63  ;;  %v626_v45 = vpop.f32.mrf.mxu3  ;;  %v2220_v63 = vrot.slane %v2218_v55, 1  ;;  %3489 = vmatpush.bf16.msra.mxu0 %v8968_v2 }
  0xc8   : > { %v578_v24 = vpop.f32.mrf.mxu0 }
  0xc9   : > { %v965_v21 = vpop.f32.mrf.mxu2  ;;  %v917_v29 = vpop.f32.mrf.mxu1 }
  0xca   : > { %v10242_v61 = vadd.f32 %v965_v21, %v626_v45  ;;  %v10248_v5 = vadd.f32 %v917_v29, %v578_v24  ;;  %v1041_v45 = vsel %vm1021_vm2, %v1036_v22, %v1040_v31  ;;  %v2221_v21 = vsel %vm2209_vm3, %v2216_v57, %v2220_v63  ;;  %v9318_v24 = vld [vmem:[%s9844_s10 + $0x28] sm:$0xff]  }
  0xcb   : > { %v1491_v10 = vshrl.u32 %v9318_v24, 16  ;;  %v1494_v18 = vshll.u32 %v9318_v24, 16  ;;  %v2222_v57 = vshrl.u32 %v8904_v30, 16 }
  0xcd   : > { %v1493_v9 = vrot.slane %v1491_v10, 3  ;;  %v1496_v22 = vrot.slane %v1494_v18, 4  ;;  %v9319_v18 = vld [vmem:[%s9844_s10 + $0x30] sm:$0xff]  }
  0xce   : > { %v628_v33 = vpop.f32.mrf.mxu3 }
  0xd0   : > { %v581_v16 = vpop.f32.mrf.mxu0 }
  0xd1   : > { %v967_v19 = vpop.f32.mrf.mxu2  ;;  %v920_v44 = vpop.f32.mrf.mxu1 }
  0xd2   : > { %v10256_v40 = vadd.f32 %v967_v19, %v628_v33  ;;  %v10265_v49 = vadd.f32 %v920_v44, %v581_v16  ;;  %v2226_v33 = vshll.u32 %v8905_v56, 16  ;;  %v1044_v16 = vor.u32 %v1043_v0, %v1042_v36 }
  0xd3   : > { %1709 = vmatmul.bf16.gmra.mxu3 %v1489_v39  ;;  %1935 = vmatmul.bf16.vlgmr.msrb.gmra.mxu0 %v1843_v32  ;;  %v1497_v32 = vor.u32 %v1496_v22, %v1493_v9  ;;  %v2224_v39 = vor.u32 %v2222_v57, %v2220_v63  ;;  %v1500_v63 = vshrl.u32 %v9319_v18, 16  ;;  %v1046_v0 = vrot.slane %v710_v25, 3 }
  0xd4   : > { %2432 = vmatmul.bf16.vlgmr.msrb.gmra.mxu1 %v2221_v21  ;;  %v2228_v35 = vrot.slane %v2226_v33, 1  ;;  %v9528_v21 = vld [vmem:[%s9844_s10 + $0x14] sm:$0xff]   ;;  %v1045_v30 = vsel %vm1021_vm2, %v1040_v31, %v1044_v16  ;;  %v1047_v57 = vrot.slane %v713_v26, 4  ;;  %v2230_v33 = vshrl.u32 %v8905_v56, 16 }
  0xd5   : > { %v1498_v48 = vsel %vm1021_vm2, %v1488_v62, %v1497_v32 }
  0xd6   : > { %1191 = vmatmul.bf16.gmra.mxu2 %v1041_v45  ;;  %v631_v13 = vpop.f32.mrf.mxu3  ;;  %v2229_v10 = vsel %vm2209_vm3, %v2224_v39, %v2228_v35 }
  0xd8   : > { %v583_v28 = vpop.f32.mrf.mxu0 }
  0xd9   : > { %v970_v51 = vpop.f32.mrf.mxu2  ;;  %v922_v55 = vpop.f32.mrf.mxu1 }
  0xda   : > { %v10268_v29 = vadd.f32 %v970_v51, %v631_v13  ;;  %v10277_v19 = vadd.f32 %v922_v55, %v583_v28  ;;  %v1503_v51 = vshll.u32 %v9319_v18, 16  ;;  %v8906_v28 = vld [vmem:[%s9844_s10 + $0x24] sm:$0xff]  ;;  %v1502_v55 = vrot.slane %v1500_v63, 3 }
  0xdb   : > { %v2234_v39 = vshll.u32 %v8906_v28, 16 }
  0xdc   : > { %v1505_v31 = vrot.slane %v1503_v51, 4  ;;  %v9320_v51 = vld [vmem:[%s9844_s10 + $0x38] sm:$0xff]  }
  0xde   : > { %v633_v44 = vpop.f32.mrf.mxu3 }
  0xe0   : > { %v586_v53 = vpop.f32.mrf.mxu0 }
  0xe1   : > { %v972_v45 = vpop.f32.mrf.mxu2  ;;  %v925_v54 = vpop.f32.mrf.mxu1 }
  0xe2   : > { %v10280_v24 = vadd.f32 %v972_v45, %v633_v44  ;;  %v10286_v13 = vadd.f32 %v925_v54, %v586_v53  ;;  %v1506_v45 = vor.u32 %v1505_v31, %v1502_v55  ;;  %v2232_v53 = vor.u32 %v2230_v33, %v2228_v35  ;;  %v8951_v35 = vld [vmem:[%s13383_s1 + $0x1a8] sm:$0xff] }
  0xe3   : > { %1714 = vmatmul.bf16.gmra.mxu3 %v1498_v48  ;;  %1940 = vmatmul.bf16.gmra.mxu0 %v9528_v21  ;;  %v1048_v21 = vor.u32 %v1047_v57, %v1046_v0  ;;  %v2236_v48 = vrot.slane %v2234_v39, 1 }
  0xe4   : > { %2437 = vmatmul.bf16.gmra.mxu1 %v2229_v10  ;;  %v9530_v10 = vld [vmem:[%s9844_s10 + $0x1c] sm:$0xff]   ;;  %v1507_v25 = vsel %vm1021_vm2, %v1497_v32, %v1506_v45  ;;  %v8959_v32 = vld [vmem:[%s13383_s1 + $0x1e8] sm:$0xff]  ;;  %2922 = vmatpush.bf16.msra.mxu2 %v8951_v35 }
  0xe5   : > { %v1049_v26 = vsel %vm1021_vm2, %v1044_v16, %v1048_v21  ;;  %v2237_v56 = vsel %vm2209_vm3, %v2232_v53, %v2236_v48  ;;  %v8907_v16 = vld [vmem:[%s9844_s10 + $0x2c] sm:$0xff]  ;;  %3182 = vmatpush.bf16.msra.mxu3 %v8959_v32  ;;  %v1050_v53 = vrot.slane %v719_v3, 3  ;;  %v9532_v3 = vld [vmem:[%s9844_s10 + $0x24] sm:$0xff]  }
  0xe6   : > { %1196 = vmatmul.bf16.gmra.mxu2 %v1045_v30  ;;  %v636_v9 = vpop.f32.mrf.mxu3 }
  0xe8   : > { %v588_v62 = vpop.f32.mrf.mxu0 }
  0xe9   : > { %v975_v22 = vpop.f32.mrf.mxu2  ;;  %v927_v36 = vpop.f32.mrf.mxu1 }
  0xea   : > { %v10289_v2 = vadd.f32 %v975_v22, %v636_v9  ;;  %v10295_v44 = vadd.f32 %v927_v36, %v588_v62  ;;  %v1509_v22 = vshrl.u32 %v9320_v51, 16  ;;  %v1512_v62 = vshll.u32 %v9320_v51, 16 }
  0xec   : > { %v1511_v57 = vrot.slane %v1509_v22, 3  ;;  %v1514_v33 = vrot.slane %v1512_v62, 4 }
  0xee   : > { %v638_v54 = vpop.f32.mrf.mxu3 }
  0xf0   : > { %v591_v63 = vpop.f32.mrf.mxu0 }
  0xf1   : > { %v977_v30 = vpop.f32.mrf.mxu2  ;;  %v930_v11 = vpop.f32.mrf.mxu1 }
  0xf2   : > { %v10298_v18 = vadd.f32 %v977_v30, %v638_v54  ;;  %v10304_v9 = vadd.f32 %v930_v11, %v591_v63  ;;  %v1051_v54 = vrot.slane %v722_v4, 4  ;;  %v2238_v30 = vshrl.u32 %v8906_v28, 16 }
  0xf3   : > { %1719 = vmatmul.bf16.gmra.mxu3 %v1507_v25  ;;  %1945 = vmatmul.bf16.gmra.mxu0 %v9530_v10  ;;  %v2242_v10 = vshll.u32 %v8907_v16, 16  ;;  %v8967_v25 = vld [vmem:[%s13383_s1 + $0x228] sm:$0xff]  ;;  %v1515_v11 = vor.u32 %v1514_v33, %v1511_v57  ;;  %v8908_v33 = vld [vmem:[%s9844_s10 + $0x34] sm:$0xff] }
  0xf4   : > { %2442 = vmatmul.bf16.gmra.mxu1 %v2237_v56  ;;  %3490 = vmatpush.bf16.msra.mxu0 %v8967_v25  ;;  %v2240_v56 = vor.u32 %v2238_v30, %v2236_v48  ;;  %v1054_v25 = vrot.slane %v728_v42, 3 }
  0xf5   : > { %v2244_v51 = vrot.slane %v2242_v10, 1  ;;  %v1516_v28 = vsel %vm1021_vm2, %v1506_v45, %v1515_v11 }
  0xf6   : > { %1201 = vmatmul.bf16.gmra.mxu2 %v1049_v26  ;;  %v641_v55 = vpop.f32.mrf.mxu3  ;;  %v1052_v26 = vor.u32 %v1051_v54, %v1050_v53 }
  0xf8   : > { %v593_v0 = vpop.f32.mrf.mxu0  ;;  %v1053_v32 = vsel %vm1021_vm2, %v1048_v21, %v1052_v26 }
  0xf9   : > { %v980_v31 = vpop.f32.mrf.mxu2  ;;  %v932_v39 = vpop.f32.mrf.mxu1 }
  0xfa   : > { %v10313_v36 = vadd.f32 %v980_v31, %v641_v55  ;;  %v10319_v63 = vadd.f32 %v932_v39, %v593_v0  ;;  %v2245_v55 = vsel %vm2209_vm3, %v2240_v56, %v2244_v51  ;;  %v9321_v31 = vld [vmem:[%s9844_s10 + $0x40] sm:$0xff]   ;;  %v1055_v56 = vrot.slane %v731_v43, 4 }
  0xfb   : > { %v1518_v48 = vshrl.u32 %v9321_v31, 16  ;;  %v1521_v57 = vshll.u32 %v9321_v31, 16 }
  0xfd   : > { %v1520_v30 = vrot.slane %v1518_v48, 3  ;;  %v1523_v21 = vrot.slane %v1521_v57, 4  ;;  %v9534_v48 = vld [vmem:[%s9844_s10 + $0x2c] sm:$0xff]  }
  0xfe   : > { %v643_v35 = vpop.f32.mrf.mxu3 }
 0x100   : > { %v596_v4 = vpop.f32.mrf.mxu0 }
 0x101   : > { %v982_v22 = vpop.f32.mrf.mxu2  ;;  %v935_v62 = vpop.f32.mrf.mxu1 }
 0x102   : > { %v10325_v52 = vadd.f32 %v982_v22, %v643_v35  ;;  %v10331_v0 = vadd.f32 %v935_v62, %v596_v4  ;;  %v2246_v35 = vshrl.u32 %v8907_v16, 16  ;;  %v2250_v22 = vshll.u32 %v8908_v33, 16 }
 0x103   : > { %1724 = vmatmul.bf16.gmra.mxu3 %v1516_v28  ;;  %1950 = vmatmul.bf16.gmra.mxu0 %v9532_v3  ;;  %v1524_v4 = vor.u32 %v1523_v21, %v1520_v30  ;;  %v1056_v28 = vor.u32 %v1055_v56, %v1054_v25  ;;  %v8950_v21 = vld [vmem:[%s13383_s1 + $0x1a0] sm:$0xff] }
 0x104   : > { %2447 = vmatmul.bf16.gmra.mxu1 %v2245_v55  ;;  %v2248_v62 = vor.u32 %v2246_v35, %v2244_v51  ;;  %2923 = vmatpush.bf16.msra.mxu2 %v8950_v21 }
 0x105   : > { %v1525_v42 = vsel %vm1021_vm2, %v1515_v11, %v1524_v4  ;;  %v1057_v43 = vsel %vm1021_vm2, %v1052_v26, %v1056_v28 }
 0x106   : > { %1206 = vmatmul.bf16.gmra.mxu2 %v1053_v32  ;;  %v646_v39 = vpop.f32.mrf.mxu3  ;;  %v2252_v32 = vrot.slane %v2250_v22, 1 }
 0x108   : > { %v598_v45 = vpop.f32.mrf.mxu0  ;;  %v2253_v16 = vsel %vm2209_vm3, %v2248_v62, %v2252_v32 }
 0x109   : > { %v985_v53 = vpop.f32.mrf.mxu2  ;;  %v937_v10 = vpop.f32.mrf.mxu1 }
 0x10a   : > { %v10334_v54 = vadd.f32 %v985_v53, %v646_v39  ;;  %v10340_v3 = vadd.f32 %v937_v10, %v598_v45  ;;  %v9322_v53 = vld [vmem:[%s9844_s10 + $0x48] sm:$0xff]   ;;  %v8909_v10 = vld [vmem:[%s9844_s10 + $0x3c] sm:$0xff] }
 0x10b   : > { %v1527_v51 = vshrl.u32 %v9322_v53, 16  ;;  %v1530_v30 = vshll.u32 %v9322_v53, 16 }
 0x10d   : > { %v1529_v35 = vrot.slane %v1527_v51, 3  ;;  %v1532_v22 = vrot.slane %v1530_v30, 4 }
 0x10e   : > { %v648_v55 = vpop.f32.mrf.mxu3 }
 0x110   : > { %v601_v39 = vpop.f32.mrf.mxu0 }
 0x111   : > { %v987_v31 = vpop.f32.mrf.mxu2  ;;  %v940_v46 = vpop.f32.mrf.mxu1 }
 0x112   : > { %v10343_v57 = vadd.f32 %v987_v31, %v648_v55  ;;  %v10349_v45 = vadd.f32 %v940_v46, %v601_v39  ;;  %v1058_v55 = vrot.slane %v737_v7, 3  ;;  %v1059_v31 = vrot.slane %v740_v14, 4  ;;  %v8958_v46 = vld [vmem:[%s13383_s1 + $0x1e0] sm:$0xff]  ;;  %v9536_v7 = vld [vmem:[%s9844_s10 + $0x34] sm:$0xff]  }
 0x113   : > { %1729 = vmatmul.bf16.gmra.mxu3 %v1525_v42  ;;  %1955 = vmatmul.bf16.gmra.mxu0 %v9534_v48  ;;  %v2254_v48 = vshrl.u32 %v8908_v33, 16  ;;  %v2258_v39 = vshll.u32 %v8909_v10, 16 }
 0x114   : > { %2452 = vmatmul.bf16.gmra.mxu1 %v2253_v16  ;;  %3183 = vmatpush.bf16.msra.mxu3 %v8958_v46  ;;  %v1060_v16 = vor.u32 %v1059_v31, %v1058_v55  ;;  %v8910_v31 = vld [vmem:[%s9844_s10 + $0x44] sm:$0xff] }
 0x115   : > { %v2256_v53 = vor.u32 %v2254_v48, %v2252_v32  ;;  %v2260_v51 = vrot.slane %v2258_v39, 1  ;;  %v8966_v32 = vld [vmem:[%s13383_s1 + $0x220] sm:$0xff] }
 0x116   : > { %1211 = vmatmul.bf16.gmra.mxu2 %v1057_v43  ;;  %v651_v11 = vpop.f32.mrf.mxu3  ;;  %v1533_v43 = vor.u32 %v1532_v22, %v1529_v35  ;;  %3491 = vmatpush.bf16.msra.mxu0 %v8966_v32 }
 0x118   : > { %v603_v56 = vpop.f32.mrf.mxu0  ;;  %v1534_v33 = vsel %vm1021_vm2, %v1524_v4, %v1533_v43 }
 0x119   : > { %v990_v25 = vpop.f32.mrf.mxu2  ;;  %v942_v62 = vpop.f32.mrf.mxu1 }
 0x11a   : > { %v10355_v26 = vadd.f32 %v990_v25, %v651_v11  ;;  %v10361_v42 = vadd.f32 %v942_v62, %v603_v56  ;;  %v1061_v25 = vsel %vm1021_vm2, %v1056_v28, %v1060_v16  ;;  %v2261_v56 = vsel %vm2209_vm3, %v2256_v53, %v2260_v51  ;;  %v9323_v62 = vld [vmem:[%s9844_s10 + $0x50] sm:$0xff]  }
 0x11b   : > { %v1536_v22 = vshrl.u32 %v9323_v62, 16  ;;  %v1539_v55 = vshll.u32 %v9323_v62, 16 }
 0x11d   : > { %v1538_v46 = vrot.slane %v1536_v22, 3  ;;  %v1541_v53 = vrot.slane %v1539_v55, 4  ;;  %v9538_v22 = vld [vmem:[%s9844_s10 + $0x3c] sm:$0xff]  }
 0x11e   : > { %v653_v30 = vpop.f32.mrf.mxu3 }
 0x120   : > { %v606_v14 = vpop.f32.mrf.mxu0 }
 0x121   : > { %v992_v21 = vpop.f32.mrf.mxu2  ;;  %v945_v11 = vpop.f32.mrf.mxu1 }
 0x122   : > { %v10367_v6 = vadd.f32 %v992_v21, %v653_v30  ;;  %v10373_v35 = vadd.f32 %v945_v11, %v606_v14  ;;  %v1062_v21 = vrot.slane %v746_v37, 3  ;;  %v2262_v14 = vshrl.u32 %v8909_v10, 16 }
 0x123   : > { %1734 = vmatmul.bf16.gmra.mxu3 %v1534_v33  ;;  %1960 = vmatmul.bf16.gmra.mxu0 %v9536_v7  ;;  %v1063_v7 = vrot.slane %v749_v38, 4  ;;  %v2266_v33 = vshll.u32 %v8910_v31, 16 }
 0x124   : > { %13536 = vst [vmem:[#allocation6_spill] sm:$0xff] %v10367_v6  ;;  %2457 = vmatmul.bf16.gmra.mxu1 %v2261_v56  ;;  %v2264_v62 = vor.u32 %v2262_v14, %v2260_v51  ;;  %v9542_v6 = vld [vmem:[%s9844_s10 + $0x4c] sm:$0xff]  }
 0x125   : > { %v1064_v56 = vor.u32 %v1063_v7, %v1062_v21  ;;  %v2268_v32 = vrot.slane %v2266_v33, 1 }
 0x126   : > { %1216 = vmatmul.bf16.gmra.mxu2 %v1061_v25  ;;  %v656_v4 = vpop.f32.mrf.mxu3  ;;  %v1542_v25 = vor.u32 %v1541_v53, %v1538_v46  ;;  %v8911_v53 = vld [vmem:[%s9844_s10 + $0x4c] sm:$0xff] }
 0x127   : > { %v1065_v38 = vsel %vm1021_vm2, %v1060_v16, %v1064_v56  ;;  %v2269_v10 = vsel %vm2209_vm3, %v2264_v62, %v2268_v32  ;;  %v13539_v62 = vshrl.u32 %v9862_v15, 16 }
 0x128   : > { %v608_v39 = vpop.f32.mrf.mxu0  ;;  %v1543_v37 = vsel %vm1021_vm2, %v1533_v43, %v1542_v25 }
 0x129   : > { %v995_v48 = vpop.f32.mrf.mxu2  ;;  %v947_v30 = vpop.f32.mrf.mxu1 }
 0x12a   : > { %v10379_v28 = vadd.f32 %v995_v48, %v656_v4  ;;  %v10385_v11 = vadd.f32 %v947_v30, %v608_v39  ;;  %v9324_v39 = vld [vmem:[%s9844_s10 + $0x58] sm:$0xff]  }
 0x12b   : > { %v1545_v51 = vshrl.u32 %v9324_v39, 16  ;;  %v1548_v46 = vshll.u32 %v9324_v39, 16  ;;  %v8957_v39 = vld [vmem:[%s13383_s1 + $0x1d8] sm:$0xff] }
 0x12c   : > { %13537 = vst [vmem:[#allocation7_spill] sm:$0xff] %v10379_v28  ;;  %3184 = vmatpush.bf16.msra.mxu3 %v8957_v39 }
 0x12d   : > { %v1547_v33 = vrot.slane %v1545_v51, 3 }
 0x12e   : > { %v658_v4 = vpop.f32.mrf.mxu3 }
 0x130   : > { %v611_v23 = vpop.f32.mrf.mxu0 }
 0x131   : > { %v997_v48 = vpop.f32.mrf.mxu2  ;;  %v950_v8 = vpop.f32.mrf.mxu1 }
 0x132   : > { %v10388_v55 = vadd.f32 %v997_v48, %v658_v4  ;;  %v10394_v30 = vadd.f32 %v950_v8, %v611_v23  ;;  %v1550_v4 = vrot.slane %v1548_v46, 4  ;;  %v1066_v48 = vrot.slane %v13539_v62, 3 }
 0x133   : > { %1739 = vmatmul.bf16.gmra.mxu3 %v1543_v37  ;;  %1965 = vmatmul.bf16.gmra.mxu0 %v9538_v22  ;;  %v13540_v23 = vshll.u32 %v9862_v15, 16  ;;  %v2270_v37 = vshrl.u32 %v8910_v31, 16  ;;  %v2274_v8 = vshll.u32 %v8911_v53, 16 }
 0x134   : > { %13538 = vst [vmem:[#allocation8_spill] sm:$0xff] %v10388_v55  ;;  %2462 = vmatmul.bf16.gmra.mxu1 %v2269_v10  ;;  %v1551_v51 = vor.u32 %v1550_v4, %v1547_v33  ;;  %v9325_v33 = vld [vmem:[%s9844_s10 + $0x60] sm:$0xff]  }
 0x135   : > { %v1067_v22 = vrot.slane %v13540_v23, 4  ;;  %v2272_v15 = vor.u32 %v2270_v37, %v2268_v32  ;;  %v1554_v32 = vshrl.u32 %v9325_v33, 16 }
 0x136   : > { %1221 = vmatmul.bf16.gmra.mxu2 %v1065_v38  ;;  %v1700_v21 = vpop.f32.mrf.mxu3 }
 0x137   : > { %v1068_v46 = vor.u32 %v1067_v22, %v1066_v48  ;;  %v1557_v22 = vshll.u32 %v9325_v33, 16  ;;  %v1556_v39 = vrot.slane %v1554_v32, 3 }
 0x138   : > { %v613_v43 = vpop.f32.mrf.mxu0 }
 0x139   : > { %v1182_v7 = vpop.f32.mrf.mxu2  ;;  %v952_v16 = vpop.f32.mrf.mxu1  ;;  %v1069_v55 = vsel %vm1021_vm2, %v1064_v56, %v1068_v46 }
 0x13a   : > { %v1272_v14 = vadd.f32 %v1182_v7, %v10215_v1  ;;  %v10402_v10 = vadd.f32 %v952_v16, %v613_v43  ;;  %v8949_v1 = vld [vmem:[%s13383_s1 + $0x198] sm:$0xff]  ;;  %v2276_v7 = vrot.slane %v2274_v8, 1  ;;  %v1552_v16 = vsel %vm1021_vm2, %v1542_v25, %v1551_v51 }
 0x13b   : > { %2924 = vmatpush.bf16.msra.mxu2 %v8949_v1  ;;  %v8912_v25 = vld [vmem:[%s9844_s10 + $0x54] sm:$0xff] }
 0x13c   : > { %v1790_v38 = vadd.f32 %v1700_v21, %v1272_v14  ;;  %v9540_v21 = vld [vmem:[%s9844_s10 + $0x44] sm:$0xff]   ;;  %v2277_v28 = vsel %vm2209_vm3, %v2272_v15, %v2276_v7  ;;  %v1559_v15 = vrot.slane %v1557_v22, 4 }
 0x13e   : > { %v1702_v31 = vpop.f32.mrf.mxu3  ;;  %v1560_v33 = vor.u32 %v1559_v15, %v1556_v39  ;;  %v9326_v39 = vld [vmem:[%s9844_s10 + $0x68] sm:$0xff]  }
 0x140   : > { %v616_v43 = vpop.f32.mrf.mxu0 }
 0x141   : > { %v1184_v62 = vpop.f32.mrf.mxu2  ;;  %v955_v23 = vpop.f32.mrf.mxu1 }
 0x142   : > { %v1273_v14 = vadd.f32 %v1184_v62, %v10226_v41  ;;  %v10416_v48 = vadd.f32 %v955_v23, %v616_v43  ;;  %v8965_v41 = vld [vmem:[%s13383_s1 + $0x218] sm:$0xff]  ;;  %v13542_v62 = vshll.u32 %v9868_v17, 16  ;;  %v2282_v43 = vshll.u32 %v8912_v25, 16 }
 0x143   : > { %1744 = vmatmul.bf16.gmra.mxu3 %v1552_v16  ;;  %1970 = vmatmul.bf16.gmra.mxu0 %v9540_v21 }
 0x144   : > { %v1791_v4 = vadd.f32 %v1702_v31, %v1273_v14  ;;  %2467 = vmatmul.bf16.gmra.mxu1 %v2277_v28  ;;  %3492 = vmatpush.bf16.msra.mxu0 %v8965_v41  ;;  %v1071_v21 = vrot.slane %v13542_v62, 4  ;;  %v2278_v14 = vshrl.u32 %v8911_v53, 16  ;;  %v2284_v41 = vrot.slane %v2282_v43, 1 }
 0x146   : > { %1226 = vmatmul.bf16.gmra.mxu2 %v1069_v55  ;;  %v1705_v37 = vpop.f32.mrf.mxu3  ;;  %v13541_v55 = vshrl.u32 %v9868_v17, 16  ;;  %v2280_v22 = vor.u32 %v2278_v14, %v2276_v7 }
 0x148   : > { %v618_v1 = vpop.f32.mrf.mxu0  ;;  %v1070_v28 = vrot.slane %v13541_v55, 3  ;;  %v2285_v62 = vsel %vm2209_vm3, %v2280_v22, %v2284_v41 }
 0x149   : > { %v1187_v56 = vpop.f32.mrf.mxu2  ;;  %v957_v31 = vpop.f32.mrf.mxu1 }
 0x14a   : > { %v1274_v8 = vadd.f32 %v1187_v56, %v10239_v27  ;;  %v10427_v23 = vadd.f32 %v957_v31, %v618_v1  ;;  %v9002_v27 = vld [vmem:[%s13383_s1 + $0x2b8] sm:$0xff]  ;;  %v1072_v32 = vor.u32 %v1071_v21, %v1070_v28  ;;  %v1563_v28 = vshrl.u32 %v9326_v39, 16 }
 0x14b   : > { %4255 = vmatpush.bf16.msra.mxu1 %v9002_v27  ;;  %v8913_v21 = vld [vmem:[%s9844_s10 + $0x5c] sm:$0xff] }
 0x14c   : > { %v1792_v16 = vadd.f32 %v1705_v37, %v1274_v8  ;;  %v1561_v37 = vsel %vm1021_vm2, %v1551_v51, %v1560_v33  ;;  %v1073_v31 = vsel %vm1021_vm2, %v1068_v46, %v1072_v32  ;;  %v13543_v46 = vshrl.u32 %v9931_v58, 16 }
 0x14d   : > { %v1565_v22 = vrot.slane %v1563_v28, 3 }
 0x14e   : > { %v1707_v56 = vpop.f32.mrf.mxu3  ;;  %v1074_v27 = vrot.slane %v13543_v46, 3 }
 0x150   : > { %v1936_v53 = vpop.f32.mrf.mxu0 }
 0x151   : > { %v1189_v55 = vpop.f32.mrf.mxu2  ;;  %v2026_v8 = vadd.f32 %v1936_v53, %v1790_v38  ;;  %v2433_v1 = vpop.f32.mrf.mxu1 }
 0x152   : > { %v1275_v17 = vadd.f32 %v1189_v55, %v10248_v5  ;;  %v1566_v5 = vshll.u32 %v9326_v39, 16 }
 0x153   : > { %v10438_v7 = vadd.f32 %v2433_v1, %v2026_v8  ;;  %1749 = vmatmul.bf16.gmra.mxu3 %v1561_v37  ;;  %1975 = vmatmul.bf16.gmra.mxu0 %v9542_v6  ;;  %v13544_v6 = vshll.u32 %v9931_v58, 16  ;;  %v2286_v37 = vshrl.u32 %v8912_v25, 16  ;;  %v2290_v8 = vshll.u32 %v8913_v21, 16 }
 0x154   : > { %v1793_v15 = vadd.f32 %v1707_v56, %v1275_v17  ;;  %2472 = vmatmul.bf16.gmra.mxu1 %v2285_v62  ;;  %v1568_v55 = vrot.slane %v1566_v5, 4 }
 0x155   : > { %v1075_v53 = vrot.slane %v13544_v6, 4  ;;  %v2288_v28 = vor.u32 %v2286_v37, %v2284_v41  ;;  %v2292_v5 = vrot.slane %v2290_v8, 1  ;;  %v8956_v41 = vld [vmem:[%s13383_s1 + $0x1d0] sm:$0xff]  ;;  %v13545_v8 = vshrl.u32 %v9970_v20, 16 }
 0x156   : > { %1231 = vmatmul.bf16.gmra.mxu2 %v1073_v31  ;;  %v1710_v14 = vpop.f32.mrf.mxu3  ;;  %v1569_v62 = vor.u32 %v1568_v55, %v1565_v22  ;;  %v9327_v22 = vld [vmem:[%s9844_s10 + $0x70] sm:$0xff]   ;;  %3185 = vmatpush.bf16.msra.mxu3 %v8956_v41 }
 0x157   : > { %v1076_v39 = vor.u32 %v1075_v53, %v1074_v27 }
 0x158   : > { %v1938_v51 = vpop.f32.mrf.mxu0 }
 0x159   : > { %v1192_v43 = vpop.f32.mrf.mxu2  ;;  %v2027_v56 = vadd.f32 %v1938_v51, %v1791_v4  ;;  %v2435_v17 = vpop.f32.mrf.mxu1  ;;  %v9544_v51 = vld [vmem:[%s9844_s10 + $0x54] sm:$0xff]  }
 0x15a   : > { %v1276_v38 = vadd.f32 %v1192_v43, %v10265_v49  ;;  %v8948_v49 = vld [vmem:[%s13383_s1 + $0x190] sm:$0xff] }
 0x15b   : > { %v10446_v31 = vadd.f32 %v2435_v17, %v2027_v56  ;;  %2925 = vmatpush.bf16.msra.mxu2 %v8948_v49  ;;  %v1077_v56 = vsel %vm1021_vm2, %v1072_v32, %v1076_v39  ;;  %v2293_v17 = vsel %vm2209_vm3, %v2288_v28, %v2292_v5  ;;  %v1078_v49 = vrot.slane %v13545_v8, 3 }
 0x15c   : > { %v1794_v1 = vadd.f32 %v1710_v14, %v1276_v38  ;;  %v1570_v14 = vsel %vm1021_vm2, %v1560_v33, %v1569_v62  ;;  %v1575_v33 = vshll.u32 %v9327_v22, 16 }
 0x15e   : > { %v1712_v4 = vpop.f32.mrf.mxu3 }
 0x160   : > { %v1941_v25 = vpop.f32.mrf.mxu0 }
 0x161   : > { %v1194_v43 = vpop.f32.mrf.mxu2  ;;  %v2028_v38 = vadd.f32 %v1941_v25, %v1792_v16  ;;  %v2438_v46 = vpop.f32.mrf.mxu1  ;;  %v8914_v16 = vld [vmem:[%s9844_s10 + $0x64] sm:$0xff] }
 0x162   : > { %v1277_v58 = vadd.f32 %v1194_v43, %v10277_v19  ;;  %v1572_v19 = vshrl.u32 %v9327_v22, 16 }
 0x163   : > { %v10460_v55 = vadd.f32 %v2438_v46, %v2028_v38  ;;  %1754 = vmatmul.bf16.gmra.mxu3 %v1570_v14  ;;  %1980 = vmatmul.bf16.gmra.mxu0 %v9544_v51  ;;  %v13546_v51 = vshll.u32 %v9970_v20, 16  ;;  %v2294_v14 = vshrl.u32 %v8913_v21, 16  ;;  %v2298_v38 = vshll.u32 %v8914_v16, 16 }
 0x164   : > { %v1795_v27 = vadd.f32 %v1712_v4, %v1277_v58  ;;  %2477 = vmatmul.bf16.gmra.mxu1 %v2293_v17  ;;  %v1574_v28 = vrot.slane %v1572_v19, 3  ;;  %v1577_v4 = vrot.slane %v1575_v33, 4 }
 0x165   : > { %v1079_v25 = vrot.slane %v13546_v51, 4  ;;  %v2296_v41 = vor.u32 %v2294_v14, %v2292_v5  ;;  %v2300_v19 = vrot.slane %v2298_v38, 1  ;;  %v9001_v5 = vld [vmem:[%s13383_s1 + $0x2b0] sm:$0xff]  ;;  %v13547_v14 = vshrl.u32 %v10003_v50, 16 }
 0x166   : > { %1236 = vmatmul.bf16.gmra.mxu2 %v1077_v56  ;;  %v1715_v6 = vpop.f32.mrf.mxu3  ;;  %v8964_v56 = vld [vmem:[%s13383_s1 + $0x210] sm:$0xff]  ;;  %v1578_v17 = vor.u32 %v1577_v4, %v1574_v28  ;;  %v9328_v28 = vld [vmem:[%s9844_s10 + $0x78] sm:$0xff]   ;;  %4256 = vmatpush.bf16.msra.mxu1 %v9001_v5 }
 0x167   : > { %3493 = vmatpush.bf16.msra.mxu0 %v8964_v56  ;;  %v1080_v22 = vor.u32 %v1079_v25, %v1078_v49  ;;  %v1082_v38 = vrot.slane %v13547_v14, 3  ;;  %v9329_v14 = vld [vmem:[%s9844_s10 + $0x80] sm:$0xff]  }
 0x168   : > { %v1943_v37 = vpop.f32.mrf.mxu0 }
 0x169   : > { %v1197_v32 = vpop.f32.mrf.mxu2  ;;  %v2029_v43 = vadd.f32 %v1943_v37, %v1793_v15  ;;  %v2440_v58 = vpop.f32.mrf.mxu1  ;;  %v1081_v8 = vsel %vm1021_vm2, %v1076_v39, %v1080_v22 }
 0x16a   : > { %v1278_v53 = vadd.f32 %v1197_v32, %v10286_v13  ;;  %v9546_v32 = vld [vmem:[%s9844_s10 + $0x5c] sm:$0xff]  }
 0x16b   : > { %v10471_v13 = vadd.f32 %v2440_v58, %v2029_v43  ;;  %v2301_v43 = vsel %vm2209_vm3, %v2296_v41, %v2300_v19 }
 0x16c   : > { %v1796_v46 = vadd.f32 %v1715_v6, %v1278_v53  ;;  %v1579_v6 = vsel %vm1021_vm2, %v1569_v62, %v1578_v17  ;;  %v1584_v62 = vshll.u32 %v9328_v28, 16 }
 0x16e   : > { %v1717_v15 = vpop.f32.mrf.mxu3  ;;  %v1586_v41 = vrot.slane %v1584_v62, 4 }
 0x170   : > { %v1946_v21 = vpop.f32.mrf.mxu0 }
 0x171   : > { %v1199_v33 = vpop.f32.mrf.mxu2  ;;  %v2030_v53 = vadd.f32 %v1946_v21, %v1794_v1  ;;  %v2443_v37 = vpop.f32.mrf.mxu1  ;;  %v10485_v1 = vld [vmem:[%s9844_s10 + $0x6c] sm:$0xff]  ;;  %v2302_v21 = vshrl.u32 %v8914_v16, 16 }
 0x172   : > { %v1279_v20 = vadd.f32 %v1199_v33, %v10295_v44  ;;  %v1581_v44 = vshrl.u32 %v9328_v28, 16 }
 0x173   : > { %v10482_v49 = vadd.f32 %v2443_v37, %v2030_v53  ;;  %1759 = vmatmul.bf16.gmra.mxu3 %v1579_v6  ;;  %1985 = vmatmul.bf16.gmra.mxu0 %v9546_v32  ;;  %v13548_v32 = vshll.u32 %v10003_v50, 16  ;;  %v2306_v6 = vshll.u32 %v10485_v1, 16 }
 0x174   : > { %v1797_v4 = vadd.f32 %v1717_v15, %v1279_v20  ;;  %2482 = vmatmul.bf16.gmra.mxu1 %v2301_v43  ;;  %v1583_v56 = vrot.slane %v1581_v44, 3  ;;  %v2304_v43 = vor.u32 %v2302_v21, %v2300_v19  ;;  %v9548_v44 = vld [vmem:[%s9844_s10 + $0x64] sm:$0xff]  }
 0x175   : > { %v1083_v20 = vrot.slane %v13548_v32, 4  ;;  %v2308_v28 = vrot.slane %v2306_v6, 1 }
 0x176   : > { %1241 = vmatmul.bf16.gmra.mxu2 %v1081_v8  ;;  %v1720_v39 = vpop.f32.mrf.mxu3 }
 0x177   : > { %v10499_v8 = vor.u32 %v1083_v20, %v1082_v38  ;;  %v8947_v38 = vld [vmem:[%s13383_s1 + $0x188] sm:$0xff]  ;;  %v13549_v20 = vshrl.u32 %v10033_v12, 16 }
 0x178   : > { %v1948_v25 = vpop.f32.mrf.mxu0  ;;  %2926 = vmatpush.bf16.msra.mxu2 %v8947_v38 }
 0x179   : > { %v1202_v58 = vpop.f32.mrf.mxu2  ;;  %v2031_v15 = vadd.f32 %v1948_v25, %v1795_v27  ;;  %v2445_v33 = vpop.f32.mrf.mxu1  ;;  %v2309_v25 = vsel %vm2209_vm3, %v2304_v43, %v2308_v28  ;;  %v1086_v21 = vrot.slane %v13549_v20, 3 }
 0x17a   : > { %v1280_v51 = vadd.f32 %v1202_v58, %v10304_v9  ;;  %v10497_v9 = vor.u32 %v1586_v41, %v1583_v56  ;;  %v10520_v56 = vld [vmem:[%s9844_s10 + $0x74] sm:$0xff] }
 0x17b   : > { %v10495_v37 = vadd.f32 %v2445_v33, %v2031_v15 }
 0x17c   : > { %v10493_v53 = vadd.f32 %v1720_v39, %v1280_v51  ;;  %v1588_v16 = vsel %vm1021_vm2, %v1578_v17, %v10497_v9  ;;  %v1085_v51 = vsel %vm1021_vm2, %v1080_v22, %v10499_v8  ;;  %v1593_v17 = vshll.u32 %v9329_v14, 16  ;;  %v8955_v22 = vld [vmem:[%s13383_s1 + $0x1c8] sm:$0xff] }
 0x17d   : > { %3186 = vmatpush.bf16.msra.mxu3 %v8955_v22 }
 0x17e   : > { %v1722_v5 = vpop.f32.mrf.mxu3  ;;  %v1595_v43 = vrot.slane %v1593_v17, 4  ;;  %v9550_v17 = vld [vmem:[%s9844_s10 + $0x6c] sm:$0xff]  }
 0x180   : > { %v1951_v62 = vpop.f32.mrf.mxu0 }
 0x181   : > { %v1204_v27 = vpop.f32.mrf.mxu2  ;;  %v2032_v39 = vadd.f32 %v1951_v62, %v1796_v46  ;;  %v2448_v58 = vpop.f32.mrf.mxu1  ;;  %v1590_v46 = vshrl.u32 %v9329_v14, 16  ;;  %v2310_v62 = vshrl.u32 %v10485_v1, 16 }
 0x182   : > { %v1281_v50 = vadd.f32 %v1204_v27, %v10319_v63 }
 0x183   : > { %v10514_v63 = vadd.f32 %v2448_v58, %v2032_v39  ;;  %1764 = vmatmul.bf16.gmra.mxu3 %v1588_v16  ;;  %1990 = vmatmul.bf16.gmra.mxu0 %v9548_v44  ;;  %v1592_v6 = vrot.slane %v1590_v46, 3  ;;  %v13550_v44 = vshll.u32 %v10033_v12, 16  ;;  %v2314_v16 = vshll.u32 %v10520_v56, 16 }
 0x184   : > { %v10509_v19 = vadd.f32 %v1722_v5, %v1281_v50  ;;  %2487 = vmatmul.bf16.gmra.mxu1 %v2309_v25  ;;  %v9738_v12 = vmov 0   ;;  %v2312_v25 = vor.u32 %v2310_v62, %v2308_v28 }
 0x185   : > { %v1087_v50 = vrot.slane %v13550_v44, 4  ;;  %9646 = vset.pattern.permute.xlu0 %v9738_v12  ;;  %288 = vst [vmem:[#allocation2] sm:$0xf] %v9738_v12  ;;  %9647 = vset.pattern.permute.xlu1 %v9738_v12  ;;  %v2316_v14 = vrot.slane %v2314_v16, 1  ;;  %v13551_v16 = vshrl.u32 %v10066_v59, 16 }
 0x186   : > { %1246 = vmatmul.bf16.gmra.mxu2 %v1085_v51  ;;  %v1725_v41 = vpop.f32.mrf.mxu3  ;;  %v10539_v51 = vor.u32 %v1595_v43, %v1592_v6  ;;  %289 = vst [vmem:[#allocation2 + $0x4] sm:$0xf] %v9738_v12  ;;  %9648 = vset.pattern.permute.xlu2 %v9738_v12 }
 0x187   : > { %v10541_v1 = vor.u32 %v1087_v50, %v1086_v21  ;;  %290 = vst [vmem:[#allocation2 + $0x8] sm:$0xf] %v9738_v12  ;;  %v2317_v20 = vsel %vm2209_vm3, %v2312_v25, %v2316_v14  ;;  %v9330_v21 = vld [vmem:[%s9844_s10 + $0x88] sm:$0xff]  }
 0x188   : > { %v1953_v32 = vpop.f32.mrf.mxu0  ;;  %291 = vst [vmem:[#allocation2 + $0x9c] sm:$0xf] %v9738_v12  ;;  %v1602_v43 = vshll.u32 %v9330_v21, 16 }
 0x189   : > { %v1207_v15 = vpop.f32.mrf.mxu2  ;;  %v2033_v5 = vadd.f32 %v1953_v32, %v1797_v4  ;;  %v2450_v27 = vpop.f32.mrf.mxu1  ;;  %v252_v4 = vld [vmem:[%s13385_s3] sm:$0xff]  ;;  %292 = vst [vmem:[#allocation2 + $0xa0] sm:$0xf] %v9738_v12  ;;  %v1089_v32 = vsel %vm1021_vm2, %v10499_v8, %v10541_v1  ;;  %v253_v8 = vld [vmem:[%s13385_s3 + $0x8] sm:$0xff] }
 0x18a   : > { %v1282_v33 = vadd.f32 %v1207_v15, %v10331_v0  ;;  %v8963_v0 = vld [vmem:[%s13383_s1 + $0x208] sm:$0xff]  ;;  %3701 = vperm.xlu0 %9646, %v252_v4   ;;  %v1597_v15 = vsel %vm1021_vm2, %v10497_v9, %v10539_v51  ;;  %293 = vst [vmem:[#allocation2 + $0xa4] sm:$0xf] %v9738_v12  ;;  %v1599_v9 = vshrl.u32 %v9330_v21, 16  ;;  %v1604_v12 = vrot.slane %v1602_v43, 4 }
 0x18b   : > { %v10531_v58 = vadd.f32 %v2450_v27, %v2033_v5  ;;  %3494 = vmatpush.bf16.msra.mxu0 %v8963_v0  ;;  %v10565_v5 = vld [vmem:[%s9844_s10 + $0x7c] sm:$0xff]  ;;  %v1090_v0 = vrot.slane %v13551_v16, 3 }
 0x18c   : > { %v10529_v39 = vadd.f32 %v1725_v41, %v1282_v33  ;;  %v1601_v4 = vrot.slane %v1599_v9, 3 }
 0x18e   : > { %v1727_v38 = vpop.f32.mrf.mxu3 }
 0x190   : > { %v1956_v41 = vpop.f32.mrf.mxu0 }
 0x191   : > { %v1209_v46 = vpop.f32.mrf.mxu2  ;;  %v2034_v28 = vadd.f32 %v1956_v41, %v10493_v53  ;;  %v2453_v33 = vpop.f32.mrf.mxu1  ;;  %v9000_v53 = vld [vmem:[%s13383_s1 + $0x2a8] sm:$0xff]  ;;  %v2322_v41 = vshll.u32 %v10565_v5, 16 }
 0x192   : > { %v1283_v22 = vadd.f32 %v1209_v46, %v10340_v3  ;;  %4257 = vmatpush.bf16.msra.mxu1 %v9000_v53  ;;  %3706 = vperm.xlu0 %9646, %v253_v8   ;;  %v13552_v46 = vshll.u32 %v10066_v59, 16  ;;  %v9552_v53 = vld [vmem:[%s9844_s10 + $0x74] sm:$0xff]  }
 0x193   : > { %v10556_v3 = vadd.f32 %v2453_v33, %v2034_v28  ;;  %1769 = vmatmul.bf16.gmra.mxu3 %v1597_v15  ;;  %1995 = vmatmul.bf16.gmra.mxu0 %v9550_v17  ;;  %v254_v28 = vld [vmem:[%s13385_s3 + $0x10] sm:$0xff]  ;;  %v10585_v33 = vor.u32 %v1604_v12, %v1601_v4  ;;  %v261_v4 = vld [vmem:[%s13385_s3 + $0x48] sm:$0xff] }
 0x194   : > { %v10554_v6 = vadd.f32 %v1727_v38, %v1283_v22  ;;  %2492 = vmatmul.bf16.gmra.mxu1 %v2317_v20  ;;  %v1091_v17 = vrot.slane %v13552_v46, 4  ;;  %v2318_v22 = vshrl.u32 %v10520_v56, 16  ;;  %3711 = vperm.xlu1 %9647, %v254_v28   ;;  %v10618_v12 = vld [vmem:[%s9844_s10 + $0x84] sm:$0xff]  ;;  %v13553_v46 = vshrl.u32 %v10099_v47, 16 }
 0x195   : > { %v1606_v8 = vsel %vm1021_vm2, %v10539_v51, %v10585_v33  ;;  %v13554_v28 = vshll.u32 %v10099_v47, 16 }
 0x196   : > { %1251 = vmatmul.bf16.gmra.mxu2 %v1089_v32  ;;  %v1730_v27 = vpop.f32.mrf.mxu3  ;;  %v10587_v59 = vor.u32 %v1091_v17, %v1090_v0  ;;  %v2320_v56 = vor.u32 %v2318_v22, %v2316_v14  ;;  %v2324_v32 = vrot.slane %v2322_v41, 1  ;;  %v255_v0 = vld [vmem:[%s13385_s3 + $0x18] sm:$0xff]  ;;  %v1094_v17 = vrot.slane %v13553_v46, 3 }
 0x198   : > { %v1958_v62 = vpop.f32.mrf.mxu0  ;;  %v1093_v14 = vsel %vm1021_vm2, %v10541_v1, %v10587_v59  ;;  %v8946_v1 = vld [vmem:[%s13383_s1 + $0x180] sm:$0xff] }
 0x199   : > { %v1212_v44 = vpop.f32.mrf.mxu2  ;;  %v2035_v25 = vadd.f32 %v1958_v62, %v10509_v19  ;;  %v2455_v38 = vpop.f32.mrf.mxu1  ;;  %v258_v19 = vld [vmem:[%s13385_s3 + $0x30] sm:$0xff]  ;;  %2927 = vmatpush.bf16.msra.mxu2 %v8946_v1 }
 0x19a   : > { %v1284_v50 = vadd.f32 %v1212_v44, %v10349_v45  ;;  %3731 = vperm.xlu0 %9646, %v258_v19   ;;  %v10600_v62 = vld [vmem:[%s9844_s10 + $0x90] sm:$0xff]   ;;  %v1095_v19 = vrot.slane %v13554_v28, 4 }
 0x19b   : > { %v10577_v45 = vadd.f32 %v2455_v38, %v2035_v25  ;;  %v1611_v51 = vshll.u32 %v10600_v62, 16 }
 0x19c   : > { %v10575_v15 = vadd.f32 %v1730_v27, %v1284_v50  ;;  %v2325_v50 = vsel %vm2209_vm3, %v2320_v56, %v2324_v32  ;;  %3716 = vperm.xlu1 %9647, %v255_v0  }
 0x19e   : > { %v1732_v20 = vpop.f32.mrf.mxu3 }
 0x1a0   : > { %v1961_v43 = vpop.f32.mrf.mxu0 }
 0x1a1   : > { %v1214_v21 = vpop.f32.mrf.mxu2  ;;  %v2036_v27 = vadd.f32 %v1961_v43, %v10529_v39  ;;  %v2458_v44 = vpop.f32.mrf.mxu1  ;;  %v1608_v39 = vshrl.u32 %v10600_v62, 16  ;;  %v2330_v43 = vshll.u32 %v10618_v12, 16 }
 0x1a2   : > { %v1285_v9 = vadd.f32 %v1214_v21, %v10361_v42  ;;  %3746 = vperm.xlu0 %9646, %v261_v4  }
 0x1a3   : > { %v10604_v42 = vadd.f32 %v2458_v44, %v2036_v27  ;;  %1774 = vmatmul.bf16.gmra.mxu3 %v1606_v8  ;;  %2000 = vmatmul.bf16.gmra.mxu0 %v9552_v53  ;;  %v1610_v56 = vrot.slane %v1608_v39, 3  ;;  %v1000_v8 = vld [vmem:[%s9844_s10 + $0x90] sm:$0xf]  ;;  %v1344_v27 = vld [vmem:[%s9844_s10 + $0x98] sm:$0xf]  ;;  %v2332_v0 = vrot.slane %v2330_v43, 1 }
 0x1a4   : > { %v10602_v16 = vadd.f32 %v1732_v20, %v1285_v9  ;;  %2497 = vmatmul.bf16.gmra.mxu1 %v2325_v50  ;;  %v1613_v20 = vrot.slane %v1611_v51, 4  ;;  %v2326_v9 = vshrl.u32 %v10565_v5, 16  ;;  %v264_v5 = vld [vmem:[%s13385_s3 + $0x60] sm:$0xff]  ;;  %v1019_v50 = vunpack.c.l.b16 %v1000_v8  ;;  %v267_v43 = vld [vmem:[%s13385_s3 + $0x78] sm:$0xff] }
 0x1a5   : > { %v10645_v39 = vunpack.c.l.b16 %v1344_v27  ;;  %v10647_v51 = vor.u32 %v1095_v19, %v1094_v17  ;;  %v10675_v27 = vld [vmem:[%s9844_s10 + $0x8c] sm:$0xff] }
 0x1a6   : > { %1256 = vmatmul.bf16.gmra.mxu2 %v1093_v14  ;;  %v1735_v25 = vpop.f32.mrf.mxu3  ;;  %v10643_v14 = vor.u32 %v1613_v20, %v1610_v56  ;;  %v2328_v1 = vor.u32 %v2326_v9, %v2324_v32  ;;  %v1020_v28 = vpack.c.b16 %v1019_v50, %v1019_v50 }
 0x1a7   : > { %v1454_v56 = vpack.c.b16 %v10645_v39, %v10645_v39  ;;  %v1097_v19 = vsel %vm1021_vm2, %v10587_v59, %v10647_v51  ;;  %v262_v59 = vld [vmem:[%s13385_s3 + $0x50] sm:$0xff] }
 0x1a8   : > { %v1963_v41 = vpop.f32.mrf.mxu0  ;;  %v2333_v20 = vsel %vm2209_vm3, %v2328_v1, %v2332_v0  ;;  %v1102_v8 = vshll.u32 %v1020_v28, 16 }
 0x1a9   : > { %v1217_v38 = vpop.f32.mrf.mxu2  ;;  %v2037_v21 = vadd.f32 %v1963_v41, %v10554_v6  ;;  %v2460_v53 = vpop.f32.mrf.mxu1  ;;  %v259_v6 = vld [vmem:[%s13385_s3 + $0x38] sm:$0xff]  ;;  %v1615_v41 = vsel %vm1021_vm2, %v10585_v33, %v10643_v14  ;;  %v8962_v33 = vld [vmem:[%s13383_s1 + $0x200] sm:$0xff]  ;;  %v1620_v9 = vshll.u32 %v1454_v56, 16 }
 0x1aa   : > { %v1286_v22 = vadd.f32 %v1217_v38, %v10373_v35  ;;  %v8954_v35 = vld [vmem:[%s13383_s1 + $0x1c0] sm:$0xff]  ;;  %3736 = vperm.xlu1 %9647, %v259_v6   ;;  %3761 = vperm.xlu0 %9646, %v264_v5  }
 0x1ab   : > { %v10635_v47 = vadd.f32 %v2460_v53, %v2037_v21  ;;  %3187 = vmatpush.bf16.msra.mxu3 %v8954_v35  ;;  %v9554_v38 = vld [vmem:[%s9844_s10 + $0x7c] sm:$0xff]   ;;  %v1617_v53 = vshrl.u32 %v1454_v56, 16  ;;  %3495 = vmatpush.bf16.msra.mxu0 %v8962_v33  ;;  %v2559_v56 = vld [vmem:[%s9844_s10 + $0x14] sm:$0xff]  }
 0x1ac   : > { %v10630_v44 = vadd.f32 %v1735_v25, %v1286_v22 }
 0x1ae   : > { %v1737_v4 = vpop.f32.mrf.mxu3 }
 0x1b0   : > { %v1966_v22 = vpop.f32.mrf.mxu0 }
 0x1b1   : > { %v1219_v25 = vpop.f32.mrf.mxu2  ;;  %v2038_v17 = vadd.f32 %v1966_v22, %v10575_v15  ;;  %v2463_v32 = vpop.f32.mrf.mxu1  ;;  %v1099_v15 = vshrl.u32 %v1020_v28, 16  ;;  %v1104_v22 = vrot.slane %v1102_v8, 4  ;;  %v2338_v28 = vshll.u32 %v10675_v27, 16 }
 0x1b2   : > { %v1287_v46 = vadd.f32 %v1219_v25, %v10385_v11  ;;  %3751 = vperm.xlu1 %9647, %v262_v59   ;;  %3776 = vperm.xlu0 %9646, %v267_v43   ;;  %v1622_v25 = vrot.slane %v1620_v9, 4  ;;  %v9556_v59 = vld [vmem:[%s9844_s10 + $0x84] sm:$0xff]  }
 0x1b3   : > { %v10666_v21 = vadd.f32 %v2463_v32, %v2038_v17  ;;  %1779 = vmatmul.bf16.gmra.mxu3 %v1615_v41  ;;  %2005 = vmatmul.bf16.gmra.mxu0 %v9554_v38  ;;  %v1101_v1 = vrot.slane %v1099_v15, 3  ;;  %v2334_v41 = vshrl.u32 %v10618_v12, 16  ;;  %v9671_v17 = vld [vmem:[%s9844_s10 + $0x14] sm:$0xf0]  ;;  %v2340_v15 = vrot.slane %v2338_v28, 1 }
 0x1b4   : > { %v10661_v11 = vadd.f32 %v1737_v4, %v1287_v46  ;;  %2502 = vmatmul.bf16.gmra.mxu1 %v2333_v20  ;;  %v1619_v4 = vrot.slane %v1617_v53, 3 }
 0x1b5   : > { %v1105_v20 = vor.u32 %v1104_v22, %v1101_v1  ;;  %v2336_v33 = vor.u32 %v2334_v41, %v2332_v0  ;;  %v9672_v1 = vld [vmem:[%s9844_s10 + $0x14] sm:$0xe]  ;;  %v10721_v22 = vld [vmem:[%s9844_s10 + $0x1c] sm:$0xff] }
 0x1b6   : > { %1261 = vmatmul.bf16.gmra.mxu2 %v1097_v19  ;;  %v1740_v35 = vpop.f32.mrf.mxu3  ;;  %v270_v19 = vld [vmem:[%s13385_s3 + $0x90] sm:$0xff]  ;;  %v1623_v12 = vor.u32 %v1622_v25, %v1619_v4 }
 0x1b7   : > { %v1106_v0 = vsel %vm1021_vm2, %v10647_v51, %v1105_v20  ;;  %v273_v51 = vld [vmem:[%s13385_s3 + $0xa8] sm:$0xff]  ;;  %v10724_v41 = vld [vmem:[%s9844_s10 + $0x94] sm:$0xff] }
 0x1b8   : > { %v1968_v50 = vpop.f32.mrf.mxu0 }
 0x1b9   : > { %v1222_v6 = vpop.f32.mrf.mxu2  ;;  %v10679_v38 = vadd.f32 %v1968_v50, %v10602_v16  ;;  %v10681_v46 = vpop.f32.mrf.mxu1  ;;  %v265_v16 = vld [vmem:[%s13385_s3 + $0x68] sm:$0xff]  ;;  %v2341_v50 = vsel %vm2209_vm3, %v2336_v33, %v2340_v15  ;;  %v10727_v33 = vor.u32 %v9672_v1, %v9671_v17 }
 0x1ba   : > { %v1288_v5 = vadd.f32 %v1222_v6, %v10394_v30  ;;  %v8999_v30 = vld [vmem:[%s13383_s1 + $0x2a0] sm:$0xff]  ;;  %3766 = vperm.xlu1 %9647, %v265_v16   ;;  %3791 = vperm.xlu0 %9646, %v270_v19  }
 0x1bb   : > { %4258 = vmatpush.bf16.msra.mxu1 %v8999_v30 }
 0x1bc   : > { %v10687_v32 = vadd.f32 %v1740_v35, %v1288_v5  ;;  %v1624_v35 = vsel %vm1021_vm2, %v10643_v14, %v1623_v12  ;;  %v268_v14 = vld [vmem:[%s13385_s3 + $0x80] sm:$0xff]  ;;  %v2707_v12 = vshrl.u32 %v2559_v56, 16 }
 0x1be   : > { %v1742_v53 = vpop.f32.mrf.mxu3 }
 0x1c0   : > { %v1971_v8 = vpop.f32.mrf.mxu0 }
 0x1c1   : > { %v1224_v9 = vpop.f32.mrf.mxu2  ;;  %v2040_v6 = vadd.f32 %v1971_v8, %v10630_v44  ;;  %v2468_v5 = vpop.f32.mrf.mxu1  ;;  %v256_v44 = vld [vmem:[%s13385_s3 + $0x20] sm:$0xff]  ;;  %v2346_v8 = vshll.u32 %v10724_v41, 16 }
 0x1c2   : > { %v1289_v43 = vadd.f32 %v1224_v9, %v10402_v10  ;;  %v2709_v10 = vshll.u32 %v2559_v56, 16  ;;  %3721 = vperm.xlu2 %9648, %v256_v44   ;;  %3781 = vperm.xlu1 %9647, %v268_v14   ;;  %v276_v56 = vld [vmem:[%s13385_s3 + $0xc0] sm:$0xff]  ;;  %v9557_v14 = vld [vmem:[%s9844_s10 + $0x8c] sm:$0xff]  }
 0x1c3   : > { %v10709_v25 = vadd.f32 %v2468_v5, %v2040_v6  ;;  %1784 = vmatmul.bf16.gmra.mxu3 %v1624_v35  ;;  %2010 = vmatmul.bf16.gmra.mxu0 %v9556_v59  ;;  %v2714_v59 = vshll.u32 %v10721_v22, 16  ;;  %v3078_v6 = vrot.slane %v10721_v22, 1 }
 0x1c4   : > { %v10707_v4 = vadd.f32 %v1742_v53, %v1289_v43  ;;  %2507 = vmatmul.bf16.gmra.mxu1 %v2341_v50  ;;  %3806 = vperm.xlu0 %9646, %v273_v51   ;;  %v2711_v20 = vrot.slane %v2709_v10, 1  ;;  %v2342_v43 = vshrl.u32 %v10675_v27, 16  ;;  %v3077_v27 = vrot.slane %v10727_v33, 1  ;;  %v2098_v10 = vld [vmem:[%s9844_s10 + $0x9c] sm:$0x1] }
 0x1c5   : > { %v2716_v5 = vrot.slane %v2714_v59, 1  ;;  %v2348_v50 = vrot.slane %v2346_v8, 1 }
 0x1c6   : > { %1266 = vmatmul.bf16.gmra.mxu2 %v1106_v0  ;;  %v1745_v28 = vpop.f32.mrf.mxu3  ;;  %v2712_v17 = vor.u32 %v2711_v20, %v2707_v12  ;;  %v2344_v0 = vor.u32 %v2342_v43, %v2340_v15  ;;  %v2189_v20 = vunpack.c.l.b16 %v2098_v10  ;;  %v2718_v10 = vshrl.u32 %v10721_v22, 16 }
 0x1c8   : > { %v1973_v19 = vpop.f32.mrf.mxu0  ;;  %v2717_v15 = vsel %vm2209_vm3, %v2712_v17, %v2716_v5  ;;  %v2349_v12 = vsel %vm2209_vm3, %v2344_v0, %v2348_v50 }
 0x1c9   : > { %v1227_v30 = vpop.f32.mrf.mxu2  ;;  %v10730_v53 = vadd.f32 %v1973_v19, %v10661_v11  ;;  %v10732_v9 = vpop.f32.mrf.mxu1  ;;  %v271_v11 = vld [vmem:[%s13385_s3 + $0x98] sm:$0xff] }
 0x1ca   : > { %v1290_v16 = vadd.f32 %v1227_v30, %v10416_v48  ;;  %v257_v48 = vld [vmem:[%s13385_s3 + $0x28] sm:$0xff]  ;;  %3796 = vperm.xlu1 %9647, %v271_v11   ;;  %v3079_v30 = vsel %vm3076_vm4, %v3077_v27, %v3078_v6 }
 0x1cb   : > { %3726 = vperm.xlu2 %9648, %v257_v48   ;;  %v279_v48 = vld [vmem:[%s13385_s3 + $0xd8] sm:$0xff]  ;;  %v10775_v11 = vld [vmem:[%s9844_s10 + $0x24] sm:$0xff] }
 0x1cc   : > { %v10737_v35 = vadd.f32 %v1745_v28, %v1290_v16  ;;  %3821 = vperm.xlu0 %9646, %v276_v56   ;;  %v2208_v56 = vpack.c.b16 %v2189_v20, %v2189_v20  ;;  %v2720_v20 = vor.u32 %v2718_v10, %v2716_v5 }
 0x1ce   : > { %v1747_v1 = vpop.f32.mrf.mxu3 }
 0x1d0   : > { %v1976_v28 = vpop.f32.mrf.mxu0 }
 0x1d1   : > { %v1229_v44 = vpop.f32.mrf.mxu2  ;;  %v2042_v16 = vadd.f32 %v1976_v28, %v10687_v32  ;;  %v2473_v19 = vpop.f32.mrf.mxu1  ;;  %v274_v32 = vld [vmem:[%s13385_s3 + $0xb0] sm:$0xff]  ;;  %v2350_v28 = vshrl.u32 %v10724_v41, 16 }
 0x1d2   : > { %v1291_v51 = vadd.f32 %v1229_v44, %v10427_v23  ;;  %v260_v23 = vld [vmem:[%s13385_s3 + $0x40] sm:$0xff]  ;;  %3811 = vperm.xlu1 %9647, %v274_v32   ;;  %v282_v41 = vld [vmem:[%s13385_s3 + $0xf0] sm:$0xff] }
 0x1d3   : > { %v10763_v8 = vadd.f32 %v2473_v19, %v2042_v16  ;;  %2015 = vmatmul.bf16.gmra.mxu0 %v9557_v14  ;;  %3188 = vmatmul.bf16.vlgmr.msra.gmra.mxu3 %v3079_v30  ;;  %v2354_v30 = vshll.u32 %v2208_v56, 16  ;;  %v9161_v19 = vunpack.c.h.b16 %v10600_v62 }
 0x1d4   : > { %v10761_v43 = vadd.f32 %v1747_v1, %v1291_v51  ;;  %2512 = vmatmul.bf16.gmra.mxu1 %v2349_v12  ;;  %3741 = vperm.xlu2 %9648, %v260_v23   ;;  %v2722_v51 = vshll.u32 %v10775_v11, 16  ;;  %v3080_v12 = vrot.slane %v10775_v11, 1  ;;  %v2352_v23 = vor.u32 %v2350_v28, %v2348_v50 }
 0x1d5   : > { %3836 = vperm.xlu0 %9646, %v279_v48   ;;  %v2356_v32 = vrot.slane %v2354_v30, 1 }
 0x1d6   : > { %2928 = vmatmul.bf16.vlgmr.msra.gmra.mxu2 %v2717_v15  ;;  %v1750_v17 = vpop.f32.mrf.mxu3  ;;  %v277_v15 = vld [vmem:[%s13385_s3 + $0xc8] sm:$0xff]  ;;  %v2724_v62 = vrot.slane %v2722_v51, 1  ;;  %v3081_v5 = vsel %vm3076_vm4, %v3078_v6, %v3080_v12  ;;  %v3341_v6 = vshll.u32 %v10727_v33, 16 }
 0x1d7   : > { %v2357_v30 = vsel %vm2209_vm3, %v2352_v23, %v2356_v32 }
 0x1d8   : > { %v1978_v1 = vpop.f32.mrf.mxu0  ;;  %v2725_v28 = vsel %vm2209_vm3, %v2720_v20, %v2724_v62  ;;  %v3345_v20 = vrot.slane %v2718_v10, 1  ;;  %v283_v10 = vld [vmem:[%s13385_s3 + $0xf8] sm:$0xff] }
 0x1d9   : > { %v1232_v27 = vpop.f32.mrf.mxu2  ;;  %v10780_v44 = vadd.f32 %v1978_v1, %v10707_v4  ;;  %v10782_v14 = vpop.f32.mrf.mxu1  ;;  %v263_v4 = vld [vmem:[%s13385_s3 + $0x58] sm:$0xff] }
 0x1da   : > { %v1292_v0 = vadd.f32 %v1232_v27, %v10220_v60  ;;  %v8998_v60 = vld [vmem:[%s13383_s1 + $0x298] sm:$0xff]  ;;  %3826 = vperm.xlu1 %9647, %v277_v15   ;;  %v10830_v15 = vld [vmem:[%s9844_s10 + $0x2c] sm:$0xff] }
 0x1db   : > { %4259 = vmatpush.bf16.msra.mxu1 %v8998_v60  ;;  %v3082_v22 = vrot.slane %v10830_v15, 1 }
 0x1dc   : > { %v10786_v16 = vadd.f32 %v1750_v17, %v1292_v0  ;;  %3756 = vperm.xlu2 %9648, %v263_v4   ;;  %v1860_v17 = vpack.c.b16 %v10645_v39, %v9161_v19  ;;  %v280_v19 = vld [vmem:[%s13385_s3 + $0xe0] sm:$0xff]  ;;  %v285_v4 = vld [vmem:[%s13385_s3 + $0x108] sm:$0xff] }
 0x1dd   : > { %3851 = vperm.xlu0 %9646, %v282_v41  }
 0x1de   : > { %v1752_v48 = vpop.f32.mrf.mxu3 }
 0x1e0   : > { %v1981_v0 = vpop.f32.mrf.mxu0 }
 0x1e1   : > { %v1234_v56 = vpop.f32.mrf.mxu2  ;;  %v2044_v50 = vadd.f32 %v1981_v0, %v10737_v35  ;;  %v2478_v1 = vpop.f32.mrf.mxu1  ;;  %v266_v35 = vld [vmem:[%s13385_s3 + $0x70] sm:$0xff] }
 0x1e2   : > { %v1293_v27 = vadd.f32 %v1234_v56, %v10228_v34  ;;  %v3338_v34 = vshrl.u32 %v10727_v33, 16  ;;  %3841 = vperm.xlu1 %9647, %v280_v19   ;;  %v3343_v56 = vrot.slane %v3341_v6, 2 }
 0x1e3   : > { %v10816_v39 = vadd.f32 %v2478_v1, %v2044_v50  ;;  %2020 = vmatmul.bf16.gmra.mxu0 %v1860_v17  ;;  %3193 = vmatmul.bf16.gmra.mxu3 %v3081_v5  ;;  %v3346_v17 = vrot.slane %v2714_v59, 2  ;;  %v2726_v5 = vshrl.u32 %v10775_v11, 16  ;;  %v2730_v50 = vshll.u32 %v10830_v15, 16 }
 0x1e4   : > { %v10814_v60 = vadd.f32 %v1752_v48, %v1293_v27  ;;  %2517 = vmatmul.bf16.gmra.mxu1 %v2357_v30  ;;  %3771 = vperm.xlu2 %9648, %v266_v35   ;;  %v3340_v48 = vrot.slane %v3338_v34, 1 }
 0x1e5   : > { %3866 = vperm.xlu0 %9646, %v285_v4   ;;  %v2732_v30 = vrot.slane %v2730_v50, 1  ;;  %v3083_v4 = vsel %vm3076_vm4, %v3080_v12, %v3082_v22  ;;  %v286_v12 = vld [vmem:[%s13385_s3 + $0x110] sm:$0xff] }
 0x1e6   : > { %2933 = vmatmul.bf16.gmra.mxu2 %v2725_v28  ;;  %v1755_v41 = vpop.f32.mrf.mxu3  ;;  %v3344_v59 = vor.u32 %v3343_v56, %v3340_v48  ;;  %v2728_v28 = vor.u32 %v2726_v5, %v2724_v62  ;;  %v10867_v48 = vld [vmem:[%s9844_s10 + $0x34] sm:$0xff] }
 0x1e8   : > { %v1983_v32 = vpop.f32.mrf.mxu0 }
 0x1e9   : > { %v1237_v33 = vpop.f32.mrf.mxu2  ;;  %v10836_v27 = vadd.f32 %v1983_v32, %v10761_v43  ;;  %v10838_v0 = vpop.f32.mrf.mxu1  ;;  %v3347_v43 = vor.u32 %v3346_v17, %v3345_v20 }
 0x1ea   : > { %v1294_v23 = vadd.f32 %v1237_v33, %v10242_v61  ;;  %v269_v61 = vld [vmem:[%s13385_s3 + $0x88] sm:$0xff]  ;;  %3856 = vperm.xlu1 %9647, %v283_v10   ;;  %v2733_v33 = vsel %vm2209_vm3, %v2728_v28, %v2732_v30  ;;  %v3349_v10 = vrot.slane %v2726_v5, 1 }
 0x1ec   : > { %v1812_v1 = vadd.f32 %v1755_v41, %v1294_v23  ;;  %3786 = vperm.xlu2 %9648, %v269_v61   ;;  %v3348_v41 = vsel %vm3336_vm5, %v3344_v59, %v3347_v43  ;;  %v3350_v59 = vrot.slane %v2722_v51, 2 }
 0x1ee   : > { %v1757_v34 = vpop.f32.mrf.mxu3  ;;  %v3351_v5 = vor.u32 %v3350_v59, %v3349_v10 }
 0x1f0   : > { %v1986_v19 = vpop.f32.mrf.mxu0 }
 0x1f1   : > { %v1239_v6 = vpop.f32.mrf.mxu2  ;;  %v2046_v62 = vadd.f32 %v1986_v19, %v10786_v16  ;;  %v2483_v20 = vpop.f32.mrf.mxu1 }
 0x1f2   : > { %v1295_v35 = vadd.f32 %v1239_v6, %v10256_v40  ;;  %v272_v40 = vld [vmem:[%s13385_s3 + $0xa0] sm:$0xff]  ;;  %3871 = vperm.xlu1 %9647, %v286_v12   ;;  %v2734_v6 = vshrl.u32 %v10830_v15, 16 }
 0x1f3   : > { %v10858_v32 = vadd.f32 %v2483_v20, %v2046_v62  ;;  %3198 = vmatmul.bf16.gmra.mxu3 %v3083_v4  ;;  %3496 = vmatmul.bf16.vlgmr.msra.gmra.mxu0 %v3348_v41  ;;  %v275_v4 = vld [vmem:[%s13385_s3 + $0xb8] sm:$0xff] }
 0x1f4   : > { %v1813_v23 = vadd.f32 %v1757_v34, %v1295_v35  ;;  %3801 = vperm.xlu2 %9648, %v272_v40   ;;  %v2738_v35 = vshll.u32 %v10867_v48, 16  ;;  %v2736_v41 = vor.u32 %v2734_v6, %v2732_v30  ;;  %v3352_v40 = vsel %vm3336_vm5, %v3347_v43, %v3351_v5  ;;  %v8997_v30 = vld [vmem:[%s13383_s1 + $0x290] sm:$0xff] }
 0x1f5   : > { %4260 = vmatpush.bf16.msra.mxu1 %v8997_v30 }
 0x1f6   : > { %2938 = vmatmul.bf16.gmra.mxu2 %v2733_v33  ;;  %v1760_v16 = vpop.f32.mrf.mxu3  ;;  %v2740_v11 = vrot.slane %v2738_v35, 1 }
 0x1f8   : > { %v1988_v61 = vpop.f32.mrf.mxu0 }
 0x1f9   : > { %v1242_v56 = vpop.f32.mrf.mxu2  ;;  %v10873_v28 = vadd.f32 %v1988_v61, %v10814_v60  ;;  %v10875_v34 = vpop.f32.mrf.mxu1 }
 0x1fa   : > { %v1296_v17 = vadd.f32 %v1242_v56, %v10268_v29  ;;  %v3084_v29 = vrot.slane %v10867_v48, 1  ;;  %v2741_v56 = vsel %vm2209_vm3, %v2736_v41, %v2740_v11  ;;  %v3354_v41 = vrot.slane %v2730_v50, 2 }
 0x1fc   : > { %v1814_v19 = vadd.f32 %v1760_v16, %v1296_v17  ;;  %3816 = vperm.xlu2 %9648, %v275_v4   ;;  %v3085_v33 = vsel %vm3076_vm4, %v3082_v22, %v3084_v29  ;;  %v10898_v22 = vld [vmem:[%s9844_s10 + $0x3c] sm:$0xff]  ;;  %v3353_v4 = vrot.slane %v2734_v6, 1 }
 0x1fe   : > { %v1762_v51 = vpop.f32.mrf.mxu3 }
 0x200   : > { %v1991_v20 = vpop.f32.mrf.mxu0 }
 0x201   : > { %v1244_v60 = vpop.f32.mrf.mxu2  ;;  %v2048_v12 = vadd.f32 %v1991_v20, %v1812_v1  ;;  %v2488_v16 = vpop.f32.mrf.mxu1  ;;  %v13405_v20 = vshll.u32 %v10898_v22, 16 }
 0x202   : > { %v1297_v62 = vadd.f32 %v1244_v60, %v10280_v24  ;;  %v278_v24 = vld [vmem:[%s13385_s3 + $0xd0] sm:$0xff] }
 0x203   : > { %v10892_v61 = vadd.f32 %v2488_v16, %v2048_v12  ;;  %3203 = vmatmul.bf16.gmra.mxu3 %v3085_v33  ;;  %3501 = vmatmul.bf16.gmra.mxu0 %v3352_v40  ;;  %v281_v40 = vld [vmem:[%s13385_s3 + $0xe8] sm:$0xff]  ;;  %v3355_v12 = vor.u32 %v3354_v41, %v3353_v4  ;;  %v2748_v15 = vrot.slane %v13405_v20, 1  ;;  %v284_v4 = vld [vmem:[%s13385_s3 + $0x100] sm:$0xff] }
 0x204   : > { %v1815_v17 = vadd.f32 %v1762_v51, %v1297_v62  ;;  %3831 = vperm.xlu2 %9648, %v278_v24   ;;  %v2742_v62 = vshrl.u32 %v10867_v48, 16 }
 0x205   : > { %13555 = vst [vmem:[#allocation9_spill] sm:$0xff] %v10892_v61  ;;  %v3356_v24 = vsel %vm3336_vm5, %v3351_v5, %v3355_v12 }
 0x206   : > { %2943 = vmatmul.bf16.gmra.mxu2 %v2741_v56  ;;  %v1765_v1 = vpop.f32.mrf.mxu3  ;;  %v2744_v6 = vor.u32 %v2742_v62, %v2740_v11 }
 0x208   : > { %v1993_v59 = vpop.f32.mrf.mxu0 }
 0x209   : > { %v1247_v43 = vpop.f32.mrf.mxu2  ;;  %v10903_v51 = vadd.f32 %v1993_v59, %v1813_v23  ;;  %v10905_v60 = vpop.f32.mrf.mxu1 }
 0x20a   : > { %v1298_v10 = vadd.f32 %v1247_v43, %v10289_v2  ;;  %13557 = vst [vmem:[#allocation11_spill] sm:$0xff] %v10905_v60  ;;  %v3086_v2 = vrot.slane %v10898_v22, 1 }
 0x20b   : > { %13556 = vst [vmem:[#allocation10_spill] sm:$0xff] %v10903_v51 }
 0x20c   : > { %v1816_v33 = vadd.f32 %v1765_v1, %v1298_v10  ;;  %3846 = vperm.xlu2 %9648, %v281_v40   ;;  %v3087_v30 = vsel %vm3076_vm4, %v3084_v29, %v3086_v2  ;;  %v2749_v10 = vsel %vm2209_vm3, %v2744_v6, %v2748_v15  ;;  %v3357_v40 = vrot.slane %v2742_v62, 1 }
 0x20d   : > { %v3358_v6 = vrot.slane %v2738_v35, 2 }
 0x20e   : > { %v1767_v50 = vpop.f32.mrf.mxu3 }
 0x210   : > { %v1996_v56 = vpop.f32.mrf.mxu0 }
 0x211   : > { %v1249_v23 = vpop.f32.mrf.mxu2  ;;  %v2050_v1 = vadd.f32 %v1996_v56, %v1814_v19  ;;  %v2493_v43 = vpop.f32.mrf.mxu1 }
 0x212   : > { %v1299_v16 = vadd.f32 %v1249_v23, %v10298_v18  ;;  %v10925_v18 = vld [vmem:[%s9844_s10 + $0x44] sm:$0xff] }
 0x213   : > { %v10919_v11 = vadd.f32 %v2493_v43, %v2050_v1  ;;  %3208 = vmatmul.bf16.gmra.mxu3 %v3087_v30  ;;  %3506 = vmatmul.bf16.gmra.mxu0 %v3356_v24  ;;  %v2754_v56 = vshll.u32 %v10925_v18, 16  ;;  %v287_v24 = vld [vmem:[%s13385_s3 + $0x118] sm:$0xff]  ;;  %v3359_v1 = vor.u32 %v3358_v6, %v3357_v40 }
 0x214   : > { %v1817_v59 = vadd.f32 %v1767_v50, %v1299_v16  ;;  %3861 = vperm.xlu2 %9648, %v284_v4   ;;  %v2750_v16 = vshrl.u32 %v10898_v22, 16 }
 0x215   : > { %13558 = vst [vmem:[#allocation12_spill] sm:$0xff] %v10919_v11  ;;  %v2756_v43 = vrot.slane %v2754_v56, 1 }
 0x216   : > { %2948 = vmatmul.bf16.gmra.mxu2 %v2749_v10  ;;  %v1770_v29 = vpop.f32.mrf.mxu3  ;;  %v2752_v62 = vor.u32 %v2750_v16, %v2748_v15  ;;  %v8996_v15 = vld [vmem:[%s13383_s1 + $0x288] sm:$0xff]  ;;  %v3361_v6 = vrot.slane %v2750_v16, 1 }
 0x217   : > { %4261 = vmatpush.bf16.msra.mxu1 %v8996_v15 }
 0x218   : > { %v1998_v5 = vpop.f32.mrf.mxu0 }
 0x219   : > { %v1252_v41 = vpop.f32.mrf.mxu2  ;;  %v10930_v50 = vadd.f32 %v1998_v5, %v1815_v17  ;;  %v10932_v23 = vpop.f32.mrf.mxu1  ;;  %v2757_v5 = vsel %vm2209_vm3, %v2752_v62, %v2756_v43 }
 0x21a   : > { %v1300_v19 = vadd.f32 %v1252_v41, %v10313_v36  ;;  %13560 = vst [vmem:[#allocation14_spill] sm:$0xff] %v10932_v23  ;;  %v3088_v36 = vrot.slane %v10925_v18, 1 }
 0x21b   : > { %13559 = vst [vmem:[#allocation13_spill] sm:$0xff] %v10930_v50 }
 0x21c   : > { %v1818_v30 = vadd.f32 %v1770_v29, %v1300_v19  ;;  %3876 = vperm.xlu2 %9648, %v287_v24   ;;  %v3089_v4 = vsel %vm3076_vm4, %v3086_v2, %v3088_v36  ;;  %v3360_v29 = vsel %vm3336_vm5, %v3355_v12, %v3359_v1  ;;  %v13562_v24 = vshll.u32 %v10898_v22, 16 }
 0x21e   : > { %v1772_v48 = vpop.f32.mrf.mxu3  ;;  %v3362_v62 = vrot.slane %v13562_v24, 2 }
 0x220   : > { %v2001_v10 = vpop.f32.mrf.mxu0 }
 0x221   : > { %v1254_v35 = vpop.f32.mrf.mxu2  ;;  %v2052_v41 = vadd.f32 %v2001_v10, %v1816_v33  ;;  %v2498_v19 = vpop.f32.mrf.mxu1 }
 0x222   : > { %v1301_v17 = vadd.f32 %v1254_v35, %v10325_v52  ;;  %v10950_v52 = vld [vmem:[%s9844_s10 + $0x4c] sm:$0xff] }
 0x223   : > { %v10944_v23 = vadd.f32 %v2498_v19, %v2052_v41  ;;  %3213 = vmatmul.bf16.gmra.mxu3 %v3089_v4  ;;  %3511 = vmatmul.bf16.gmra.mxu0 %v3360_v29  ;;  %v2762_v10 = vshll.u32 %v10950_v52, 16  ;;  %v3090_v29 = vrot.slane %v10950_v52, 1  ;;  %v3363_v41 = vor.u32 %v3362_v62, %v3361_v6 }
 0x224   : > { %v1819_v20 = vadd.f32 %v1772_v48, %v1301_v17  ;;  %v2758_v17 = vshrl.u32 %v10925_v18, 16 }
 0x225   : > { %13561 = vst [vmem:[#allocation15_spill] sm:$0xff] %v10944_v23 }
 0x226   : > { %2953 = vmatmul.bf16.gmra.mxu2 %v2757_v5  ;;  %v1775_v2 = vpop.f32.mrf.mxu3  ;;  %v2760_v19 = vor.u32 %v2758_v17, %v2756_v43  ;;  %v10969_v43 = vld [vmem:[%s9844_s10 + $0x54] sm:$0xff] }
 0x228   : > { %v2003_v12 = vpop.f32.mrf.mxu0 }
 0x229   : > { %v1257_v40 = vpop.f32.mrf.mxu2  ;;  %v10955_v48 = vadd.f32 %v2003_v12, %v1817_v59  ;;  %v10957_v35 = vpop.f32.mrf.mxu1  ;;  %v3091_v59 = vsel %vm3076_vm4, %v3088_v36, %v3090_v29  ;;  %v3365_v36 = vrot.slane %v2758_v17, 1 }
 0x22a   : > { %v1302_v33 = vadd.f32 %v1257_v40, %v10334_v54  ;;  %13564 = vst [vmem:[#allocation17_spill] sm:$0xff] %v10957_v35  ;;  %v2764_v54 = vrot.slane %v2762_v10, 1  ;;  %v3364_v40 = vsel %vm3336_vm5, %v3359_v1, %v3363_v41  ;;  %v3366_v35 = vrot.slane %v2754_v56, 2 }
 0x22b   : > { %13563 = vst [vmem:[#allocation16_spill] sm:$0xff] %v10955_v48 }
 0x22c   : > { %v1820_v4 = vadd.f32 %v1775_v2, %v1302_v33  ;;  %v2765_v24 = vsel %vm2209_vm3, %v2760_v19, %v2764_v54  ;;  %v2766_v19 = vshrl.u32 %v10950_v52, 16 }
 0x22e   : > { %v1777_v5 = vpop.f32.mrf.mxu3 }
 0x230   : > { %v2006_v15 = vpop.f32.mrf.mxu0 }
 0x231   : > { %v1259_v16 = vpop.f32.mrf.mxu2  ;;  %v2054_v12 = vadd.f32 %v2006_v15, %v1818_v30  ;;  %v2503_v18 = vpop.f32.mrf.mxu1  ;;  %v3092_v15 = vrot.slane %v10969_v43, 1 }
 0x232   : > { %v1303_v22 = vadd.f32 %v1259_v16, %v10343_v57 }
 0x233   : > { %v10966_v33 = vadd.f32 %v2503_v18, %v2054_v12  ;;  %3218 = vmatmul.bf16.gmra.mxu3 %v3091_v59  ;;  %3516 = vmatmul.bf16.gmra.mxu0 %v3364_v40  ;;  %v3367_v59 = vor.u32 %v3366_v35, %v3365_v36  ;;  %v2768_v40 = vor.u32 %v2766_v19, %v2764_v54  ;;  %v10986_v35 = vld [vmem:[%s9844_s10 + $0x5c] sm:$0xff] }
 0x234   : > { %v1821_v2 = vadd.f32 %v1777_v5, %v1303_v22  ;;  %v2770_v5 = vshll.u32 %v10969_v43, 16 }
 0x235   : > { %13565 = vst [vmem:[#allocation18_spill] sm:$0xff] %v10966_v33  ;;  %v3370_v33 = vrot.slane %v2762_v10, 2 }
 0x236   : > { %2958 = vmatmul.bf16.gmra.mxu2 %v2765_v24  ;;  %v1780_v6 = vpop.f32.mrf.mxu3  ;;  %v2772_v12 = vrot.slane %v2770_v5, 1  ;;  %v13568_v24 = vld [vmem:[#allocation6_spill] sm:$0xff] }
 0x238   : > { %v2008_v16 = vpop.f32.mrf.mxu0 }
 0x239   : > { %v1262_v62 = vpop.f32.mrf.mxu2  ;;  %v10972_v1 = vadd.f32 %v2008_v16, %v1819_v20  ;;  %v10974_v30 = vpop.f32.mrf.mxu1  ;;  %v3093_v20 = vsel %vm3076_vm4, %v3090_v29, %v3092_v15  ;;  %v3369_v29 = vrot.slane %v2766_v19, 1  ;;  %v13573_v19 = vld [vmem:[#allocation8_spill] sm:$0xff] }
 0x23a   : > { %v1304_v57 = vadd.f32 %v1262_v62, %v10355_v26  ;;  %13567 = vst [vmem:[#allocation20_spill] sm:$0xff] %v10974_v30  ;;  %v3368_v62 = vsel %vm3336_vm5, %v3363_v41, %v3367_v59  ;;  %v2773_v30 = vsel %vm2209_vm3, %v2768_v40, %v2772_v12  ;;  %v2774_v40 = vshrl.u32 %v10969_v43, 16 }
 0x23b   : > { %13566 = vst [vmem:[#allocation19_spill] sm:$0xff] %v10972_v1 }
 0x23c   : > { %v1822_v22 = vadd.f32 %v1780_v6, %v1304_v57 }
 0x23e   : > { %v1782_v18 = vpop.f32.mrf.mxu3 }
 0x240   : > { %v2011_v56 = vpop.f32.mrf.mxu0 }
 0x241   : > { %v1264_v26 = vpop.f32.mrf.mxu2  ;;  %v2056_v16 = vadd.f32 %v2011_v56, %v1820_v4  ;;  %v2508_v52 = vpop.f32.mrf.mxu1  ;;  %v3094_v56 = vrot.slane %v10986_v35, 1 }
 0x242   : > { %v1305_v17 = vadd.f32 %v1264_v26, %v13568_v24  ;;  %v13570_v26 = vld [vmem:[#allocation7_spill] sm:$0xff] }
 0x243   : > { %v10983_v57 = vadd.f32 %v2508_v52, %v2056_v16  ;;  %3223 = vmatmul.bf16.gmra.mxu3 %v3093_v20  ;;  %3521 = vmatmul.bf16.gmra.mxu0 %v3368_v62  ;;  %v3371_v20 = vor.u32 %v3370_v33, %v3369_v29  ;;  %v2776_v62 = vor.u32 %v2774_v40, %v2772_v12  ;;  %v11006_v33 = vld [vmem:[%s9844_s10 + $0x64] sm:$0xff] }
 0x244   : > { %v1823_v6 = vadd.f32 %v1782_v18, %v1305_v17  ;;  %v2778_v18 = vshll.u32 %v10986_v35, 16  ;;  %v3095_v43 = vsel %vm3076_vm4, %v3092_v15, %v3094_v56 }
 0x245   : > { %13569 = vst [vmem:[#allocation6_spill] sm:$0xff] %v10983_v57  ;;  %v11064_v57 = vld [vmem:[%s9844_s10 + $0x74] sm:$0xff] }
 0x246   : > { %2963 = vmatmul.bf16.gmra.mxu2 %v2773_v30  ;;  %v1785_v54 = vpop.f32.mrf.mxu3  ;;  %v8995_v30 = vld [vmem:[%s13383_s1 + $0x280] sm:$0xff]  ;;  %v2780_v10 = vrot.slane %v2778_v18, 1 }
 0x247   : > { %4262 = vmatpush.bf16.msra.mxu1 %v8995_v30 }
 0x248   : > { %v2013_v1 = vpop.f32.mrf.mxu0 }
 0x249   : > { %v1267_v36 = vpop.f32.mrf.mxu2  ;;  %v10989_v41 = vadd.f32 %v2013_v1, %v1821_v2  ;;  %v10991_v4 = vpop.f32.mrf.mxu1 }
 0x24a   : > { %v1306_v24 = vadd.f32 %v1267_v36, %v13570_v26  ;;  %13572 = vst [vmem:[#allocation21_spill] sm:$0xff] %v10991_v4 }
 0x24b   : > { %13571 = vst [vmem:[#allocation7_spill] sm:$0xff] %v10989_v41 }
 0x24c   : > { %v1824_v17 = vadd.f32 %v1785_v54, %v1306_v24  ;;  %v3372_v54 = vsel %vm3336_vm5, %v3367_v59, %v3371_v20  ;;  %v2781_v24 = vsel %vm2209_vm3, %v2776_v62, %v2780_v10  ;;  %v13406_v62 = vshll.u32 %v11006_v33, 16 }
 0x24e   : > { %v1787_v2 = vpop.f32.mrf.mxu3 }
 0x250   : > { %v2016_v52 = vpop.f32.mrf.mxu0 }
 0x251   : > { %v1269_v1 = vpop.f32.mrf.mxu2  ;;  %v2058_v36 = vadd.f32 %v2016_v52, %v1822_v22  ;;  %v2513_v26 = vpop.f32.mrf.mxu1  ;;  %v2782_v22 = vshrl.u32 %v10986_v35, 16 }
 0x252   : > { %v1307_v16 = vadd.f32 %v1269_v1, %v13573_v19  ;;  %v3373_v1 = vrot.slane %v2774_v40, 1  ;;  %v3374_v19 = vrot.slane %v2770_v5, 2 }
 0x253   : > { %v11003_v41 = vadd.f32 %v2513_v26, %v2058_v36  ;;  %3228 = vmatmul.bf16.gmra.mxu3 %v3095_v43  ;;  %3526 = vmatmul.bf16.gmra.mxu0 %v3372_v54  ;;  %v2784_v52 = vor.u32 %v2782_v22, %v2780_v10  ;;  %v2788_v43 = vrot.slane %v13406_v62, 1 }
 0x254   : > { %v1825_v4 = vadd.f32 %v1787_v2, %v1307_v16  ;;  %v3096_v2 = vrot.slane %v11006_v33, 1  ;;  %v3375_v16 = vor.u32 %v3374_v19, %v3373_v1  ;;  %v11028_v1 = vld [vmem:[%s9844_s10 + $0x6c] sm:$0xff] }
 0x255   : > { %13574 = vst [vmem:[#allocation8_spill] sm:$0xff] %v11003_v41  ;;  %v13583_v60 = vshll.u32 %v11028_v1, 16 }
 0x256   : > { %2968 = vmatmul.bf16.gmra.mxu2 %v2781_v24  ;;  %v3189_v12 = vpop.f32.mrf.mxu3  ;;  %v3376_v36 = vsel %vm3336_vm5, %v3371_v20, %v3375_v16  ;;  %v2789_v24 = vsel %vm2209_vm3, %v2784_v52, %v2788_v43  ;;  %v2790_v52 = vshrl.u32 %v11006_v33, 16 }
 0x257   : > { %v3386_v51 = vrot.slane %v13583_v60, 2  ;;  %v8993_v60 = vld [vmem:[%s13383_s1 + $0x270] sm:$0xff] }
 0x258   : > { %v2018_v30 = vpop.f32.mrf.mxu0 }
 0x259   : > { %v2929_v29 = vpop.f32.mrf.mxu2  ;;  %v11008_v15 = vadd.f32 %v2018_v30, %v1823_v6  ;;  %v11010_v59 = vpop.f32.mrf.mxu1  ;;  %v3097_v6 = vsel %vm3076_vm4, %v3094_v56, %v3096_v2  ;;  %v8994_v30 = vld [vmem:[%s13383_s1 + $0x278] sm:$0xff] }
 0x25a   : > { %13576 = vst [vmem:[#allocation23_spill] sm:$0xff] %v11010_v59  ;;  %4593 = vmatpush.bf16.msrb.mxu2 %v8994_v30  ;;  %v13407_v59 = vshll.u32 %v11028_v1, 16 }
 0x25b   : > { %13575 = vst [vmem:[#allocation22_spill] sm:$0xff] %v11008_v15 }
 0x25e   : > { %v11017_v54 = vpop.f32.mrf.mxu3  ;;  %4594 = vmatpush.bf16.msrb.mxu2 %v8993_v60 }
 0x260   : > { %v2021_v5 = vpop.f32.mrf.mxu0 }
 0x261   : > { %v2931_v40 = vpop.f32.mrf.mxu2  ;;  %v2060_v26 = vadd.f32 %v2021_v5, %v1824_v17  ;;  %v2518_v35 = vpop.f32.mrf.mxu1  ;;  %v3377_v17 = vrot.slane %v2782_v22, 1  ;;  %v3378_v5 = vrot.slane %v2778_v18, 2  ;;  %v2796_v22 = vrot.slane %v13407_v59, 1  ;;  %v3987_v59 = vld [vmem:[#allocation2] sm:$0xc] }
 0x262   : > { %v3020_v15 = vadd.f32 %v2931_v40, %v10446_v31  ;;  %v13580_v31 = vshll.u32 %v11006_v33, 16 }
 0x263   : > { %v11025_v10 = vadd.f32 %v2518_v35, %v2060_v26  ;;  %3233 = vmatmul.bf16.gmra.mxu3 %v3097_v6  ;;  %3531 = vmatmul.bf16.gmra.mxu0 %v3376_v36  ;;  %v3019_v26 = vadd.f32 %v2929_v29, %v10438_v7  ;;  %v9010_v6 = vld [vmem:[%s13383_s1 + $0x2f8] sm:$0xff]  ;;  %v3098_v36 = vrot.slane %v11028_v1, 1  ;;  %v3379_v35 = vor.u32 %v3378_v5, %v3377_v17  ;;  %v11050_v7 = vld [vmem:[%s13384_s2] ss:$0 sm:$0xff] }
 0x264   : > { %4864 = vmatpush.bf16.msrb.mxu3 %v9010_v6  ;;  %v9018_v29 = vld [vmem:[%s13383_s1 + $0x338] sm:$0xff]  ;;  %v3988_v6 = vld [vmem:[#allocation2 + $0x4] sm:$0xf]  ;;  %v3280_v40 = vadd.f32 %v11017_v54, %v3020_v15 }
 0x265   : > { %13577 = vst [vmem:[#allocation24_spill] sm:$0xff] %v11025_v10  ;;  %v3279_v18 = vadd.f32 %v3189_v12, %v3019_v26  ;;  %v3099_v17 = vsel %vm3076_vm4, %v3096_v2, %v3098_v36  ;;  %v3380_v12 = vsel %vm3336_vm5, %v3375_v16, %v3379_v35  ;;  %5382 = vmatpush.bf16.msrb.mxu0 %v9018_v29  ;;  %v4041_v10 = vld [vmem:[#allocation2] sm:$0x8]  ;;  %v4097_v2 = vunpack.c.l.b16 %v3988_v6 }
 0x266   : > { %2973 = vmatmul.bf16.gmra.mxu2 %v2789_v24  ;;  %v11030_v19 = vpop.f32.mrf.mxu3  ;;  %v2792_v24 = vor.u32 %v2790_v52, %v2788_v43  ;;  %v9026_v43 = vld [vmem:[%s13383_s1 + $0x378] sm:$0xff]  ;;  %v4355_v16 = vunpack.c.l.b16 %v3987_v59  ;;  %v13409_v59 = vshll.u32 %v11064_v57, 16 }
 0x267   : > { %5618 = vmatpush.bf16.msrb.mxu1 %v9026_v43 }
 0x268   : > { %v2023_v20 = vpop.f32.mrf.mxu0  ;;  %v2797_v26 = vsel %vm2209_vm3, %v2792_v24, %v2796_v22  ;;  %v4356_v6 = vpack.c.b16 %v4097_v2, %v4355_v16  ;;  %v11084_v33 = vrot.slane %v13409_v59, 1 }
 0x269   : > { %v2934_v56 = vpop.f32.mrf.mxu2  ;;  %v11032_v62 = vadd.f32 %v2023_v20, %v1825_v4 }
 0x26a   : > { %v3021_v48 = vadd.f32 %v2934_v56, %v10460_v55  ;;  %v4361_v15 = vshll.u32 %v4356_v6, 16 }
 0x26b   : > { %13578 = vst [vmem:[#allocation25_spill] sm:$0xff] %v11032_v62 }
 0x26c   : > { %v3281_v16 = vadd.f32 %v11030_v19, %v3021_v48  ;;  %v4363_v48 = vrot.slane %v4361_v15, 3 }
 0x26e   : > { %v11043_v4 = vpop.f32.mrf.mxu3 }
 0x270   : > { %v3497_v20 = vpop.f32.mrf.mxu0 }
 0x271   : > { %v11045_v30 = vpop.f32.mrf.mxu2  ;;  %v3587_v5 = vadd.f32 %v3497_v20, %v3279_v18  ;;  %v11066_v18 = vpop.permute.xlu0 %3701  ;;  %v4096_v20 = vunpack.c.l.b16 %v4041_v10  ;;  %v13410_v10 = vrot.slane %v11064_v57, 1 }
 0x272   : > { %13579 = vst [vmem:[#allocation26_spill] sm:$0xff] %v11066_v18  ;;  %v3022_v15 = vadd.f32 %v11045_v30, %v10471_v13 }
 0x273   : > { %v3627_v62 = vadd.f32 %v11050_v7, %v3587_v5  ;;  %3238 = vmatmul.bf16.gmra.mxu3 %v3099_v17  ;;  %3536 = vmatmul.bf16.gmra.mxu0 %v3380_v12  ;;  %v2798_v12 = vshrl.u32 %v11028_v1, 16  ;;  %v3381_v5 = vrot.slane %v2790_v52, 1  ;;  %v4358_v52 = vshrl.u32 %v4356_v6, 16  ;;  %v9009_v1 = vld [vmem:[%s13383_s1 + $0x2f0] sm:$0xff] }
 0x274   : > { %4865 = vmatpush.bf16.msrb.mxu3 %v9009_v1 }
 0x275   : > { %v3663_v41 = vmax.f32 %v3627_v62, 0.0  ;;  %v3382_v62 = vrot.slane %v13580_v31, 2  ;;  %v2800_v50 = vor.u32 %v2798_v12, %v2796_v22  ;;  %v3101_v22 = vsel %vm3076_vm4, %v3098_v36, %v13410_v10 }
 0x276   : > { %2978 = vmatmul.bf16.gmra.mxu2 %v2797_v26  ;;  %v11068_v24 = vpop.f32.mrf.mxu3  ;;  %v3385_v11 = vrot.slane %v2798_v12, 1 }
 0x277   : > { %v3879_v29 = vmul.f32 %v11066_v18, %v3663_v41  ;;  %v4133_v18 = vpack.c.b16 %v4097_v2, %v4096_v20  ;;  %v11080_v23 = vor.u32 %v3382_v62, %v3381_v5  ;;  %v2805_v31 = vsel %vm2209_vm3, %v2800_v50, %v11084_v33 }
 0x278   : > { %v3499_v17 = vpop.f32.mrf.mxu0  ;;  %v4360_v62 = vrot.slane %v4358_v52, 2 }
 0x279   : > { %v11071_v43 = vpop.f32.mrf.mxu2  ;;  %v3915_v26 = vpack.c.bf16 %v3879_v29, %v3879_v29  ;;  %v3588_v41 = vadd.f32 %v3499_v17, %v3280_v40  ;;  %v4714_v2 = vshrl.u32 %v4133_v18, 16  ;;  %v4717_v29 = vshll.u32 %v4133_v18, 16  ;;  %v11105_v52 = vpop.permute.xlu0 %3706 }
 0x27a   : > { %v3384_v17 = vsel %vm3336_vm5, %v3379_v35, %v11080_v23  ;;  %v4152_v40 = vrot.slane %v4133_v18, 3  ;;  %13581 = vst [vmem:[#allocation27_spill] sm:$0xff] %v11105_v52 }
 0x27b   : > { %3951 = vst [vmem:[#allocation2 + $0xc] sm:$0xf] %v3915_v26  ;;  %v3628_v55 = vadd.f32 %v11050_v7, %v3588_v41  ;;  %v4716_v41 = vrot.slane %v4714_v2, 3  ;;  %v4719_v36 = vrot.slane %v4717_v29, 4 }
 0x27d   : > { %v3664_v26 = vmax.f32 %v3628_v55, 0.0  ;;  %v11110_v55 = vld [vmem:[%s9844_s10 + $0x7c] sm:$0xff]  ;;  %v4720_v30 = vor.u32 %v4719_v36, %v4716_v41  ;;  %v3023_v36 = vadd.f32 %v11071_v43, %v10482_v49 }
 0x27e   : > { %v11086_v54 = vpop.f32.mrf.mxu3 }
 0x27f   : > { %v3880_v59 = vmul.f32 %v11105_v52, %v3664_v26  ;;  %v13412_v26 = vshll.u32 %v11110_v55, 16 }
 0x280   : > { %v3502_v20 = vpop.f32.mrf.mxu0 }
 0x281   : > { %v11090_v56 = vpop.f32.mrf.mxu2  ;;  %v3589_v5 = vadd.f32 %v3502_v20, %v3281_v16  ;;  %v4364_v20 = vor.u32 %v4363_v48, %v4360_v62  ;;  %v2812_v43 = vrot.slane %v13412_v26, 1 }
 0x282   : > { %v11099_v19 = vld [vmem:[#allocation2 + $0x8] sm:$0xff] }
 0x283   : > { %v3629_v6 = vadd.f32 %v11050_v7, %v3589_v5  ;;  %3243 = vmatmul.bf16.gmra.mxu3 %v3101_v22  ;;  %3541 = vmatmul.bf16.gmra.mxu0 %v3384_v17  ;;  %v13411_v35 = vrot.slane %v11099_v19, 3  ;;  %v4366_v16 = vshrl.u32 %v11099_v19, 16  ;;  %v4369_v50 = vshll.u32 %v11099_v19, 16  ;;  %v11112_v22 = vpop.permute.xlu1 %3711 }
 0x284   : > { %13582 = vst [vmem:[#allocation28_spill] sm:$0xff] %v11112_v22 }
 0x285   : > { %v3665_v18 = vmax.f32 %v3629_v6, 0.0  ;;  %v4154_v29 = vsel %vm458_vm0, %v4152_v40, %v13411_v35  ;;  %v4368_v17 = vrot.slane %v4366_v16, 2  ;;  %v4371_v5 = vrot.slane %v4369_v50, 3 }
 0x286   : > { %2983 = vmatmul.bf16.gmra.mxu2 %v2805_v31  ;;  %v11114_v2 = vpop.f32.mrf.mxu3  ;;  %v4721_v31 = vrot.slane %v4366_v16, 3  ;;  %4263 = vmatmul.bf16.vlgmr.msra.gmra.mxu1 %v4154_v29  ;;  %v4722_v62 = vrot.slane %v4369_v50, 4  ;;  %v13414_v6 = vshrl.u32 %v11064_v57, 16  ;;  %v3282_v16 = vadd.f32 %v11043_v4, %v3022_v15 }
 0x287   : > { %v3881_v10 = vmul.f32 %v11112_v22, %v3665_v18  ;;  %v11126_v40 = vor.u32 %v4371_v5, %v4368_v17  ;;  %v3283_v50 = vadd.f32 %v11068_v24, %v3023_v36 }
 0x288   : > { %v3504_v48 = vpop.f32.mrf.mxu0  ;;  %v11130_v18 = vor.u32 %v4722_v62, %v4721_v31  ;;  %v2808_v49 = vor.u32 %v13414_v6, %v11084_v33  ;;  %v13584_v33 = vrot.slane %v11064_v57, 1  ;;  %v11174_v31 = vld [vmem:[#allocation2 + $0xc] sm:$0xf]  ;;  %v9025_v62 = vld [vmem:[%s13383_s1 + $0x370] sm:$0xff] }
 0x289   : > { %v11121_v13 = vpop.f32.mrf.mxu2  ;;  %v9165_v35 = vpack.c.bf16 %v3881_v10, %v3880_v59  ;;  %v11134_v41 = vsel %vm664_vm1, %v4364_v20, %v11126_v40  ;;  %v3590_v12 = vadd.f32 %v3504_v48, %v3282_v16  ;;  %v13413_v59 = vrot.slane %v11110_v55, 1  ;;  %5619 = vmatpush.bf16.msrb.mxu1 %v9025_v62 }
 0x28a   : > { %v11146_v4 = vsel %vm1021_vm2, %v4720_v30, %v11130_v18  ;;  %v11149_v10 = vor.u32 %v3386_v51, %v3385_v11  ;;  %v9017_v51 = vld [vmem:[%s13383_s1 + $0x330] sm:$0xff]  ;;  %v2813_v5 = vsel %vm2209_vm3, %v2808_v49, %v2812_v43  ;;  %v3024_v49 = vadd.f32 %v11090_v56, %v10495_v37 }
 0x28b   : > { %9412 = vst [vmem:[#allocation2 + $0x10] sm:$0xff] %v9165_v35   ;;  %v3630_v15 = vadd.f32 %v11050_v7, %v3590_v12  ;;  %v3103_v29 = vsel %vm3076_vm4, %v13584_v33, %v13413_v59  ;;  %5383 = vmatpush.bf16.msrb.mxu0 %v9017_v51  ;;  %v11187_v1 = vpop.permute.xlu1 %3716  ;;  %v11192_v51 = vld [vmem:[%s9844_s10 + $0x84] sm:$0xff]  ;;  %v11196_v33 = vpop.permute.xlu2 %3721 }
 0x28c   : > { %v3388_v17 = vsel %vm3336_vm5, %v11080_v23, %v11149_v10  ;;  %13585 = vst [vmem:[#allocation29_spill] sm:$0xff] %v11187_v1 }
 0x28d   : > { %v3666_v16 = vmax.f32 %v3630_v15, 0.0  ;;  %v13419_v15 = vunpack.c.l.b16 %v11174_v31  ;;  %13586 = vst [vmem:[#allocation30_spill] sm:$0xff] %v11196_v33 }
 0x28e   : > { %v11156_v35 = vpop.f32.mrf.mxu3 }
 0x28f   : > { %v3882_v56 = vmul.f32 %v11187_v1, %v3666_v16 }
 0x290   : > { %v3507_v11 = vpop.f32.mrf.mxu0 }
 0x291   : > { %v11160_v20 = vpop.f32.mrf.mxu2  ;;  %v3591_v24 = vadd.f32 %v3507_v11, %v3283_v50 }
 0x292   : > { %v11176_v30 = vld [vmem:[#allocation2 + $0x10] sm:$0xff] }
 0x293   : > { %v11181_v48 = vld [vmem:[#allocation2 + $0x10] sm:$0xff]   ;;  %v3631_v36 = vadd.f32 %v11050_v7, %v3591_v24  ;;  %3248 = vmatmul.bf16.gmra.mxu3 %v3103_v29  ;;  %3546 = vmatmul.bf16.gmra.mxu0 %v3388_v17  ;;  %v13416_v23 = vrot.slane %v11176_v30, 3  ;;  %v4375_v12 = vshrl.u32 %v11176_v30, 16  ;;  %v4378_v60 = vshll.u32 %v11176_v30, 16 }
 0x294   : > { %v9249_v11 = vunpack.c.l.b16 %v11181_v48  ;;  %v13587_v17 = vrot.slane %v11099_v19, 3  ;;  %v2814_v19 = vshrl.u32 %v11110_v55, 16 }
 0x295   : > { %v3667_v50 = vmax.f32 %v3631_v36, 0.0  ;;  %v4380_v62 = vrot.slane %v4378_v60, 3  ;;  %v4725_v37 = vrot.slane %v4375_v12, 3  ;;  %v4726_v59 = vrot.slane %v4378_v60, 4 }
 0x296   : > { %2988 = vmatmul.bf16.gmra.mxu2 %v2813_v5  ;;  %v11198_v29 = vpop.f32.mrf.mxu3  ;;  %v4156_v24 = vsel %vm458_vm0, %v13587_v17, %v13416_v23  ;;  %v4377_v5 = vrot.slane %v4375_v12, 2  ;;  %v11211_v6 = vpack.c.b16 %v9249_v11, %v13419_v15  ;;  %v13589_v17 = vshrl.u32 %v11064_v57, 16 }
 0x297   : > { %v3883_v36 = vmul.f32 %v11196_v33, %v3667_v50  ;;  %4268 = vmatmul.bf16.gmra.mxu1 %v4156_v24  ;;  %v13590_v12 = vshll.u32 %v11064_v57, 16  ;;  %v3284_v50 = vadd.f32 %v11086_v54, %v3024_v49  ;;  %v13421_v24 = vshll.u32 %v11192_v51, 16 }
 0x298   : > { %13588 = vst [vmem:[#allocation31_spill] sm:$0xff] %v11211_v6  ;;  %v3509_v22 = vpop.f32.mrf.mxu0  ;;  %v3389_v23 = vrot.slane %v13589_v17, 1  ;;  %v4381_v16 = vor.u32 %v4380_v62, %v4377_v5  ;;  %v4727_v60 = vor.u32 %v4726_v59, %v4725_v37  ;;  %v3025_v15 = vadd.f32 %v11121_v13, %v10514_v63  ;;  %v11256_v17 = vpop.permute.xlu0 %3731 }
 0x299   : > { %v11207_v26 = vpop.f32.mrf.mxu2  ;;  %v3390_v52 = vrot.slane %v13590_v12, 2  ;;  %v9170_v33 = vpack.c.bf16 %v3883_v36, %v3882_v56  ;;  %v3592_v1 = vadd.f32 %v3509_v22, %v3284_v50  ;;  %v13422_v5 = vrot.slane %v11192_v51, 1  ;;  %13592 = vst [vmem:[#allocation32_spill] sm:$0xff] %v11256_v17  ;;  %v11261_v50 = vld [vmem:[%s9844_s10 + $0x8c] sm:$0xff] }
 0x29a   : > { %v11222_v11 = vsel %vm664_vm1, %v11126_v40, %v4381_v16  ;;  %v11228_v57 = vsel %vm1021_vm2, %v11130_v18, %v4727_v60  ;;  %v2816_v49 = vor.u32 %v2814_v19, %v2812_v43  ;;  %v2820_v59 = vrot.slane %v13421_v24, 1 }
 0x29b   : > { %9413 = vst [vmem:[#allocation2 + $0x18] sm:$0xff] %v9170_v33   ;;  %v11231_v54 = vor.u32 %v3390_v52, %v3389_v23  ;;  %v3285_v40 = vadd.f32 %v11114_v2, %v3025_v15  ;;  %v3632_v63 = vadd.f32 %v11050_v7, %v3592_v1  ;;  %v13591_v18 = vrot.slane %v11110_v55, 1 }
 0x29c   : > { %v2821_v33 = vsel %vm2209_vm3, %v2816_v49, %v2820_v59  ;;  %v11263_v49 = vpop.permute.xlu2 %3726  ;;  %v2822_v24 = vshrl.u32 %v11192_v51, 16  ;;  %v13595_v6 = vshll.u32 %v11110_v55, 16  ;;  %v8992_v55 = vld [vmem:[%s13383_s1 + $0x268] sm:$0xff] }
 0x29d   : > { %v3105_v52 = vsel %vm3076_vm4, %v13591_v18, %v13422_v5  ;;  %v3392_v43 = vsel %vm3336_vm5, %v11149_v10, %v11231_v54  ;;  %v3668_v1 = vmax.f32 %v3632_v63, 0.0  ;;  %v3026_v10 = vadd.f32 %v11160_v20, %v10531_v58  ;;  %13593 = vst [vmem:[#allocation33_spill] sm:$0xff] %v11263_v49  ;;  %4595 = vmatpush.bf16.msrb.mxu2 %v8992_v55 }
 0x29e   : > { %v11235_v62 = vpop.f32.mrf.mxu3  ;;  %v13594_v63 = vrot.slane %v11176_v30, 3  ;;  %v3393_v5 = vrot.slane %v2814_v19, 1  ;;  %v3394_v30 = vrot.slane %v13595_v6, 2 }
 0x2a0   : > { %v3512_v22 = vpop.f32.mrf.mxu0 }
 0x2a1   : > { %v11239_v13 = vpop.f32.mrf.mxu2  ;;  %v3593_v23 = vadd.f32 %v3512_v22, %v3285_v40 }
 0x2a2   : > { %v11250_v2 = vld [vmem:[#allocation2 + $0x18] sm:$0xff] }
 0x2a3   : > { %v3633_v15 = vadd.f32 %v11050_v7, %v3593_v23  ;;  %3253 = vmatmul.bf16.gmra.mxu3 %v3105_v52  ;;  %3551 = vmatmul.bf16.gmra.mxu0 %v3392_v43  ;;  %v13423_v37 = vrot.slane %v11250_v2, 3  ;;  %v4384_v56 = vshrl.u32 %v11250_v2, 16  ;;  %v4387_v36 = vshll.u32 %v11250_v2, 16 }
 0x2a4   : > { %v3884_v23 = vmul.f32 %v11263_v49, %v3668_v1  ;;  %v13425_v1 = vshll.u32 %v11261_v50, 16 }
 0x2a5   : > { %v3669_v12 = vmax.f32 %v3633_v15, 0.0  ;;  %v4158_v22 = vsel %vm458_vm0, %v13594_v63, %v13423_v37  ;;  %v4386_v18 = vrot.slane %v4384_v56, 2  ;;  %v4389_v52 = vrot.slane %v4387_v36, 3 }
 0x2a6   : > { %2993 = vmatmul.bf16.gmra.mxu2 %v2821_v33  ;;  %v11265_v40 = vpop.f32.mrf.mxu3  ;;  %v4729_v43 = vrot.slane %v4384_v56, 3  ;;  %v4730_v33 = vrot.slane %v4387_v36, 4  ;;  %v3286_v63 = vadd.f32 %v11156_v35, %v3026_v10  ;;  %v3027_v36 = vadd.f32 %v11207_v26, %v10556_v3  ;;  %v11305_v3 = vld [vmem:[#allocation2 + $0x14] sm:$0xff]  }
 0x2a7   : > { %v3885_v58 = vmul.f32 %v11256_v17, %v3669_v12  ;;  %4273 = vmatmul.bf16.gmra.mxu1 %v4158_v22  ;;  %v11279_v61 = vor.u32 %v4389_v52, %v4386_v18  ;;  %v13426_v35 = vrot.slane %v11261_v50, 1  ;;  %v11299_v10 = vor.u32 %v3394_v30, %v3393_v5  ;;  %13597 = vst [vmem:[#allocation35_spill] sm:$0xff] %v11305_v3  ;;  %v9008_v5 = vld [vmem:[%s13383_s1 + $0x2e8] sm:$0xff] }
 0x2a8   : > { %v3514_v15 = vpop.f32.mrf.mxu0  ;;  %v11283_v37 = vor.u32 %v4730_v33, %v4729_v43  ;;  %v2824_v22 = vor.u32 %v2822_v24, %v2820_v59  ;;  %v3287_v18 = vadd.f32 %v11198_v29, %v3027_v36  ;;  %v6745_v59 = vld [vmem:[#allocation2 + $0x14] sm:$0xe]  ;;  %v13424_v33 = vunpack.c.h.b16 %v11305_v3  ;;  %4866 = vmatpush.bf16.msrb.mxu3 %v9008_v5  ;;  %v11339_v5 = vpop.permute.xlu1 %3736 }
 0x2a9   : > { %v11274_v20 = vpop.f32.mrf.mxu2  ;;  %v9175_v56 = vpack.c.bf16 %v3885_v58, %v3884_v23  ;;  %v11287_v12 = vsel %vm664_vm1, %v4381_v16, %v11279_v61  ;;  %v3594_v19 = vadd.f32 %v3514_v15, %v3286_v63  ;;  %v11303_v16 = vrot.slane %v13425_v1, 1  ;;  %13601 = vst [vmem:[#allocation38_spill] sm:$0xff] %v11339_v5 }
 0x2aa   : > { %13596 = vst [vmem:[#allocation34_spill] sm:$0xff] %v11287_v12  ;;  %v11296_v6 = vsel %vm1021_vm2, %v4727_v60, %v11283_v37  ;;  %v13598_v23 = vrot.slane %v11192_v51, 1  ;;  %v3396_v29 = vsel %vm3336_vm5, %v11231_v54, %v11299_v10 }
 0x2ab   : > { %9414 = vst [vmem:[#allocation2 + $0x20] sm:$0xff] %v9175_v56   ;;  %v3634_v52 = vadd.f32 %v11050_v7, %v3594_v19  ;;  %v2829_v30 = vsel %vm2209_vm3, %v2824_v22, %v11303_v16  ;;  %v6764_v56 = vunpack.c.l.b16 %v6745_v59 }
 0x2ac   : > { %v3107_v58 = vsel %vm3076_vm4, %v13598_v23, %v13426_v35  ;;  %v11344_v23 = vld [vmem:[%s9844_s10 + $0x94] sm:$0xff] }
 0x2ad   : > { %v3670_v36 = vmax.f32 %v3634_v52, 0.0  ;;  %v11337_v22 = vpack.c.b16 %v13424_v33, %v6764_v56  ;;  %v3028_v52 = vadd.f32 %v11239_v13, %v10577_v45  ;;  %v13603_v56 = vrot.slane %v11250_v2, 3 }
 0x2ae   : > { %v11307_v26 = vpop.f32.mrf.mxu3 }
 0x2af   : > { %13600 = vst [vmem:[#allocation37_spill] sm:$0xff] %v11337_v22  ;;  %v3886_v45 = vmul.f32 %v11339_v5, %v3670_v36  ;;  %v3288_v36 = vadd.f32 %v11235_v62, %v3028_v52  ;;  %v9016_v62 = vld [vmem:[%s13383_s1 + $0x328] sm:$0xff]  ;;  %v8989_v5 = vld [vmem:[%s13383_s1 + $0x250] sm:$0xff] }
 0x2b0   : > { %v3517_v43 = vpop.f32.mrf.mxu0  ;;  %5384 = vmatpush.bf16.msrb.mxu0 %v9016_v62 }
 0x2b1   : > { %v11311_v60 = vpop.f32.mrf.mxu2  ;;  %v3595_v15 = vadd.f32 %v3517_v43, %v3287_v18 }
 0x2b2   : > { %v11327_v63 = vld [vmem:[#allocation2 + $0x20] sm:$0xff] }
 0x2b3   : > { %v3635_v19 = vadd.f32 %v11050_v7, %v3595_v15  ;;  %3258 = vmatmul.bf16.gmra.mxu3 %v3107_v58  ;;  %3556 = vmatmul.bf16.gmra.mxu0 %v3396_v29  ;;  %v13430_v55 = vrot.slane %v11327_v63, 3  ;;  %v4393_v54 = vshrl.u32 %v11327_v63, 16  ;;  %v4396_v18 = vshll.u32 %v11327_v63, 16  ;;  %v11333_v43 = vld [vmem:[#allocation2 + $0x1c] sm:$0xff]  ;;  %v11347_v15 = vpop.permute.xlu2 %3741 }
 0x2b4   : > { %13599 = vst [vmem:[#allocation36_spill] sm:$0xff] %v11333_v43  ;;  %v3397_v29 = vrot.slane %v2822_v24, 1  ;;  %v13604_v24 = vshll.u32 %v11192_v51, 16  ;;  %v13432_v2 = vshrl.u32 %v11333_v43, 16 }
 0x2b5   : > { %v3671_v59 = vmax.f32 %v3635_v19, 0.0  ;;  %13602 = vst [vmem:[#allocation39_spill] sm:$0xff] %v11347_v15  ;;  %v4160_v33 = vsel %vm458_vm0, %v13603_v56, %v13430_v55  ;;  %v4395_v1 = vrot.slane %v4393_v54, 2  ;;  %v4398_v35 = vrot.slane %v4396_v18, 3 }
 0x2b6   : > { %2998 = vmatmul.bf16.gmra.mxu2 %v2829_v30  ;;  %v11349_v30 = vpop.f32.mrf.mxu3  ;;  %v4733_v17 = vrot.slane %v4393_v54, 3  ;;  %v3398_v58 = vrot.slane %v13604_v24, 2  ;;  %v4734_v49 = vrot.slane %v4396_v18, 4  ;;  %v7026_v56 = vshrl.u32 %v11337_v22, 16 }
 0x2b7   : > { %v3887_v13 = vmul.f32 %v11347_v15, %v3671_v59  ;;  %4278 = vmatmul.bf16.gmra.mxu1 %v4160_v33  ;;  %v11362_v12 = vor.u32 %v4398_v35, %v4395_v1  ;;  %v7029_v54 = vshll.u32 %v11337_v22, 16  ;;  %v13434_v59 = vshll.u32 %v11344_v23, 16 }
 0x2b8   : > { %v3519_v3 = vpop.f32.mrf.mxu0  ;;  %v11369_v15 = vor.u32 %v4734_v49, %v4733_v17  ;;  %v13433_v1 = vshll.u32 %v11333_v43, 16  ;;  %v3029_v35 = vadd.f32 %v11274_v20, %v10604_v42  ;;  %v13435_v18 = vrot.slane %v11344_v23, 1  ;;  %v9024_v17 = vld [vmem:[%s13383_s1 + $0x368] sm:$0xff] }
 0x2b9   : > { %v11358_v19 = vpop.f32.mrf.mxu2  ;;  %v9180_v55 = vpack.c.bf16 %v3887_v13, %v3886_v45  ;;  %v11374_v51 = vsel %vm664_vm1, %v11279_v61, %v11362_v12  ;;  %v3596_v33 = vadd.f32 %v3519_v3, %v3288_v36  ;;  %v11391_v49 = vor.u32 %v3398_v58, %v3397_v29  ;;  %5620 = vmatpush.bf16.msrb.mxu1 %v9024_v17 }
 0x2ba   : > { %v11389_v61 = vsel %vm1021_vm2, %v11283_v37, %v11369_v15  ;;  %v7033_v42 = vrot.slane %v13432_v2, 1  ;;  %v7028_v20 = vrot.slane %v7026_v56, 1  ;;  %v7031_v3 = vrot.slane %v7029_v54, 2  ;;  %v9007_v56 = vld [vmem:[%s13383_s1 + $0x2e0] sm:$0xff] }
 0x2bb   : > { %9415 = vst [vmem:[#allocation2 + $0x28] sm:$0xff] %v9180_v55   ;;  %v13605_v55 = vshrl.u32 %v11261_v50, 16  ;;  %v11400_v45 = vrot.slane %v13434_v59, 1  ;;  %v7034_v37 = vrot.slane %v13433_v1, 2  ;;  %v3289_v58 = vadd.f32 %v11265_v40, %v3029_v35  ;;  %4867 = vmatpush.bf16.msrb.mxu3 %v9007_v56  ;;  %v11451_v56 = vld [vmem:[%s9844_s10 + $0x9c] sm:$0xff] }
 0x2bc   : > { %v3636_v29 = vadd.f32 %v11050_v7, %v3596_v33  ;;  %v13606_v36 = vrot.slane %v11261_v50, 1  ;;  %v3400_v40 = vsel %vm3336_vm5, %v11299_v10, %v11391_v49  ;;  %v7032_v35 = vor.u32 %v7031_v3, %v7028_v20  ;;  %v8990_v10 = vld [vmem:[%s13383_s1 + $0x258] sm:$0xff] }
 0x2bd   : > { %v2832_v52 = vor.u32 %v13605_v55, %v11303_v16  ;;  %v8991_v16 = vld [vmem:[%s13383_s1 + $0x260] sm:$0xff]  ;;  %v11424_v33 = vor.u32 %v7034_v37, %v7033_v42  ;;  %v9006_v42 = vld [vmem:[%s13383_s1 + $0x2d8] sm:$0xff] }
 0x2be   : > { %v11402_v13 = vpop.f32.mrf.mxu3  ;;  %v3109_v62 = vsel %vm3076_vm4, %v13606_v36, %v13435_v18  ;;  %4596 = vmatpush.bf16.msrb.mxu2 %v8991_v16  ;;  %v3672_v36 = vmax.f32 %v3636_v29, 0.0  ;;  %v3030_v29 = vadd.f32 %v11311_v60, %v10635_v47 }
 0x2bf   : > { %v2837_v55 = vsel %vm2209_vm3, %v2832_v52, %v11400_v45  ;;  %v11432_v1 = vsel %vm3336_vm5, %v7032_v35, %v11424_v33  ;;  %4868 = vmatpush.bf16.msrb.mxu3 %v9006_v42  ;;  %v13611_v35 = vrot.slane %v11327_v63, 3  ;;  %v9005_v63 = vld [vmem:[%s13383_s1 + $0x2d0] sm:$0xff] }
 0x2c0   : > { %v3522_v54 = vpop.f32.mrf.mxu0  ;;  %13607 = vst [vmem:[#allocation40_spill] sm:$0xff] %v11432_v1  ;;  %v13443_v1 = vshll.u32 %v11451_v56, 16 }
 0x2c1   : > { %v11408_v24 = vpop.f32.mrf.mxu2  ;;  %v3597_v17 = vadd.f32 %v3522_v54, %v3289_v58  ;;  %v11446_v58 = vpop.permute.xlu0 %3746 }
 0x2c2   : > { %v11428_v2 = vld [vmem:[#allocation2 + $0x28] sm:$0xff]  ;;  %13609 = vst [vmem:[#allocation42_spill] sm:$0xff] %v11446_v58  ;;  %4597 = vmatpush.bf16.msrb.mxu2 %v8990_v10  ;;  %v3888_v60 = vmul.f32 %v11446_v58, %v3672_v36  ;;  %v13612_v10 = vshrl.u32 %v11261_v50, 16  ;;  %v13613_v36 = vshll.u32 %v11261_v50, 16 }
 0x2c3   : > { %v3637_v59 = vadd.f32 %v11050_v7, %v3597_v17  ;;  %3263 = vmatmul.bf16.gmra.mxu3 %v3109_v62  ;;  %3561 = vmatmul.bf16.gmra.mxu0 %v3400_v40  ;;  %v13437_v20 = vrot.slane %v11428_v2, 3  ;;  %v4402_v3 = vshrl.u32 %v11428_v2, 16  ;;  %v4405_v52 = vshll.u32 %v11428_v2, 16  ;;  %v11444_v37 = vld [vmem:[#allocation2 + $0x24] sm:$0xff]  ;;  %v11454_v62 = vpop.permute.xlu1 %3751 }
 0x2c4   : > { %13608 = vst [vmem:[#allocation41_spill] sm:$0xff] %v11444_v37  ;;  %v3401_v42 = vrot.slane %v13612_v10, 1  ;;  %v3290_v10 = vadd.f32 %v11307_v26, %v3030_v29  ;;  %4869 = vmatpush.bf16.msrb.mxu3 %v9005_v63  ;;  %v8988_v26 = vld [vmem:[%s13383_s1 + $0x248] sm:$0xff] }
 0x2c5   : > { %v3673_v16 = vmax.f32 %v3637_v59, 0.0  ;;  %13610 = vst [vmem:[#allocation43_spill] sm:$0xff] %v11454_v62  ;;  %v4162_v17 = vsel %vm458_vm0, %v13611_v35, %v13437_v20  ;;  %v4407_v18 = vrot.slane %v4405_v52, 3  ;;  %v4737_v47 = vrot.slane %v4402_v3, 3 }
 0x2c6   : > { %3003 = vmatmul.bf16.gmra.mxu2 %v2837_v55  ;;  %v11456_v40 = vpop.f32.mrf.mxu3  ;;  %v4404_v55 = vrot.slane %v4402_v3, 2  ;;  %v4738_v35 = vrot.slane %v4405_v52, 4  ;;  %v3402_v20 = vrot.slane %v13613_v36, 2 }
 0x2c7   : > { %v3889_v59 = vmul.f32 %v11454_v62, %v3673_v16  ;;  %4283 = vmatmul.bf16.gmra.mxu1 %v4162_v17  ;;  %v13442_v17 = vshll.u32 %v11444_v37, 16  ;;  %v13441_v62 = vshrl.u32 %v11444_v37, 16  ;;  %4598 = vmatpush.bf16.msrb.mxu2 %v8989_v5  ;;  %v9004_v5 = vld [vmem:[%s13383_s1 + $0x2c8] sm:$0xff] }
 0x2c8   : > { %v3524_v3 = vpop.f32.mrf.mxu0  ;;  %v11477_v16 = vor.u32 %v4407_v18, %v4404_v55  ;;  %v11483_v22 = vor.u32 %v4738_v35, %v4737_v47  ;;  %v3031_v18 = vadd.f32 %v11358_v19, %v10666_v21  ;;  %v11504_v55 = vor.u32 %v3402_v20, %v3401_v42  ;;  %4870 = vmatpush.bf16.msrb.mxu3 %v9004_v5  ;;  %v2595_v20 = vld [vmem:[%s9844_s10 + $0xa4] sm:$0x1] }
 0x2c9   : > { %v11465_v54 = vpop.f32.mrf.mxu2  ;;  %v9185_v58 = vpack.c.bf16 %v3889_v59, %v3888_v60  ;;  %v3598_v52 = vadd.f32 %v3524_v3, %v3290_v10  ;;  %v7037_v21 = vrot.slane %v13441_v62, 1  ;;  %v7038_v19 = vrot.slane %v13442_v17, 2  ;;  %v9003_v3 = vld [vmem:[%s13383_s1 + $0x2c0] sm:$0xff] }
 0x2ca   : > { %v11488_v50 = vsel %vm664_vm1, %v11362_v12, %v11477_v16  ;;  %v11501_v29 = vsel %vm1021_vm2, %v11369_v15, %v11483_v22  ;;  %v13444_v12 = vrot.slane %v11451_v56, 1  ;;  %v11515_v60 = vrot.slane %v13443_v1, 1 }
 0x2cb   : > { %9416 = vst [vmem:[#allocation2 + $0x30] sm:$0xff] %v9185_v58   ;;  %v13614_v58 = vshrl.u32 %v11344_v23, 16  ;;  %4599 = vmatpush.bf16.msrb.mxu2 %v8988_v26  ;;  %v11520_v59 = vor.u32 %v7038_v19, %v7037_v21  ;;  %v3291_v42 = vadd.f32 %v11349_v30, %v3031_v18  ;;  %v3638_v63 = vadd.f32 %v11050_v7, %v3598_v52 }
 0x2cc   : > { %v13615_v10 = vrot.slane %v11344_v23, 1  ;;  %v3404_v30 = vsel %vm3336_vm5, %v11391_v49, %v11504_v55  ;;  %v2686_v21 = vunpack.c.l.b16 %v2595_v20  ;;  %4871 = vmatpush.bf16.msrb.mxu3 %v9003_v3 }
 0x2cd   : > { %v2840_v47 = vor.u32 %v13614_v58, %v11400_v45  ;;  %v8987_v45 = vld [vmem:[%s13383_s1 + $0x240] sm:$0xff]  ;;  %v11543_v18 = vsel %vm3336_vm5, %v11424_v33, %v11520_v59  ;;  %v2536_v58 = vadd.f32 %v10681_v46, %v10679_v38  ;;  %v11560_v46 = vpop.permute.xlu2 %3756 }
 0x2ce   : > { %v11517_v15 = vpop.f32.mrf.mxu3  ;;  %v3111_v26 = vsel %vm3076_vm4, %v13615_v10, %v13444_v12  ;;  %13616 = vst [vmem:[#allocation44_spill] sm:$0xff] %v11543_v18  ;;  %v3674_v10 = vmax.f32 %v3638_v63, 0.0  ;;  %v2705_v38 = vpack.c.b16 %v2686_v21, %v2686_v21  ;;  %v2846_v21 = vshrl.u32 %v11451_v56, 16 }
 0x2cf   : > { %v2845_v5 = vsel %vm2209_vm3, %v2840_v47, %v11515_v60  ;;  %4600 = vmatpush.bf16.msrb.mxu2 %v8987_v45  ;;  %v11557_v45 = vpop.permute.xlu0 %3761  ;;  %v3032_v3 = vadd.f32 %v11408_v24, %v2536_v58  ;;  %13619 = vst [vmem:[#allocation47_spill] sm:$0xff] %v11560_v46  ;;  %v13621_v12 = vshrl.u32 %v11344_v23, 16 }
 0x2d0   : > { %v3527_v36 = vpop.f32.mrf.mxu0  ;;  %13618 = vst [vmem:[#allocation46_spill] sm:$0xff] %v11557_v45  ;;  %v3890_v17 = vmul.f32 %v11560_v46, %v3674_v10 }
 0x2d1   : > { %v11524_v35 = vpop.f32.mrf.mxu2  ;;  %v3599_v52 = vadd.f32 %v3527_v36, %v3291_v42  ;;  %v3405_v18 = vrot.slane %v13621_v12, 1  ;;  %v3292_v10 = vadd.f32 %v11402_v13, %v3032_v3  ;;  %v9015_v13 = vld [vmem:[%s13383_s1 + $0x320] sm:$0xff] }
 0x2d2   : > { %v11547_v19 = vld [vmem:[#allocation2 + $0x30] sm:$0xff]  ;;  %5385 = vmatpush.bf16.msrb.mxu0 %v9015_v13 }
 0x2d3   : > { %v3639_v49 = vadd.f32 %v11050_v7, %v3599_v52  ;;  %3268 = vmatmul.bf16.gmra.mxu3 %v3111_v26  ;;  %3566 = vmatmul.bf16.gmra.mxu0 %v3404_v30  ;;  %v13445_v33 = vrot.slane %v11547_v19, 3  ;;  %v4411_v42 = vshrl.u32 %v11547_v19, 16  ;;  %v4414_v47 = vshll.u32 %v11547_v19, 16  ;;  %v11555_v20 = vld [vmem:[#allocation2 + $0x2c] sm:$0xff] }
 0x2d4   : > { %13617 = vst [vmem:[#allocation45_spill] sm:$0xff] %v11555_v20  ;;  %v13620_v26 = vrot.slane %v11428_v2, 3  ;;  %v13622_v2 = vshll.u32 %v11344_v23, 16  ;;  %v13449_v12 = vshll.u32 %v11555_v20, 16  ;;  %v3033_v23 = vadd.f32 %v11465_v54, %v10709_v25 }
 0x2d5   : > { %v3675_v36 = vmax.f32 %v3639_v49, 0.0  ;;  %v4413_v52 = vrot.slane %v4411_v42, 2  ;;  %v4741_v62 = vrot.slane %v4411_v42, 3  ;;  %v4742_v58 = vrot.slane %v4414_v47, 4 }
 0x2d6   : > { %3008 = vmatmul.bf16.gmra.mxu2 %v2845_v5  ;;  %v11562_v63 = vpop.f32.mrf.mxu3  ;;  %v4164_v30 = vsel %vm458_vm0, %v13620_v26, %v13445_v33  ;;  %v4416_v5 = vrot.slane %v4414_v47, 3  ;;  %v3406_v26 = vrot.slane %v13622_v2, 2  ;;  %v13448_v42 = vshrl.u32 %v11555_v20, 16 }
 0x2d7   : > { %v3891_v1 = vmul.f32 %v11557_v45, %v3675_v36  ;;  %4288 = vmatmul.bf16.gmra.mxu1 %v4164_v30  ;;  %v2850_v45 = vshll.u32 %v2705_v38, 16  ;;  %v11582_v46 = vor.u32 %v4742_v58, %v4741_v62  ;;  %v2848_v54 = vor.u32 %v2846_v21, %v11515_v60 }
 0x2d8   : > { %v3529_v49 = vpop.f32.mrf.mxu0  ;;  %v11578_v33 = vor.u32 %v4416_v5, %v4413_v52  ;;  %v7041_v25 = vrot.slane %v13448_v42, 1  ;;  %v7042_v5 = vrot.slane %v13449_v12, 2 }
 0x2d9   : > { %v11571_v24 = vpop.f32.mrf.mxu2  ;;  %v9190_v36 = vpack.c.bf16 %v3891_v1, %v3890_v17  ;;  %v3600_v30 = vadd.f32 %v3529_v49, %v3292_v10  ;;  %v9023_v1 = vld [vmem:[%s13383_s1 + $0x360] sm:$0xff]  ;;  %v11601_v62 = vsel %vm1021_vm2, %v11483_v22, %v11582_v46  ;;  %v11603_v17 = vor.u32 %v3406_v26, %v3405_v18 }
 0x2da   : > { %v11587_v47 = vsel %vm664_vm1, %v11477_v16, %v11578_v33  ;;  %v3112_v16 = vrot.slane %v2705_v38, 1  ;;  %v2852_v3 = vrot.slane %v2850_v45, 1  ;;  %5621 = vmatpush.bf16.msrb.mxu1 %v9023_v1  ;;  %v3293_v22 = vadd.f32 %v11456_v40, %v3033_v23 }
 0x2db   : > { %9417 = vst [vmem:[#allocation2 + $0x38] sm:$0xff] %v9190_v36   ;;  %v3640_v18 = vadd.f32 %v11050_v7, %v3600_v30  ;;  %v13623_v49 = vrot.slane %v11451_v56, 1  ;;  %v3408_v60 = vsel %vm3336_vm5, %v11504_v55, %v11603_v17  ;;  %v11624_v45 = vor.u32 %v7042_v5, %v7041_v25  ;;  %v9014_v55 = vld [vmem:[%s13383_s1 + $0x318] sm:$0xff] }
 0x2dc   : > { %v2853_v10 = vsel %vm2209_vm3, %v2848_v54, %v2852_v3  ;;  %v2538_v23 = vadd.f32 %v10732_v9, %v10730_v53  ;;  %v11645_v54 = vpop.permute.xlu1 %3766  ;;  %5386 = vmatpush.bf16.msrb.mxu0 %v9014_v55  ;;  %v11648_v3 = vpop.permute.xlu2 %3771  ;;  %v13629_v55 = vshll.u32 %v11451_v56, 16  ;;  %v3035_v56 = vadd.f32 %v11571_v24, %v10763_v8 }
 0x2dd   : > { %v3113_v2 = vsel %vm3076_vm4, %v13623_v49, %v3112_v16  ;;  %v11632_v40 = vsel %vm3336_vm5, %v11520_v59, %v11624_v45  ;;  %v3676_v30 = vmax.f32 %v3640_v18, 0.0  ;;  %13626 = vst [vmem:[#allocation50_spill] sm:$0xff] %v11645_v54 }
 0x2de   : > { %v11610_v52 = vpop.f32.mrf.mxu3  ;;  %13624 = vst [vmem:[#allocation48_spill] sm:$0xff] %v11632_v40  ;;  %v3034_v53 = vadd.f32 %v11524_v35, %v2538_v23  ;;  %v9013_v23 = vld [vmem:[%s13383_s1 + $0x310] sm:$0xff] }
 0x2df   : > { %13627 = vst [vmem:[#allocation51_spill] sm:$0xff] %v11648_v3 }
 0x2e0   : > { %v3532_v58 = vpop.f32.mrf.mxu0  ;;  %5387 = vmatpush.bf16.msrb.mxu0 %v9013_v23 }
 0x2e1   : > { %v11616_v38 = vpop.f32.mrf.mxu2  ;;  %v3601_v26 = vadd.f32 %v3532_v58, %v3293_v22  ;;  %v13628_v22 = vrot.slane %v11547_v19, 3 }
 0x2e2   : > { %v11627_v36 = vld [vmem:[#allocation2 + $0x38] sm:$0xff] }
 0x2e3   : > { %v3641_v13 = vadd.f32 %v11050_v7, %v3601_v26  ;;  %3273 = vmatmul.bf16.gmra.mxu3 %v3113_v2  ;;  %3571 = vmatmul.bf16.gmra.mxu0 %v3408_v60  ;;  %v4165_v1 = vrot.slane %v11627_v36, 3  ;;  %v4420_v16 = vshrl.u32 %v11627_v36, 16  ;;  %v4423_v59 = vshll.u32 %v11627_v36, 16  ;;  %v11643_v25 = vld [vmem:[#allocation2 + $0x34] sm:$0xff] }
 0x2e4   : > { %13625 = vst [vmem:[#allocation49_spill] sm:$0xff] %v11643_v25  ;;  %v3892_v60 = vmul.f32 %v11645_v54, %v3676_v30  ;;  %v13451_v30 = vshll.u32 %v11643_v25, 16 }
 0x2e5   : > { %v3677_v9 = vmax.f32 %v3641_v13, 0.0  ;;  %v4166_v18 = vsel %vm458_vm0, %v13628_v22, %v4165_v1  ;;  %v4422_v58 = vrot.slane %v4420_v16, 2  ;;  %v4425_v49 = vrot.slane %v4423_v59, 3 }
 0x2e6   : > { %3013 = vmatmul.bf16.gmra.mxu2 %v2853_v10  ;;  %v11650_v5 = vpop.f32.mrf.mxu3  ;;  %v4745_v2 = vrot.slane %v4420_v16, 3  ;;  %v3409_v10 = vrot.slane %v2846_v21, 1  ;;  %v4746_v19 = vrot.slane %v4423_v59, 4  ;;  %v3410_v22 = vrot.slane %v13629_v55, 2  ;;  %v3315_v16 = vld [vmem:[%s9844_s10 + $0xa4] sm:$0x3] }
 0x2e7   : > { %v3893_v35 = vmul.f32 %v11648_v3, %v3677_v9  ;;  %4293 = vmatmul.bf16.gmra.mxu1 %v4166_v18  ;;  %v11669_v42 = vor.u32 %v4425_v49, %v4422_v58  ;;  %v13450_v9 = vshrl.u32 %v11643_v25, 16  ;;  %v3294_v18 = vadd.f32 %v11517_v15, %v3034_v53  ;;  %v9012_v55 = vld [vmem:[%s13383_s1 + $0x308] sm:$0xff]  ;;  %s244_s10 = scalar_lea.vmem [#allocation3], %s243_s13 }
 0x2e8   : > { %v3534_v13 = vpop.f32.mrf.mxu0  ;;  %v11674_v21 = vor.u32 %v4746_v19, %v4745_v2  ;;  %v3334_v49 = vunpack.c.l.b16 %v3315_v16  ;;  %v11691_v53 = vor.u32 %v3410_v22, %v3409_v10  ;;  %v7046_v8 = vrot.slane %v13451_v30, 2  ;;  %5388 = vmatpush.bf16.msrb.mxu0 %v9012_v55  ;;  %v9011_v10 = vld [vmem:[%s13383_s1 + $0x300] sm:$0xff]  ;;  %s7517_s19 = sshll.u32 %s244_s10, 4  ;;  %s7518_s19 = int_to_ptr.vmem [resolvable:$true] %s7517_s19 }
 0x2e9   : > { %v11659_v26 = vpop.f32.mrf.mxu2  ;;  %v9195_v12 = vpack.c.bf16 %v3893_v35, %v3892_v60  ;;  %v11679_v59 = vsel %vm664_vm1, %v11578_v33, %v11669_v42  ;;  %v3602_v58 = vadd.f32 %v3534_v13, %v3294_v18  ;;  %v7045_v33 = vrot.slane %v13450_v9, 1  ;;  %v11723_v18 = vld [vmem:[%s13384_s2] ss:$0 sm:$0xff] }
 0x2ea   : > { %v11689_v15 = vsel %vm1021_vm2, %v11582_v46, %v11674_v21  ;;  %v3295_v2 = vadd.f32 %v11562_v63, %v3035_v56  ;;  %v3335_v46 = vpack.c.b16 %v3334_v49, %v3334_v49  ;;  %v3412_v19 = vsel %vm3336_vm5, %v11603_v17, %v11691_v53 }
 0x2eb   : > { %9418 = vst [vmem:[#allocation2 + $0x40] sm:$0xff] %v9195_v12   ;;  %v11699_v12 = vor.u32 %v7046_v8, %v7045_v33  ;;  %v3642_v60 = vadd.f32 %v11050_v7, %v3602_v58  ;;  %v2540_v22 = vadd.f32 %v10782_v14, %v10780_v44  ;;  %v11731_v14 = vpop.permute.xlu0 %3776 }
 0x2ec   : > { %5389 = vmatpush.bf16.msrb.mxu0 %v9011_v10  ;;  %v3417_v58 = vshll.u32 %v3335_v46, 16  ;;  %13631 = vst [vmem:[#allocation53_spill] sm:$0xff] %v11731_v14 }
 0x2ed   : > { %v11714_v13 = vsel %vm3336_vm5, %v11624_v45, %v11699_v12  ;;  %v3678_v16 = vmax.f32 %v3642_v60, 0.0  ;;  %v3414_v45 = vshrl.u32 %v3335_v46, 16  ;;  %v3036_v55 = vadd.f32 %v11616_v38, %v2540_v22 }
 0x2ee   : > { %v11697_v24 = vpop.f32.mrf.mxu3  ;;  %13630 = vst [vmem:[#allocation52_spill] sm:$0xff] %v11714_v13  ;;  %v3419_v30 = vrot.slane %v3417_v58, 2 }
 0x2ef   : > { %v3416_v9 = vrot.slane %v3414_v45, 1  ;;  %v3296_v36 = vadd.f32 %v11610_v52, %v3036_v55  ;;  %v3037_v45 = vadd.f32 %v11659_v26, %v10816_v39  ;;  %v11771_v55 = vpop.f32.mrf.mxu1 }
 0x2f0   : > { %v3537_v23 = vpop.f32.mrf.mxu0 }
 0x2f1   : > { %v11703_v35 = vpop.f32.mrf.mxu2  ;;  %v3603_v63 = vadd.f32 %v3537_v23, %v3295_v2  ;;  %v11736_v2 = vpop.permute.xlu1 %3781  ;;  %v3894_v23 = vmul.f32 %v11731_v14, %v3678_v16  ;;  %v3297_v26 = vadd.f32 %v11650_v5, %v3037_v45 }
 0x2f2   : > { %v11716_v7 = vld [vmem:[#allocation2 + $0x40] sm:$0xff]  ;;  %13633 = vst [vmem:[#allocation55_spill] sm:$0xff] %v11736_v2 }
 0x2f3   : > { %v3643_v17 = vadd.f32 %v11723_v18, %v3603_v63  ;;  %3576 = vmatmul.bf16.gmra.mxu0 %v3412_v19  ;;  %4872 = vmatmul.bf16.vlgmr.msrb.gmra.mxu3 %v11146_v4  ;;  %v13453_v56 = vrot.slane %v11716_v7, 3  ;;  %v4429_v49 = vshrl.u32 %v11716_v7, 16  ;;  %v4432_v44 = vshll.u32 %v11716_v7, 16  ;;  %v11734_v8 = vld [vmem:[#allocation2 + $0x3c] sm:$0xff]  ;;  %v4999_v63 = vld [vmem:[#allocation2 + $0x8] sm:$0x8] }
 0x2f4   : > { %13632 = vst [vmem:[#allocation54_spill] sm:$0xff] %v11734_v8  ;;  %v13454_v16 = vshrl.u32 %v11734_v8, 16 }
 0x2f5   : > { %v3679_v33 = vmax.f32 %v3643_v17, 0.0  ;;  %v4431_v60 = vrot.slane %v4429_v49, 2  ;;  %v4434_v46 = vrot.slane %v4432_v44, 3  ;;  %v4749_v10 = vrot.slane %v4429_v49, 3 }
 0x2f6   : > { %4601 = vmatmul.bf16.vlgmr.msrb.gmra.mxu2 %v11134_v41  ;;  %v11738_v4 = vpop.f32.mrf.mxu3  ;;  %v4168_v41 = vsel %vm458_vm0, %v4165_v1, %v13453_v56  ;;  %v4750_v22 = vrot.slane %v4432_v44, 4  ;;  %v5090_v49 = vunpack.c.l.b16 %v4999_v63  ;;  %v13455_v44 = vshll.u32 %v11734_v8, 16 }
 0x2f7   : > { %v3895_v38 = vmul.f32 %v11736_v2, %v3679_v33  ;;  %4298 = vmatmul.bf16.gmra.mxu1 %v4168_v41  ;;  %v11749_v3 = vor.u32 %v4434_v46, %v4431_v60  ;;  %v3420_v41 = vor.u32 %v3419_v30, %v3416_v9  ;;  %v13634_v46 = vunpack.c.l.b16 %v11174_v31  ;;  %v9022_v30 = vld [vmem:[%s13383_s1 + $0x358] sm:$0xff] }
 0x2f8   : > { %v3539_v17 = vpop.f32.mrf.mxu0  ;;  %v11754_v56 = vor.u32 %v4750_v22, %v4749_v10  ;;  %v7050_v39 = vrot.slane %v13455_v44, 2  ;;  %5622 = vmatpush.bf16.msrb.mxu1 %v9022_v30  ;;  %v2542_v22 = vadd.f32 %v10838_v0, %v10836_v27  ;;  %v5158_v27 = vshll.u32 %v11181_v48, 16 }
 0x2f9   : > { %v11747_v19 = vpop.f32.mrf.mxu2  ;;  %v11752_v1 = vpack.c.bf16 %v3895_v38, %v3894_v23  ;;  %v11760_v33 = vsel %vm664_vm1, %v11669_v42, %v11749_v3  ;;  %v3604_v52 = vadd.f32 %v3539_v17, %v3296_v36  ;;  %v7049_v42 = vrot.slane %v13454_v16, 1 }
 0x2fa   : > { %v11769_v58 = vsel %vm1021_vm2, %v11674_v21, %v11754_v56  ;;  %v11779_v10 = vpack.c.b16 %v13634_v46, %v5090_v49  ;;  %v3421_v38 = vsel %vm3336_vm5, %v11691_v53, %v3420_v41  ;;  %v3038_v0 = vadd.f32 %v11703_v35, %v2542_v22  ;;  %v11822_v35 = vpop.permute.xlu2 %3786 }
 0x2fb   : > { %9419 = vst [vmem:[#allocation2 + $0x48] sm:$0xff] %v11752_v1   ;;  %v3644_v21 = vadd.f32 %v11723_v18, %v3604_v52  ;;  %v11792_v31 = vor.u32 %v7050_v39, %v7049_v42  ;;  %v5155_v52 = vshrl.u32 %v11181_v48, 16  ;;  %v11817_v39 = vpop.permute.xlu0 %3791  ;;  %v13639_v30 = vrot.slane %v11716_v7, 3 }
 0x2fc   : > { %v5147_v17 = vshrl.u32 %v11779_v10, 16  ;;  %13637 = vst [vmem:[#allocation58_spill] sm:$0xff] %v11817_v39  ;;  %v5150_v44 = vshll.u32 %v11779_v10, 16  ;;  %v5160_v54 = vrot.slane %v5158_v27, 4 }
 0x2fd   : > { %v11804_v49 = vsel %vm3336_vm5, %v11699_v12, %v11792_v31  ;;  %v3680_v45 = vmax.f32 %v3644_v21, 0.0  ;;  %v5221_v21 = vshll.u32 %v11752_v1, 16  ;;  %13638 = vst [vmem:[#allocation59_spill] sm:$0xff] %v11822_v35  ;;  %v5157_v14 = vrot.slane %v5155_v52, 3 }
 0x2fe   : > { %v11775_v60 = vpop.f32.mrf.mxu3  ;;  %13636 = vst [vmem:[#allocation57_spill] sm:$0xff] %v11804_v49 }
 0x2ff   : > { %v5223_v52 = vrot.slane %v5221_v21, 4 }
 0x300   : > { %v3542_v9 = vpop.f32.mrf.mxu0 }
 0x301   : > { %v11785_v23 = vpop.f32.mrf.mxu2  ;;  %v3605_v63 = vadd.f32 %v3542_v9, %v3297_v26 }
 0x302   : > { %v11796_v5 = vld [vmem:[#allocation2 + $0x48] sm:$0xff] }
 0x303   : > { %v11799_v36 = vld [vmem:[#allocation2 + $0x44] sm:$0xff]  ;;  %v3645_v53 = vadd.f32 %v11723_v18, %v3605_v63  ;;  %3581 = vmatmul.bf16.gmra.mxu0 %v3421_v38  ;;  %4877 = vmatmul.bf16.gmra.mxu3 %v11228_v57  ;;  %v11812_v41 = vpop.f32.mrf.mxu1  ;;  %v4169_v42 = vrot.slane %v11796_v5, 3  ;;  %v4438_v12 = vshrl.u32 %v11796_v5, 16  ;;  %v4441_v46 = vshll.u32 %v11796_v5, 16 }
 0x304   : > { %13635 = vst [vmem:[#allocation56_spill] sm:$0xff] %v11799_v36  ;;  %v5218_v57 = vshrl.u32 %v11752_v1, 16  ;;  %v13459_v7 = vshll.u32 %v11799_v36, 16  ;;  %v13640_v27 = vshrl.u32 %v11799_v36, 16 }
 0x305   : > { %v3681_v26 = vmax.f32 %v3645_v53, 0.0  ;;  %v4170_v9 = vsel %vm458_vm0, %v13639_v30, %v4169_v42  ;;  %v4440_v38 = vrot.slane %v4438_v12, 2  ;;  %v4443_v63 = vrot.slane %v4441_v46, 3 }
 0x306   : > { %4606 = vmatmul.bf16.gmra.mxu2 %v11222_v11  ;;  %v11824_v11 = vpop.f32.mrf.mxu3  ;;  %v4753_v22 = vrot.slane %v4438_v12, 3  ;;  %v3896_v53 = vmul.f32 %v11822_v35, %v3680_v45  ;;  %v4754_v48 = vrot.slane %v4441_v46, 4  ;;  %v3298_v30 = vadd.f32 %v11697_v24, %v3038_v0 }
 0x307   : > { %v3897_v16 = vmul.f32 %v11817_v39, %v3681_v26  ;;  %4303 = vmatmul.bf16.gmra.mxu1 %v4170_v9  ;;  %v11836_v49 = vor.u32 %v4443_v63, %v4440_v38  ;;  %v3039_v45 = vadd.f32 %v11747_v19, %v10858_v32  ;;  %v5220_v46 = vrot.slane %v5218_v57, 3 }
 0x308   : > { %v3544_v2 = vpop.f32.mrf.mxu0  ;;  %v11842_v26 = vor.u32 %v4754_v48, %v4753_v22  ;;  %v7053_v9 = vrot.slane %v13640_v27, 1  ;;  %v5149_v0 = vrot.slane %v5147_v17, 3  ;;  %v5152_v48 = vrot.slane %v5150_v44, 4 }
 0x309   : > { %v11833_v1 = vpop.f32.mrf.mxu2  ;;  %v9205_v12 = vpack.c.bf16 %v3897_v16, %v3896_v53  ;;  %v11847_v10 = vsel %vm664_vm1, %v11749_v3, %v11836_v49  ;;  %v3606_v38 = vadd.f32 %v3544_v2, %v3298_v30  ;;  %v7054_v3 = vrot.slane %v13459_v7, 2 }
 0x30a   : > { %v11854_v24 = vsel %vm1021_vm2, %v11754_v56, %v11842_v26  ;;  %v11862_v22 = vor.u32 %v5160_v54, %v5157_v14  ;;  %v3299_v56 = vadd.f32 %v11738_v4, %v3039_v45  ;;  %v5153_v27 = vor.u32 %v5152_v48, %v5149_v0  ;;  %v9430_v14 = vld [vmem:[#allocation2 + $0x18] sm:$0xff]  }
 0x30b   : > { %9420 = vst [vmem:[#allocation2 + $0x50] sm:$0xff] %v9205_v12   ;;  %v5227_v32 = vshrl.u32 %v9205_v12, 16  ;;  %v5230_v19 = vshll.u32 %v9205_v12, 16  ;;  %v11856_v16 = vpop.f32.mrf.mxu1  ;;  %v11864_v2 = vor.u32 %v7054_v3, %v7053_v9  ;;  %v3646_v53 = vadd.f32 %v11723_v18, %v3606_v38 }
 0x30c   : > { %v11870_v12 = vor.u32 %v5223_v52, %v5220_v46  ;;  %v5162_v45 = vsel %vm1021_vm2, %v5153_v27, %v11862_v22  ;;  %v2544_v9 = vadd.f32 %v10875_v34, %v10873_v28  ;;  %v5164_v3 = vshrl.u32 %v9430_v14, 16 }
 0x30d   : > { %v5229_v57 = vrot.slane %v5227_v32, 3  ;;  %v5232_v21 = vrot.slane %v5230_v19, 4  ;;  %v11877_v32 = vsel %vm3336_vm5, %v11792_v31, %v11864_v2  ;;  %v3682_v38 = vmax.f32 %v3646_v53, 0.0  ;;  %v13643_v19 = vld [vmem:[#allocation34_spill] sm:$0xff] }
 0x30e   : > { %v11860_v63 = vpop.f32.mrf.mxu3  ;;  %13641 = vst [vmem:[#allocation60_spill] sm:$0xff] %v11877_v32  ;;  %v3040_v28 = vadd.f32 %v11785_v23, %v2544_v9  ;;  %v5167_v53 = vshll.u32 %v9430_v14, 16 }
 0x30f   : > { %v11872_v44 = vor.u32 %v5232_v21, %v5229_v57 }
 0x310   : > { %v3547_v17 = vpop.f32.mrf.mxu0  ;;  %v3300_v5 = vadd.f32 %v11775_v60, %v3040_v28 }
 0x311   : > { %v11868_v30 = vpop.f32.mrf.mxu2  ;;  %v3607_v54 = vadd.f32 %v3547_v17, %v3299_v56  ;;  %v11882_v4 = vsel %vm1021_vm2, %v11870_v12, %v11872_v44  ;;  %v11900_v56 = vpop.permute.xlu1 %3796 }
 0x312   : > { %v11886_v46 = vld [vmem:[#allocation2 + $0x50] sm:$0xff]  ;;  %13644 = vst [vmem:[#allocation34_spill] sm:$0xff] %v11900_v56  ;;  %v11904_v17 = vpop.permute.xlu2 %3801  ;;  %v3898_v39 = vmul.f32 %v11900_v56, %v3682_v38  ;;  %v5169_v56 = vrot.slane %v5167_v53, 4 }
 0x313   : > { %v11888_v52 = vld [vmem:[#allocation2 + $0x4c] sm:$0xff]  ;;  %v3647_v31 = vadd.f32 %v11723_v18, %v3607_v54  ;;  %4882 = vmatmul.bf16.gmra.mxu3 %v11296_v6  ;;  %5390 = vmatmul.bf16.vlgmr.msrb.gmra.mxu0 %v5162_v45  ;;  %v13462_v48 = vrot.slane %v11886_v46, 3  ;;  %v4447_v57 = vshrl.u32 %v11886_v46, 16  ;;  %v4450_v21 = vshll.u32 %v11886_v46, 16  ;;  %13645 = vst [vmem:[#allocation62_spill] sm:$0xff] %v11904_v17 }
 0x314   : > { %13642 = vst [vmem:[#allocation61_spill] sm:$0xff] %v11888_v52  ;;  %v11895_v0 = vpop.f32.mrf.mxu1  ;;  %v13464_v35 = vshll.u32 %v11888_v52, 16 }
 0x315   : > { %v3683_v34 = vmax.f32 %v3647_v31, 0.0  ;;  %v4172_v54 = vsel %vm458_vm0, %v4169_v42, %v13462_v48  ;;  %v4449_v45 = vrot.slane %v4447_v57, 2  ;;  %v4757_v7 = vrot.slane %v4447_v57, 3  ;;  %v13646_v57 = vld [vmem:[#allocation9_spill] sm:$0xff] }
 0x316   : > { %4611 = vmatmul.bf16.gmra.mxu2 %v13643_v19  ;;  %v11906_v27 = vpop.f32.mrf.mxu3  ;;  %v4452_v19 = vrot.slane %v4450_v21, 3  ;;  %v4758_v9 = vrot.slane %v4450_v21, 4  ;;  %v5166_v42 = vrot.slane %v5164_v3, 3  ;;  %v3041_v38 = vadd.f32 %v11833_v1, %v13646_v57 }
 0x317   : > { %v3899_v23 = vmul.f32 %v11904_v17, %v3683_v34  ;;  %4308 = vmatmul.bf16.gmra.mxu1 %v4172_v54  ;;  %v13647_v21 = vshrl.u32 %v11888_v52, 16  ;;  %v7058_v1 = vrot.slane %v13464_v35, 2 }
 0x318   : > { %v3549_v31 = vpop.f32.mrf.mxu0  ;;  %v11917_v6 = vor.u32 %v4452_v19, %v4449_v45  ;;  %v11921_v48 = vor.u32 %v4758_v9, %v4757_v7  ;;  %v11943_v19 = vor.u32 %v5169_v56, %v5166_v42  ;;  %v3301_v9 = vadd.f32 %v11824_v11, %v3041_v38  ;;  %v9431_v38 = vld [vmem:[#allocation2 + $0x20] sm:$0xff]  }
 0x319   : > { %v11915_v14 = vpop.f32.mrf.mxu2  ;;  %v9210_v32 = vpack.c.bf16 %v3899_v23, %v3898_v39  ;;  %v7057_v54 = vrot.slane %v13647_v21, 1  ;;  %v3608_v45 = vadd.f32 %v3549_v31, %v3300_v5 }
 0x31a   : > { %v11928_v34 = vsel %vm664_vm1, %v11836_v49, %v11917_v6  ;;  %v11935_v60 = vsel %vm1021_vm2, %v11842_v26, %v11921_v48  ;;  %v5171_v11 = vsel %vm1021_vm2, %v11862_v22, %v11943_v19 }
 0x31b   : > { %9421 = vst [vmem:[#allocation2 + $0x58] sm:$0xff] %v9210_v32   ;;  %v5236_v39 = vshrl.u32 %v9210_v32, 16  ;;  %v5239_v7 = vshll.u32 %v9210_v32, 16  ;;  %v11945_v23 = vor.u32 %v7058_v1, %v7057_v54  ;;  %v3648_v26 = vadd.f32 %v11723_v18, %v3608_v45  ;;  %v9021_v54 = vld [vmem:[%s13383_s1 + $0x350] sm:$0xff] }
 0x31c   : > { %v11937_v3 = vpop.f32.mrf.mxu1  ;;  %v13649_v45 = vld [vmem:[#allocation10_spill] sm:$0xff]  ;;  %5623 = vmatpush.bf16.msrb.mxu1 %v9021_v54  ;;  %v13654_v54 = vrot.slane %v11886_v46, 3 }
 0x31d   : > { %v5238_v28 = vrot.slane %v5236_v39, 3  ;;  %v5241_v49 = vrot.slane %v5239_v7, 4  ;;  %v11956_v57 = vsel %vm3336_vm5, %v11864_v2, %v11945_v23  ;;  %v13650_v2 = vld [vmem:[#allocation11_spill] sm:$0xff]  ;;  %v3684_v7 = vmax.f32 %v3648_v26, 0.0 }
 0x31e   : > { %v11941_v53 = vpop.f32.mrf.mxu3  ;;  %13648 = vst [vmem:[#allocation9_spill] sm:$0xff] %v11956_v57  ;;  %v2546_v39 = vadd.f32 %v13650_v2, %v13649_v45  ;;  %v11986_v45 = vpop.permute.xlu1 %3811 }
 0x31f   : > { %v11951_v32 = vor.u32 %v5241_v49, %v5238_v28  ;;  %13653 = vst [vmem:[#allocation63_spill] sm:$0xff] %v11986_v45 }
 0x320   : > { %v3552_v5 = vpop.f32.mrf.mxu0  ;;  %v3042_v26 = vadd.f32 %v11868_v30, %v2546_v39 }
 0x321   : > { %v11949_v31 = vpop.f32.mrf.mxu2  ;;  %v3609_v21 = vadd.f32 %v3552_v5, %v3301_v9  ;;  %v11961_v56 = vsel %vm1021_vm2, %v11872_v44, %v11951_v32  ;;  %v11983_v5 = vpop.permute.xlu0 %3806 }
 0x322   : > { %v11966_v42 = vld [vmem:[#allocation2 + $0x58] sm:$0xff]  ;;  %13652 = vst [vmem:[#allocation11_spill] sm:$0xff] %v11983_v5  ;;  %v3900_v13 = vmul.f32 %v11983_v5, %v3684_v7 }
 0x323   : > { %v3649_v1 = vadd.f32 %v11723_v18, %v3609_v21  ;;  %4887 = vmatmul.bf16.gmra.mxu3 %v11389_v61  ;;  %5395 = vmatmul.bf16.gmra.mxu0 %v5171_v11  ;;  %v13468_v22 = vrot.slane %v11966_v42, 3  ;;  %v4456_v28 = vshrl.u32 %v11966_v42, 16  ;;  %v4459_v49 = vshll.u32 %v11966_v42, 16  ;;  %v11981_v9 = vld [vmem:[#allocation2 + $0x54] sm:$0xff] }
 0x324   : > { %v11976_v44 = vpop.f32.mrf.mxu1  ;;  %13651 = vst [vmem:[#allocation10_spill] sm:$0xff] %v11981_v9  ;;  %v5173_v61 = vshrl.u32 %v9431_v38, 16  ;;  %v5176_v11 = vshll.u32 %v9431_v38, 16  ;;  %v13473_v52 = vshll.u32 %v11981_v9, 16  ;;  %v13472_v46 = vshrl.u32 %v11981_v9, 16 }
 0x325   : > { %v3685_v21 = vmax.f32 %v3649_v1, 0.0  ;;  %v4174_v2 = vsel %vm458_vm0, %v13654_v54, %v13468_v22  ;;  %v4458_v35 = vrot.slane %v4456_v28, 2  ;;  %v4461_v17 = vrot.slane %v4459_v49, 3 }
 0x326   : > { %4616 = vmatmul.bf16.gmra.mxu2 %v11374_v51  ;;  %v11988_v51 = vpop.f32.mrf.mxu3  ;;  %v4761_v57 = vrot.slane %v4456_v28, 3  ;;  %v4762_v38 = vrot.slane %v4459_v49, 4  ;;  %v3302_v54 = vadd.f32 %v11860_v63, %v3042_v26  ;;  %v13655_v28 = vld [vmem:[#allocation12_spill] sm:$0xff]  ;;  %v7062_v26 = vrot.slane %v13473_v52, 2 }
 0x327   : > { %v3901_v30 = vmul.f32 %v11986_v45, %v3685_v21  ;;  %4313 = vmatmul.bf16.gmra.mxu1 %v4174_v2  ;;  %v11999_v40 = vor.u32 %v4461_v17, %v4458_v35  ;;  %v3043_v7 = vadd.f32 %v11915_v14, %v13655_v28  ;;  %v5175_v21 = vrot.slane %v5173_v61, 3 }
 0x328   : > { %v3554_v1 = vpop.f32.mrf.mxu0  ;;  %v12004_v36 = vor.u32 %v4762_v38, %v4761_v57  ;;  %v5178_v45 = vrot.slane %v5176_v11, 4  ;;  %v7061_v14 = vrot.slane %v13472_v46, 1 }
 0x329   : > { %v11997_v39 = vpop.f32.mrf.mxu2  ;;  %v9215_v22 = vpack.c.bf16 %v3901_v30, %v3900_v13  ;;  %v12011_v49 = vsel %vm664_vm1, %v11917_v6, %v11999_v40  ;;  %v3610_v35 = vadd.f32 %v3554_v1, %v3302_v54  ;;  %v12063_v46 = vpop.permute.xlu0 %3821 }
 0x32a   : > { %v12016_v17 = vsel %vm1021_vm2, %v11921_v48, %v12004_v36  ;;  %v12026_v2 = vor.u32 %v5178_v45, %v5175_v21  ;;  %v12028_v30 = vor.u32 %v7062_v26, %v7061_v14  ;;  %v3303_v48 = vadd.f32 %v11906_v27, %v3043_v7  ;;  %v13659_v14 = vld [vmem:[#allocation14_spill] sm:$0xff] }
 0x32b   : > { %9422 = vst [vmem:[#allocation2 + $0x60] sm:$0xff] %v9215_v22   ;;  %v5245_v13 = vshrl.u32 %v9215_v22, 16  ;;  %v5248_v63 = vshll.u32 %v9215_v22, 16  ;;  %v3650_v22 = vadd.f32 %v11723_v18, %v3610_v35  ;;  %v13658_v35 = vld [vmem:[#allocation13_spill] sm:$0xff] }
 0x32c   : > { %v12018_v57 = vpop.f32.mrf.mxu1  ;;  %v12039_v28 = vsel %vm3336_vm5, %v11945_v23, %v12028_v30  ;;  %v5180_v27 = vsel %vm1021_vm2, %v11943_v19, %v12026_v2  ;;  %v2548_v26 = vadd.f32 %v13659_v14, %v13658_v35  ;;  %13660 = vst [vmem:[#allocation13_spill] sm:$0xff] %v12063_v46  ;;  %v13662_v14 = vrot.slane %v11966_v42, 3 }
 0x32d   : > { %v5247_v61 = vrot.slane %v5245_v13, 3  ;;  %v5250_v6 = vrot.slane %v5248_v63, 4  ;;  %13656 = vst [vmem:[#allocation12_spill] sm:$0xff] %v12039_v28  ;;  %v9432_v63 = vld [vmem:[#allocation2 + $0x28] sm:$0xff]   ;;  %v3686_v23 = vmax.f32 %v3650_v22, 0.0 }
 0x32e   : > { %v12024_v11 = vpop.f32.mrf.mxu3  ;;  %v5182_v19 = vshrl.u32 %v9432_v63, 16  ;;  %v3044_v22 = vadd.f32 %v11949_v31, %v2548_v26 }
 0x32f   : > { %v12034_v1 = vor.u32 %v5250_v6, %v5247_v61 }
 0x330   : > { %v3557_v54 = vpop.f32.mrf.mxu0  ;;  %v3304_v42 = vadd.f32 %v11941_v53, %v3044_v22 }
 0x331   : > { %v12032_v38 = vpop.f32.mrf.mxu2  ;;  %v3611_v13 = vadd.f32 %v3557_v54, %v3303_v48  ;;  %v12044_v45 = vsel %vm1021_vm2, %v11951_v32, %v12034_v1 }
 0x332   : > { %v12049_v7 = vld [vmem:[#allocation2 + $0x60] sm:$0xff] }
 0x333   : > { %v12051_v21 = vld [vmem:[#allocation2 + $0x5c] sm:$0xff]  ;;  %v3651_v61 = vadd.f32 %v11723_v18, %v3611_v13  ;;  %4892 = vmatmul.bf16.gmra.mxu3 %v11501_v29  ;;  %5400 = vmatmul.bf16.gmra.mxu0 %v5180_v27  ;;  %v13483_v6 = vrot.slane %v12049_v7, 3  ;;  %v4465_v48 = vshrl.u32 %v12049_v7, 16  ;;  %v4468_v54 = vshll.u32 %v12049_v7, 16  ;;  %v12067_v27 = vpop.permute.xlu2 %3816 }
 0x334   : > { %13657 = vst [vmem:[#allocation64_spill] sm:$0xff] %v12051_v21  ;;  %v12058_v32 = vpop.f32.mrf.mxu1  ;;  %v5185_v13 = vshll.u32 %v9432_v63, 16  ;;  %v3902_v8 = vmul.f32 %v12067_v27, %v3686_v23  ;;  %v13485_v25 = vshll.u32 %v12051_v21, 16 }
 0x335   : > { %v3687_v35 = vmax.f32 %v3651_v61, 0.0  ;;  %13661 = vst [vmem:[#allocation14_spill] sm:$0xff] %v12067_v27  ;;  %v4176_v52 = vsel %vm458_vm0, %v13662_v14, %v13483_v6  ;;  %v4467_v5 = vrot.slane %v4465_v48, 2  ;;  %v4470_v28 = vrot.slane %v4468_v54, 3 }
 0x336   : > { %4621 = vmatmul.bf16.gmra.mxu2 %v11488_v50  ;;  %v12069_v50 = vpop.f32.mrf.mxu3  ;;  %v4765_v9 = vrot.slane %v4465_v48, 3  ;;  %v4766_v26 = vrot.slane %v4468_v54, 4  ;;  %v5184_v14 = vrot.slane %v5182_v19, 3  ;;  %v13663_v48 = vld [vmem:[#allocation15_spill] sm:$0xff]  ;;  %v5187_v27 = vrot.slane %v5185_v13, 4 }
 0x337   : > { %v3903_v31 = vmul.f32 %v12063_v46, %v3687_v35  ;;  %4318 = vmatmul.bf16.gmra.mxu1 %v4176_v52  ;;  %v12080_v29 = vor.u32 %v4470_v28, %v4467_v5  ;;  %v3045_v23 = vadd.f32 %v11997_v39, %v13663_v48  ;;  %v13664_v5 = vshrl.u32 %v12051_v21, 16 }
 0x338   : > { %v3559_v61 = vpop.f32.mrf.mxu0  ;;  %v12084_v6 = vor.u32 %v4766_v26, %v4765_v9  ;;  %v7066_v39 = vrot.slane %v13485_v25, 2  ;;  %v12106_v13 = vor.u32 %v5187_v27, %v5184_v14 }
 0x339   : > { %v12078_v63 = vpop.f32.mrf.mxu2  ;;  %v9220_v20 = vpack.c.bf16 %v3903_v31, %v3902_v8  ;;  %v12091_v52 = vsel %vm664_vm1, %v11999_v40, %v12080_v29  ;;  %v7065_v28 = vrot.slane %v13664_v5, 1  ;;  %v3612_v54 = vadd.f32 %v3559_v61, %v3304_v42 }
 0x33a   : > { %v12098_v8 = vsel %vm1021_vm2, %v12004_v36, %v12084_v6  ;;  %v3305_v26 = vadd.f32 %v11988_v51, %v3045_v23  ;;  %v5189_v51 = vsel %vm1021_vm2, %v12026_v2, %v12106_v13 }
 0x33b   : > { %9423 = vst [vmem:[#allocation2 + $0x68] sm:$0xff] %v9220_v20   ;;  %v5254_v53 = vshrl.u32 %v9220_v20, 16  ;;  %v5257_v9 = vshll.u32 %v9220_v20, 16  ;;  %v12108_v31 = vor.u32 %v7066_v39, %v7065_v28  ;;  %v3652_v36 = vadd.f32 %v11723_v18, %v3612_v54  ;;  %v13668_v28 = vld [vmem:[#allocation16_spill] sm:$0xff]  ;;  %v13669_v54 = vld [vmem:[#allocation17_spill] sm:$0xff] }
 0x33c   : > { %v12100_v19 = vpop.f32.mrf.mxu1 }
 0x33d   : > { %v5256_v22 = vrot.slane %v5254_v53, 3  ;;  %v5259_v40 = vrot.slane %v5257_v9, 4  ;;  %v12119_v48 = vsel %vm3336_vm5, %v12028_v30, %v12108_v31  ;;  %v9433_v53 = vld [vmem:[#allocation2 + $0x30] sm:$0xff]   ;;  %v2550_v9 = vadd.f32 %v13669_v54, %v13668_v28 }
 0x33e   : > { %v12104_v35 = vpop.f32.mrf.mxu3  ;;  %13665 = vst [vmem:[#allocation15_spill] sm:$0xff] %v12119_v48  ;;  %v3688_v30 = vmax.f32 %v3652_v36, 0.0  ;;  %v5191_v2 = vshrl.u32 %v9433_v53, 16  ;;  %v13672_v54 = vrot.slane %v12049_v7, 3 }
 0x33f   : > { %v12114_v20 = vor.u32 %v5259_v40, %v5256_v22  ;;  %v3046_v36 = vadd.f32 %v12032_v38, %v2550_v9 }
 0x340   : > { %v3562_v42 = vpop.f32.mrf.mxu0 }
 0x341   : > { %v12112_v61 = vpop.f32.mrf.mxu2  ;;  %v3613_v5 = vadd.f32 %v3562_v42, %v3305_v26  ;;  %v12124_v27 = vsel %vm1021_vm2, %v12034_v1, %v12114_v20  ;;  %v12143_v42 = vpop.permute.xlu1 %3826  ;;  %v3306_v7 = vadd.f32 %v12024_v11, %v3046_v36 }
 0x342   : > { %13666 = vst [vmem:[#allocation65_spill] sm:$0xff] %v12124_v27  ;;  %v12129_v14 = vld [vmem:[#allocation2 + $0x68] sm:$0xff]  ;;  %v3904_v37 = vmul.f32 %v12143_v42, %v3688_v30 }
 0x343   : > { %v12131_v23 = vld [vmem:[#allocation2 + $0x64] sm:$0xff]  ;;  %v3653_v39 = vadd.f32 %v11723_v18, %v3613_v5  ;;  %4897 = vmatmul.bf16.gmra.mxu3 %v11601_v62  ;;  %5405 = vmatmul.bf16.gmra.mxu0 %v5189_v51  ;;  %v13493_v22 = vrot.slane %v12129_v14, 3  ;;  %v4474_v40 = vshrl.u32 %v12129_v14, 16  ;;  %v4477_v26 = vshll.u32 %v12129_v14, 16  ;;  %13670 = vst [vmem:[#allocation16_spill] sm:$0xff] %v12143_v42  ;;  %v12147_v51 = vpop.permute.xlu2 %3831 }
 0x344   : > { %13667 = vst [vmem:[#allocation66_spill] sm:$0xff] %v12131_v23  ;;  %v12138_v1 = vpop.f32.mrf.mxu1  ;;  %v5194_v5 = vshll.u32 %v9433_v53, 16  ;;  %v13495_v43 = vshll.u32 %v12131_v23, 16 }
 0x345   : > { %v3689_v28 = vmax.f32 %v3653_v39, 0.0  ;;  %13671 = vst [vmem:[#allocation17_spill] sm:$0xff] %v12147_v51  ;;  %v4178_v25 = vsel %vm458_vm0, %v13672_v54, %v13493_v22  ;;  %v4476_v46 = vrot.slane %v4474_v40, 2  ;;  %v4479_v48 = vrot.slane %v4477_v26, 3 }
 0x346   : > { %4626 = vmatmul.bf16.gmra.mxu2 %v11587_v47  ;;  %v12149_v47 = vpop.f32.mrf.mxu3  ;;  %v4769_v21 = vrot.slane %v4474_v40, 3  ;;  %v4770_v9 = vrot.slane %v4477_v26, 4  ;;  %v5193_v54 = vrot.slane %v5191_v2, 3  ;;  %v13673_v40 = vld [vmem:[#allocation18_spill] sm:$0xff]  ;;  %v5196_v42 = vrot.slane %v5194_v5, 4 }
 0x347   : > { %v3905_v38 = vmul.f32 %v12147_v51, %v3689_v28  ;;  %4323 = vmatmul.bf16.gmra.mxu1 %v4178_v25  ;;  %v12160_v62 = vor.u32 %v4479_v48, %v4476_v46  ;;  %v3047_v30 = vadd.f32 %v12078_v63, %v13673_v40  ;;  %v13674_v46 = vshrl.u32 %v12131_v23, 16 }
 0x348   : > { %v3564_v39 = vpop.f32.mrf.mxu0  ;;  %v12164_v22 = vor.u32 %v4770_v9, %v4769_v21 }
 0x349   : > { %v12158_v53 = vpop.f32.mrf.mxu2  ;;  %v9225_v27 = vpack.c.bf16 %v3905_v38, %v3904_v37  ;;  %v12171_v25 = vsel %vm664_vm1, %v12080_v29, %v12160_v62  ;;  %v7069_v48 = vrot.slane %v13674_v46, 1  ;;  %v3614_v26 = vadd.f32 %v3564_v39, %v3306_v7  ;;  %v9020_v37 = vld [vmem:[%s13383_s1 + $0x348] sm:$0xff] }
 0x34a   : > { %v12181_v11 = vsel %vm1021_vm2, %v12084_v6, %v12164_v22  ;;  %v7070_v29 = vrot.slane %v13495_v43, 2  ;;  %5624 = vmatpush.bf16.msrb.mxu1 %v9020_v37  ;;  %v12189_v38 = vor.u32 %v5196_v42, %v5193_v54  ;;  %v3307_v39 = vadd.f32 %v12069_v50, %v3047_v30 }
 0x34b   : > { %9424 = vst [vmem:[#allocation2 + $0x70] sm:$0xff] %v9225_v27   ;;  %v5263_v21 = vshrl.u32 %v9225_v27, 16  ;;  %v5266_v63 = vshll.u32 %v9225_v27, 16  ;;  %v3654_v6 = vadd.f32 %v11723_v18, %v3614_v26  ;;  %v13680_v26 = vld [vmem:[#allocation20_spill] sm:$0xff] }
 0x34c   : > { %v12183_v2 = vpop.f32.mrf.mxu1  ;;  %v12191_v9 = vor.u32 %v7070_v29, %v7069_v48  ;;  %v5198_v50 = vsel %vm1021_vm2, %v12106_v13, %v12189_v38  ;;  %v13679_v48 = vld [vmem:[#allocation19_spill] sm:$0xff] }
 0x34d   : > { %13675 = vst [vmem:[#allocation18_spill] sm:$0xff] %v12183_v2  ;;  %v5265_v36 = vrot.slane %v5263_v21, 3  ;;  %v5268_v28 = vrot.slane %v5266_v63, 4  ;;  %v9434_v21 = vld [vmem:[#allocation2 + $0x38] sm:$0xff]   ;;  %v2552_v63 = vadd.f32 %v13680_v26, %v13679_v48  ;;  %v13684_v26 = vrot.slane %v12129_v14, 3 }
 0x34e   : > { %v12187_v5 = vpop.f32.mrf.mxu3  ;;  %v12202_v46 = vsel %vm3336_vm5, %v12108_v31, %v12191_v9  ;;  %v3690_v31 = vmax.f32 %v3654_v6, 0.0  ;;  %v5200_v13 = vshrl.u32 %v9434_v21, 16 }
 0x34f   : > { %v12197_v27 = vor.u32 %v5268_v28, %v5265_v36  ;;  %13676 = vst [vmem:[#allocation67_spill] sm:$0xff] %v12202_v46  ;;  %v3048_v6 = vadd.f32 %v12112_v61, %v2552_v63 }
 0x350   : > { %v3567_v40 = vpop.f32.mrf.mxu0 }
 0x351   : > { %v12195_v7 = vpop.f32.mrf.mxu2  ;;  %v3615_v37 = vadd.f32 %v3567_v40, %v3307_v39  ;;  %v12207_v42 = vsel %vm1021_vm2, %v12114_v20, %v12197_v27  ;;  %v12226_v40 = vpop.permute.xlu0 %3836  ;;  %v3308_v14 = vadd.f32 %v12104_v35, %v3048_v6 }
 0x352   : > { %13677 = vst [vmem:[#allocation68_spill] sm:$0xff] %v12207_v42  ;;  %v12212_v54 = vld [vmem:[#allocation2 + $0x70] sm:$0xff]  ;;  %v3906_v42 = vmul.f32 %v12226_v40, %v3690_v31 }
 0x353   : > { %v12214_v30 = vld [vmem:[#allocation2 + $0x6c] sm:$0xff]  ;;  %v3655_v29 = vadd.f32 %v11723_v18, %v3615_v37  ;;  %4902 = vmatmul.bf16.gmra.mxu3 %v11689_v15  ;;  %5410 = vmatmul.bf16.gmra.mxu0 %v5198_v50  ;;  %v13499_v36 = vrot.slane %v12212_v54, 3  ;;  %v4483_v28 = vshrl.u32 %v12212_v54, 16  ;;  %v4486_v39 = vshll.u32 %v12212_v54, 16  ;;  %13682 = vst [vmem:[#allocation20_spill] sm:$0xff] %v12226_v40  ;;  %v12230_v50 = vpop.permute.xlu1 %3841 }
 0x354   : > { %13678 = vst [vmem:[#allocation69_spill] sm:$0xff] %v12214_v30  ;;  %v12221_v20 = vpop.f32.mrf.mxu1  ;;  %v5203_v37 = vshll.u32 %v9434_v21, 16 }
 0x355   : > { %13681 = vst [vmem:[#allocation19_spill] sm:$0xff] %v12221_v20  ;;  %v3691_v48 = vmax.f32 %v3655_v29, 0.0  ;;  %v4180_v43 = vsel %vm458_vm0, %v13684_v26, %v13499_v36  ;;  %v4485_v51 = vrot.slane %v4483_v28, 2  ;;  %v4488_v46 = vrot.slane %v4486_v39, 3 }
 0x356   : > { %4631 = vmatmul.bf16.gmra.mxu2 %v11679_v59  ;;  %13683 = vst [vmem:[#allocation70_spill] sm:$0xff] %v12230_v50  ;;  %v12232_v59 = vpop.f32.mrf.mxu3  ;;  %v4773_v23 = vrot.slane %v4483_v28, 3  ;;  %v4774_v63 = vrot.slane %v4486_v39, 4  ;;  %v13501_v20 = vshll.u32 %v12214_v30, 16  ;;  %v5202_v26 = vrot.slane %v5200_v13, 3  ;;  %v13685_v28 = vld [vmem:[#allocation6_spill] sm:$0xff] }
 0x357   : > { %v3907_v61 = vmul.f32 %v12230_v50, %v3691_v48  ;;  %4328 = vmatmul.bf16.gmra.mxu1 %v4180_v43  ;;  %v12243_v15 = vor.u32 %v4488_v46, %v4485_v51  ;;  %v3049_v31 = vadd.f32 %v12158_v53, %v13685_v28  ;;  %v5205_v40 = vrot.slane %v5203_v37, 4 }
 0x358   : > { %v3569_v29 = vpop.f32.mrf.mxu0  ;;  %v12247_v36 = vor.u32 %v4774_v63, %v4773_v23  ;;  %v13686_v51 = vshrl.u32 %v12214_v30, 16  ;;  %v7074_v53 = vrot.slane %v13501_v20, 2 }
 0x359   : > { %v12241_v21 = vpop.f32.mrf.mxu2  ;;  %v9230_v2 = vpack.c.bf16 %v3907_v61, %v3906_v42  ;;  %v12254_v43 = vsel %vm664_vm1, %v12160_v62, %v12243_v15  ;;  %v3616_v39 = vadd.f32 %v3569_v29, %v3308_v14  ;;  %v12269_v37 = vor.u32 %v5205_v40, %v5202_v26 }
 0x35a   : > { %v7073_v46 = vrot.slane %v13686_v51, 1  ;;  %v12261_v35 = vsel %vm1021_vm2, %v12164_v22, %v12247_v36  ;;  %v3309_v63 = vadd.f32 %v12149_v47, %v3049_v31 }
 0x35b   : > { %9425 = vst [vmem:[#allocation2 + $0x78] sm:$0xff] %v9230_v2   ;;  %v5272_v23 = vshrl.u32 %v9230_v2, 16  ;;  %v5275_v42 = vshll.u32 %v9230_v2, 16  ;;  %v3656_v22 = vadd.f32 %v11723_v18, %v3616_v39  ;;  %v5207_v47 = vsel %vm1021_vm2, %v12189_v38, %v12269_v37  ;;  %v13692_v39 = vld [vmem:[#allocation21_spill] sm:$0xff] }
 0x35c   : > { %v12263_v13 = vpop.f32.mrf.mxu1  ;;  %v12271_v61 = vor.u32 %v7074_v53, %v7073_v46  ;;  %v13691_v46 = vld [vmem:[#allocation7_spill] sm:$0xff] }
 0x35d   : > { %13687 = vst [vmem:[#allocation6_spill] sm:$0xff] %v12263_v13  ;;  %v5274_v6 = vrot.slane %v5272_v23, 3  ;;  %v5277_v62 = vrot.slane %v5275_v42, 4  ;;  %v9435_v23 = vld [vmem:[#allocation2 + $0x40] sm:$0xff]   ;;  %v2554_v42 = vadd.f32 %v13692_v39, %v13691_v46  ;;  %v13696_v39 = vrot.slane %v12212_v54, 3 }
 0x35e   : > { %v12267_v48 = vpop.f32.mrf.mxu3  ;;  %v12282_v28 = vsel %vm3336_vm5, %v12191_v9, %v12271_v61  ;;  %v3692_v9 = vmax.f32 %v3656_v22, 0.0  ;;  %v5209_v38 = vshrl.u32 %v9435_v23, 16 }
 0x35f   : > { %v12277_v2 = vor.u32 %v5277_v62, %v5274_v6  ;;  %13688 = vst [vmem:[#allocation71_spill] sm:$0xff] %v12282_v28  ;;  %v3050_v22 = vadd.f32 %v12195_v7, %v2554_v42 }
 0x360   : > { %v3572_v14 = vpop.f32.mrf.mxu0 }
 0x361   : > { %v12275_v29 = vpop.f32.mrf.mxu2  ;;  %v3617_v51 = vadd.f32 %v3572_v14, %v3309_v63  ;;  %v12287_v40 = vsel %vm1021_vm2, %v12197_v27, %v12277_v2  ;;  %v12306_v14 = vpop.permute.xlu0 %3851  ;;  %v3310_v54 = vadd.f32 %v12187_v5, %v3050_v22  ;;  %v9019_v5 = vld [vmem:[%s13383_s1 + $0x340] sm:$0xff] }
 0x362   : > { %13689 = vst [vmem:[#allocation72_spill] sm:$0xff] %v12287_v40  ;;  %v12292_v26 = vld [vmem:[#allocation2 + $0x78] sm:$0xff]  ;;  %5625 = vmatpush.bf16.msrb.mxu1 %v9019_v5 }
 0x363   : > { %v12294_v31 = vld [vmem:[#allocation2 + $0x74] sm:$0xff]  ;;  %v3657_v53 = vadd.f32 %v11723_v18, %v3617_v51  ;;  %4907 = vmatmul.bf16.gmra.mxu3 %v11769_v58  ;;  %5415 = vmatmul.bf16.gmra.mxu0 %v5207_v47  ;;  %v13505_v6 = vrot.slane %v12292_v26, 3  ;;  %v4492_v62 = vshrl.u32 %v12292_v26, 16  ;;  %v4495_v63 = vshll.u32 %v12292_v26, 16  ;;  %13694 = vst [vmem:[#allocation21_spill] sm:$0xff] %v12306_v14  ;;  %v12310_v47 = vpop.permute.xlu2 %3846 }
 0x364   : > { %13690 = vst [vmem:[#allocation73_spill] sm:$0xff] %v12294_v31  ;;  %v12301_v27 = vpop.f32.mrf.mxu1  ;;  %v5212_v51 = vshll.u32 %v9435_v23, 16  ;;  %v3908_v40 = vmul.f32 %v12310_v47, %v3692_v9 }
 0x365   : > { %13693 = vst [vmem:[#allocation7_spill] sm:$0xff] %v12301_v27  ;;  %v3693_v46 = vmax.f32 %v3657_v53, 0.0  ;;  %v4182_v20 = vsel %vm458_vm0, %v13696_v39, %v13505_v6  ;;  %v4494_v50 = vrot.slane %v4492_v62, 2  ;;  %v4497_v28 = vrot.slane %v4495_v63, 3 }
 0x366   : > { %4636 = vmatmul.bf16.gmra.mxu2 %v11760_v33  ;;  %13695 = vst [vmem:[#allocation74_spill] sm:$0xff] %v12310_v47  ;;  %v12312_v33 = vpop.f32.mrf.mxu3  ;;  %v4777_v30 = vrot.slane %v4492_v62, 3  ;;  %v4778_v42 = vrot.slane %v4495_v63, 4  ;;  %v13507_v27 = vshll.u32 %v12294_v31, 16  ;;  %v5211_v39 = vrot.slane %v5209_v38, 3  ;;  %v13697_v62 = vld [vmem:[#allocation8_spill] sm:$0xff] }
 0x367   : > { %v3909_v7 = vmul.f32 %v12306_v14, %v3693_v46  ;;  %4333 = vmatmul.bf16.gmra.mxu1 %v4182_v20  ;;  %v12323_v58 = vor.u32 %v4497_v28, %v4494_v50  ;;  %v3051_v9 = vadd.f32 %v12241_v21, %v13697_v62  ;;  %v5214_v47 = vrot.slane %v5212_v51, 4 }
 0x368   : > { %v3574_v53 = vpop.f32.mrf.mxu0  ;;  %v12327_v6 = vor.u32 %v4778_v42, %v4777_v30  ;;  %v13698_v50 = vshrl.u32 %v12294_v31, 16 }
 0x369   : > { %v12321_v23 = vpop.f32.mrf.mxu2  ;;  %v9235_v13 = vpack.c.bf16 %v3909_v7, %v3908_v40  ;;  %v12334_v20 = vsel %vm664_vm1, %v12243_v15, %v12323_v58  ;;  %v3618_v63 = vadd.f32 %v3574_v53, %v3310_v54  ;;  %v7078_v15 = vrot.slane %v13507_v27, 2 }
 0x36a   : > { %v7077_v28 = vrot.slane %v13698_v50, 1  ;;  %v12344_v30 = vsel %vm1021_vm2, %v12247_v36, %v12327_v6  ;;  %v12352_v7 = vor.u32 %v5214_v47, %v5211_v39  ;;  %v3311_v53 = vadd.f32 %v12232_v59, %v3051_v9 }
 0x36b   : > { %9426 = vst [vmem:[#allocation2 + $0x80] sm:$0xff] %v9235_v13   ;;  %v5281_v21 = vshrl.u32 %v9235_v13, 16  ;;  %v5284_v40 = vshll.u32 %v9235_v13, 16  ;;  %v3658_v36 = vadd.f32 %v11723_v18, %v3618_v63  ;;  %v13701_v63 = vld [vmem:[#allocation23_spill] sm:$0xff] }
 0x36c   : > { %v12346_v38 = vpop.f32.mrf.mxu1  ;;  %v12354_v42 = vor.u32 %v7078_v15, %v7077_v28  ;;  %v5216_v59 = vsel %vm1021_vm2, %v12269_v37, %v12352_v7  ;;  %v13700_v28 = vld [vmem:[#allocation22_spill] sm:$0xff] }
 0x36d   : > { %v5283_v22 = vrot.slane %v5281_v21, 3  ;;  %v5286_v46 = vrot.slane %v5284_v40, 4  ;;  %v2556_v21 = vadd.f32 %v13701_v63, %v13700_v28  ;;  %v3694_v40 = vmax.f32 %v3658_v36, 0.0 }
 0x36e   : > { %v12350_v51 = vpop.f32.mrf.mxu3  ;;  %v12365_v50 = vsel %vm3336_vm5, %v12271_v61, %v12354_v42 }
 0x36f   : > { %v12360_v13 = vor.u32 %v5286_v46, %v5283_v22  ;;  %13699 = vst [vmem:[#allocation8_spill] sm:$0xff] %v12365_v50  ;;  %v12389_v46 = vpop.permute.xlu1 %3856 }
 0x370   : > { %v3577_v62 = vpop.f32.mrf.mxu0  ;;  %13702 = vst [vmem:[#allocation22_spill] sm:$0xff] %v12389_v46  ;;  %v3910_v27 = vmul.f32 %v12389_v46, %v3694_v40 }
 0x371   : > { %v12358_v54 = vpop.f32.mrf.mxu2  ;;  %v3619_v5 = vadd.f32 %v3577_v62, %v3311_v53  ;;  %v12370_v47 = vsel %vm1021_vm2, %v12277_v2, %v12360_v13  ;;  %v3052_v53 = vadd.f32 %v12275_v29, %v2556_v21  ;;  %v12393_v62 = vpop.permute.xlu2 %3861 }
 0x372   : > { %v12375_v39 = vld [vmem:[#allocation2 + $0x80] sm:$0xff]  ;;  %13703 = vst [vmem:[#allocation23_spill] sm:$0xff] %v12393_v62 }
 0x373   : > { %v12377_v9 = vld [vmem:[#allocation2 + $0x7c] sm:$0xff]  ;;  %v3659_v61 = vadd.f32 %v11723_v18, %v3619_v5  ;;  %4912 = vmatmul.bf16.gmra.mxu3 %v11854_v24  ;;  %5420 = vmatmul.bf16.gmra.mxu0 %v5216_v59  ;;  %v13511_v15 = vrot.slane %v12375_v39, 3  ;;  %v4501_v37 = vshrl.u32 %v12375_v39, 16  ;;  %v4504_v22 = vshll.u32 %v12375_v39, 16 }
 0x374   : > { %v12384_v2 = vpop.f32.mrf.mxu1  ;;  %v13513_v31 = vshll.u32 %v12377_v9, 16 }
 0x375   : > { %v3695_v36 = vmax.f32 %v3659_v61, 0.0  ;;  %v4503_v59 = vrot.slane %v4501_v37, 2  ;;  %v4506_v28 = vrot.slane %v4504_v22, 3  ;;  %v4781_v63 = vrot.slane %v4501_v37, 3  ;;  %v13705_v37 = vld [vmem:[#allocation24_spill] sm:$0xff] }
 0x376   : > { %4641 = vmatmul.bf16.gmra.mxu2 %v11847_v10  ;;  %v4873_v24 = vpop.f32.mrf.mxu3  ;;  %v13704_v10 = vrot.slane %v12292_v26, 3  ;;  %v4782_v21 = vrot.slane %v4504_v22, 4  ;;  %v3312_v26 = vadd.f32 %v12267_v48, %v3052_v53  ;;  %v3053_v40 = vadd.f32 %v12321_v23, %v13705_v37  ;;  %v13708_v37 = vld [vmem:[#allocation25_spill] sm:$0xff] }
 0x377   : > { %v3911_v14 = vmul.f32 %v12393_v62, %v3695_v36  ;;  %v12403_v50 = vor.u32 %v4506_v28, %v4503_v59  ;;  %v7082_v53 = vrot.slane %v13513_v31, 2 }
 0x378   : > { %v4184_v5 = vsel %vm458_vm0, %v13704_v10, %v13511_v15  ;;  %v3579_v18 = vpop.f32.mrf.mxu0  ;;  %v12407_v15 = vor.u32 %v4782_v21, %v4781_v63  ;;  %v3313_v63 = vadd.f32 %v12312_v33, %v3053_v40 }
 0x379   : > { %v4602_v29 = vpop.f32.mrf.mxu2  ;;  %4338 = vmatmul.bf16.gmra.mxu1 %v4184_v5  ;;  %v9240_v10 = vpack.c.bf16 %v3911_v14, %v3910_v27  ;;  %v12416_v22 = vsel %vm664_vm1, %v12323_v58, %v12403_v50  ;;  %v3620_v5 = vadd.f32 %v3579_v18, %v3312_v26  ;;  %v9652_v18 = vld [vmem:[%s13384_s2] ss:$0 sm:$0xff] }
 0x37a   : > { %v4603_v61 = vadd.f32 %v4602_v29, %v11812_v41  ;;  %v13706_v41 = vshrl.u32 %v12377_v9, 16  ;;  %v12423_v48 = vsel %vm1021_vm2, %v12327_v6, %v12407_v15 }
 0x37b   : > { %9427 = vst [vmem:[#allocation2 + $0x88] sm:$0xff] %v9240_v10   ;;  %v5290_v27 = vshrl.u32 %v9240_v10, 16  ;;  %v5293_v14 = vshll.u32 %v9240_v10, 16  ;;  %v3660_v6 = vadd.f32 %v9652_v18, %v3620_v5 }
 0x37c   : > { %v12411_v46 = vadd.f32 %v4873_v24, %v4603_v61  ;;  %v7081_v36 = vrot.slane %v13706_v41, 1  ;;  %v12425_v23 = vpop.f32.mrf.mxu1  ;;  %v2558_v41 = vadd.f32 %v11771_v55, %v13708_v37  ;;  %v9077_v55 = vld [vmem:[%s13383_s1 + $0x3f8] sm:$0xff] }
 0x37d   : > { %v5292_v24 = vrot.slane %v5290_v27, 3  ;;  %v5295_v58 = vrot.slane %v5293_v14, 4  ;;  %6610 = vmatpush.bf16.msra.mxu3 %v9077_v55 }
 0x37e   : > { %v4875_v59 = vpop.f32.mrf.mxu3  ;;  %v12429_v28 = vor.u32 %v7082_v53, %v7081_v36  ;;  %v3054_v27 = vadd.f32 %v12358_v54, %v2558_v41 }
 0x37f   : > { %v12435_v21 = vor.u32 %v5295_v58, %v5292_v24  ;;  %v12471_v58 = vpop.permute.xlu0 %3866 }
 0x380   : > { %v3582_v26 = vpop.f32.mrf.mxu0  ;;  %v12441_v10 = vsel %vm3336_vm5, %v12354_v42, %v12429_v28  ;;  %v9052_v42 = vld [vmem:[%s13383_s1 + $0x3b8] sm:$0xff]  ;;  %13709 = vst [vmem:[#allocation25_spill] sm:$0xff] %v12471_v58  ;;  %v3314_v37 = vadd.f32 %v12350_v51, %v3054_v27 }
 0x381   : > { %v4604_v29 = vpop.f32.mrf.mxu2  ;;  %13707 = vst [vmem:[#allocation24_spill] sm:$0xff] %v12441_v10  ;;  %v3621_v33 = vadd.f32 %v3582_v26, %v3313_v63  ;;  %v12448_v40 = vsel %vm1021_vm2, %v12360_v13, %v12435_v21  ;;  %v3696_v13 = vmax.f32 %v3660_v6, 0.0  ;;  %6114 = vmatpush.bf16.msra.mxu2 %v9052_v42  ;;  %v12475_v63 = vpop.permute.xlu1 %3871  ;;  %v9085_v27 = vld [vmem:[%s13383_s1 + $0x438] sm:$0xff] }
 0x382   : > { %v4605_v61 = vadd.f32 %v4604_v29, %v11856_v16  ;;  %v5225_v16 = vsel %vm1021_vm2, %v12352_v7, %v11870_v12  ;;  %v12455_v5 = vld [vmem:[#allocation2 + $0x88] sm:$0xff]  ;;  %13710 = vst [vmem:[#allocation75_spill] sm:$0xff] %v12475_v63  ;;  %6869 = vmatpush.bf16.msra.mxu0 %v9085_v27 }
 0x383   : > { %v3661_v14 = vadd.f32 %v9652_v18, %v3621_v33  ;;  %4917 = vmatmul.bf16.gmra.mxu3 %v11935_v60  ;;  %5425 = vmatmul.bf16.gmra.mxu0 %v5225_v16  ;;  %v13514_v7 = vrot.slane %v12455_v5, 3  ;;  %v4510_v53 = vshrl.u32 %v12455_v5, 16  ;;  %v4513_v24 = vshll.u32 %v12455_v5, 16  ;;  %v12473_v54 = vld [vmem:[#allocation2 + $0x84] sm:$0xff] }
 0x384   : > { %v12450_v36 = vadd.f32 %v4875_v59, %v4605_v61  ;;  %v12466_v12 = vpop.f32.mrf.mxu1  ;;  %v3912_v41 = vmul.f32 %v12471_v58, %v3696_v13 }
 0x385   : > { %v3697_v59 = vmax.f32 %v3661_v14, 0.0  ;;  %v4512_v29 = vrot.slane %v4510_v53, 2  ;;  %v4515_v61 = vrot.slane %v4513_v24, 3  ;;  %v4785_v26 = vrot.slane %v4510_v53, 3 }
 0x386   : > { %4646 = vmatmul.bf16.gmra.mxu2 %v11928_v34  ;;  %v4878_v60 = vpop.f32.mrf.mxu3  ;;  %v13711_v34 = vrot.slane %v12375_v39, 3  ;;  %v4786_v42 = vrot.slane %v4513_v24, 4  ;;  %v13515_v53 = vshrl.u32 %v12473_v54, 16  ;;  %v13516_v24 = vshll.u32 %v12473_v54, 16 }
 0x387   : > { %v3913_v33 = vmul.f32 %v12475_v63, %v3697_v59  ;;  %v12486_v31 = vor.u32 %v4515_v61, %v4512_v29 }
 0x388   : > { %v4186_v6 = vsel %vm458_vm0, %v13711_v34, %v13514_v7  ;;  %v3584_v14 = vpop.f32.mrf.mxu0  ;;  %v12490_v7 = vor.u32 %v4786_v42, %v4785_v26 }
 0x389   : > { %v4607_v16 = vpop.f32.mrf.mxu2  ;;  %4343 = vmatmul.bf16.gmra.mxu1 %v4186_v6  ;;  %v12488_v39 = vpack.c.bf16 %v3913_v33, %v3912_v41  ;;  %v3622_v34 = vadd.f32 %v3584_v14, %v3314_v37  ;;  %v12504_v13 = vsel %vm664_vm1, %v12403_v50, %v12486_v31  ;;  %v7085_v41 = vrot.slane %v13515_v53, 1 }
 0x38a   : > { %v4608_v55 = vadd.f32 %v4607_v16, %v11895_v0  ;;  %v9093_v0 = vld [vmem:[%s13383_s1 + $0x478] sm:$0xff] }
 0x38b   : > { %9428 = vst [vmem:[#allocation2 + $0x90] sm:$0xff] %v12488_v39   ;;  %v3662_v59 = vadd.f32 %v9652_v18, %v3622_v34  ;;  %v5299_v6 = vshrl.u32 %v12488_v39, 16  ;;  %v5302_v29 = vshll.u32 %v12488_v39, 16  ;;  %7176 = vmatpush.bf16.msra.mxu1 %v9093_v0  ;;  %v12519_v18 = vpop.permute.xlu2 %3876 }
 0x38c   : > { %v12493_v51 = vadd.f32 %v4878_v60, %v4608_v55  ;;  %v12511_v60 = vsel %vm1021_vm2, %v12407_v15, %v12490_v7  ;;  %v12515_v61 = vpop.f32.mrf.mxu1  ;;  %13712 = vst [vmem:[#allocation76_spill] sm:$0xff] %v12519_v18  ;;  %v7086_v55 = vrot.slane %v13516_v24, 2 }
 0x38d   : > { %v3698_v50 = vmax.f32 %v3662_v59, 0.0  ;;  %v5301_v26 = vrot.slane %v5299_v6, 3  ;;  %v5304_v37 = vrot.slane %v5302_v29, 4 }
 0x38e   : > { %v4880_v33 = vpop.f32.mrf.mxu3  ;;  %v12535_v6 = vor.u32 %v7086_v55, %v7085_v41  ;;  %v12549_v55 = vld [vmem:[#allocation2 + $0x9c] sm:$0xff] }
 0x38f   : > { %v3914_v15 = vmul.f32 %v12519_v18, %v3698_v50  ;;  %v12522_v42 = vor.u32 %v5304_v37, %v5301_v26  ;;  %13714 = vst [vmem:[#allocation78_spill] sm:$0xff] %v12549_v55 }
 0x390   : > { %v5391_v34 = vpop.f32.mrf.mxu0 }
 0x391   : > { %v4609_v16 = vpop.f32.mrf.mxu2  ;;  %v3950_v27 = vpack.c.bf16 %v3914_v15, %v3914_v15  ;;  %v12528_v0 = vadd.f32 %v5391_v34, %v12411_v46  ;;  %v12533_v59 = vsel %vm1021_vm2, %v12435_v21, %v12522_v42  ;;  %v12544_v46 = vsel %vm3336_vm5, %v12429_v28, %v12535_v6 }
 0x392   : > { %v4610_v14 = vadd.f32 %v4609_v16, %v11937_v3  ;;  %v4023_v50 = vld [vmem:[#allocation2 + $0x90] sm:$0x7]  ;;  %13713 = vst [vmem:[#allocation77_spill] sm:$0xff] %v12544_v46  ;;  %v13715_v28 = vrot.slane %v12455_v5, 3  ;;  %v13519_v5 = vshll.u32 %v12549_v55, 16 }
 0x393   : > { %3986 = vst [vmem:[#allocation2 + $0x98] sm:$0xf] %v3950_v27  ;;  %4922 = vmatmul.bf16.gmra.mxu3 %v12016_v17  ;;  %5430 = vmatmul.bf16.gmra.mxu0 %v11882_v4  ;;  %v4132_v3 = vunpack.c.l.b16 %v4023_v50  ;;  %v12561_v18 = vld [vmem:[#allocation2 + $0x8c] sm:$0xff] }
 0x394   : > { %v12537_v29 = vadd.f32 %v4880_v33, %v4610_v14  ;;  %v12547_v21 = vpop.f32.mrf.mxu1  ;;  %13716 = vst [vmem:[#allocation79_spill] sm:$0xff] %v12561_v18 }
 0x395   : > { %v4151_v26 = vpack.c.b16 %v4132_v3, %v4132_v3 }
 0x396   : > { %4651 = vmatmul.bf16.gmra.mxu2 %v12011_v49  ;;  %v4883_v37 = vpop.f32.mrf.mxu3 }
 0x397   : > { %v4187_v33 = vrot.slane %v4151_v26, 3  ;;  %v4519_v15 = vshrl.u32 %v4151_v26, 16  ;;  %v4522_v16 = vshll.u32 %v4151_v26, 16  ;;  %v9314_v26 = vunpack.c.h.b16 %v12488_v39 }
 0x398   : > { %v5393_v17 = vpop.f32.mrf.mxu0  ;;  %v13521_v39 = vshll.u32 %v12561_v18, 16 }
 0x399   : > { %v4612_v41 = vpop.f32.mrf.mxu2  ;;  %v12553_v14 = vadd.f32 %v5393_v17, %v12450_v36  ;;  %v4188_v49 = vsel %vm458_vm0, %v13715_v28, %v4187_v33  ;;  %v4521_v34 = vrot.slane %v4519_v15, 2  ;;  %v4524_v27 = vrot.slane %v4522_v16, 3 }
 0x39a   : > { %v4613_v4 = vadd.f32 %v4612_v41, %v11976_v44  ;;  %4348 = vmatmul.bf16.gmra.mxu1 %v4188_v49  ;;  %v5035_v3 = vld [vmem:[#allocation2 + $0x98] sm:$0xf]  ;;  %v13518_v44 = vshrl.u32 %v12549_v55, 16 }
 0x39b   : > { %v4525_v53 = vor.u32 %v4524_v27, %v4521_v34  ;;  %v12558_v24 = vunpack.c.l.b16 %v5035_v3  ;;  %v12566_v41 = vld [vmem:[#allocation2 + $0x94] sm:$0xff] }
 0x39c   : > { %v4967_v50 = vadd.f32 %v4883_v37, %v4613_v4  ;;  %v12564_v36 = vpop.f32.mrf.mxu1  ;;  %13717 = vst [vmem:[#allocation80_spill] sm:$0xff] %v12566_v41  ;;  %v13520_v4 = vshrl.u32 %v12561_v18, 16  ;;  %v7097_v17 = vrot.slane %v13518_v44, 1  ;;  %v13524_v34 = vshll.u32 %v12566_v41, 16 }
 0x39d   : > { %v12571_v37 = vsel %vm664_vm1, %v12486_v31, %v4525_v53  ;;  %v12574_v33 = vpack.c.b16 %v12558_v24, %v9314_v26  ;;  %v13523_v31 = vshrl.u32 %v12566_v41, 16  ;;  %v7098_v53 = vrot.slane %v13519_v5, 2  ;;  %v9051_v26 = vld [vmem:[%s13383_s1 + $0x3b0] sm:$0xff] }
 0x39e   : > { %v4885_v15 = vpop.f32.mrf.mxu3  ;;  %6115 = vmatpush.bf16.msra.mxu2 %v9051_v26 }
 0x3a0   : > { %v5396_v49 = vpop.f32.mrf.mxu0 }
 0x3a1   : > { %v4614_v16 = vpop.f32.mrf.mxu2  ;;  %v12586_v27 = vadd.f32 %v5396_v49, %v12493_v51  ;;  %v9076_v51 = vld [vmem:[%s13383_s1 + $0x3f0] sm:$0xff] }
 0x3a2   : > { %v4615_v28 = vadd.f32 %v4614_v16, %v12018_v57  ;;  %v7089_v57 = vrot.slane %v13520_v4, 1  ;;  %v7090_v16 = vrot.slane %v13521_v39, 2  ;;  %6611 = vmatpush.bf16.msra.mxu3 %v9076_v51 }
 0x3a3   : > { %4927 = vmatmul.bf16.gmra.mxu3 %v12098_v8  ;;  %5435 = vmatmul.bf16.gmra.mxu0 %v11961_v56  ;;  %v7094_v56 = vrot.slane %v13524_v34, 2  ;;  %v12607_v8 = vor.u32 %v7098_v53, %v7097_v17  ;;  %v13724_v34 = vld [vmem:[#allocation65_spill] sm:$0xff] }
 0x3a4   : > { %v4968_v3 = vadd.f32 %v4885_v15, %v4615_v28  ;;  %v12598_v44 = vpop.f32.mrf.mxu1  ;;  %v7093_v15 = vrot.slane %v13523_v31, 1  ;;  %v7091_v28 = vor.u32 %v7090_v16, %v7089_v57  ;;  %v13722_v57 = vld [vmem:[#allocation31_spill] sm:$0xff] }
 0x3a5   : > { %13718 = vst [vmem:[#allocation81_spill] sm:$0xff] %v12607_v8 }
 0x3a6   : > { %4656 = vmatmul.bf16.gmra.mxu2 %v12091_v52  ;;  %v4888_v49 = vpop.f32.mrf.mxu3  ;;  %v7095_v5 = vor.u32 %v7094_v56, %v7093_v15  ;;  %v12611_v4 = vsel %vm3336_vm5, %v12535_v6, %v7091_v28  ;;  %v9084_v6 = vld [vmem:[%s13383_s1 + $0x430] sm:$0xff] }
 0x3a7   : > { %13719 = vst [vmem:[#allocation82_spill] sm:$0xff] %v12611_v4  ;;  %6870 = vmatpush.bf16.msra.mxu0 %v9084_v6 }
 0x3a8   : > { %v5398_v63 = vpop.f32.mrf.mxu0  ;;  %v12615_v31 = vsel %vm3336_vm5, %v7091_v28, %v7095_v5  ;;  %v12619_v17 = vsel %vm3336_vm5, %v7095_v5, %v12607_v8 }
 0x3a9   : > { %v4617_v52 = vpop.f32.mrf.mxu2  ;;  %13720 = vst [vmem:[#allocation83_spill] sm:$0xff] %v12615_v31  ;;  %v12622_v53 = vadd.f32 %v5398_v63, %v12537_v29  ;;  %v9092_v63 = vld [vmem:[%s13383_s1 + $0x470] sm:$0xff] }
 0x3aa   : > { %v4618_v39 = vadd.f32 %v4617_v52, %v12058_v32  ;;  %13721 = vst [vmem:[#allocation84_spill] sm:$0xff] %v12619_v17  ;;  %5626 = vmatmul.bf16.vlgmr.msrb.gmra.mxu1 %v13722_v57  ;;  %v9560_v52 = vld [vmem:[#allocation2 + $0x14] sm:$0xff]  }
 0x3ab   : > { %7177 = vmatpush.bf16.msra.mxu1 %v9092_v63  ;;  %v9653_v17 = vld [vmem:[#allocation2 + $0x14] sm:$0xff]  }
 0x3ac   : > { %v4969_v26 = vadd.f32 %v4888_v49, %v4618_v39  ;;  %v12628_v16 = vpop.f32.mrf.mxu1 }
 0x3ae   : > { %v4890_v32 = vpop.f32.mrf.mxu3 }
 0x3b0   : > { %v5401_v56 = vpop.f32.mrf.mxu0 }
 0x3b1   : > { %v4619_v51 = vpop.f32.mrf.mxu2  ;;  %v12631_v5 = vadd.f32 %v5401_v56, %v4967_v50 }
 0x3b2   : > { %v4620_v15 = vadd.f32 %v4619_v51, %v12100_v19 }
 0x3b3   : > { %4932 = vmatmul.bf16.gmra.mxu3 %v12181_v11  ;;  %5440 = vmatmul.bf16.gmra.mxu0 %v12044_v45  ;;  %v13723_v45 = vld [vmem:[#allocation18_spill] sm:$0xff] }
 0x3b4   : > { %v4970_v28 = vadd.f32 %v4890_v32, %v4620_v15  ;;  %v12639_v29 = vpop.f32.mrf.mxu1 }
 0x3b6   : > { %4661 = vmatmul.bf16.gmra.mxu2 %v12171_v25  ;;  %v4893_v39 = vpop.f32.mrf.mxu3 }
 0x3b8   : > { %v5403_v50 = vpop.f32.mrf.mxu0 }
 0x3b9   : > { %v4622_v49 = vpop.f32.mrf.mxu2  ;;  %v12642_v57 = vadd.f32 %v5403_v50, %v4968_v3 }
 0x3ba   : > { %v4623_v19 = vadd.f32 %v4622_v49, %v12138_v1  ;;  %5631 = vmatmul.bf16.gmra.mxu1 %v9560_v52  ;;  %v13725_v49 = vld [vmem:[#allocation19_spill] sm:$0xff]  ;;  %v9562_v52 = vld [vmem:[#allocation2 + $0x1c] sm:$0xff]  }
 0x3bc   : > { %v4971_v6 = vadd.f32 %v4893_v39, %v4623_v19  ;;  %v12644_v32 = vpop.f32.mrf.mxu1 }
 0x3be   : > { %v4895_v11 = vpop.f32.mrf.mxu3 }
 0x3c0   : > { %v5406_v25 = vpop.f32.mrf.mxu0 }
 0x3c1   : > { %v4624_v51 = vpop.f32.mrf.mxu2  ;;  %v12647_v56 = vadd.f32 %v5406_v25, %v4969_v26 }
 0x3c2   : > { %v4625_v15 = vadd.f32 %v4624_v51, %v13723_v45  ;;  %v13726_v45 = vld [vmem:[#allocation6_spill] sm:$0xff] }
 0x3c3   : > { %4937 = vmatmul.bf16.gmra.mxu3 %v12261_v35  ;;  %5445 = vmatmul.bf16.gmra.mxu0 %v13724_v34  ;;  %v9050_v35 = vld [vmem:[%s13383_s1 + $0x3a8] sm:$0xff] }
 0x3c4   : > { %v4972_v63 = vadd.f32 %v4895_v11, %v4625_v15  ;;  %v12652_v1 = vpop.f32.mrf.mxu1  ;;  %6116 = vmatpush.bf16.msra.mxu2 %v9050_v35  ;;  %v13728_v35 = vld [vmem:[#allocation7_spill] sm:$0xff] }
 0x3c6   : > { %4666 = vmatmul.bf16.gmra.mxu2 %v12254_v43  ;;  %v4898_v3 = vpop.f32.mrf.mxu3  ;;  %v9075_v43 = vld [vmem:[%s13383_s1 + $0x3e8] sm:$0xff] }
 0x3c7   : > { %6612 = vmatpush.bf16.msra.mxu3 %v9075_v43 }
 0x3c8   : > { %v5408_v50 = vpop.f32.mrf.mxu0 }
 0x3c9   : > { %v4627_v39 = vpop.f32.mrf.mxu2  ;;  %v12655_v58 = vadd.f32 %v5408_v50, %v4970_v28 }
 0x3ca   : > { %v4628_v19 = vadd.f32 %v4627_v39, %v13725_v49  ;;  %5636 = vmatmul.bf16.gmra.mxu1 %v9562_v52  ;;  %v9083_v39 = vld [vmem:[%s13383_s1 + $0x428] sm:$0xff] }
 0x3cb   : > { %v9091_v49 = vld [vmem:[%s13383_s1 + $0x468] sm:$0xff]  ;;  %6871 = vmatpush.bf16.msra.mxu0 %v9083_v39  ;;  %v9049_v39 = vld [vmem:[%s13383_s1 + $0x3a0] sm:$0xff] }
 0x3cc   : > { %v4973_v51 = vadd.f32 %v4898_v3, %v4628_v19  ;;  %v12663_v34 = vpop.f32.mrf.mxu1  ;;  %v13727_v19 = vld [vmem:[#allocation68_spill] sm:$0xff]  ;;  %7178 = vmatpush.bf16.msra.mxu1 %v9091_v49  ;;  %6117 = vmatpush.bf16.msra.mxu2 %v9049_v39 }
 0x3ce   : > { %v4900_v26 = vpop.f32.mrf.mxu3 }
 0x3d0   : > { %v5411_v28 = vpop.f32.mrf.mxu0 }
 0x3d1   : > { %v4629_v11 = vpop.f32.mrf.mxu2  ;;  %v12666_v25 = vadd.f32 %v5411_v28, %v4971_v6 }
 0x3d2   : > { %v4630_v15 = vadd.f32 %v4629_v11, %v13726_v45  ;;  %v9564_v11 = vld [vmem:[#allocation2 + $0x24] sm:$0xff]  }
 0x3d3   : > { %4942 = vmatmul.bf16.gmra.mxu3 %v12344_v30  ;;  %5450 = vmatmul.bf16.gmra.mxu0 %v13727_v19 }
 0x3d4   : > { %v4974_v3 = vadd.f32 %v4900_v26, %v4630_v15  ;;  %v12677_v50 = vpop.f32.mrf.mxu1 }
 0x3d6   : > { %4671 = vmatmul.bf16.gmra.mxu2 %v12334_v20  ;;  %v4903_v6 = vpop.f32.mrf.mxu3 }
 0x3d8   : > { %v5413_v26 = vpop.f32.mrf.mxu0 }
 0x3d9   : > { %v4632_v52 = vpop.f32.mrf.mxu2  ;;  %v12680_v45 = vadd.f32 %v5413_v26, %v4972_v63  ;;  %v9074_v63 = vld [vmem:[%s13383_s1 + $0x3e0] sm:$0xff]  ;;  %v9566_v26 = vld [vmem:[#allocation2 + $0x2c] sm:$0xff]  }
 0x3da   : > { %v4633_v43 = vadd.f32 %v4632_v52, %v13728_v35  ;;  %5641 = vmatmul.bf16.gmra.mxu1 %v9564_v11  ;;  %6613 = vmatpush.bf16.msra.mxu3 %v9074_v63  ;;  %v9047_v11 = vld [vmem:[%s13383_s1 + $0x390] sm:$0xff] }
 0x3dc   : > { %v4975_v15 = vadd.f32 %v4903_v6, %v4633_v43  ;;  %v12682_v28 = vpop.f32.mrf.mxu1  ;;  %v13729_v6 = vld [vmem:[#allocation72_spill] sm:$0xff] }
 0x3de   : > { %v4905_v30 = vpop.f32.mrf.mxu3 }
 0x3e0   : > { %v5416_v62 = vpop.f32.mrf.mxu0 }
 0x3e1   : > { %v4634_v19 = vpop.f32.mrf.mxu2  ;;  %v12685_v8 = vadd.f32 %v5416_v62, %v4973_v51  ;;  %v9048_v62 = vld [vmem:[%s13383_s1 + $0x398] sm:$0xff] }
 0x3e2   : > { %v4635_v20 = vadd.f32 %v4634_v19, %v12346_v38  ;;  %v9073_v38 = vld [vmem:[%s13383_s1 + $0x3d8] sm:$0xff]  ;;  %6118 = vmatpush.bf16.msra.mxu2 %v9048_v62 }
 0x3e3   : > { %4947 = vmatmul.bf16.gmra.mxu3 %v12423_v48  ;;  %5455 = vmatmul.bf16.gmra.mxu0 %v13729_v6 }
 0x3e4   : > { %v4976_v49 = vadd.f32 %v4905_v30, %v4635_v20  ;;  %v12696_v52 = vpop.f32.mrf.mxu1  ;;  %6614 = vmatpush.bf16.msra.mxu3 %v9073_v38  ;;  %v9072_v30 = vld [vmem:[%s13383_s1 + $0x3d0] sm:$0xff] }
 0x3e5   : > { %v4692_v20 = vld [vmem:[#allocation2 + $0x90] sm:$0xf] }
 0x3e6   : > { %4676 = vmatmul.bf16.gmra.mxu2 %v12416_v22  ;;  %v4908_v51 = vpop.f32.mrf.mxu3  ;;  %v4711_v6 = vunpack.c.l.b16 %v4692_v20 }
 0x3e7   : > { %6119 = vmatpush.bf16.msra.mxu2 %v9047_v11 }
 0x3e8   : > { %v5418_v43 = vpop.f32.mrf.mxu0  ;;  %6615 = vmatpush.bf16.msra.mxu3 %v9072_v30  ;;  %v4712_v11 = vpack.c.b16 %v4711_v6, %v4711_v6  ;;  %v9568_v6 = vld [vmem:[#allocation2 + $0x34] sm:$0xff]  }
 0x3e9   : > { %v4637_v35 = vpop.f32.mrf.mxu2  ;;  %v12705_v22 = vadd.f32 %v5418_v43, %v4974_v3  ;;  %v9046_v3 = vld [vmem:[%s13383_s1 + $0x388] sm:$0xff]  ;;  %v9070_v43 = vld [vmem:[%s13383_s1 + $0x3c0] sm:$0xff] }
 0x3ea   : > { %v4638_v48 = vadd.f32 %v4637_v35, %v12384_v2  ;;  %5646 = vmatmul.bf16.gmra.mxu1 %v9566_v26  ;;  %v9071_v2 = vld [vmem:[%s13383_s1 + $0x3c8] sm:$0xff]  ;;  %v4790_v20 = vshrl.u32 %v4712_v11, 16 }
 0x3eb   : > { %6120 = vmatpush.bf16.msra.mxu2 %v9046_v3 }
 0x3ec   : > { %v4977_v19 = vadd.f32 %v4908_v51, %v4638_v48  ;;  %v12713_v39 = vpop.f32.mrf.mxu1  ;;  %6616 = vmatpush.bf16.msra.mxu3 %v9071_v2  ;;  %v9045_v48 = vld [vmem:[%s13383_s1 + $0x380] sm:$0xff]  ;;  %v4793_v2 = vshll.u32 %v4712_v11, 16 }
 0x3ee   : > { %v4910_v63 = vpop.f32.mrf.mxu3 }
 0x3ef   : > { %6121 = vmatpush.bf16.msra.mxu2 %v9045_v48 }
 0x3f0   : > { %v5421_v51 = vpop.f32.mrf.mxu0  ;;  %6617 = vmatpush.bf16.msra.mxu3 %v9070_v43 }
 0x3f1   : > { %v4639_v38 = vpop.f32.mrf.mxu2  ;;  %v12722_v35 = vadd.f32 %v5421_v51, %v4975_v15  ;;  %v9082_v15 = vld [vmem:[%s13383_s1 + $0x420] sm:$0xff] }
 0x3f2   : > { %v4640_v62 = vadd.f32 %v4639_v38, %v12425_v23  ;;  %6872 = vmatpush.bf16.msra.mxu0 %v9082_v15  ;;  %v4792_v38 = vrot.slane %v4790_v20, 3  ;;  %v9090_v51 = vld [vmem:[%s13383_s1 + $0x460] sm:$0xff] }
 0x3f3   : > { %4952 = vmatmul.bf16.gmra.mxu3 %v12511_v60  ;;  %5460 = vmatmul.bf16.gmra.mxu0 %v12370_v47 }
 0x3f4   : > { %v4978_v26 = vadd.f32 %v4910_v63, %v4640_v62  ;;  %v4795_v62 = vrot.slane %v4793_v2, 4  ;;  %7179 = vmatpush.bf16.msra.mxu1 %v9090_v51  ;;  %v13730_v2 = vld [vmem:[#allocation35_spill] sm:$0xff] }
 0x3f5   : > { %v12760_v51 = vld [vmem:[#allocation2 + $0x14] sm:$0xff] }
 0x3f6   : > { %4681 = vmatmul.bf16.gmra.mxu2 %v12504_v13  ;;  %v12733_v23 = vpop.f32.mrf.mxu1  ;;  %v4913_v30 = vpop.f32.mrf.mxu3  ;;  %v4796_v11 = vor.u32 %v4795_v62, %v4792_v38 }
 0x3f8   : > { %v5423_v60 = vpop.f32.mrf.mxu0  ;;  %v4797_v20 = vsel %vm1021_vm2, %v12490_v7, %v4796_v11 }
 0x3f9   : > { %v4642_v3 = vpop.f32.mrf.mxu2  ;;  %v12739_v47 = vadd.f32 %v5423_v60, %v4976_v49  ;;  %v6340_v49 = vunpack.c.l.b16 %v9653_v17  ;;  %v9027_v17 = vld [vmem:[#allocation2 + $0xc] sm:$0xff] }
 0x3fa   : > { %v4643_v63 = vadd.f32 %v4642_v3, %v12466_v12  ;;  %5651 = vmatmul.bf16.gmra.mxu1 %v9568_v6 }
 0x3fc   : > { %v4979_v13 = vadd.f32 %v4913_v30, %v4643_v63  ;;  %v13731_v63 = vunpack.c.h.b16 %v13730_v2 }
 0x3fe   : > { %v12744_v48 = vpop.f32.mrf.mxu1  ;;  %v4915_v43 = vpop.f32.mrf.mxu3  ;;  %v6377_v6 = vpack.c.b16 %v13731_v63, %v6340_v49  ;;  %v5908_v49 = vshll.u32 %v12760_v51, 16 }
 0x400   : > { %v5426_v3 = vpop.f32.mrf.mxu0  ;;  %v5910_v31 = vrot.slane %v5908_v49, 1 }
 0x401   : > { %v4644_v15 = vpop.f32.mrf.mxu2  ;;  %v12747_v60 = vadd.f32 %v5426_v3, %v4977_v19  ;;  %v9080_v3 = vld [vmem:[%s13383_s1 + $0x410] sm:$0xff] }
 0x402   : > { %v4645_v12 = vadd.f32 %v4644_v15, %v12515_v61  ;;  %v9081_v61 = vld [vmem:[%s13383_s1 + $0x418] sm:$0xff]  ;;  %v5903_v15 = vshll.u32 %v9027_v17, 16 }
 0x403   : > { %4957 = vmatmul.bf16.gmra.mxu3 %v4797_v20  ;;  %5465 = vmatmul.bf16.gmra.mxu0 %v12448_v40 }
 0x404   : > { %v4980_v30 = vadd.f32 %v4915_v43, %v4645_v12  ;;  %6873 = vmatpush.bf16.msra.mxu0 %v9081_v61  ;;  %v9570_v43 = vld [vmem:[#allocation2 + $0x3c] sm:$0xff]   ;;  %v5905_v2 = vrot.slane %v5903_v15, 1  ;;  %v6397_v61 = vshrl.u32 %v6377_v6, 16 }
 0x406   : > { %4686 = vmatmul.bf16.gmra.mxu2 %v12571_v37  ;;  %v12758_v38 = vpop.f32.mrf.mxu1  ;;  %v4918_v19 = vpop.f32.mrf.mxu3  ;;  %v6399_v37 = vshll.u32 %v6377_v6, 16  ;;  %v5145_v6 = vpack.c.b16 %v12558_v24, %v12558_v24 }
 0x408   : > { %v5428_v40 = vpop.f32.mrf.mxu0  ;;  %v6401_v20 = vrot.slane %v6399_v37, 1  ;;  %6874 = vmatpush.bf16.msra.mxu0 %v9080_v3 }
 0x409   : > { %v4647_v62 = vpop.f32.mrf.mxu2  ;;  %v12763_v11 = vadd.f32 %v5428_v40, %v4978_v26  ;;  %v13732_v26 = vld [vmem:[#allocation36_spill] sm:$0xff] }
 0x40a   : > { %v4648_v7 = vadd.f32 %v4647_v62, %v12547_v21  ;;  %5656 = vmatmul.bf16.gmra.mxu1 %v9570_v43  ;;  %v9079_v21 = vld [vmem:[%s13383_s1 + $0x408] sm:$0xff]  ;;  %v13733_v62 = vshll.u32 %v13732_v26, 16  ;;  %v5901_v43 = vshrl.u32 %v9027_v17, 16  ;;  %v6402_v37 = vor.u32 %v6401_v20, %v6397_v61  ;;  %v9029_v20 = vld [vmem:[#allocation2 + $0x1c] sm:$0xff] }
 0x40b   : > { %v5311_v17 = vshll.u32 %v5145_v6, 16 }
 0x40c   : > { %v4981_v12 = vadd.f32 %v4918_v19, %v4648_v7  ;;  %v6406_v40 = vrot.slane %v13733_v62, 1  ;;  %6875 = vmatpush.bf16.msra.mxu0 %v9079_v21  ;;  %v5906_v10 = vor.u32 %v5905_v2, %v5901_v43  ;;  %v9078_v62 = vld [vmem:[%s13383_s1 + $0x400] sm:$0xff]  ;;  %v5916_v43 = vshll.u32 %v9029_v20, 16 }
 0x40d   : > { %v9572_v2 = vld [vmem:[#allocation2 + $0x44] sm:$0xff]  }
 0x40e   : > { %v4920_v63 = vpop.f32.mrf.mxu3  ;;  %v12774_v19 = vpop.f32.mrf.mxu1  ;;  %v6407_v15 = vsel %vm2209_vm3, %v6402_v37, %v6406_v40 }
 0x410   : > { %v5431_v46 = vpop.f32.mrf.mxu0  ;;  %6876 = vmatpush.bf16.msra.mxu0 %v9078_v62 }
 0x411   : > { %v4649_v7 = vpop.f32.mrf.mxu2  ;;  %v12777_v3 = vadd.f32 %v5431_v46, %v4979_v13  ;;  %v5308_v13 = vshrl.u32 %v5145_v6, 16  ;;  %v13734_v6 = vld [vmem:[#allocation41_spill] sm:$0xff] }
 0x412   : > { %v4650_v4 = vadd.f32 %v4649_v7, %v12564_v36  ;;  %v5911_v36 = vsel %vm2209_vm3, %v5906_v10, %v5910_v31  ;;  %v5313_v10 = vrot.slane %v5311_v17, 4  ;;  %v9089_v7 = vld [vmem:[%s13383_s1 + $0x458] sm:$0xff]  ;;  %v13735_v62 = vshll.u32 %v13734_v6, 16 }
 0x413   : > { %5470 = vmatmul.bf16.gmra.mxu0 %v12533_v59  ;;  %6618 = vmatmul.bf16.vlgmr.msra.gmra.mxu3 %v6407_v15  ;;  %v5310_v59 = vrot.slane %v5308_v13, 3 }
 0x414   : > { %v4982_v55 = vadd.f32 %v4920_v63, %v4650_v4  ;;  %7180 = vmatpush.bf16.msra.mxu1 %v9089_v7 }
 0x415   : > { %v5314_v15 = vor.u32 %v5313_v10, %v5310_v59 }
 0x416   : > { %6122 = vmatmul.bf16.vlgmr.msra.gmra.mxu2 %v5911_v36  ;;  %v4923_v46 = vpop.f32.mrf.mxu3  ;;  %v6414_v36 = vrot.slane %v13735_v62, 1 }
 0x417   : > { %v12787_v49 = vpop.f32.mrf.mxu1  ;;  %v5315_v59 = vsel %vm1021_vm2, %v12522_v42, %v5314_v15 }
 0x418   : > { %v5433_v21 = vpop.f32.mrf.mxu0 }
 0x419   : > { %v4652_v4 = vpop.f32.mrf.mxu2  ;;  %v12790_v63 = vadd.f32 %v5433_v21, %v4980_v30  ;;  %v5912_v30 = vshrl.u32 %v12760_v51, 16 }
 0x41a   : > { %v4653_v24 = vadd.f32 %v4652_v4, %v12598_v44  ;;  %5661 = vmatmul.bf16.gmra.mxu1 %v9572_v2 }
 0x41b   : > { %v5914_v7 = vor.u32 %v5912_v30, %v5910_v31 }
 0x41c   : > { %v4983_v61 = vadd.f32 %v4923_v46, %v4653_v24  ;;  %v5918_v46 = vrot.slane %v5916_v43, 1  ;;  %v13736_v24 = vshrl.u32 %v13732_v26, 16 }
 0x41e   : > { %v4925_v37 = vpop.f32.mrf.mxu3  ;;  %v6410_v21 = vor.u32 %v13736_v24, %v6406_v40  ;;  %v5919_v62 = vsel %vm2209_vm3, %v5914_v7, %v5918_v46  ;;  %v9574_v40 = vld [vmem:[#allocation2 + $0x4c] sm:$0xff]  }
 0x41f   : > { %v12797_v4 = vpop.f32.mrf.mxu1 }
 0x420   : > { %v5436_v17 = vpop.f32.mrf.mxu0  ;;  %v6415_v10 = vsel %vm2209_vm3, %v6410_v21, %v6414_v36  ;;  %v9654_v21 = vld [vmem:[#allocation2 + $0x1c] sm:$0xff] }
 0x421   : > { %v4654_v44 = vpop.f32.mrf.mxu2  ;;  %v12803_v2 = vadd.f32 %v5436_v17, %v4981_v12  ;;  %v6767_v7 = vrot.slane %v9654_v21, 1 }
 0x422   : > { %v4655_v13 = vadd.f32 %v4654_v44, %v12628_v16  ;;  %v9030_v44 = vld [vmem:[#allocation2 + $0x24] sm:$0xff] }
 0x423   : > { %5475 = vmatmul.bf16.gmra.mxu0 %v5315_v59  ;;  %6623 = vmatmul.bf16.gmra.mxu3 %v6415_v10  ;;  %v5924_v15 = vshll.u32 %v9030_v44, 16 }
 0x424   : > { %v4984_v41 = vadd.f32 %v4925_v37, %v4655_v13  ;;  %v13737_v13 = vld [vmem:[#allocation45_spill] sm:$0xff] }
 0x425   : > { %v13738_v17 = vshll.u32 %v13737_v13, 16 }
 0x426   : > { %6127 = vmatmul.bf16.gmra.mxu2 %v5919_v62  ;;  %v4928_v51 = vpop.f32.mrf.mxu3  ;;  %v5920_v62 = vshrl.u32 %v9029_v20, 16 }
 0x427   : > { %v5627_v43 = vpop.f32.mrf.mxu1  ;;  %v6422_v24 = vrot.slane %v13738_v17, 1 }
 0x428   : > { %v12811_v12 = vadd.f32 %v5627_v43, %v12528_v0  ;;  %v5438_v31 = vpop.f32.mrf.mxu0  ;;  %v5922_v17 = vor.u32 %v5920_v62, %v5918_v46 }
 0x429   : > { %v4657_v16 = vpop.f32.mrf.mxu2  ;;  %v12813_v37 = vadd.f32 %v5438_v31, %v4982_v55 }
 0x42a   : > { %v4658_v26 = vadd.f32 %v4657_v16, %v12639_v29  ;;  %5666 = vmatmul.bf16.gmra.mxu1 %v9574_v40  ;;  %v5926_v29 = vrot.slane %v5924_v15, 1 }
 0x42c   : > { %v4985_v42 = vadd.f32 %v4928_v51, %v4658_v26  ;;  %v13739_v51 = vshrl.u32 %v13734_v6, 16  ;;  %v13740_v26 = vld [vmem:[#allocation37_spill] sm:$0xff]  ;;  %v5927_v15 = vsel %vm2209_vm3, %v5922_v17, %v5926_v29  ;;  %v9031_v6 = vld [vmem:[#allocation2 + $0x2c] sm:$0xff] }
 0x42d   : > { %v6766_v31 = vrot.slane %v13740_v26, 1 }
 0x42e   : > { %v4930_v30 = vpop.f32.mrf.mxu3  ;;  %v6418_v43 = vor.u32 %v13739_v51, %v6414_v36  ;;  %v13741_v51 = vld [vmem:[#allocation49_spill] sm:$0xff] }
 0x42f   : > { %v5629_v10 = vpop.f32.mrf.mxu1  ;;  %v6768_v20 = vsel %vm3076_vm4, %v6766_v31, %v6767_v7  ;;  %v9655_v31 = vld [vmem:[#allocation2 + $0x24] sm:$0xff] }
 0x430   : > { %v12819_v16 = vadd.f32 %v5629_v10, %v12553_v14  ;;  %v5441_v55 = vpop.f32.mrf.mxu0  ;;  %v6423_v21 = vsel %vm2209_vm3, %v6418_v43, %v6422_v24  ;;  %v13742_v43 = vshll.u32 %v13741_v51, 16  ;;  %v6769_v17 = vrot.slane %v9655_v31, 1 }
 0x431   : > { %v4659_v59 = vpop.f32.mrf.mxu2  ;;  %v12824_v40 = vadd.f32 %v5441_v55, %v4983_v61 }
 0x432   : > { %v4660_v0 = vadd.f32 %v4659_v59, %v12644_v32  ;;  %v6430_v26 = vrot.slane %v13742_v43, 1  ;;  %v6770_v31 = vsel %vm3076_vm4, %v6767_v7, %v6769_v17 }
 0x433   : > { %6628 = vmatmul.bf16.gmra.mxu3 %v6423_v21  ;;  %6877 = vmatmul.bf16.vlgmr.msra.gmra.mxu0 %v6768_v20 }
 0x434   : > { %v4986_v18 = vadd.f32 %v4930_v30, %v4660_v0  ;;  %v9576_v30 = vld [vmem:[#allocation2 + $0x54] sm:$0xff]   ;;  %v5932_v0 = vshll.u32 %v9031_v6, 16 }
 0x436   : > { %6132 = vmatmul.bf16.gmra.mxu2 %v5927_v15  ;;  %v4933_v14 = vpop.f32.mrf.mxu3  ;;  %v5928_v15 = vshrl.u32 %v9030_v44, 16  ;;  %v9088_v44 = vld [vmem:[%s13383_s1 + $0x450] sm:$0xff] }
 0x437   : > { %v5632_v59 = vpop.f32.mrf.mxu1  ;;  %7181 = vmatpush.bf16.msra.mxu1 %v9088_v44 }
 0x438   : > { %v12831_v61 = vadd.f32 %v5632_v59, %v12586_v27  ;;  %v5443_v46 = vpop.f32.mrf.mxu0 }
 0x439   : > { %v4662_v32 = vpop.f32.mrf.mxu2  ;;  %v12833_v10 = vadd.f32 %v5443_v46, %v4984_v41  ;;  %v5930_v46 = vor.u32 %v5928_v15, %v5926_v29 }
 0x43a   : > { %v4663_v36 = vadd.f32 %v4662_v32, %v12652_v1  ;;  %5671 = vmatmul.bf16.gmra.mxu1 %v9576_v30  ;;  %v5934_v1 = vrot.slane %v5932_v0, 1 }
 0x43c   : > { %v4987_v62 = vadd.f32 %v4933_v14, %v4663_v36  ;;  %v13743_v14 = vshrl.u32 %v13737_v13, 16 }
 0x43e   : > { %v4935_v55 = vpop.f32.mrf.mxu3  ;;  %v6426_v59 = vor.u32 %v13743_v14, %v6422_v24  ;;  %v9032_v24 = vld [vmem:[#allocation2 + $0x34] sm:$0xff] }
 0x43f   : > { %v5634_v20 = vpop.f32.mrf.mxu1  ;;  %v5940_v15 = vshll.u32 %v9032_v24, 16 }
 0x440   : > { %v12839_v32 = vadd.f32 %v5634_v20, %v12622_v53  ;;  %v5446_v41 = vpop.f32.mrf.mxu0  ;;  %v6431_v43 = vsel %vm2209_vm3, %v6426_v59, %v6430_v26 }
 0x441   : > { %v4664_v21 = vpop.f32.mrf.mxu2  ;;  %v12843_v36 = vadd.f32 %v5446_v41, %v4985_v42  ;;  %v13744_v41 = vld [vmem:[#allocation54_spill] sm:$0xff] }
 0x442   : > { %v4665_v27 = vadd.f32 %v4664_v21, %v12663_v34  ;;  %v5935_v34 = vsel %vm2209_vm3, %v5930_v46, %v5934_v1  ;;  %v13745_v14 = vshll.u32 %v13744_v41, 16  ;;  %v9656_v46 = vld [vmem:[#allocation2 + $0x2c] sm:$0xff] }
 0x443   : > { %6633 = vmatmul.bf16.gmra.mxu3 %v6431_v43  ;;  %6882 = vmatmul.bf16.gmra.mxu0 %v6770_v31  ;;  %v6771_v43 = vrot.slane %v9656_v46, 1 }
 0x444   : > { %v4988_v30 = vadd.f32 %v4935_v55, %v4665_v27  ;;  %v9578_v55 = vld [vmem:[#allocation2 + $0x5c] sm:$0xff]   ;;  %v6438_v59 = vrot.slane %v13745_v14, 1 }
 0x445   : > { %v6772_v46 = vsel %vm3076_vm4, %v6769_v17, %v6771_v43 }
 0x446   : > { %6137 = vmatmul.bf16.gmra.mxu2 %v5935_v34  ;;  %v4938_v53 = vpop.f32.mrf.mxu3  ;;  %v5936_v34 = vshrl.u32 %v9031_v6, 16 }
 0x447   : > { %v5637_v42 = vpop.f32.mrf.mxu1 }
 0x448   : > { %v12853_v0 = vadd.f32 %v5637_v42, %v12631_v5  ;;  %v5448_v7 = vpop.f32.mrf.mxu0 }
 0x449   : > { %v4667_v13 = vpop.f32.mrf.mxu2  ;;  %v12855_v21 = vadd.f32 %v5448_v7, %v4986_v18  ;;  %v5938_v7 = vor.u32 %v5936_v34, %v5934_v1  ;;  %v9580_v1 = vld [vmem:[#allocation2 + $0x64] sm:$0xff]  }
 0x44a   : > { %v4668_v29 = vadd.f32 %v4667_v13, %v12677_v50  ;;  %5676 = vmatmul.bf16.gmra.mxu1 %v9578_v55  ;;  %v5942_v50 = vrot.slane %v5940_v15, 1 }
 0x44c   : > { %v4989_v20 = vadd.f32 %v4938_v53, %v4668_v29  ;;  %v13746_v53 = vshrl.u32 %v13741_v51, 16  ;;  %v5943_v6 = vsel %vm2209_vm3, %v5938_v7, %v5942_v50 }
 0x44e   : > { %v4940_v27 = vpop.f32.mrf.mxu3  ;;  %v6434_v42 = vor.u32 %v13746_v53, %v6430_v26 }
 0x44f   : > { %v5639_v44 = vpop.f32.mrf.mxu1 }
 0x450   : > { %v12861_v13 = vadd.f32 %v5639_v44, %v12642_v57  ;;  %v5451_v18 = vpop.f32.mrf.mxu0  ;;  %v6439_v14 = vsel %vm2209_vm3, %v6434_v42, %v6438_v59  ;;  %v9657_v42 = vld [vmem:[#allocation2 + $0x34] sm:$0xff] }
 0x451   : > { %v4669_v31 = vpop.f32.mrf.mxu2  ;;  %v12865_v29 = vadd.f32 %v5451_v18, %v4987_v62  ;;  %v6773_v7 = vrot.slane %v9657_v42, 1 }
 0x452   : > { %v4670_v5 = vadd.f32 %v4669_v31, %v12682_v28  ;;  %v9033_v31 = vld [vmem:[#allocation2 + $0x3c] sm:$0xff] }
 0x453   : > { %6638 = vmatmul.bf16.gmra.mxu3 %v6439_v14  ;;  %6887 = vmatmul.bf16.gmra.mxu0 %v6772_v46  ;;  %v5948_v17 = vshll.u32 %v9033_v31, 16  ;;  %v6774_v42 = vsel %vm3076_vm4, %v6771_v43, %v6773_v7 }
 0x454   : > { %v4990_v55 = vadd.f32 %v4940_v27, %v4670_v5  ;;  %v13747_v5 = vld [vmem:[#allocation56_spill] sm:$0xff] }
 0x455   : > { %v13748_v18 = vshll.u32 %v13747_v5, 16 }
 0x456   : > { %6142 = vmatmul.bf16.gmra.mxu2 %v5943_v6  ;;  %v4943_v28 = vpop.f32.mrf.mxu3  ;;  %v5944_v6 = vshrl.u32 %v9032_v24, 16  ;;  %v9087_v24 = vld [vmem:[%s13383_s1 + $0x448] sm:$0xff] }
 0x457   : > { %v5642_v15 = vpop.f32.mrf.mxu1  ;;  %v6446_v53 = vrot.slane %v13748_v18, 1  ;;  %7182 = vmatpush.bf16.msra.mxu1 %v9087_v24 }
 0x458   : > { %v12872_v62 = vadd.f32 %v5642_v15, %v12647_v56  ;;  %v5453_v26 = vpop.f32.mrf.mxu0 }
 0x459   : > { %v4672_v57 = vpop.f32.mrf.mxu2  ;;  %v12874_v27 = vadd.f32 %v5453_v26, %v4988_v30  ;;  %v5946_v26 = vor.u32 %v5944_v6, %v5942_v50 }
 0x45a   : > { %v4673_v51 = vadd.f32 %v4672_v57, %v12696_v52  ;;  %5681 = vmatmul.bf16.gmra.mxu1 %v9580_v1  ;;  %v5950_v52 = vrot.slane %v5948_v17, 1 }
 0x45c   : > { %v4991_v44 = vadd.f32 %v4943_v28, %v4673_v51  ;;  %v13749_v28 = vshrl.u32 %v13744_v41, 16 }
 0x45e   : > { %v4945_v34 = vpop.f32.mrf.mxu3  ;;  %v6442_v15 = vor.u32 %v13749_v28, %v6438_v59  ;;  %v9034_v59 = vld [vmem:[#allocation2 + $0x44] sm:$0xff] }
 0x45f   : > { %v5644_v46 = vpop.f32.mrf.mxu1  ;;  %v5956_v6 = vshll.u32 %v9034_v59, 16 }
 0x460   : > { %v12880_v57 = vadd.f32 %v5644_v46, %v12655_v58  ;;  %v5456_v30 = vpop.f32.mrf.mxu0  ;;  %v6447_v18 = vsel %vm2209_vm3, %v6442_v15, %v6446_v53 }
 0x461   : > { %v4674_v14 = vpop.f32.mrf.mxu2  ;;  %v12884_v51 = vadd.f32 %v5456_v30, %v4989_v20  ;;  %v13750_v30 = vld [vmem:[#allocation61_spill] sm:$0xff] }
 0x462   : > { %v4675_v56 = vadd.f32 %v4674_v14, %v12713_v39  ;;  %v5951_v39 = vsel %vm2209_vm3, %v5946_v26, %v5950_v52  ;;  %v13751_v28 = vshll.u32 %v13750_v30, 16  ;;  %v9658_v26 = vld [vmem:[#allocation2 + $0x3c] sm:$0xff] }
 0x463   : > { %6643 = vmatmul.bf16.gmra.mxu3 %v6447_v18  ;;  %6892 = vmatmul.bf16.gmra.mxu0 %v6774_v42  ;;  %v6775_v18 = vrot.slane %v9658_v26, 1 }
 0x464   : > { %v4992_v1 = vadd.f32 %v4945_v34, %v4675_v56  ;;  %v9582_v34 = vld [vmem:[#allocation2 + $0x6c] sm:$0xff]   ;;  %v6454_v15 = vrot.slane %v13751_v28, 1 }
 0x465   : > { %v6776_v26 = vsel %vm3076_vm4, %v6773_v7, %v6775_v18 }
 0x466   : > { %6147 = vmatmul.bf16.gmra.mxu2 %v5951_v39  ;;  %v4948_v58 = vpop.f32.mrf.mxu3  ;;  %v5952_v39 = vshrl.u32 %v9033_v31, 16 }
 0x467   : > { %v5647_v20 = vpop.f32.mrf.mxu1 }
 0x468   : > { %v12894_v17 = vadd.f32 %v5647_v20, %v12666_v25  ;;  %v5458_v43 = vpop.f32.mrf.mxu0 }
 0x469   : > { %v4677_v41 = vpop.f32.mrf.mxu2  ;;  %v12896_v14 = vadd.f32 %v5458_v43, %v4990_v55  ;;  %v5954_v43 = vor.u32 %v5952_v39, %v5950_v52  ;;  %v9584_v52 = vld [vmem:[#allocation2 + $0x74] sm:$0xff]  }
 0x46a   : > { %v4678_v50 = vadd.f32 %v4677_v41, %v12733_v23  ;;  %5686 = vmatmul.bf16.gmra.mxu1 %v9582_v34  ;;  %v5958_v23 = vrot.slane %v5956_v6, 1 }
 0x46c   : > { %v4993_v46 = vadd.f32 %v4948_v58, %v4678_v50  ;;  %v13752_v58 = vshrl.u32 %v13747_v5, 16  ;;  %v5959_v31 = vsel %vm2209_vm3, %v5954_v43, %v5958_v23 }
 0x46e   : > { %v4950_v56 = vpop.f32.mrf.mxu3  ;;  %v6450_v20 = vor.u32 %v13752_v58, %v6446_v53 }
 0x46f   : > { %v5649_v24 = vpop.f32.mrf.mxu1 }
 0x470   : > { %v12902_v41 = vadd.f32 %v5649_v24, %v12680_v45  ;;  %v5461_v55 = vpop.f32.mrf.mxu0  ;;  %v6455_v28 = vsel %vm2209_vm3, %v6450_v20, %v6454_v15  ;;  %v9659_v20 = vld [vmem:[#allocation2 + $0x44] sm:$0xff] }
 0x471   : > { %v4679_v42 = vpop.f32.mrf.mxu2  ;;  %v12906_v50 = vadd.f32 %v5461_v55, %v4991_v44  ;;  %v6777_v43 = vrot.slane %v9659_v20, 1 }
 0x472   : > { %v4680_v25 = vadd.f32 %v4679_v42, %v12744_v48  ;;  %v9035_v42 = vld [vmem:[#allocation2 + $0x4c] sm:$0xff] }
 0x473   : > { %6648 = vmatmul.bf16.gmra.mxu3 %v6455_v28  ;;  %6897 = vmatmul.bf16.gmra.mxu0 %v6776_v26  ;;  %v5964_v7 = vshll.u32 %v9035_v42, 16  ;;  %v6778_v20 = vsel %vm3076_vm4, %v6775_v18, %v6777_v43  ;;  %v9086_v18 = vld [vmem:[%s13383_s1 + $0x440] sm:$0xff] }
 0x474   : > { %v4994_v34 = vadd.f32 %v4950_v56, %v4680_v25  ;;  %v13753_v25 = vld [vmem:[#allocation10_spill] sm:$0xff]  ;;  %7183 = vmatpush.bf16.msra.mxu1 %v9086_v18 }
 0x475   : > { %v13754_v55 = vshll.u32 %v13753_v25, 16 }
 0x476   : > { %6152 = vmatmul.bf16.gmra.mxu2 %v5959_v31  ;;  %v4953_v48 = vpop.f32.mrf.mxu3  ;;  %v5960_v31 = vshrl.u32 %v9034_v59, 16 }
 0x477   : > { %v5652_v6 = vpop.f32.mrf.mxu1  ;;  %v6462_v58 = vrot.slane %v13754_v55, 1 }
 0x478   : > { %v12913_v44 = vadd.f32 %v5652_v6, %v12685_v8  ;;  %v5463_v53 = vpop.f32.mrf.mxu0 }
 0x479   : > { %v4682_v45 = vpop.f32.mrf.mxu2  ;;  %v12915_v56 = vadd.f32 %v5463_v53, %v4992_v1  ;;  %v5962_v53 = vor.u32 %v5960_v31, %v5958_v23  ;;  %v9586_v23 = vld [vmem:[#allocation2 + $0x7c] sm:$0xff]  }
 0x47a   : > { %v4683_v5 = vadd.f32 %v4682_v45, %v12758_v38  ;;  %5691 = vmatmul.bf16.gmra.mxu1 %v9584_v52  ;;  %v5966_v38 = vrot.slane %v5964_v7, 1 }
 0x47c   : > { %v4995_v24 = vadd.f32 %v4953_v48, %v4683_v5  ;;  %v13755_v48 = vshrl.u32 %v13750_v30, 16  ;;  %v5967_v59 = vsel %vm2209_vm3, %v5962_v53, %v5966_v38 }
 0x47e   : > { %v4955_v39 = vpop.f32.mrf.mxu3  ;;  %v6458_v6 = vor.u32 %v13755_v48, %v6454_v15 }
 0x47f   : > { %v5654_v26 = vpop.f32.mrf.mxu1 }
 0x480   : > { %v12921_v45 = vadd.f32 %v5654_v26, %v12705_v22  ;;  %v5466_v1 = vpop.f32.mrf.mxu0  ;;  %v6463_v55 = vsel %vm2209_vm3, %v6458_v6, %v6462_v58 }
 0x481   : > { %v4684_v28 = vpop.f32.mrf.mxu2  ;;  %v12925_v5 = vadd.f32 %v5466_v1, %v4993_v46  ;;  %v13756_v1 = vld [vmem:[#allocation64_spill] sm:$0xff] }
 0x482   : > { %v4685_v8 = vadd.f32 %v4684_v28, %v12774_v19  ;;  %v9036_v28 = vld [vmem:[#allocation2 + $0x54] sm:$0xff]  ;;  %v13757_v48 = vshll.u32 %v13756_v1, 16 }
 0x483   : > { %6653 = vmatmul.bf16.gmra.mxu3 %v6463_v55  ;;  %6902 = vmatmul.bf16.gmra.mxu0 %v6778_v20  ;;  %v5972_v31 = vshll.u32 %v9036_v28, 16  ;;  %v5968_v20 = vshrl.u32 %v9035_v42, 16 }
 0x484   : > { %v4996_v52 = vadd.f32 %v4955_v39, %v4685_v8  ;;  %v6470_v6 = vrot.slane %v13757_v48, 1 }
 0x486   : > { %6157 = vmatmul.bf16.gmra.mxu2 %v5967_v59  ;;  %v4958_v19 = vpop.f32.mrf.mxu3  ;;  %v5974_v59 = vrot.slane %v5972_v31, 1 }
 0x487   : > { %v5657_v7 = vpop.f32.mrf.mxu1 }
 0x488   : > { %v12932_v46 = vadd.f32 %v5657_v7, %v12722_v35  ;;  %v5468_v15 = vpop.f32.mrf.mxu0  ;;  %v13758_v7 = vshrl.u32 %v13753_v25, 16 }
 0x489   : > { %v4687_v22 = vpop.f32.mrf.mxu2  ;;  %v12934_v39 = vadd.f32 %v5468_v15, %v4994_v34 }
 0x48a   : > { %v4688_v30 = vadd.f32 %v4687_v22, %v12787_v49  ;;  %5696 = vmatmul.bf16.gmra.mxu1 %v9586_v23  ;;  %v9660_v49 = vld [vmem:[#allocation2 + $0x4c] sm:$0xff]  ;;  %v5970_v23 = vor.u32 %v5968_v20, %v5966_v38  ;;  %v9588_v38 = vld [vmem:[#allocation2 + $0x84] sm:$0xff]  }
 0x48b   : > { %v6779_v53 = vrot.slane %v9660_v49, 1 }
 0x48c   : > { %v4997_v26 = vadd.f32 %v4958_v19, %v4688_v30  ;;  %v6466_v30 = vor.u32 %v13758_v7, %v6462_v58  ;;  %v5975_v42 = vsel %vm2209_vm3, %v5970_v23, %v5974_v59 }
 0x48d   : > { %v6780_v49 = vsel %vm3076_vm4, %v6777_v43, %v6779_v53 }
 0x48e   : > { %v4960_v8 = vpop.f32.mrf.mxu3  ;;  %v6471_v48 = vsel %vm2209_vm3, %v6466_v30, %v6470_v6  ;;  %v9661_v30 = vld [vmem:[#allocation2 + $0x54] sm:$0xff] }
 0x48f   : > { %v5659_v55 = vpop.f32.mrf.mxu1  ;;  %v6781_v23 = vrot.slane %v9661_v30, 1 }
 0x490   : > { %v12943_v19 = vadd.f32 %v5659_v55, %v12739_v47  ;;  %v5471_v22 = vpop.f32.mrf.mxu0 }
 0x491   : > { %v4689_v35 = vpop.f32.mrf.mxu2  ;;  %v12947_v15 = vadd.f32 %v5471_v22, %v4995_v24  ;;  %v6782_v30 = vsel %vm3076_vm4, %v6779_v53, %v6781_v23 }
 0x492   : > { %v4690_v34 = vadd.f32 %v4689_v35, %v12797_v4  ;;  %v9037_v35 = vld [vmem:[#allocation2 + $0x5c] sm:$0xff] }
 0x493   : > { %6658 = vmatmul.bf16.gmra.mxu3 %v6471_v48  ;;  %6907 = vmatmul.bf16.gmra.mxu0 %v6780_v49  ;;  %v5980_v43 = vshll.u32 %v9037_v35, 16 }
 0x494   : > { %v4998_v18 = vadd.f32 %v4960_v8, %v4690_v34  ;;  %v13759_v34 = vld [vmem:[#allocation66_spill] sm:$0xff] }
 0x495   : > { %v13760_v22 = vshll.u32 %v13759_v34, 16 }
 0x496   : > { %6162 = vmatmul.bf16.gmra.mxu2 %v5975_v42  ;;  %v6619_v4 = vpop.f32.mrf.mxu3  ;;  %v5976_v42 = vshrl.u32 %v9036_v28, 16 }
 0x497   : > { %v5662_v31 = vpop.f32.mrf.mxu1  ;;  %v6478_v7 = vrot.slane %v13760_v22, 1 }
 0x498   : > { %v12954_v24 = vadd.f32 %v5662_v31, %v12747_v60  ;;  %v5473_v58 = vpop.f32.mrf.mxu0 }
 0x499   : > { %v6123_v47 = vpop.f32.mrf.mxu2  ;;  %v12956_v8 = vadd.f32 %v5473_v58, %v4996_v52  ;;  %v5978_v58 = vor.u32 %v5976_v42, %v5974_v59  ;;  %v9589_v59 = vld [vmem:[#allocation2 + $0x8c] sm:$0xff]  }
 0x49a   : > { %v6213_v25 = vadd.f32 %v6123_v47, %v12811_v12  ;;  %5701 = vmatmul.bf16.gmra.mxu1 %v9588_v38  ;;  %v5982_v12 = vrot.slane %v5980_v43, 1 }
 0x49c   : > { %v6709_v55 = vadd.f32 %v6619_v4, %v6213_v25  ;;  %v13761_v4 = vshrl.u32 %v13756_v1, 16  ;;  %v5983_v28 = vsel %vm2209_vm3, %v5978_v58, %v5982_v12 }
 0x49e   : > { %v6621_v20 = vpop.f32.mrf.mxu3  ;;  %v6474_v31 = vor.u32 %v13761_v4, %v6470_v6 }
 0x49f   : > { %v5664_v49 = vpop.f32.mrf.mxu1 }
 0x4a0   : > { %v12962_v47 = vadd.f32 %v5664_v49, %v12763_v11  ;;  %v5476_v52 = vpop.f32.mrf.mxu0  ;;  %v6479_v22 = vsel %vm2209_vm3, %v6474_v31, %v6478_v7  ;;  %v9662_v31 = vld [vmem:[#allocation2 + $0x5c] sm:$0xff] }
 0x4a1   : > { %v6125_v48 = vpop.f32.mrf.mxu2  ;;  %v12966_v25 = vadd.f32 %v5476_v52, %v4997_v26  ;;  %v6783_v58 = vrot.slane %v9662_v31, 1 }
 0x4a2   : > { %v6214_v60 = vadd.f32 %v6125_v48, %v12819_v16  ;;  %v9038_v48 = vld [vmem:[#allocation2 + $0x64] sm:$0xff] }
 0x4a3   : > { %6663 = vmatmul.bf16.gmra.mxu3 %v6479_v22  ;;  %6912 = vmatmul.bf16.gmra.mxu0 %v6782_v30  ;;  %v5988_v53 = vshll.u32 %v9038_v48, 16  ;;  %v6784_v31 = vsel %vm3076_vm4, %v6781_v23, %v6783_v58 }
 0x4a4   : > { %v6710_v38 = vadd.f32 %v6621_v20, %v6214_v60  ;;  %v13762_v60 = vld [vmem:[#allocation69_spill] sm:$0xff] }
 0x4a5   : > { %v13763_v52 = vshll.u32 %v13762_v60, 16 }
 0x4a6   : > { %6167 = vmatmul.bf16.gmra.mxu2 %v5983_v28  ;;  %v6624_v16 = vpop.f32.mrf.mxu3  ;;  %v5984_v28 = vshrl.u32 %v9037_v35, 16 }
 0x4a7   : > { %v5667_v43 = vpop.f32.mrf.mxu1  ;;  %v6486_v4 = vrot.slane %v13763_v52, 1 }
 0x4a8   : > { %v12973_v26 = vadd.f32 %v5667_v43, %v12777_v3  ;;  %v5478_v6 = vpop.f32.mrf.mxu0 }
 0x4a9   : > { %v6128_v11 = vpop.f32.mrf.mxu2  ;;  %v12975_v20 = vadd.f32 %v5478_v6, %v4998_v18  ;;  %v5986_v6 = vor.u32 %v5984_v28, %v5982_v12  ;;  %v13765_v28 = vld [vmem:[#allocation73_spill] sm:$0xff] }
 0x4aa   : > { %v6215_v1 = vadd.f32 %v6128_v11, %v12831_v61  ;;  %5706 = vmatmul.bf16.gmra.mxu1 %v9589_v59  ;;  %v5990_v61 = vrot.slane %v5988_v53, 1 }
 0x4ac   : > { %v6711_v49 = vadd.f32 %v6624_v16, %v6215_v1  ;;  %v13764_v16 = vshrl.u32 %v13759_v34, 16  ;;  %v5991_v35 = vsel %vm2209_vm3, %v5986_v6, %v5990_v61 }
 0x4ae   : > { %v6626_v42 = vpop.f32.mrf.mxu3  ;;  %v6482_v43 = vor.u32 %v13764_v16, %v6478_v7  ;;  %v9663_v16 = vld [vmem:[#allocation2 + $0x64] sm:$0xff] }
 0x4af   : > { %v5669_v30 = vpop.f32.mrf.mxu1 }
 0x4b0   : > { %v12981_v11 = vadd.f32 %v5669_v30, %v12790_v63  ;;  %v6878_v18 = vpop.f32.mrf.mxu0  ;;  %v6487_v52 = vsel %vm2209_vm3, %v6482_v43, %v6486_v4  ;;  %v6785_v43 = vrot.slane %v9663_v16, 1  ;;  %v9040_v16 = vld [vmem:[#allocation2 + $0x74] sm:$0xff] }
 0x4b1   : > { %v6130_v22 = vpop.f32.mrf.mxu2  ;;  %v12985_v1 = vadd.f32 %v6878_v18, %v6709_v55 }
 0x4b2   : > { %v6216_v3 = vadd.f32 %v6130_v22, %v12839_v32  ;;  %v9039_v22 = vld [vmem:[#allocation2 + $0x6c] sm:$0xff] }
 0x4b3   : > { %6668 = vmatmul.bf16.gmra.mxu3 %v6487_v52  ;;  %6917 = vmatmul.bf16.gmra.mxu0 %v6784_v31  ;;  %v5996_v23 = vshll.u32 %v9039_v22, 16  ;;  %v5992_v31 = vshrl.u32 %v9038_v48, 16 }
 0x4b4   : > { %v6712_v59 = vadd.f32 %v6626_v42, %v6216_v3  ;;  %v13766_v3 = vshll.u32 %v13765_v28, 16 }
 0x4b6   : > { %6172 = vmatmul.bf16.gmra.mxu2 %v5991_v35  ;;  %v6629_v32 = vpop.f32.mrf.mxu3  ;;  %v6494_v18 = vrot.slane %v13766_v3, 1  ;;  %v6786_v3 = vsel %vm3076_vm4, %v6783_v58, %v6785_v43  ;;  %v6004_v58 = vshll.u32 %v9040_v16, 16 }
 0x4b7   : > { %v5672_v53 = vpop.f32.mrf.mxu1 }
 0x4b8   : > { %v12992_v55 = vadd.f32 %v5672_v53, %v12803_v2  ;;  %v6880_v7 = vpop.f32.mrf.mxu0  ;;  %v5994_v53 = vor.u32 %v5992_v31, %v5990_v61  ;;  %v13769_v31 = vshll.u32 %v12377_v9, 16 }
 0x4b9   : > { %v6133_v63 = vpop.f32.mrf.mxu2  ;;  %v12994_v12 = vadd.f32 %v6880_v7, %v6710_v38 }
 0x4ba   : > { %v6217_v34 = vadd.f32 %v6133_v63, %v12853_v0  ;;  %5711 = vmatmul.bf16.gmra.mxu1 %v12574_v33  ;;  %v5998_v0 = vrot.slane %v5996_v23, 1 }
 0x4bc   : > { %v6713_v42 = vadd.f32 %v6629_v32, %v6217_v34  ;;  %v13767_v32 = vshrl.u32 %v13762_v60, 16  ;;  %v5999_v48 = vsel %vm2209_vm3, %v5994_v53, %v5998_v0 }
 0x4be   : > { %v6631_v30 = vpop.f32.mrf.mxu3  ;;  %v6490_v33 = vor.u32 %v13767_v32, %v6486_v4 }
 0x4bf   : > { %v5674_v52 = vpop.f32.mrf.mxu1 }
 0x4c0   : > { %v13001_v35 = vadd.f32 %v5674_v52, %v12813_v37  ;;  %v6883_v38 = vpop.f32.mrf.mxu0  ;;  %v6495_v7 = vsel %vm2209_vm3, %v6490_v33, %v6494_v18 }
 0x4c1   : > { %v6135_v6 = vpop.f32.mrf.mxu2  ;;  %v13005_v63 = vadd.f32 %v6883_v38, %v6711_v49  ;;  %v9664_v38 = vld [vmem:[#allocation2 + $0x6c] sm:$0xff] }
 0x4c2   : > { %v6218_v2 = vadd.f32 %v6135_v6, %v12861_v13  ;;  %v13768_v6 = vld [vmem:[#allocation40_spill] sm:$0xff]  ;;  %v6787_v32 = vrot.slane %v9664_v38, 1 }
 0x4c3   : > { %6673 = vmatmul.bf16.gmra.mxu3 %v6495_v7  ;;  %6922 = vmatmul.bf16.gmra.mxu0 %v6786_v3  ;;  %v6000_v7 = vshrl.u32 %v9039_v22, 16  ;;  %v13771_v38 = vld [vmem:[#allocation44_spill] sm:$0xff] }
 0x4c4   : > { %v6714_v34 = vadd.f32 %v6631_v30, %v6218_v2  ;;  %v6502_v2 = vrot.slane %v13769_v31, 1  ;;  %v9041_v31 = vld [vmem:[#allocation2 + $0x7c] sm:$0xff] }
 0x4c6   : > { %6177 = vmatmul.bf16.gmra.mxu2 %v5999_v48  ;;  %v6634_v13 = vpop.f32.mrf.mxu3  ;;  %v13770_v48 = vshrl.u32 %v13765_v28, 16 }
 0x4c7   : > { %v5677_v23 = vpop.f32.mrf.mxu1 }
 0x4c8   : > { %v13012_v49 = vadd.f32 %v5677_v23, %v12824_v40  ;;  %v6885_v4 = vpop.f32.mrf.mxu0  ;;  %v6002_v23 = vor.u32 %v6000_v7, %v5998_v0 }
 0x4c9   : > { %v6138_v37 = vpop.f32.mrf.mxu2  ;;  %v13014_v61 = vadd.f32 %v6885_v4, %v6712_v59 }
 0x4ca   : > { %v6219_v60 = vadd.f32 %v6138_v37, %v12872_v62  ;;  %7184 = vmatmul.bf16.vlgmr.msra.gmra.mxu1 %v13768_v6  ;;  %v6006_v62 = vrot.slane %v6004_v58, 1  ;;  %v6788_v6 = vsel %vm3076_vm4, %v6785_v43, %v6787_v32  ;;  %v6012_v43 = vshll.u32 %v9041_v31, 16 }
 0x4cc   : > { %v6715_v30 = vadd.f32 %v6634_v13, %v6219_v60  ;;  %v6498_v13 = vor.u32 %v13770_v48, %v6494_v18  ;;  %v6007_v22 = vsel %vm2209_vm3, %v6002_v23, %v6006_v62  ;;  %v6008_v23 = vshrl.u32 %v9040_v16, 16 }
 0x4ce   : > { %v6636_v52 = vpop.f32.mrf.mxu3  ;;  %v6503_v4 = vsel %vm2209_vm3, %v6498_v13, %v6502_v2 }
 0x4cf   : > { %v5679_v53 = vpop.f32.mrf.mxu1 }
 0x4d0   : > { %v13021_v3 = vadd.f32 %v5679_v53, %v12833_v10  ;;  %v6888_v59 = vpop.f32.mrf.mxu0  ;;  %v13772_v53 = vshll.u32 %v12473_v54, 16 }
 0x4d1   : > { %v6140_v33 = vpop.f32.mrf.mxu2  ;;  %v13025_v37 = vadd.f32 %v6888_v59, %v6713_v42 }
 0x4d2   : > { %v6220_v40 = vadd.f32 %v6140_v33, %v12880_v57  ;;  %v6510_v7 = vrot.slane %v13772_v53, 1  ;;  %v13774_v53 = vld [vmem:[#allocation48_spill] sm:$0xff] }
 0x4d3   : > { %6678 = vmatmul.bf16.gmra.mxu3 %v6503_v4  ;;  %6927 = vmatmul.bf16.gmra.mxu0 %v6788_v6  ;;  %v13773_v6 = vshrl.u32 %v12377_v9, 16 }
 0x4d4   : > { %v6716_v60 = vadd.f32 %v6636_v52, %v6220_v40  ;;  %v9665_v40 = vld [vmem:[#allocation2 + $0x74] sm:$0xff] }
 0x4d5   : > { %v6789_v59 = vrot.slane %v9665_v40, 1 }
 0x4d6   : > { %6182 = vmatmul.bf16.gmra.mxu2 %v6007_v22  ;;  %v6639_v57 = vpop.f32.mrf.mxu3  ;;  %v6506_v22 = vor.u32 %v13773_v6, %v6502_v2 }
 0x4d7   : > { %v5682_v58 = vpop.f32.mrf.mxu1 }
 0x4d8   : > { %v13032_v42 = vadd.f32 %v5682_v58, %v12843_v36  ;;  %v6890_v18 = vpop.f32.mrf.mxu0 }
 0x4d9   : > { %v6143_v10 = vpop.f32.mrf.mxu2  ;;  %v13034_v0 = vadd.f32 %v6890_v18, %v6714_v34  ;;  %v6790_v18 = vsel %vm3076_vm4, %v6787_v32, %v6789_v59 }
 0x4da   : > { %v6221_v28 = vadd.f32 %v6143_v10, %v12894_v17  ;;  %7189 = vmatmul.bf16.gmra.mxu1 %v13771_v38  ;;  %v6014_v17 = vrot.slane %v6012_v43, 1  ;;  %v6010_v10 = vor.u32 %v6008_v23, %v6006_v62  ;;  %v9042_v43 = vld [vmem:[#allocation2 + $0x84] sm:$0xff] }
 0x4db   : > { %v6020_v32 = vshll.u32 %v9042_v43, 16 }
 0x4dc   : > { %v6717_v52 = vadd.f32 %v6639_v57, %v6221_v28  ;;  %v6511_v28 = vsel %vm2209_vm3, %v6506_v22, %v6510_v7  ;;  %v6015_v16 = vsel %vm2209_vm3, %v6010_v10, %v6014_v17  ;;  %v6016_v10 = vshrl.u32 %v9041_v31, 16 }
 0x4de   : > { %v6641_v33 = vpop.f32.mrf.mxu3 }
 0x4df   : > { %v5684_v13 = vpop.f32.mrf.mxu1 }
 0x4e0   : > { %v13041_v4 = vadd.f32 %v5684_v13, %v12855_v21  ;;  %v6893_v34 = vpop.f32.mrf.mxu0 }
 0x4e1   : > { %v6145_v48 = vpop.f32.mrf.mxu2  ;;  %v13045_v57 = vadd.f32 %v6893_v34, %v6715_v30 }
 0x4e2   : > { %v6222_v36 = vadd.f32 %v6145_v48, %v12902_v41  ;;  %v13775_v48 = vld [vmem:[#allocation79_spill] sm:$0xff] }
 0x4e3   : > { %6683 = vmatmul.bf16.gmra.mxu3 %v6511_v28  ;;  %6932 = vmatmul.bf16.gmra.mxu0 %v6790_v18  ;;  %v13776_v13 = vshll.u32 %v13775_v48, 16  ;;  %v13777_v18 = vshrl.u32 %v12473_v54, 16 }
 0x4e4   : > { %v6718_v58 = vadd.f32 %v6641_v33, %v6222_v36  ;;  %v9666_v36 = vld [vmem:[#allocation2 + $0x7c] sm:$0xff] }
 0x4e5   : > { %v6518_v23 = vrot.slane %v13776_v13, 1  ;;  %v6791_v34 = vrot.slane %v9666_v36, 1  ;;  %v13778_v13 = vld [vmem:[#allocation52_spill] sm:$0xff] }
 0x4e6   : > { %6187 = vmatmul.bf16.gmra.mxu2 %v6015_v16  ;;  %v6644_v41 = vpop.f32.mrf.mxu3  ;;  %v6514_v16 = vor.u32 %v13777_v18, %v6510_v7 }
 0x4e7   : > { %v5687_v38 = vpop.f32.mrf.mxu1 }
 0x4e8   : > { %v13052_v30 = vadd.f32 %v5687_v38, %v12865_v29  ;;  %v6895_v2 = vpop.f32.mrf.mxu0 }
 0x4e9   : > { %v6148_v21 = vpop.f32.mrf.mxu2  ;;  %v13054_v62 = vadd.f32 %v6895_v2, %v6716_v60  ;;  %v6792_v2 = vsel %vm3076_vm4, %v6789_v59, %v6791_v34 }
 0x4ea   : > { %v6223_v9 = vadd.f32 %v6148_v21, %v12913_v44  ;;  %7194 = vmatmul.bf16.gmra.mxu1 %v13774_v53  ;;  %v6022_v44 = vrot.slane %v6020_v32, 1  ;;  %v6018_v21 = vor.u32 %v6016_v10, %v6014_v17  ;;  %v9043_v32 = vld [vmem:[#allocation2 + $0x8c] sm:$0xff] }
 0x4eb   : > { %v6028_v59 = vshll.u32 %v9043_v32, 16 }
 0x4ec   : > { %v6719_v33 = vadd.f32 %v6644_v41, %v6223_v9  ;;  %v6519_v9 = vsel %vm2209_vm3, %v6514_v16, %v6518_v23  ;;  %v6023_v31 = vsel %vm2209_vm3, %v6018_v21, %v6022_v44  ;;  %v6024_v21 = vshrl.u32 %v9042_v43, 16 }
 0x4ee   : > { %v6646_v40 = vpop.f32.mrf.mxu3 }
 0x4ef   : > { %v5689_v22 = vpop.f32.mrf.mxu1 }
 0x4f0   : > { %v13061_v28 = vadd.f32 %v5689_v22, %v12874_v27  ;;  %v6898_v60 = vpop.f32.mrf.mxu0 }
 0x4f1   : > { %v6150_v6 = vpop.f32.mrf.mxu2  ;;  %v13065_v41 = vadd.f32 %v6898_v60, %v6717_v52 }
 0x4f2   : > { %v6224_v29 = vadd.f32 %v6150_v6, %v12921_v45  ;;  %v13779_v6 = vld [vmem:[#allocation80_spill] sm:$0xff] }
 0x4f3   : > { %6688 = vmatmul.bf16.gmra.mxu3 %v6519_v9  ;;  %6937 = vmatmul.bf16.gmra.mxu0 %v6792_v2  ;;  %v13780_v22 = vshll.u32 %v13779_v6, 16  ;;  %v13781_v2 = vshrl.u32 %v13775_v48, 16 }
 0x4f4   : > { %v6720_v38 = vadd.f32 %v6646_v40, %v6224_v29  ;;  %v9667_v29 = vld [vmem:[#allocation2 + $0x84] sm:$0xff] }
 0x4f5   : > { %v6526_v10 = vrot.slane %v13780_v22, 1  ;;  %v6793_v60 = vrot.slane %v9667_v29, 1  ;;  %v13782_v22 = vld [vmem:[#allocation57_spill] sm:$0xff] }
 0x4f6   : > { %6192 = vmatmul.bf16.gmra.mxu2 %v6023_v31  ;;  %v6649_v45 = vpop.f32.mrf.mxu3  ;;  %v6522_v31 = vor.u32 %v13781_v2, %v6518_v23  ;;  %v6285_v29 = vld [vmem:[#allocation2 + $0xa4] sm:$0x1] }
 0x4f7   : > { %v5692_v53 = vpop.f32.mrf.mxu1 }
 0x4f8   : > { %v13072_v52 = vadd.f32 %v5692_v53, %v12884_v51  ;;  %v6900_v7 = vpop.f32.mrf.mxu0 }
 0x4f9   : > { %v6153_v27 = vpop.f32.mrf.mxu2  ;;  %v13074_v17 = vadd.f32 %v6900_v7, %v6718_v58  ;;  %v6794_v7 = vsel %vm3076_vm4, %v6791_v34, %v6793_v60 }
 0x4fa   : > { %v6225_v54 = vadd.f32 %v6153_v27, %v12932_v46  ;;  %7199 = vmatmul.bf16.gmra.mxu1 %v13778_v13  ;;  %v6030_v46 = vrot.slane %v6028_v59, 1  ;;  %v6026_v27 = vor.u32 %v6024_v21, %v6022_v44  ;;  %v9044_v59 = vld [vmem:[#allocation2 + $0x94] sm:$0xff] }
 0x4fb   : > { %v6036_v34 = vshll.u32 %v9044_v59, 16 }
 0x4fc   : > { %v6721_v40 = vadd.f32 %v6649_v45, %v6225_v54  ;;  %v6527_v54 = vsel %vm2209_vm3, %v6522_v31, %v6526_v10  ;;  %v6031_v43 = vsel %vm2209_vm3, %v6026_v27, %v6030_v46  ;;  %v9668_v31 = vld [vmem:[#allocation2 + $0x8c] sm:$0xff] }
 0x4fe   : > { %v6651_v36 = vpop.f32.mrf.mxu3 }
 0x4ff   : > { %v5694_v16 = vpop.f32.mrf.mxu1 }
 0x500   : > { %v13081_v9 = vadd.f32 %v5694_v16, %v12896_v14  ;;  %v6903_v58 = vpop.f32.mrf.mxu0  ;;  %v13783_v16 = vshrl.u32 %v13779_v6, 16 }
 0x501   : > { %v6155_v18 = vpop.f32.mrf.mxu2  ;;  %v13085_v45 = vadd.f32 %v6903_v58, %v6719_v33 }
 0x502   : > { %v6226_v51 = vadd.f32 %v6155_v18, %v12943_v19  ;;  %v6530_v21 = vor.u32 %v13783_v16, %v6526_v10 }
 0x503   : > { %6693 = vmatmul.bf16.gmra.mxu3 %v6527_v54  ;;  %6942 = vmatmul.bf16.gmra.mxu0 %v6794_v7  ;;  %v6032_v54 = vshrl.u32 %v9043_v32, 16  ;;  %v6038_v7 = vrot.slane %v6036_v34, 1 }
 0x504   : > { %v6722_v53 = vadd.f32 %v6651_v36, %v6226_v51  ;;  %v13784_v51 = vld [vmem:[#allocation78_spill] sm:$0xff] }
 0x505   : > { %v13785_v58 = vshll.u32 %v13784_v51, 16  ;;  %v6034_v6 = vor.u32 %v6032_v54, %v6030_v46  ;;  %v13787_v54 = vshrl.u32 %v13784_v51, 16 }
 0x506   : > { %6197 = vmatmul.bf16.gmra.mxu2 %v6031_v43  ;;  %v6654_v19 = vpop.f32.mrf.mxu3 }
 0x507   : > { %v5697_v13 = vpop.f32.mrf.mxu1  ;;  %v6534_v2 = vrot.slane %v13785_v58, 1  ;;  %v6039_v16 = vsel %vm2209_vm3, %v6034_v6, %v6038_v7  ;;  %v9669_v6 = vld [vmem:[#allocation2 + $0x94] sm:$0xff] }
 0x508   : > { %v13092_v33 = vadd.f32 %v5697_v13, %v12906_v50  ;;  %v6905_v23 = vpop.f32.mrf.mxu0  ;;  %v6376_v13 = vunpack.c.l.b16 %v6285_v29 }
 0x509   : > { %v6158_v14 = vpop.f32.mrf.mxu2  ;;  %v13094_v44 = vadd.f32 %v6905_v23, %v6720_v38  ;;  %v6535_v23 = vsel %vm2209_vm3, %v6530_v21, %v6534_v2 }
 0x50a   : > { %v6227_v48 = vadd.f32 %v6158_v14, %v12954_v24  ;;  %7204 = vmatmul.bf16.gmra.mxu1 %v13782_v22  ;;  %v6795_v24 = vrot.slane %v9668_v31, 1  ;;  %v5789_v14 = vld [vmem:[#allocation2 + $0x9c] sm:$0x1] }
 0x50b   : > { %v5880_v32 = vunpack.c.l.b16 %v5789_v14  ;;  %v6040_v14 = vshrl.u32 %v9044_v59, 16 }
 0x50c   : > { %v6723_v36 = vadd.f32 %v6654_v19, %v6227_v48  ;;  %v6796_v22 = vsel %vm3076_vm4, %v6793_v60, %v6795_v24 }
 0x50d   : > { %v5899_v29 = vpack.c.b16 %v5880_v32, %v5880_v32 }
 0x50e   : > { %v6656_v18 = vpop.f32.mrf.mxu3 }
 0x50f   : > { %v5699_v50 = vpop.f32.mrf.mxu1 }
 0x510   : > { %v13103_v43 = vadd.f32 %v5699_v50, %v12915_v56  ;;  %v6908_v19 = vpop.f32.mrf.mxu0  ;;  %v6044_v50 = vshll.u32 %v5899_v29, 16 }
 0x511   : > { %v6160_v27 = vpop.f32.mrf.mxu2  ;;  %v13105_v48 = vadd.f32 %v6908_v19, %v6721_v40 }
 0x512   : > { %v6228_v38 = vadd.f32 %v6160_v27, %v12962_v47  ;;  %v13110_v47 = vpack.c.b16 %v6376_v13, %v6376_v13  ;;  %v13786_v27 = vld [vmem:[#allocation60_spill] sm:$0xff] }
 0x513   : > { %6698 = vmatmul.bf16.gmra.mxu3 %v6535_v23  ;;  %6947 = vmatmul.bf16.gmra.mxu0 %v6796_v22  ;;  %v6042_v22 = vor.u32 %v6040_v14, %v6038_v7 }
 0x514   : > { %v6724_v10 = vadd.f32 %v6656_v18, %v6228_v38  ;;  %v6540_v60 = vshll.u32 %v13110_v47, 16  ;;  %v6538_v38 = vor.u32 %v13787_v54, %v6534_v2 }
 0x516   : > { %6202 = vmatmul.bf16.gmra.mxu2 %v6039_v16  ;;  %v6659_v56 = vpop.f32.mrf.mxu3  ;;  %v6542_v19 = vrot.slane %v6540_v60, 1  ;;  %v6046_v16 = vrot.slane %v6044_v50, 1  ;;  %v9670_v50 = vld [vmem:[#allocation2 + $0x9c] sm:$0xff] }
 0x517   : > { %v5702_v58 = vpop.f32.mrf.mxu1  ;;  %v6799_v54 = vrot.slane %v9670_v50, 1 }
 0x518   : > { %v13114_v46 = vadd.f32 %v5702_v58, %v12925_v5  ;;  %v6910_v18 = vpop.f32.mrf.mxu0  ;;  %v6047_v2 = vsel %vm2209_vm3, %v6042_v22, %v6046_v16 }
 0x519   : > { %v6163_v34 = vpop.f32.mrf.mxu2  ;;  %v13117_v21 = vadd.f32 %v6910_v18, %v6722_v53 }
 0x51a   : > { %v6229_v40 = vadd.f32 %v6163_v34, %v12973_v26  ;;  %7209 = vmatmul.bf16.gmra.mxu1 %v13786_v27  ;;  %v6797_v26 = vrot.slane %v9669_v6, 1  ;;  %v6543_v34 = vsel %vm2209_vm3, %v6538_v38, %v6542_v19  ;;  %v13788_v27 = vld [vmem:[#allocation9_spill] sm:$0xff] }
 0x51c   : > { %v6725_v31 = vadd.f32 %v6659_v56, %v6229_v40  ;;  %v6798_v59 = vsel %vm3076_vm4, %v6795_v24, %v6797_v26 }
 0x51e   : > { %v6661_v13 = vpop.f32.mrf.mxu3 }
 0x51f   : > { %v5704_v5 = vpop.f32.mrf.mxu1 }
 0x520   : > { %v13124_v53 = vadd.f32 %v5704_v5, %v12934_v39  ;;  %v6913_v56 = vpop.f32.mrf.mxu0 }
 0x521   : > { %v6165_v23 = vpop.f32.mrf.mxu2  ;;  %v13127_v58 = vadd.f32 %v6913_v56, %v6723_v36 }
 0x522   : > { %v6230_v32 = vadd.f32 %v6165_v23, %v12981_v11 }
 0x523   : > { %6952 = vmatmul.bf16.gmra.mxu0 %v6798_v59  ;;  %6703 = vmatmul.bf16.gmra.mxu3 %v6543_v34  ;;  %v13789_v34 = vld [vmem:[#allocation12_spill] sm:$0xff] }
 0x524   : > { %v6726_v51 = vadd.f32 %v6661_v13, %v6230_v32 }
 0x526   : > { %6207 = vmatmul.bf16.gmra.mxu2 %v6047_v2  ;;  %v6664_v7 = vpop.f32.mrf.mxu3 }
 0x527   : > { %v5707_v40 = vpop.f32.mrf.mxu1 }
 0x528   : > { %v13133_v39 = vadd.f32 %v5707_v40, %v12947_v15  ;;  %v6915_v18 = vpop.f32.mrf.mxu0 }
 0x529   : > { %v6168_v29 = vpop.f32.mrf.mxu2  ;;  %v13135_v60 = vadd.f32 %v6915_v18, %v6724_v10  ;;  %v6800_v10 = vsel %vm3076_vm4, %v6797_v26, %v6799_v54 }
 0x52a   : > { %v6231_v11 = vadd.f32 %v6168_v29, %v12992_v55  ;;  %7214 = vmatmul.bf16.gmra.mxu1 %v13788_v27 }
 0x52c   : > { %v6727_v36 = vadd.f32 %v6664_v7, %v6231_v11 }
 0x52e   : > { %v6666_v24 = vpop.f32.mrf.mxu3 }
 0x52f   : > { %v5709_v19 = vpop.f32.mrf.mxu1 }
 0x530   : > { %v13140_v13 = vadd.f32 %v5709_v19, %v12956_v8  ;;  %v6918_v55 = vpop.f32.mrf.mxu0 }
 0x531   : > { %v6170_v38 = vpop.f32.mrf.mxu2  ;;  %v13142_v6 = vadd.f32 %v6918_v55, %v6725_v31  ;;  %v6801_v31 = vrot.slane %v13110_v47, 1 }
 0x532   : > { %v6232_v14 = vadd.f32 %v6170_v38, %v13001_v35  ;;  %v13170_v38 = vld [vmem:[%s13384_s2 + $0x1] ss:$0 sm:$0xff] }
 0x533   : > { %6957 = vmatmul.bf16.gmra.mxu0 %v6800_v10 }
 0x534   : > { %v6728_v15 = vadd.f32 %v6666_v24, %v6232_v14 }
 0x536   : > { %v6669_v23 = vpop.f32.mrf.mxu3 }
 0x537   : > { %v5712_v22 = vpop.f32.mrf.mxu1 }
 0x538   : > { %v13147_v32 = vadd.f32 %v5712_v22, %v12966_v25  ;;  %v6920_v56 = vpop.f32.mrf.mxu0  ;;  %v6802_v25 = vsel %vm3076_vm4, %v6799_v54, %v6801_v31  ;;  %v13791_v31 = vld [vmem:[#allocation26_spill] sm:$0xff] }
 0x539   : > { %v6173_v5 = vpop.f32.mrf.mxu2  ;;  %v13149_v35 = vadd.f32 %v6920_v56, %v6726_v51  ;;  %v7483_v51 = vld [vmem:[%s13386_s4 + $0x78] sm:$0xff] }
 0x53a   : > { %v6233_v16 = vadd.f32 %v6173_v5, %v13012_v49  ;;  %7219 = vmatmul.bf16.gmra.mxu1 %v13789_v34  ;;  %7485 = vmatpush.msrb.mxu2 %v7483_v51 }
 0x53c   : > { %v6729_v8 = vadd.f32 %v6669_v23, %v6233_v16 }
 0x53e   : > { %v6671_v59 = vpop.f32.mrf.mxu3 }
 0x53f   : > { %v5714_v26 = vpop.f32.mrf.mxu1 }
 0x540   : > { %v13155_v29 = vadd.f32 %v5714_v26, %v12975_v20  ;;  %v6923_v49 = vpop.f32.mrf.mxu0 }
 0x541   : > { %v6175_v2 = vpop.f32.mrf.mxu2  ;;  %v13161_v40 = vadd.f32 %v6923_v49, %v6727_v36  ;;  %v13790_v36 = vld [vmem:[#allocation15_spill] sm:$0xff] }
 0x542   : > { %v6234_v7 = vadd.f32 %v6175_v2, %v13021_v3  ;;  %v13792_v2 = vld [vmem:[#allocation27_spill] sm:$0xff] }
 0x543   : > { %6962 = vmatmul.bf16.gmra.mxu0 %v6802_v25 }
 0x544   : > { %v6730_v11 = vadd.f32 %v6671_v59, %v6234_v7 }
 0x546   : > { %v6674_v47 = vpop.f32.mrf.mxu3 }
 0x547   : > { %v7185_v27 = vpop.f32.mrf.mxu1 }
 0x548   : > { %v7275_v20 = vadd.f32 %v7185_v27, %v12985_v1  ;;  %v6925_v24 = vpop.f32.mrf.mxu0 }
 0x549   : > { %v6178_v18 = vpop.f32.mrf.mxu2  ;;  %v13165_v50 = vadd.f32 %v6925_v24, %v6728_v15  ;;  %v7482_v15 = vld [vmem:[%s13386_s4 + $0x70] sm:$0xff]  ;;  %v13794_v24 = vld [vmem:[#allocation28_spill] sm:$0xff] }
 0x54a   : > { %v6235_v3 = vadd.f32 %v6178_v18, %v13032_v42  ;;  %7224 = vmatmul.bf16.gmra.mxu1 %v13790_v36  ;;  %v7316_v19 = vadd.f32 %v13170_v38, %v7275_v20  ;;  %7486 = vmatpush.msrb.mxu2 %v7482_v15 }
 0x54c   : > { %v6731_v54 = vadd.f32 %v6674_v47, %v6235_v3  ;;  %v7352_v22 = vmax.f32 %v7316_v19, 0.0  ;;  %v13793_v3 = vld [vmem:[#allocation67_spill] sm:$0xff] }
 0x54e   : > { %v6676_v14 = vpop.f32.mrf.mxu3  ;;  %v7388_v59 = vmul.f32 %v7352_v22, %v13791_v31 }
 0x54f   : > { %v7187_v10 = vpop.f32.mrf.mxu1 }
 0x550   : > { %v7276_v1 = vadd.f32 %v7187_v10, %v12994_v12  ;;  %v6928_v23 = vpop.f32.mrf.mxu0 }
 0x551   : > { %v6180_v55 = vpop.f32.mrf.mxu2  ;;  %v13179_v5 = vadd.f32 %v6928_v23, %v6729_v8 }
 0x552   : > { %v6236_v42 = vadd.f32 %v6180_v55, %v13041_v4  ;;  %v7317_v56 = vadd.f32 %v13170_v38, %v7276_v1  ;;  %v13795_v1 = vld [vmem:[#allocation29_spill] sm:$0xff] }
 0x554   : > { %v6732_v16 = vadd.f32 %v6676_v14, %v6236_v42  ;;  %v7353_v34 = vmax.f32 %v7317_v56, 0.0 }
 0x556   : > { %v7389_v26 = vmul.f32 %v7353_v34, %v13792_v2  ;;  %v6679_v8 = vpop.f32.mrf.mxu3 }
 0x557   : > { %v7190_v7 = vpop.f32.mrf.mxu1 }
 0x558   : > { %v7424_v12 = vadd.f32 %v7389_v26, %v7388_v59  ;;  %v7277_v25 = vadd.f32 %v7190_v7, %v13005_v63  ;;  %v6930_v51 = vpop.f32.mrf.mxu0  ;;  %v7481_v63 = vld [vmem:[%s13386_s4 + $0x68] sm:$0xff]  ;;  %v13796_v59 = vld [vmem:[#allocation71_spill] sm:$0xff] }
 0x559   : > { %v6183_v4 = vpop.f32.mrf.mxu2  ;;  %v13186_v47 = vadd.f32 %v6930_v51, %v6730_v11  ;;  %7487 = vmatpush.msrb.mxu2 %v7481_v63 }
 0x55a   : > { %v6237_v49 = vadd.f32 %v6183_v4, %v13052_v30  ;;  %v7318_v27 = vadd.f32 %v13170_v38, %v7277_v25  ;;  %7229 = vmatmul.bf16.gmra.mxu1 %v13793_v3 }
 0x55c   : > { %v6733_v18 = vadd.f32 %v6679_v8, %v6237_v49  ;;  %v7354_v20 = vmax.f32 %v7318_v27, 0.0  ;;  %v13798_v8 = vld [vmem:[#allocation33_spill] sm:$0xff] }
 0x55e   : > { %v7390_v36 = vmul.f32 %v7354_v20, %v13794_v24  ;;  %v7480_v24 = vld [vmem:[%s13386_s4 + $0x60] sm:$0xff] }
 0x55f   : > { %v7192_v19 = vpop.f32.mrf.mxu1  ;;  %7488 = vmatpush.msrb.mxu2 %v7480_v24 }
 0x560   : > { %v7425_v14 = vadd.f32 %v7424_v12, %v7390_v36  ;;  %v7278_v55 = vadd.f32 %v7192_v19, %v13014_v61  ;;  %v6933_v10 = vpop.f32.mrf.mxu0  ;;  %v13800_v19 = vld [vmem:[#allocation32_spill] sm:$0xff] }
 0x561   : > { %v13195_v30 = vadd.f32 %v6933_v10, %v6731_v54  ;;  %v13797_v54 = vld [vmem:[#allocation30_spill] sm:$0xff] }
 0x562   : > { %v7319_v11 = vadd.f32 %v13170_v38, %v7278_v55 }
 0x564   : > { %v7355_v42 = vmax.f32 %v7319_v11, 0.0 }
 0x566   : > { %v7391_v23 = vmul.f32 %v7355_v42, %v13795_v1 }
 0x567   : > { %v7195_v15 = vpop.f32.mrf.mxu1 }
 0x568   : > { %v7426_v22 = vadd.f32 %v7425_v14, %v7391_v23  ;;  %v7279_v56 = vadd.f32 %v7195_v15, %v13025_v37  ;;  %v6935_v34 = vpop.f32.mrf.mxu0 }
 0x569   : > { %v13200_v31 = vadd.f32 %v6935_v34, %v6732_v16 }
 0x56a   : > { %v7320_v61 = vadd.f32 %v13170_v38, %v7279_v56  ;;  %7234 = vmatmul.bf16.gmra.mxu1 %v13796_v59  ;;  %v7479_v56 = vld [vmem:[%s13386_s4 + $0x58] sm:$0xff] }
 0x56b   : > { %7489 = vmatpush.msrb.mxu2 %v7479_v56 }
 0x56c   : > { %v7356_v2 = vmax.f32 %v7320_v61, 0.0  ;;  %v13802_v61 = vld [vmem:[#allocation24_spill] sm:$0xff] }
 0x56e   : > { %v7392_v26 = vmul.f32 %v7356_v2, %v13797_v54 }
 0x56f   : > { %v7197_v4 = vpop.f32.mrf.mxu1 }
 0x570   : > { %v7427_v7 = vadd.f32 %v7426_v22, %v7392_v26  ;;  %v7280_v12 = vadd.f32 %v7197_v4, %v13034_v0  ;;  %v6938_v49 = vpop.f32.mrf.mxu0  ;;  %v13799_v0 = vld [vmem:[#allocation8_spill] sm:$0xff] }
 0x571   : > { %v13206_v25 = vadd.f32 %v6938_v49, %v6733_v18 }
 0x572   : > { %v7321_v51 = vadd.f32 %v13170_v38, %v7280_v12 }
 0x574   : > { %v7357_v37 = vmax.f32 %v7321_v51, 0.0 }
 0x576   : > { %v7393_v16 = vmul.f32 %v7357_v37, %v13798_v8 }
 0x577   : > { %v7200_v27 = vpop.f32.mrf.mxu1 }
 0x578   : > { %v7428_v3 = vadd.f32 %v7427_v7, %v7393_v16  ;;  %v7281_v20 = vadd.f32 %v7200_v27, %v13045_v57  ;;  %v13801_v57 = vld [vmem:[#allocation38_spill] sm:$0xff] }
 0x579   : > { %v7478_v16 = vld [vmem:[%s13386_s4 + $0x50] sm:$0xff] }
 0x57a   : > { %v7322_v36 = vadd.f32 %v13170_v38, %v7281_v20  ;;  %7239 = vmatmul.bf16.gmra.mxu1 %v13799_v0  ;;  %7490 = vmatpush.msrb.mxu2 %v7478_v16  ;;  %v7004_v16 = vld [vmem:[#allocation2 + $0xa4] sm:$0x3] }
 0x57c   : > { %v7358_v18 = vmax.f32 %v7322_v36, 0.0 }
 0x57e   : > { %v7394_v14 = vmul.f32 %v7358_v18, %v13800_v19 }
 0x57f   : > { %v7202_v55 = vpop.f32.mrf.mxu1 }
 0x580   : > { %v7429_v10 = vadd.f32 %v7428_v3, %v7394_v14  ;;  %v7282_v63 = vadd.f32 %v7202_v55, %v13054_v62  ;;  %v13803_v62 = vld [vmem:[#allocation39_spill] sm:$0xff]  ;;  %v13805_v3 = vld [vmem:[#allocation77_spill] sm:$0xff] }
 0x582   : > { %v7323_v11 = vadd.f32 %v13170_v38, %v7282_v63 }
 0x584   : > { %v7359_v42 = vmax.f32 %v7323_v11, 0.0 }
 0x586   : > { %v7395_v1 = vmul.f32 %v7359_v42, %v13801_v57  ;;  %v7477_v42 = vld [vmem:[%s13386_s4 + $0x48] sm:$0xff] }
 0x587   : > { %v7205_v23 = vpop.f32.mrf.mxu1  ;;  %7491 = vmatpush.msrb.mxu2 %v7477_v42 }
 0x588   : > { %v7430_v15 = vadd.f32 %v7429_v10, %v7395_v1  ;;  %v7283_v22 = vadd.f32 %v7205_v23, %v13065_v41  ;;  %v13804_v41 = vld [vmem:[#allocation42_spill] sm:$0xff] }
 0x589   : > { %v13808_v1 = vld [vmem:[#allocation82_spill] sm:$0xff] }
 0x58a   : > { %v7324_v34 = vadd.f32 %v13170_v38, %v7283_v22  ;;  %7244 = vmatmul.bf16.gmra.mxu1 %v13802_v61 }
 0x58c   : > { %v7360_v59 = vmax.f32 %v7324_v34, 0.0 }
 0x58e   : > { %v7396_v2 = vmul.f32 %v7360_v59, %v13803_v62 }
 0x58f   : > { %v7207_v54 = vpop.f32.mrf.mxu1 }
 0x590   : > { %v7431_v26 = vadd.f32 %v7430_v15, %v7396_v2  ;;  %v7284_v4 = vadd.f32 %v7207_v54, %v13074_v17  ;;  %v13806_v17 = vld [vmem:[#allocation43_spill] sm:$0xff] }
 0x592   : > { %v7325_v7 = vadd.f32 %v13170_v38, %v7284_v4 }
 0x594   : > { %v7361_v12 = vmax.f32 %v7325_v7, 0.0  ;;  %v13811_v7 = vld [vmem:[#allocation83_spill] sm:$0xff] }
 0x596   : > { %v7397_v49 = vmul.f32 %v7361_v12, %v13804_v41  ;;  %v13812_v41 = vld [vmem:[#allocation51_spill] sm:$0xff] }
 0x597   : > { %v7210_v51 = vpop.f32.mrf.mxu1 }
 0x598   : > { %v7432_v37 = vadd.f32 %v7431_v26, %v7397_v49  ;;  %v7285_v8 = vadd.f32 %v7210_v51, %v13085_v45  ;;  %v13807_v45 = vld [vmem:[#allocation47_spill] sm:$0xff] }
 0x59a   : > { %v7326_v27 = vadd.f32 %v13170_v38, %v7285_v8  ;;  %7249 = vmatmul.bf16.gmra.mxu1 %v13805_v3  ;;  %v7476_v8 = vld [vmem:[%s13386_s4 + $0x40] sm:$0xff] }
 0x59b   : > { %7492 = vmatpush.msrb.mxu2 %v7476_v8 }
 0x59c   : > { %v7362_v20 = vmax.f32 %v7326_v27, 0.0 }
 0x59e   : > { %v7398_v24 = vmul.f32 %v7362_v20, %v13806_v17  ;;  %v13813_v20 = vld [vmem:[#allocation53_spill] sm:$0xff] }
 0x59f   : > { %v7212_v36 = vpop.f32.mrf.mxu1 }
 0x5a0   : > { %v7433_v0 = vadd.f32 %v7432_v37, %v7398_v24  ;;  %v7286_v18 = vadd.f32 %v7212_v36, %v13094_v44  ;;  %v13809_v44 = vld [vmem:[#allocation46_spill] sm:$0xff] }
 0x5a2   : > { %v7327_v19 = vadd.f32 %v13170_v38, %v7286_v18 }
 0x5a4   : > { %v7363_v14 = vmax.f32 %v7327_v19, 0.0 }
 0x5a6   : > { %v7399_v55 = vmul.f32 %v7363_v14, %v13807_v45 }
 0x5a7   : > { %v7215_v10 = vpop.f32.mrf.mxu1 }
 0x5a8   : > { %v7434_v63 = vadd.f32 %v7433_v0, %v7399_v55  ;;  %v7287_v11 = vadd.f32 %v7215_v10, %v13105_v48  ;;  %v13810_v48 = vld [vmem:[#allocation50_spill] sm:$0xff]  ;;  %v13815_v10 = vld [vmem:[#allocation55_spill] sm:$0xff] }
 0x5aa   : > { %v7328_v57 = vadd.f32 %v13170_v38, %v7287_v11  ;;  %7254 = vmatmul.bf16.gmra.mxu1 %v13808_v1 }
 0x5ac   : > { %v7364_v23 = vmax.f32 %v7328_v57, 0.0 }
 0x5ae   : > { %v7400_v15 = vmul.f32 %v7364_v23, %v13809_v44  ;;  %v7475_v44 = vld [vmem:[%s13386_s4 + $0x38] sm:$0xff] }
 0x5af   : > { %v7217_v22 = vpop.f32.mrf.mxu1  ;;  %7493 = vmatpush.msrb.mxu2 %v7475_v44 }
 0x5b0   : > { %v7435_v56 = vadd.f32 %v7434_v63, %v7400_v15  ;;  %v7288_v34 = vadd.f32 %v7217_v22, %v13117_v21 }
 0x5b2   : > { %v7329_v61 = vadd.f32 %v13170_v38, %v7288_v34 }
 0x5b4   : > { %v7365_v59 = vmax.f32 %v7329_v61, 0.0 }
 0x5b6   : > { %v7401_v62 = vmul.f32 %v7365_v59, %v13810_v48  ;;  %v13817_v59 = vld [vmem:[#allocation81_spill] sm:$0xff] }
 0x5b7   : > { %v7220_v2 = vpop.f32.mrf.mxu1 }
 0x5b8   : > { %v7436_v54 = vadd.f32 %v7435_v56, %v7401_v62  ;;  %v7289_v26 = vadd.f32 %v7220_v2, %v13127_v58  ;;  %v7023_v58 = vunpack.c.l.b16 %v7004_v16  ;;  %v13816_v56 = vld [vmem:[#allocation59_spill] sm:$0xff] }
 0x5ba   : > { %v7330_v4 = vadd.f32 %v13170_v38, %v7289_v26  ;;  %7259 = vmatmul.bf16.gmra.mxu1 %v13811_v7  ;;  %v7024_v36 = vpack.c.b16 %v7023_v58, %v7023_v58  ;;  %v13818_v26 = vld [vmem:[#allocation58_spill] sm:$0xff] }
 0x5bc   : > { %v7366_v12 = vmax.f32 %v7330_v4, 0.0  ;;  %v7102_v14 = vshrl.u32 %v7024_v36, 16  ;;  %v7105_v45 = vshll.u32 %v7024_v36, 16 }
 0x5be   : > { %v7402_v49 = vmul.f32 %v7366_v12, %v13812_v41  ;;  %v7104_v42 = vrot.slane %v7102_v14, 1  ;;  %v7107_v57 = vrot.slane %v7105_v45, 2  ;;  %v6681_v14 = vpop.f32.mrf.mxu3 }
 0x5bf   : > { %v7222_v51 = vpop.f32.mrf.mxu1 }
 0x5c0   : > { %v7437_v37 = vadd.f32 %v7436_v54, %v7402_v49  ;;  %v7290_v21 = vadd.f32 %v7222_v51, %v13135_v60  ;;  %v13814_v60 = vld [vmem:[#allocation84_spill] sm:$0xff]  ;;  %v7108_v15 = vor.u32 %v7107_v57, %v7104_v42  ;;  %v7474_v49 = vld [vmem:[%s13386_s4 + $0x30] sm:$0xff] }
 0x5c1   : > { %7494 = vmatpush.msrb.mxu2 %v7474_v49 }
 0x5c2   : > { %v7331_v27 = vadd.f32 %v13170_v38, %v7290_v21  ;;  %v7109_v48 = vsel %vm3336_vm5, %v13817_v59, %v7108_v15  ;;  %v13819_v21 = vld [vmem:[#allocation34_spill] sm:$0xff] }
 0x5c4   : > { %v7367_v3 = vmax.f32 %v7331_v27, 0.0 }
 0x5c6   : > { %v7403_v17 = vmul.f32 %v7367_v3, %v13813_v20  ;;  %v13820_v20 = vld [vmem:[#allocation62_spill] sm:$0xff] }
 0x5c7   : > { %v7225_v24 = vpop.f32.mrf.mxu1 }
 0x5c8   : > { %v7438_v0 = vadd.f32 %v7437_v37, %v7403_v17  ;;  %v7291_v18 = vadd.f32 %v7225_v24, %v13142_v6 }
 0x5ca   : > { %v7332_v19 = vadd.f32 %v13170_v38, %v7291_v18  ;;  %7264 = vmatmul.bf16.gmra.mxu1 %v13814_v60  ;;  %v6185_v18 = vpop.f32.mrf.mxu2 }
 0x5cc   : > { %v7368_v55 = vmax.f32 %v7332_v19, 0.0 }
 0x5ce   : > { %v7404_v63 = vmul.f32 %v7368_v55, %v13815_v10  ;;  %v6940_v55 = vpop.f32.mrf.mxu0 }
 0x5cf   : > { %v7227_v11 = vpop.f32.mrf.mxu1 }
 0x5d0   : > { %v7439_v1 = vadd.f32 %v7438_v0, %v7404_v63  ;;  %v7292_v23 = vadd.f32 %v7227_v11, %v13149_v35  ;;  %v7473_v0 = vld [vmem:[%s13386_s4 + $0x28] sm:$0xff] }
 0x5d1   : > { %7495 = vmatpush.msrb.mxu2 %v7473_v0 }
 0x5d2   : > { %v7333_v6 = vadd.f32 %v13170_v38, %v7292_v23 }
 0x5d4   : > { %v7369_v22 = vmax.f32 %v7333_v6, 0.0  ;;  %v6684_v6 = vpop.f32.mrf.mxu3 }
 0x5d6   : > { %v7405_v34 = vmul.f32 %v7369_v22, %v13816_v56  ;;  %v6943_v56 = vpop.f32.mrf.mxu0 }
 0x5d7   : > { %v7230_v61 = vpop.f32.mrf.mxu1 }
 0x5d8   : > { %v7440_v62 = vadd.f32 %v7439_v1, %v7405_v34  ;;  %v7293_v2 = vadd.f32 %v7230_v61, %v13161_v40  ;;  %v13822_v1 = vld [vmem:[#allocation63_spill] sm:$0xff] }
 0x5da   : > { %v7334_v35 = vadd.f32 %v13170_v38, %v7293_v2  ;;  %7269 = vmatmul.bf16.gmra.mxu1 %v7109_v48  ;;  %v13823_v48 = vld [vmem:[#allocation14_spill] sm:$0xff] }
 0x5dc   : > { %v7370_v54 = vmax.f32 %v7334_v35, 0.0 }
 0x5de   : > { %v7406_v4 = vmul.f32 %v7370_v54, %v13818_v26  ;;  %v7472_v26 = vld [vmem:[%s13386_s4 + $0x20] sm:$0xff] }
 0x5df   : > { %v7232_v7 = vpop.f32.mrf.mxu1  ;;  %7496 = vmatpush.msrb.mxu2 %v7472_v26 }
 0x5e0   : > { %v7441_v12 = vadd.f32 %v7440_v62, %v7406_v4  ;;  %v7294_v41 = vadd.f32 %v7232_v7, %v13165_v50  ;;  %v6686_v4 = vpop.f32.mrf.mxu3  ;;  %v6945_v7 = vpop.f32.mrf.mxu0 }
 0x5e2   : > { %v7335_v51 = vadd.f32 %v13170_v38, %v7294_v41 }
 0x5e4   : > { %v7371_v37 = vmax.f32 %v7335_v51, 0.0  ;;  %v13824_v51 = vld [vmem:[#allocation13_spill] sm:$0xff] }
 0x5e6   : > { %v7407_v40 = vmul.f32 %v7371_v37, %v13819_v21 }
 0x5e7   : > { %v7235_v8 = vpop.f32.mrf.mxu1 }
 0x5e8   : > { %v7442_v16 = vadd.f32 %v7441_v12, %v7407_v40  ;;  %v7295_v27 = vadd.f32 %v7235_v8, %v13179_v5  ;;  %v13821_v5 = vld [vmem:[#allocation11_spill] sm:$0xff] }
 0x5ea   : > { %v7336_v58 = vadd.f32 %v13170_v38, %v7295_v27 }
 0x5ec   : > { %v7372_v3 = vmax.f32 %v7336_v58, 0.0  ;;  %v6689_v58 = vpop.f32.mrf.mxu3 }
 0x5ee   : > { %v7408_v17 = vmul.f32 %v7372_v3, %v13820_v20  ;;  %v6948_v20 = vpop.f32.mrf.mxu0 }
 0x5ef   : > { %v7237_v50 = vpop.f32.mrf.mxu1 }
 0x5f0   : > { %v7443_v24 = vadd.f32 %v7442_v16, %v7408_v17  ;;  %v7296_v36 = vadd.f32 %v7237_v50, %v13186_v47  ;;  %v6188_v47 = vpop.f32.mrf.mxu2  ;;  %v13825_v50 = vld [vmem:[#allocation16_spill] sm:$0xff] }
 0x5f2   : > { %v7337_v19 = vadd.f32 %v13170_v38, %v7296_v36 }
 0x5f4   : > { %v7373_v60 = vmax.f32 %v7337_v19, 0.0 }
 0x5f6   : > { %v7409_v45 = vmul.f32 %v7373_v60, %v13821_v5 }
 0x5f7   : > { %v7240_v10 = vpop.f32.mrf.mxu1 }
 0x5f8   : > { %v7444_v63 = vadd.f32 %v7443_v24, %v7409_v45  ;;  %v7297_v11 = vadd.f32 %v7240_v10, %v13195_v30  ;;  %v6190_v59 = vpop.f32.mrf.mxu2  ;;  %v6238_v30 = vadd.f32 %v6185_v18, %v13061_v28  ;;  %v6239_v28 = vadd.f32 %v6188_v47, %v13072_v52  ;;  %v7471_v52 = vld [vmem:[%s13386_s4 + $0x18] sm:$0xff] }
 0x5f9   : > { %v6240_v0 = vadd.f32 %v6190_v59, %v13081_v9  ;;  %7497 = vmatpush.msrb.mxu2 %v7471_v52 }
 0x5fa   : > { %v7338_v42 = vadd.f32 %v13170_v38, %v7297_v11  ;;  %v6734_v12 = vadd.f32 %v6681_v14, %v6238_v30  ;;  %v6735_v27 = vadd.f32 %v6684_v6, %v6239_v28 }
 0x5fb   : > { %v6736_v5 = vadd.f32 %v6686_v4, %v6240_v0 }
 0x5fc   : > { %v7374_v57 = vmax.f32 %v7338_v42, 0.0  ;;  %v6993_v49 = vadd.f32 %v6940_v55, %v6734_v12  ;;  %v6994_v17 = vadd.f32 %v6943_v56, %v6735_v27  ;;  %v6691_v55 = vpop.f32.mrf.mxu3  ;;  %v6950_v42 = vpop.f32.mrf.mxu0  ;;  %v13827_v56 = vld [vmem:[#allocation20_spill] sm:$0xff] }
 0x5fd   : > { %v6995_v10 = vadd.f32 %v6945_v7, %v6736_v5  ;;  %v13828_v7 = vld [vmem:[#allocation70_spill] sm:$0xff] }
 0x5fe   : > { %v7410_v23 = vmul.f32 %v7374_v57, %v13822_v1 }
 0x5ff   : > { %v7242_v44 = vpop.f32.mrf.mxu1 }
 0x600   : > { %v7445_v15 = vadd.f32 %v7444_v63, %v7410_v23  ;;  %v7298_v22 = vadd.f32 %v7242_v44, %v13200_v31  ;;  %v6193_v21 = vpop.f32.mrf.mxu2  ;;  %v13826_v63 = vld [vmem:[#allocation17_spill] sm:$0xff] }
 0x601   : > { %v6241_v9 = vadd.f32 %v6193_v21, %v13092_v33  ;;  %v7470_v33 = vld [vmem:[%s13386_s4 + $0x10] sm:$0xff] }
 0x602   : > { %v7339_v34 = vadd.f32 %v13170_v38, %v7298_v22  ;;  %7498 = vmatpush.msrb.mxu2 %v7470_v33 }
 0x603   : > { %v6737_v6 = vadd.f32 %v6689_v58, %v6241_v9 }
 0x604   : > { %v7375_v61 = vmax.f32 %v7339_v34, 0.0  ;;  %v6953_v30 = vpop.f32.mrf.mxu0 }
 0x605   : > { %v6996_v22 = vadd.f32 %v6948_v20, %v6737_v6 }
 0x606   : > { %v7411_v62 = vmul.f32 %v7375_v61, %v13823_v48  ;;  %v6694_v48 = vpop.f32.mrf.mxu3 }
 0x607   : > { %v7245_v2 = vpop.f32.mrf.mxu1 }
 0x608   : > { %v7446_v35 = vadd.f32 %v7445_v15, %v7411_v62  ;;  %v7299_v54 = vadd.f32 %v7245_v2, %v13206_v25  ;;  %v6195_v60 = vpop.f32.mrf.mxu2 }
 0x609   : > { %v6242_v59 = vadd.f32 %v6195_v60, %v13103_v43  ;;  %v13830_v60 = vld [vmem:[#allocation21_spill] sm:$0xff] }
 0x60a   : > { %v7340_v31 = vadd.f32 %v13170_v38, %v7299_v54 }
 0x60b   : > { %v6738_v54 = vadd.f32 %v6691_v55, %v6242_v59 }
 0x60c   : > { %v7376_v41 = vmax.f32 %v7340_v31, 0.0 }
 0x60d   : > { %v6997_v31 = vadd.f32 %v6950_v42, %v6738_v54 }
 0x60e   : > { %v7412_v37 = vmul.f32 %v7376_v41, %v13824_v51 }
 0x60f   : > { %v7247_v40 = vpop.f32.mrf.mxu1 }
 0x610   : > { %v7447_v8 = vadd.f32 %v7446_v35, %v7412_v37  ;;  %v7300_v25 = vadd.f32 %v7247_v40, %v6993_v49  ;;  %v6198_v44 = vpop.f32.mrf.mxu2  ;;  %v6696_v37 = vpop.f32.mrf.mxu3 }
 0x611   : > { %v6243_v43 = vadd.f32 %v6198_v44, %v13114_v46  ;;  %v6955_v40 = vpop.f32.mrf.mxu0  ;;  %v7469_v46 = vld [vmem:[%s13386_s4 + $0x8] sm:$0xff] }
 0x612   : > { %v7341_v16 = vadd.f32 %v13170_v38, %v7300_v25  ;;  %7499 = vmatpush.msrb.mxu2 %v7469_v46 }
 0x613   : > { %v6739_v28 = vadd.f32 %v6694_v48, %v6243_v43  ;;  %v13832_v48 = vld [vmem:[#allocation23_spill] sm:$0xff]  ;;  %v13833_v43 = vld [vmem:[#allocation25_spill] sm:$0xff] }
 0x614   : > { %v7377_v3 = vmax.f32 %v7341_v16, 0.0  ;;  %v13829_v16 = vld [vmem:[#allocation74_spill] sm:$0xff] }
 0x615   : > { %v6998_v25 = vadd.f32 %v6953_v30, %v6739_v28 }
 0x616   : > { %v7413_v24 = vmul.f32 %v7377_v3, %v13825_v50 }
 0x617   : > { %v7250_v36 = vpop.f32.mrf.mxu1 }
 0x618   : > { %v7448_v18 = vadd.f32 %v7447_v8, %v7413_v24  ;;  %v7301_v19 = vadd.f32 %v7250_v36, %v6994_v17  ;;  %v6200_v4 = vpop.f32.mrf.mxu2  ;;  %v6699_v0 = vpop.f32.mrf.mxu3 }
 0x619   : > { %v6244_v20 = vadd.f32 %v6200_v4, %v13124_v53 }
 0x61a   : > { %v7342_v14 = vadd.f32 %v13170_v38, %v7301_v19  ;;  %v6958_v19 = vpop.f32.mrf.mxu0 }
 0x61b   : > { %v6740_v36 = vadd.f32 %v6696_v37, %v6244_v20 }
 0x61c   : > { %v7378_v45 = vmax.f32 %v7342_v14, 0.0 }
 0x61d   : > { %v6999_v52 = vadd.f32 %v6955_v40, %v6740_v36 }
 0x61e   : > { %v7414_v11 = vmul.f32 %v7378_v45, %v13826_v63 }
 0x61f   : > { %v7252_v47 = vpop.f32.mrf.mxu1 }
 0x620   : > { %v7449_v57 = vadd.f32 %v7448_v18, %v7414_v11  ;;  %v7302_v1 = vadd.f32 %v7252_v47, %v6995_v10  ;;  %v6203_v58 = vpop.f32.mrf.mxu2  ;;  %v6701_v47 = vpop.f32.mrf.mxu3 }
 0x621   : > { %v6245_v45 = vadd.f32 %v6203_v58, %v13133_v39  ;;  %v13834_v58 = vld [vmem:[#allocation75_spill] sm:$0xff] }
 0x622   : > { %v7343_v23 = vadd.f32 %v13170_v38, %v7302_v1 }
 0x623   : > { %v6741_v11 = vadd.f32 %v6699_v0, %v6245_v45 }
 0x624   : > { %v7379_v15 = vmax.f32 %v7343_v23, 0.0  ;;  %v6960_v23 = vpop.f32.mrf.mxu0 }
 0x625   : > { %v7000_v9 = vadd.f32 %v6958_v19, %v6741_v11 }
 0x626   : > { %v7415_v34 = vmul.f32 %v7379_v15, %v13827_v56 }
 0x627   : > { %v7255_v61 = vpop.f32.mrf.mxu1 }
 0x628   : > { %v7450_v62 = vadd.f32 %v7449_v57, %v7415_v34  ;;  %v7303_v2 = vadd.f32 %v7255_v61, %v6996_v22  ;;  %v6205_v10 = vpop.f32.mrf.mxu2  ;;  %v13831_v57 = vld [vmem:[#allocation22_spill] sm:$0xff] }
 0x629   : > { %v6246_v6 = vadd.f32 %v6205_v10, %v13140_v13  ;;  %v7468_v13 = vld [vmem:[%s13386_s4] sm:$0xff] }
 0x62a   : > { %v7344_v35 = vadd.f32 %v13170_v38, %v7303_v2  ;;  %v6704_v2 = vpop.f32.mrf.mxu3  ;;  %7500 = vmatpush.msrb.mxu2 %v7468_v13 }
 0x62b   : > { %v6742_v34 = vadd.f32 %v6701_v47, %v6246_v6 }
 0x62c   : > { %v7380_v26 = vmax.f32 %v7344_v35, 0.0 }
 0x62d   : > { %v7001_v59 = vadd.f32 %v6960_v23, %v6742_v34 }
 0x62e   : > { %v7416_v12 = vmul.f32 %v7380_v26, %v13828_v7  ;;  %v6963_v26 = vpop.f32.mrf.mxu0 }
 0x62f   : > { %v7257_v41 = vpop.f32.mrf.mxu1 }
 0x630   : > { %v7451_v49 = vadd.f32 %v7450_v62, %v7416_v12  ;;  %v7304_v51 = vadd.f32 %v7257_v41, %v6997_v31  ;;  %v6208_v39 = vpop.f32.mrf.mxu2 }
 0x631   : > { %v6247_v30 = vadd.f32 %v6208_v39, %v13147_v32 }
 0x632   : > { %v7345_v21 = vadd.f32 %v13170_v38, %v7304_v51  ;;  %v6706_v40 = vpop.f32.mrf.mxu3 }
 0x633   : > { %v6743_v31 = vadd.f32 %v6704_v2, %v6247_v30 }
 0x634   : > { %v7381_v8 = vmax.f32 %v7345_v21, 0.0 }
 0x635   : > { %v7002_v41 = vadd.f32 %v6963_v26, %v6743_v31 }
 0x636   : > { %v7417_v27 = vmul.f32 %v7381_v8, %v13829_v16  ;;  %v6965_v8 = vpop.f32.mrf.mxu0 }
 0x637   : > { %v7260_v3 = vpop.f32.mrf.mxu1 }
 0x638   : > { %v7452_v17 = vadd.f32 %v7451_v49, %v7417_v27  ;;  %v7305_v50 = vadd.f32 %v7260_v3, %v6998_v25  ;;  %v6210_v12 = vpop.f32.mrf.mxu2 }
 0x639   : > { %v6248_v37 = vadd.f32 %v6210_v12, %v13155_v29  ;;  %v13835_v29 = vld [vmem:[#allocation76_spill] sm:$0xff] }
 0x63a   : > { %v7346_v24 = vadd.f32 %v13170_v38, %v7305_v50 }
 0x63b   : > { %v6744_v25 = vadd.f32 %v6706_v40, %v6248_v37 }
 0x63c   : > { %v7382_v18 = vmax.f32 %v7346_v24, 0.0 }
 0x63d   : > { %v7003_v27 = vadd.f32 %v6965_v8, %v6744_v25 }
 0x63e   : > { %v7418_v14 = vmul.f32 %v7382_v18, %v13830_v60 }
 0x63f   : > { %v7262_v5 = vpop.f32.mrf.mxu1 }
 0x640   : > { %v7453_v53 = vadd.f32 %v7452_v17, %v7418_v14  ;;  %v7306_v55 = vadd.f32 %v7262_v5, %v6999_v52 }
 0x642   : > { %v7347_v63 = vadd.f32 %v13170_v38, %v7306_v55 }
 0x644   : > { %v7383_v42 = vmax.f32 %v7347_v63, 0.0 }
 0x646   : > { %v7419_v1 = vmul.f32 %v7383_v42, %v13831_v57 }
 0x647   : > { %v7265_v44 = vpop.f32.mrf.mxu1 }
 0x648   : > { %v7454_v15 = vadd.f32 %v7453_v53, %v7419_v1  ;;  %v7307_v22 = vadd.f32 %v7265_v44, %v7000_v9 }
 0x64a   : > { %v7348_v56 = vadd.f32 %v13170_v38, %v7307_v22 }
 0x64c   : > { %v7384_v61 = vmax.f32 %v7348_v56, 0.0 }
 0x64e   : > { %v7420_v62 = vmul.f32 %v7384_v61, %v13832_v48 }
 0x64f   : > { %v7267_v33 = vpop.f32.mrf.mxu1 }
 0x650   : > { %v7455_v35 = vadd.f32 %v7454_v15, %v7420_v62  ;;  %v7308_v54 = vadd.f32 %v7267_v33, %v7001_v59 }
 0x652   : > { %v7349_v4 = vadd.f32 %v13170_v38, %v7308_v54 }
 0x654   : > { %v7385_v7 = vmax.f32 %v7349_v4, 0.0 }
 0x656   : > { %v7421_v49 = vmul.f32 %v7385_v7, %v13833_v43 }
 0x657   : > { %v7270_v51 = vpop.f32.mrf.mxu1 }
 0x658   : > { %v7456_v32 = vadd.f32 %v7455_v35, %v7421_v49  ;;  %v7309_v21 = vadd.f32 %v7270_v51, %v7002_v41 }
 0x65a   : > { %v7350_v28 = vadd.f32 %v13170_v38, %v7309_v21 }
 0x65c   : > { %v7386_v16 = vmax.f32 %v7350_v28, 0.0 }
 0x65e   : > { %v7422_v3 = vmul.f32 %v7386_v16, %v13834_v58 }
 0x65f   : > { %v7272_v20 = vpop.f32.mrf.mxu1 }
 0x660   : > { %v7457_v17 = vadd.f32 %v7456_v32, %v7422_v3  ;;  %v7310_v50 = vadd.f32 %v7272_v20, %v7003_v27 }
 0x662   : > { %v7351_v46 = vadd.f32 %v13170_v38, %v7310_v50  ;;  %v7484_v38 = vld [vmem:[%s13387_s5] sm:$0x1] }
 0x664   : > { %v7387_v24 = vmax.f32 %v7351_v46, 0.0 }
 0x666   : > { %v7423_v36 = vmul.f32 %v7387_v24, %v13835_v29 }
 0x668   : > { %v7459_v0 = vsel %vm7458_vm6, %v7423_v36, 0.0 }
 0x669   : > { %v7460_v18 = vadd.f32 %v7459_v0, %v7457_v17 }
 0x66b   : > { %v7461_v19 = vrot.slane %v7460_v18, 4 }
 0x66d   : > { %v7462_v52 = vadd.f32 %v7461_v19, %v7460_v18 }
 0x66f   : > { %v7463_v60 = vrot.slane %v7462_v52, 2 }
 0x671   : > { %v7464_v14 = vadd.f32 %v7463_v60, %v7462_v52 }
 0x673   : > { %v7465_v5 = vrot.slane %v7464_v14, 1 }
 0x675   : > { %v7466_v45 = vadd.f32 %v7465_v5, %v7464_v14 }
 0x677   : > { %v7467_v53 = vmul.f32 0.00390625, %v7466_v45 }
 0x679   : > { %7501 = vmatmul.f32.vlgmr.msrb.gmra.mxu2 %v7467_v53 }
 0x6fc   : > { %v7502_v55 = vpop.f32.mrf.mxu2 }
 0x6fd   : > { %v7503_v10 = vadd.f32 %v7502_v55, %v7484_v38 }
 0x6ff   : > { %7505 = vst [vmem:[%s244_s10] sm:$0x1] %v7503_v10 }
 0x700   : > { %9701 = shalt.err (!%p9698_p3)
}
 0x701   : > { %9606 = dma.vmem_to_hbm [thread:$0]  (%p9812_p5), %s7518_s19, 16, %s7520_s20, %s7507_s26  }
 0x702 PF: > { %p9612_p4 = scmp.ge.s32.totalorder %s9736_s24, 2  ;;  %s7531_s13 = sand.u32 1, %s9724_s21  }
 0x703   : > { %s7532_s15 = scalar_lea.sflag [#allocation4], %s7531_s13 }
 0x704   : > { %p9609_p7 = pnand %p9612_p4, %p9816_p6 }
 0x706   : > { %p9610_p8 = pneg %p9609_p7 }
 0x708   : > { %9719 = dma.done.wait (%p9610_p8), %s7532_s15, 16  }
 0x709   : > { %9721 = vsyncadd (%p9610_p8), %s7532_s15, 4294967280  ;;  %p16_p9 = scmp.ge.s32.totalorder %s9799_s27, 4   ;;  %s13836_s21 = smov %s9728_s22 }
 0x70a   : > { %s13837_s22 = smov %s9732_s23  ;;  %s13838_s23 = smov %s9810_s30 }
 0x70b   : > { %s13839_s24 = smov %s9799_s27  ;;  %18 = sbr.rel (!%p16_p9) target bundleno = 3 (0x3), region = 97 }
 0x710   :  { %7537 = vsyncpa [#allocation4], 1 }
 0x711   :  { %7539 = vsyncpa [#allocation4 + $0x1], 1 }

</bundles_post_ra>
